<compile_context>
chip_gen: v7x
topology: tpu7x:2x2x1
jax: 0.10.0
libtpu: 0.0.40
codegen_flags: <defaults>
</compile_context>

<pallas_src>
import math
from functools import partial

import jax
import jax.numpy as jnp
from jax.experimental import pallas as pl
from jax.experimental.pallas import tpu as pltpu

VMEM_SPEC = pl.BlockSpec(memory_space=pltpu.MemorySpace.VMEM)
SMEM_SPEC = pl.BlockSpec(memory_space=pltpu.MemorySpace.SMEM)

HIDDEN = 32            # hidden_size
INTER = 4 * HIDDEN     # FFN intermediate size (=128, full lane width)
PATCH = 4              # ViT patch size
VOCAB = 100
NUM_TEXT_LAYERS = 6    # "first 6 layers of BERT"
NUM_VIS_LAYERS = 2     # synthetic ViT depth
NEG_BIAS = -1e9


# ----------------------------------------------------------------------------
# Kernel factory
# ----------------------------------------------------------------------------
def _make_kernel(*, B, S, s_img_pad, generate_negatives):
    H = HIDDEN
    I = INTER
    BF = jnp.bfloat16
    F32 = jnp.float32

    def _layernorm(x, g, b, eps=1e-12):
        mu = jnp.mean(x, axis=-1, keepdims=True)
        var = jnp.mean(jnp.square(x - mu), axis=-1, keepdims=True)
        return (x - mu) * jax.lax.rsqrt(var + eps) * g + b

    def _encoder(xf, bias, w32_ref, w1_ref, vec_ref):
        """Fused transformer stack on the flattened [N, H] hidden state.

        xf:   [N, H] f32           (N = B * seq, all batches stacked)
        bias: [N, N] f32           block-diag batch mask + key-pad mask, hoisted
        w32_ref: [L, 4H+I, H] bf16 (wq|wk|wv|wo|w2 stacked along sublanes;
                                    the 1/sqrt(H) scale is folded into wq)
        w1_ref:  [L, H, I]    bf16
        vec_ref: [L, 16, 128] f32  per-layer biases / LayerNorm params
        """
        num_layers = w32_ref.shape[0]
        for l in range(num_layers):                    # static unroll
            x16 = xf.astype(BF)
            # TODO(synk): single-head attention over the full hidden dim
            # (synthetic encoders); a real BERT/ViT layer is multi-head.
            q = jnp.dot(x16, w32_ref[l, 0:H, :],
                        preferred_element_type=F32) + vec_ref[l, 0:1, 0:H]
            k = jnp.dot(x16, w32_ref[l, H:2 * H, :],
                        preferred_element_type=F32) + vec_ref[l, 1:2, 0:H]
            v = jnp.dot(x16, w32_ref[l, 2 * H:3 * H, :],
                        preferred_element_type=F32) + vec_ref[l, 2:3, 0:H]
            # Block-diagonal attention over all batches at once: one NxN matmul.
            scores = jax.lax.dot_general(
                q.astype(BF), k.astype(BF),
                (((1,), (1,)), ((), ())),
                preferred_element_type=F32) + bias
            # No max-subtraction: scores are tiny (0.02-scale weights), masked
            # keys sit at -1e9 and underflow to exactly 0.
            p = jnp.exp(scores)
            p = p * pl.reciprocal(jnp.sum(p, axis=-1, keepdims=True), approx=True)
            ctx = jnp.dot(p.astype(BF), v.astype(BF), preferred_element_type=F32)
            attn = jnp.dot(ctx.astype(BF), w32_ref[l, 3 * H:4 * H, :],
                           preferred_element_type=F32) + vec_ref[l, 3:4, 0:H]
            h = _layernorm(xf + attn, vec_ref[l, 4:5, 0:H], vec_ref[l, 5:6, 0:H])
            # TODO(synk): tanh-approximate GELU (PyTorch nn.GELU defaults to erf).
            ffn = jax.nn.gelu(
                jnp.dot(h.astype(BF), w1_ref[l], preferred_element_type=F32)
                + vec_ref[l, 6:7, :],
                approximate=True)
            ffn = jnp.dot(ffn.astype(BF), w32_ref[l, 4 * H:4 * H + I, :],
                          preferred_element_type=F32) + vec_ref[l, 7:8, 0:H]
            xf = _layernorm(h + ffn, vec_ref[l, 8:9, 0:H], vec_ref[l, 9:10, 0:H])
        return xf

    def kernel(*refs):
        i = 0
        if generate_negatives:
            perm_ref = refs[0]          # [B] int32 in SMEM
            i = 1
        (aug_ref, aug_w_ref, vis_bias_ref, vis_w32_ref, vis_w1_ref, vis_vec_ref,
         emb_ref, txt_bias_ref, txt_w32_ref, txt_w1_ref, txt_vec_ref,
         head_w_ref, head_vec_ref) = refs[i:i + 13]
        out_ref = refs[i + 13]
        cls_scratch = refs[i + 14] if generate_negatives else None

        # ---- vision encoder: patch-embed + patch-bias + CLS + positions folded
        #      into one bf16 matmul against the augmented design matrix.
        vis_tok = jnp.dot(aug_ref[...], aug_w_ref[...], preferred_element_type=F32)
        vis_flat = _encoder(vis_tok, vis_bias_ref[...],
                            vis_w32_ref, vis_w1_ref, vis_vec_ref)

        # ---- text encoder: embedding LayerNorm + 6 layers.
        emb = _layernorm(emb_ref[...],
                         head_vec_ref[0:1, 0:H], head_vec_ref[1:2, 0:H])
        txt_flat = _encoder(emb, txt_bias_ref[...],
                            txt_w32_ref, txt_w1_ref, txt_vec_ref)

        # ---- CLS extraction: static, sublane-aligned row slices (no selectors).
        img_cls = jnp.concatenate(
            [vis_flat[b * s_img_pad:b * s_img_pad + 1, :] for b in range(B)], axis=0)
        txt_cls = jnp.concatenate(
            [txt_flat[b * S:b * S + 1, :] for b in range(B)], axis=0)

        # projection(concat(img, txt)) == img @ Wp[:H] + txt @ Wp[H:] + bp
        img_part = jnp.dot(img_cls.astype(BF), head_w_ref[0:H, :],
                           preferred_element_type=F32)
        txt_part = jnp.dot(txt_cls.astype(BF), head_w_ref[H:2 * H, :],
                           preferred_element_type=F32)
        proj_b = head_vec_ref[2:3, 0:H]
        cls_b = head_vec_ref[3:4, 0:H]          # only lanes 0:2 are real
        cls_w = head_w_ref[2 * H:3 * H, :]      # [H, 32], lanes 0:2 are real

        pos_h = img_part + txt_part + proj_b
        pos_logits = jnp.dot(pos_h.astype(BF), cls_w,
                             preferred_element_type=F32) + cls_b

        if generate_negatives:
            # Negative pairs: gather txt_part rows by the permutation held in
            # SMEM, via dynamic leading-dim indexing of a tiny VMEM scratch.
            for b in range(B):
                cls_scratch[b] = txt_part[b:b + 1, :]
            neg_txt_part = jnp.concatenate(
                [cls_scratch[perm_ref[b]] for b in range(B)], axis=0)
            neg_h = img_part + neg_txt_part + proj_b
            neg_logits = jnp.dot(neg_h.astype(BF), cls_w,
                                 preferred_element_type=F32) + cls_b
            out_ref[...] = jnp.concatenate([pos_logits, neg_logits], axis=0)
        else:
            out_ref[...] = pos_logits

    return kernel


# ----------------------------------------------------------------------------
# Deterministic parameter initialization — weights are pre-packed into slabs
# (bf16 for matmul operands, f32 for biases / LayerNorm params).
# ----------------------------------------------------------------------------
def _pack_layers(key, num_layers, H, I):
    ks = jax.random.split(key, 6)
    w = lambda k, s: jax.random.normal(k, s, jnp.float32) * 0.02
    L = num_layers
    scale = 1.0 / math.sqrt(H)
    wq = w(ks[0], (L, H, H)) * scale            # fold 1/sqrt(H) into Wq (& bq)
    wk = w(ks[1], (L, H, H))
    wv = w(ks[2], (L, H, H))
    wo = w(ks[3], (L, H, H))
    w1 = w(ks[4], (L, H, I))
    w2 = w(ks[5], (L, I, H))
    # [L, 4H+I, H] bf16: wq | wk | wv | wo | w2 stacked along sublanes.
    w32 = jnp.concatenate([wq, wk, wv, wo, w2], axis=1).astype(jnp.bfloat16)

    zrow = lambda: jnp.zeros((L, 1, 128), jnp.float32)
    onerow = jnp.zeros((L, 1, 128), jnp.float32).at[:, :, :H].set(1.0)
    vec = jnp.concatenate([
        zrow(), zrow(), zrow(), zrow(),   # bq*scale, bk, bv, bo (zero-init)
        onerow, zrow(),                   # ln1 gamma, beta
        zrow(), zrow(),                   # b1 (lanes 0:I), b2
        onerow, zrow(),                   # ln2 gamma, beta
        jnp.zeros((L, 6, 128), jnp.float32),
    ], axis=1)                            # [L, 16, 128] f32
    return dict(w32=w32, w1=w1.astype(jnp.bfloat16), vec=vec)


def init_params(key, *, channels, img_size, seq_len):
    H, I = HIDDEN, INTER
    n_patches = (img_size // PATCH) ** 2
    patch_dim = channels * PATCH * PATCH
    s_img = n_patches + 1
    s_img_pad = -(-s_img // 8) * 8
    aug_cols = -(-(patch_dim + 2 + s_img_pad) // 128) * 128
    ks = jax.random.split(key, 9)
    w = lambda k, s: jax.random.normal(k, s, jnp.float32) * 0.02

    # Augmented patch-embedding weight: [Wpatch ; bpatch ; cls ; pos ; 0-pad]
    vis_patch_w = w(ks[0], (patch_dim, H))
    vis_patch_b = jnp.zeros((1, H), jnp.float32)
    vis_cls = w(ks[1], (1, H))
    vis_pos = w(ks[2], (s_img, H))
    aug_w = jnp.concatenate([
        vis_patch_w, vis_patch_b, vis_cls, vis_pos,
        jnp.zeros((s_img_pad - s_img, H), jnp.float32),
        jnp.zeros((aug_cols - (patch_dim + 2 + s_img_pad), H), jnp.float32),
    ], axis=0).astype(jnp.bfloat16)                     # [aug_cols, H]

    # Head: proj (2H->H) and cls (H->2, lane-padded to 32) stacked.
    proj_w = w(ks[7], (2 * H, H))
    cls_w = w(ks[8], (H, 2))
    head_w = jnp.concatenate(
        [proj_w, jnp.zeros((H, H), jnp.float32).at[:, :2].set(cls_w)],
        axis=0).astype(jnp.bfloat16)                    # [3H, H]
    head_vec = jnp.zeros((8, 128), jnp.float32)
    head_vec = head_vec.at[0, :H].set(1.0)              # text embedding LN gamma
    # row 1: emb LN beta, row 2: proj bias, row 3: cls bias (all zero-init)

    return dict(
        aug_w=aug_w,
        vis=_pack_layers(ks[3], NUM_VIS_LAYERS, H, I),
        tok_emb=w(ks[4], (VOCAB, H)),
        txt_pos=w(ks[5], (seq_len, H)),
        txt=_pack_layers(ks[6], NUM_TEXT_LAYERS, H, I),
        head_w=head_w,
        head_vec=head_vec,
    )


# ----------------------------------------------------------------------------
# Forward pass (mirrors ImageTextMatching.forward) — one pallas_call total
# ----------------------------------------------------------------------------
@partial(jax.jit, static_argnames=("generate_negatives",))
def image_text_matching_forward(params, images, input_ids, attention_mask,
                                perm_key, generate_negatives=True):
    B, C, Hh, Ww = images.shape
    hp, wp = Hh // PATCH, Ww // PATCH
    n_patches = hp * wp
    patch_dim = C * PATCH * PATCH
    s_img = n_patches + 1
    s_img_pad = -(-s_img // 8) * 8
    S = input_ids.shape[1]
    H = HIDDEN
    aug_cols = -(-(patch_dim + 2 + s_img_pad) // 128) * 128

    # ---- JAX glue: NCHW -> patch rows -> augmented design matrix so that
    #      aug @ [Wpatch ; bpatch ; cls ; pos] builds CLS + patch tokens + their
    #      position embeddings in ONE bf16 matmul inside the kernel.
    patches = images.reshape(B, C, hp, PATCH, wp, PATCH)
    patches = patches.transpose(0, 2, 4, 1, 3, 5).reshape(B, n_patches, patch_dim)
    feat = jnp.concatenate(
        [jnp.zeros((B, 1, patch_dim), jnp.float32), patches], axis=1)
    feat = jnp.pad(feat, ((0, 0), (0, s_img_pad - s_img), (0, 0)))
    is_patch = jnp.pad(
        jnp.concatenate([jnp.zeros((1,), jnp.float32),
                         jnp.ones((n_patches,), jnp.float32)]),
        (0, s_img_pad - s_img))
    is_cls = jnp.zeros((s_img_pad,), jnp.float32).at[0].set(1.0)
    flags = jnp.stack([is_patch, is_cls], axis=-1)                    # [S_img, 2]
    pos_oh = jnp.eye(s_img_pad, dtype=jnp.float32)
    extra = jnp.concatenate(
        [flags, pos_oh,
         jnp.zeros((s_img_pad, aug_cols - (patch_dim + 2 + s_img_pad)),
                   jnp.float32)], axis=-1)
    aug = jnp.concatenate(
        [feat, jnp.broadcast_to(extra[None], (B, s_img_pad, extra.shape[-1]))],
        axis=-1).reshape(B * s_img_pad, aug_cols).astype(jnp.bfloat16)

    # ---- Hoisted attention biases: block-diagonal batch mask + key padding,
    #      built once and reused by every layer inside the kernel.
    vis_bid = jnp.repeat(jnp.arange(B), s_img_pad)
    vis_kvalid = jnp.tile(jnp.arange(s_img_pad) < s_img, (B,))
    vis_bias = jnp.where(
        (vis_bid[:, None] == vis_bid[None, :]) & vis_kvalid[None, :],
        0.0, NEG_BIAS).astype(jnp.float32)
    txt_bid = jnp.repeat(jnp.arange(B), S)
    txt_kvalid = attention_mask.reshape(-1) > 0
    txt_bias = jnp.where(
        (txt_bid[:, None] == txt_bid[None, :]) & txt_kvalid[None, :],
        0.0, NEG_BIAS).astype(jnp.float32)

    # ---- JAX glue: token-embedding gather + positions, flattened to [B*S, H]
    emb = (params["tok_emb"][input_ids] + params["txt_pos"][None, :S, :])
    emb = emb.reshape(B * S, H).astype(jnp.float32)

    args = [aug, params["aug_w"], vis_bias,
            params["vis"]["w32"], params["vis"]["w1"], params["vis"]["vec"],
            emb, txt_bias,
            params["txt"]["w32"], params["txt"]["w1"], params["txt"]["vec"],
            params["head_w"], params["head_vec"]]
    in_specs = [VMEM_SPEC] * len(args)
    scratch_shapes = []
    if generate_negatives:
        perm = jax.random.permutation(perm_key, B).astype(jnp.int32)  # randperm
        args = [perm] + args
        in_specs = [SMEM_SPEC] + in_specs
        scratch_shapes = [pltpu.VMEM((B, 1, H), jnp.float32)]

    out_rows = 2 * B if generate_negatives else B
    logits_full = pl.pallas_call(
        _make_kernel(B=B, S=S, s_img_pad=s_img_pad,
                     generate_negatives=generate_negatives),
        out_shape=jax.ShapeDtypeStruct((out_rows, HIDDEN), jnp.float32),
        in_specs=in_specs,
        out_specs=VMEM_SPEC,
        scratch_shapes=scratch_shapes,
    )(*args)
    logits = logits_full[:, :2]        # lanes 2:32 are structural zeros

    labels = jnp.ones((B,), jnp.int32)
    if generate_negatives:
        labels = jnp.concatenate([labels, jnp.zeros((B,), jnp.int32)], axis=0)
    return logits, labels


# ----------------------------------------------------------------------------
if __name__ == "__main__":
    key = jax.random.PRNGKey(0)
    k_param, k_img, k_ids, k_perm = jax.random.split(key, 4)

    B, C, IMG, SEQ = 2, 4, 16, 8
    params = init_params(k_param, channels=C, img_size=IMG, seq_len=SEQ)
    images = jax.random.normal(k_img, (B, C, IMG, IMG), jnp.float32)
    input_ids = jax.random.randint(k_ids, (B, SEQ), 0, VOCAB)
    attention_mask = jnp.array([[1] * SEQ, [1] * (SEQ - 2) + [0] * 2], jnp.int32)

    logits, labels = image_text_matching_forward(
        params, images, input_ids, attention_mask, k_perm,
        generate_negatives=True)
    logits, labels = jax.block_until_ready((logits, labels))

    assert logits.shape == (2 * B, 2), logits.shape
    assert labels.shape == (2 * B,), labels.shape
    assert bool(jnp.all(jnp.isfinite(logits)))
    print("KERNEL_OK")
</pallas_src>

<mosaic_0001>
module attributes {stable_mosaic.version = 11 : i64} {
  func.func @kernel(%arg0: memref<2xi32, #tpu.memory_space<smem>>, %arg1: memref<48x128xbf16, #tpu.memory_space<vmem>>, %arg2: memref<128x32xbf16, #tpu.memory_space<vmem>>, %arg3: memref<48x48xf32, #tpu.memory_space<vmem>>, %arg4: memref<2x256x32xbf16, #tpu.memory_space<vmem>>, %arg5: memref<2x32x128xbf16, #tpu.memory_space<vmem>>, %arg6: memref<2x16x128xf32, #tpu.memory_space<vmem>>, %arg7: memref<16x32xf32, #tpu.memory_space<vmem>>, %arg8: memref<16x16xf32, #tpu.memory_space<vmem>>, %arg9: memref<6x256x32xbf16, #tpu.memory_space<vmem>>, %arg10: memref<6x32x128xbf16, #tpu.memory_space<vmem>>, %arg11: memref<6x16x128xf32, #tpu.memory_space<vmem>>, %arg12: memref<96x32xbf16, #tpu.memory_space<vmem>>, %arg13: memref<8x128xf32, #tpu.memory_space<vmem>>, %arg14: memref<4x32xf32, #tpu.memory_space<vmem>>, %arg15: memref<2x1x32xf32, #tpu.memory_space<vmem>>) attributes {dimension_semantics = [], scalar_prefetch = 0 : i64, scratch_operands = 1 : i64, tpu.core_type = #tpu.core_type<tc>} {
    %c0 = arith.constant 0 : index
    %c0_0 = arith.constant 0 : index
    %0 = vector.load %arg1[%c0, %c0_0] : memref<48x128xbf16, #tpu.memory_space<vmem>>, vector<48x128xbf16>
    %c0_1 = arith.constant 0 : index
    %c0_2 = arith.constant 0 : index
    %1 = vector.load %arg2[%c0_1, %c0_2] : memref<128x32xbf16, #tpu.memory_space<vmem>>, vector<128x32xbf16>
    %cst = arith.constant dense<0.000000e+00> : vector<48x32xf32>
    %2 = tpu.matmul %0, %1, %cst {dimension_numbers = #tpu.dot_dimension_numbers<[1], [0], [0], [1], [0, 0, 1, 1], [], []>} : vector<48x128xbf16>, vector<128x32xbf16>, vector<48x32xf32> -> vector<48x32xf32>
    %c0_3 = arith.constant 0 : index
    %c0_4 = arith.constant 0 : index
    %3 = vector.load %arg3[%c0_3, %c0_4] : memref<48x48xf32, #tpu.memory_space<vmem>>, vector<48x48xf32>
    %4 = arith.truncf %2 : vector<48x32xf32> to vector<48x32xbf16>
    %c0_5 = arith.constant 0 : index
    %c0_6 = arith.constant 0 : index
    %c0_7 = arith.constant 0 : index
    %5 = vector.load %arg4[%c0_5, %c0_6, %c0_7] : memref<2x256x32xbf16, #tpu.memory_space<vmem>>, vector<1x32x32xbf16>
    %6 = vector.shape_cast %5 : vector<1x32x32xbf16> to vector<32x32xbf16>
    %cst_8 = arith.constant dense<0.000000e+00> : vector<48x32xf32>
    %7 = tpu.matmul %4, %6, %cst_8 {dimension_numbers = #tpu.dot_dimension_numbers<[1], [0], [0], [1], [0, 0, 1, 1], [], []>} : vector<48x32xbf16>, vector<32x32xbf16>, vector<48x32xf32> -> vector<48x32xf32>
    %c0_9 = arith.constant 0 : index
    %c0_10 = arith.constant 0 : index
    %c0_11 = arith.constant 0 : index
    %8 = vector.load %arg6[%c0_9, %c0_10, %c0_11] : memref<2x16x128xf32, #tpu.memory_space<vmem>>, vector<1x1x32xf32>
    %9 = vector.shape_cast %8 : vector<1x1x32xf32> to vector<1x32xf32>
    %10 = vector.broadcast %9 : vector<1x32xf32> to vector<48x32xf32>
    %11 = arith.addf %7, %10 : vector<48x32xf32>
    %c0_12 = arith.constant 0 : index
    %c32 = arith.constant 32 : index
    %c0_13 = arith.constant 0 : index
    %12 = vector.load %arg4[%c0_12, %c32, %c0_13] : memref<2x256x32xbf16, #tpu.memory_space<vmem>>, vector<1x32x32xbf16>
    %13 = vector.shape_cast %12 : vector<1x32x32xbf16> to vector<32x32xbf16>
    %cst_14 = arith.constant dense<0.000000e+00> : vector<48x32xf32>
    %14 = tpu.matmul %4, %13, %cst_14 {dimension_numbers = #tpu.dot_dimension_numbers<[1], [0], [0], [1], [0, 0, 1, 1], [], []>} : vector<48x32xbf16>, vector<32x32xbf16>, vector<48x32xf32> -> vector<48x32xf32>
    %c0_15 = arith.constant 0 : index
    %c1 = arith.constant 1 : index
    %c0_16 = arith.constant 0 : index
    %15 = vector.load %arg6[%c0_15, %c1, %c0_16] : memref<2x16x128xf32, #tpu.memory_space<vmem>>, vector<1x1x32xf32>
    %16 = vector.shape_cast %15 : vector<1x1x32xf32> to vector<1x32xf32>
    %17 = vector.broadcast %16 : vector<1x32xf32> to vector<48x32xf32>
    %18 = arith.addf %14, %17 : vector<48x32xf32>
    %c0_17 = arith.constant 0 : index
    %c64 = arith.constant 64 : index
    %c0_18 = arith.constant 0 : index
    %19 = vector.load %arg4[%c0_17, %c64, %c0_18] : memref<2x256x32xbf16, #tpu.memory_space<vmem>>, vector<1x32x32xbf16>
    %20 = vector.shape_cast %19 : vector<1x32x32xbf16> to vector<32x32xbf16>
    %cst_19 = arith.constant dense<0.000000e+00> : vector<48x32xf32>
    %21 = tpu.matmul %4, %20, %cst_19 {dimension_numbers = #tpu.dot_dimension_numbers<[1], [0], [0], [1], [0, 0, 1, 1], [], []>} : vector<48x32xbf16>, vector<32x32xbf16>, vector<48x32xf32> -> vector<48x32xf32>
    %c0_20 = arith.constant 0 : index
    %c2 = arith.constant 2 : index
    %c0_21 = arith.constant 0 : index
    %22 = vector.load %arg6[%c0_20, %c2, %c0_21] : memref<2x16x128xf32, #tpu.memory_space<vmem>>, vector<1x1x32xf32>
    %23 = vector.shape_cast %22 : vector<1x1x32xf32> to vector<1x32xf32>
    %24 = vector.broadcast %23 : vector<1x32xf32> to vector<48x32xf32>
    %25 = arith.addf %21, %24 : vector<48x32xf32>
    %26 = arith.truncf %11 : vector<48x32xf32> to vector<48x32xbf16>
    %27 = arith.truncf %18 : vector<48x32xf32> to vector<48x32xbf16>
    %cst_22 = arith.constant dense<0.000000e+00> : vector<48x48xf32>
    %28 = tpu.matmul %26, %27, %cst_22 {dimension_numbers = #tpu.dot_dimension_numbers<[1], [1], [0], [0], [0, 0, 1, 0], [], []>} : vector<48x32xbf16>, vector<48x32xbf16>, vector<48x48xf32> -> vector<48x48xf32>
    %29 = arith.addf %28, %3 : vector<48x48xf32>
    %30 = math.exp %29 : vector<48x48xf32>
    %cst_23 = arith.constant dense<0.000000e+00> : vector<48xf32>
    %31 = vector.multi_reduction <add>, %30, %cst_23 [1] : vector<48x48xf32> to vector<48xf32>
    %32 = vector.shape_cast %31 : vector<48xf32> to vector<48x1xf32>
    %33 = tpu.reciprocal %32 {approx = true} : vector<48x1xf32> -> vector<48x1xf32>
    %34 = vector.broadcast %33 : vector<48x1xf32> to vector<48x48xf32>
    %35 = arith.mulf %30, %34 : vector<48x48xf32>
    %36 = arith.truncf %35 : vector<48x48xf32> to vector<48x48xbf16>
    %37 = arith.truncf %25 : vector<48x32xf32> to vector<48x32xbf16>
    %cst_24 = arith.constant dense<0.000000e+00> : vector<48x32xf32>
    %38 = tpu.matmul %36, %37, %cst_24 {dimension_numbers = #tpu.dot_dimension_numbers<[1], [0], [0], [1], [0, 0, 1, 1], [], []>} : vector<48x48xbf16>, vector<48x32xbf16>, vector<48x32xf32> -> vector<48x32xf32>
    %39 = arith.truncf %38 : vector<48x32xf32> to vector<48x32xbf16>
    %c0_25 = arith.constant 0 : index
    %c96 = arith.constant 96 : index
    %c0_26 = arith.constant 0 : index
    %40 = vector.load %arg4[%c0_25, %c96, %c0_26] : memref<2x256x32xbf16, #tpu.memory_space<vmem>>, vector<1x32x32xbf16>
    %41 = vector.shape_cast %40 : vector<1x32x32xbf16> to vector<32x32xbf16>
    %cst_27 = arith.constant dense<0.000000e+00> : vector<48x32xf32>
    %42 = tpu.matmul %39, %41, %cst_27 {dimension_numbers = #tpu.dot_dimension_numbers<[1], [0], [0], [1], [0, 0, 1, 1], [], []>} : vector<48x32xbf16>, vector<32x32xbf16>, vector<48x32xf32> -> vector<48x32xf32>
    %c0_28 = arith.constant 0 : index
    %c3 = arith.constant 3 : index
    %c0_29 = arith.constant 0 : index
    %43 = vector.load %arg6[%c0_28, %c3, %c0_29] : memref<2x16x128xf32, #tpu.memory_space<vmem>>, vector<1x1x32xf32>
    %44 = vector.shape_cast %43 : vector<1x1x32xf32> to vector<1x32xf32>
    %45 = vector.broadcast %44 : vector<1x32xf32> to vector<48x32xf32>
    %46 = arith.addf %42, %45 : vector<48x32xf32>
    %47 = arith.addf %2, %46 : vector<48x32xf32>
    %c0_30 = arith.constant 0 : index
    %c4 = arith.constant 4 : index
    %c0_31 = arith.constant 0 : index
    %48 = vector.load %arg6[%c0_30, %c4, %c0_31] : memref<2x16x128xf32, #tpu.memory_space<vmem>>, vector<1x1x32xf32>
    %49 = vector.shape_cast %48 : vector<1x1x32xf32> to vector<1x32xf32>
    %c0_32 = arith.constant 0 : index
    %c5 = arith.constant 5 : index
    %c0_33 = arith.constant 0 : index
    %50 = vector.load %arg6[%c0_32, %c5, %c0_33] : memref<2x16x128xf32, #tpu.memory_space<vmem>>, vector<1x1x32xf32>
    %51 = vector.shape_cast %50 : vector<1x1x32xf32> to vector<1x32xf32>
    %cst_34 = arith.constant dense<0.000000e+00> : vector<48xf32>
    %52 = vector.multi_reduction <add>, %47, %cst_34 [1] : vector<48x32xf32> to vector<48xf32>
    %53 = vector.shape_cast %52 : vector<48xf32> to vector<48x1xf32>
    %cst_35 = arith.constant 3.200000e+01 : f32
    %54 = vector.broadcast %cst_35 : f32 to vector<48x1xf32>
    %55 = arith.divf %53, %54 : vector<48x1xf32>
    %56 = vector.broadcast %55 : vector<48x1xf32> to vector<48x32xf32>
    %57 = arith.subf %47, %56 : vector<48x32xf32>
    %58 = arith.mulf %57, %57 : vector<48x32xf32>
    %cst_36 = arith.constant dense<0.000000e+00> : vector<48xf32>
    %59 = vector.multi_reduction <add>, %58, %cst_36 [1] : vector<48x32xf32> to vector<48xf32>
    %60 = vector.shape_cast %59 : vector<48xf32> to vector<48x1xf32>
    %cst_37 = arith.constant 3.200000e+01 : f32
    %61 = vector.broadcast %cst_37 : f32 to vector<48x1xf32>
    %62 = arith.divf %60, %61 : vector<48x1xf32>
    %63 = vector.broadcast %55 : vector<48x1xf32> to vector<48x32xf32>
    %64 = arith.subf %47, %63 : vector<48x32xf32>
    %cst_38 = arith.constant 9.99999996E-13 : f32
    %65 = vector.broadcast %cst_38 : f32 to vector<48x1xf32>
    %66 = arith.addf %62, %65 : vector<48x1xf32>
    %67 = math.rsqrt %66 : vector<48x1xf32>
    %68 = vector.broadcast %67 : vector<48x1xf32> to vector<48x32xf32>
    %69 = arith.mulf %64, %68 : vector<48x32xf32>
    %70 = vector.broadcast %49 : vector<1x32xf32> to vector<48x32xf32>
    %71 = arith.mulf %69, %70 : vector<48x32xf32>
    %72 = vector.broadcast %51 : vector<1x32xf32> to vector<48x32xf32>
    %73 = arith.addf %71, %72 : vector<48x32xf32>
    %74 = arith.truncf %73 : vector<48x32xf32> to vector<48x32xbf16>
    %c0_39 = arith.constant 0 : index
    %c0_40 = arith.constant 0 : index
    %c0_41 = arith.constant 0 : index
    %75 = vector.load %arg5[%c0_39, %c0_40, %c0_41] : memref<2x32x128xbf16, #tpu.memory_space<vmem>>, vector<1x32x128xbf16>
    %76 = vector.shape_cast %75 : vector<1x32x128xbf16> to vector<32x128xbf16>
    %cst_42 = arith.constant dense<0.000000e+00> : vector<48x128xf32>
    %77 = tpu.matmul %74, %76, %cst_42 {dimension_numbers = #tpu.dot_dimension_numbers<[1], [0], [0], [1], [0, 0, 1, 1], [], []>} : vector<48x32xbf16>, vector<32x128xbf16>, vector<48x128xf32> -> vector<48x128xf32>
    %c0_43 = arith.constant 0 : index
    %c6 = arith.constant 6 : index
    %c0_44 = arith.constant 0 : index
    %78 = vector.load %arg6[%c0_43, %c6, %c0_44] : memref<2x16x128xf32, #tpu.memory_space<vmem>>, vector<1x1x128xf32>
    %79 = vector.shape_cast %78 : vector<1x1x128xf32> to vector<1x128xf32>
    %80 = vector.broadcast %79 : vector<1x128xf32> to vector<48x128xf32>
    %81 = arith.addf %77, %80 : vector<48x128xf32>
    %82 = arith.mulf %81, %81 : vector<48x128xf32>
    %83 = arith.mulf %81, %82 : vector<48x128xf32>
    %cst_45 = arith.constant 4.471500e-02 : f32
    %84 = vector.broadcast %cst_45 : f32 to vector<48x128xf32>
    %85 = arith.mulf %84, %83 : vector<48x128xf32>
    %86 = arith.addf %81, %85 : vector<48x128xf32>
    %cst_46 = arith.constant 0.797884583 : f32
    %87 = vector.broadcast %cst_46 : f32 to vector<48x128xf32>
    %88 = arith.mulf %87, %86 : vector<48x128xf32>
    %89 = math.tanh %88 : vector<48x128xf32>
    %cst_47 = arith.constant 1.000000e+00 : f32
    %90 = vector.broadcast %cst_47 : f32 to vector<48x128xf32>
    %91 = arith.addf %90, %89 : vector<48x128xf32>
    %cst_48 = arith.constant 5.000000e-01 : f32
    %92 = vector.broadcast %cst_48 : f32 to vector<48x128xf32>
    %93 = arith.mulf %92, %91 : vector<48x128xf32>
    %94 = arith.mulf %81, %93 : vector<48x128xf32>
    %95 = arith.truncf %94 : vector<48x128xf32> to vector<48x128xbf16>
    %c0_49 = arith.constant 0 : index
    %c128 = arith.constant 128 : index
    %c0_50 = arith.constant 0 : index
    %96 = vector.load %arg4[%c0_49, %c128, %c0_50] : memref<2x256x32xbf16, #tpu.memory_space<vmem>>, vector<1x128x32xbf16>
    %97 = vector.shape_cast %96 : vector<1x128x32xbf16> to vector<128x32xbf16>
    %cst_51 = arith.constant dense<0.000000e+00> : vector<48x32xf32>
    %98 = tpu.matmul %95, %97, %cst_51 {dimension_numbers = #tpu.dot_dimension_numbers<[1], [0], [0], [1], [0, 0, 1, 1], [], []>} : vector<48x128xbf16>, vector<128x32xbf16>, vector<48x32xf32> -> vector<48x32xf32>
    %c0_52 = arith.constant 0 : index
    %c7 = arith.constant 7 : index
    %c0_53 = arith.constant 0 : index
    %99 = vector.load %arg6[%c0_52, %c7, %c0_53] : memref<2x16x128xf32, #tpu.memory_space<vmem>>, vector<1x1x32xf32>
    %100 = vector.shape_cast %99 : vector<1x1x32xf32> to vector<1x32xf32>
    %101 = vector.broadcast %100 : vector<1x32xf32> to vector<48x32xf32>
    %102 = arith.addf %98, %101 : vector<48x32xf32>
    %103 = arith.addf %73, %102 : vector<48x32xf32>
    %c0_54 = arith.constant 0 : index
    %c8 = arith.constant 8 : index
    %c0_55 = arith.constant 0 : index
    %104 = vector.load %arg6[%c0_54, %c8, %c0_55] : memref<2x16x128xf32, #tpu.memory_space<vmem>>, vector<1x1x32xf32>
    %105 = vector.shape_cast %104 : vector<1x1x32xf32> to vector<1x32xf32>
    %c0_56 = arith.constant 0 : index
    %c9 = arith.constant 9 : index
    %c0_57 = arith.constant 0 : index
    %106 = vector.load %arg6[%c0_56, %c9, %c0_57] : memref<2x16x128xf32, #tpu.memory_space<vmem>>, vector<1x1x32xf32>
    %107 = vector.shape_cast %106 : vector<1x1x32xf32> to vector<1x32xf32>
    %cst_58 = arith.constant dense<0.000000e+00> : vector<48xf32>
    %108 = vector.multi_reduction <add>, %103, %cst_58 [1] : vector<48x32xf32> to vector<48xf32>
    %109 = vector.shape_cast %108 : vector<48xf32> to vector<48x1xf32>
    %cst_59 = arith.constant 3.200000e+01 : f32
    %110 = vector.broadcast %cst_59 : f32 to vector<48x1xf32>
    %111 = arith.divf %109, %110 : vector<48x1xf32>
    %112 = vector.broadcast %111 : vector<48x1xf32> to vector<48x32xf32>
    %113 = arith.subf %103, %112 : vector<48x32xf32>
    %114 = arith.mulf %113, %113 : vector<48x32xf32>
    %cst_60 = arith.constant dense<0.000000e+00> : vector<48xf32>
    %115 = vector.multi_reduction <add>, %114, %cst_60 [1] : vector<48x32xf32> to vector<48xf32>
    %116 = vector.shape_cast %115 : vector<48xf32> to vector<48x1xf32>
    %cst_61 = arith.constant 3.200000e+01 : f32
    %117 = vector.broadcast %cst_61 : f32 to vector<48x1xf32>
    %118 = arith.divf %116, %117 : vector<48x1xf32>
    %119 = vector.broadcast %111 : vector<48x1xf32> to vector<48x32xf32>
    %120 = arith.subf %103, %119 : vector<48x32xf32>
    %cst_62 = arith.constant 9.99999996E-13 : f32
    %121 = vector.broadcast %cst_62 : f32 to vector<48x1xf32>
    %122 = arith.addf %118, %121 : vector<48x1xf32>
    %123 = math.rsqrt %122 : vector<48x1xf32>
    %124 = vector.broadcast %123 : vector<48x1xf32> to vector<48x32xf32>
    %125 = arith.mulf %120, %124 : vector<48x32xf32>
    %126 = vector.broadcast %105 : vector<1x32xf32> to vector<48x32xf32>
    %127 = arith.mulf %125, %126 : vector<48x32xf32>
    %128 = vector.broadcast %107 : vector<1x32xf32> to vector<48x32xf32>
    %129 = arith.addf %127, %128 : vector<48x32xf32>
    %130 = arith.truncf %129 : vector<48x32xf32> to vector<48x32xbf16>
    %c1_63 = arith.constant 1 : index
    %c0_64 = arith.constant 0 : index
    %c0_65 = arith.constant 0 : index
    %131 = vector.load %arg4[%c1_63, %c0_64, %c0_65] : memref<2x256x32xbf16, #tpu.memory_space<vmem>>, vector<1x32x32xbf16>
    %132 = vector.shape_cast %131 : vector<1x32x32xbf16> to vector<32x32xbf16>
    %cst_66 = arith.constant dense<0.000000e+00> : vector<48x32xf32>
    %133 = tpu.matmul %130, %132, %cst_66 {dimension_numbers = #tpu.dot_dimension_numbers<[1], [0], [0], [1], [0, 0, 1, 1], [], []>} : vector<48x32xbf16>, vector<32x32xbf16>, vector<48x32xf32> -> vector<48x32xf32>
    %c1_67 = arith.constant 1 : index
    %c0_68 = arith.constant 0 : index
    %c0_69 = arith.constant 0 : index
    %134 = vector.load %arg6[%c1_67, %c0_68, %c0_69] : memref<2x16x128xf32, #tpu.memory_space<vmem>>, vector<1x1x32xf32>
    %135 = vector.shape_cast %134 : vector<1x1x32xf32> to vector<1x32xf32>
    %136 = vector.broadcast %135 : vector<1x32xf32> to vector<48x32xf32>
    %137 = arith.addf %133, %136 : vector<48x32xf32>
    %c1_70 = arith.constant 1 : index
    %c32_71 = arith.constant 32 : index
    %c0_72 = arith.constant 0 : index
    %138 = vector.load %arg4[%c1_70, %c32_71, %c0_72] : memref<2x256x32xbf16, #tpu.memory_space<vmem>>, vector<1x32x32xbf16>
    %139 = vector.shape_cast %138 : vector<1x32x32xbf16> to vector<32x32xbf16>
    %cst_73 = arith.constant dense<0.000000e+00> : vector<48x32xf32>
    %140 = tpu.matmul %130, %139, %cst_73 {dimension_numbers = #tpu.dot_dimension_numbers<[1], [0], [0], [1], [0, 0, 1, 1], [], []>} : vector<48x32xbf16>, vector<32x32xbf16>, vector<48x32xf32> -> vector<48x32xf32>
    %c1_74 = arith.constant 1 : index
    %c1_75 = arith.constant 1 : index
    %c0_76 = arith.constant 0 : index
    %141 = vector.load %arg6[%c1_74, %c1_75, %c0_76] : memref<2x16x128xf32, #tpu.memory_space<vmem>>, vector<1x1x32xf32>
    %142 = vector.shape_cast %141 : vector<1x1x32xf32> to vector<1x32xf32>
    %143 = vector.broadcast %142 : vector<1x32xf32> to vector<48x32xf32>
    %144 = arith.addf %140, %143 : vector<48x32xf32>
    %c1_77 = arith.constant 1 : index
    %c64_78 = arith.constant 64 : index
    %c0_79 = arith.constant 0 : index
    %145 = vector.load %arg4[%c1_77, %c64_78, %c0_79] : memref<2x256x32xbf16, #tpu.memory_space<vmem>>, vector<1x32x32xbf16>
    %146 = vector.shape_cast %145 : vector<1x32x32xbf16> to vector<32x32xbf16>
    %cst_80 = arith.constant dense<0.000000e+00> : vector<48x32xf32>
    %147 = tpu.matmul %130, %146, %cst_80 {dimension_numbers = #tpu.dot_dimension_numbers<[1], [0], [0], [1], [0, 0, 1, 1], [], []>} : vector<48x32xbf16>, vector<32x32xbf16>, vector<48x32xf32> -> vector<48x32xf32>
    %c1_81 = arith.constant 1 : index
    %c2_82 = arith.constant 2 : index
    %c0_83 = arith.constant 0 : index
    %148 = vector.load %arg6[%c1_81, %c2_82, %c0_83] : memref<2x16x128xf32, #tpu.memory_space<vmem>>, vector<1x1x32xf32>
    %149 = vector.shape_cast %148 : vector<1x1x32xf32> to vector<1x32xf32>
    %150 = vector.broadcast %149 : vector<1x32xf32> to vector<48x32xf32>
    %151 = arith.addf %147, %150 : vector<48x32xf32>
    %152 = arith.truncf %137 : vector<48x32xf32> to vector<48x32xbf16>
    %153 = arith.truncf %144 : vector<48x32xf32> to vector<48x32xbf16>
    %cst_84 = arith.constant dense<0.000000e+00> : vector<48x48xf32>
    %154 = tpu.matmul %152, %153, %cst_84 {dimension_numbers = #tpu.dot_dimension_numbers<[1], [1], [0], [0], [0, 0, 1, 0], [], []>} : vector<48x32xbf16>, vector<48x32xbf16>, vector<48x48xf32> -> vector<48x48xf32>
    %155 = arith.addf %154, %3 : vector<48x48xf32>
    %156 = math.exp %155 : vector<48x48xf32>
    %cst_85 = arith.constant dense<0.000000e+00> : vector<48xf32>
    %157 = vector.multi_reduction <add>, %156, %cst_85 [1] : vector<48x48xf32> to vector<48xf32>
    %158 = vector.shape_cast %157 : vector<48xf32> to vector<48x1xf32>
    %159 = tpu.reciprocal %158 {approx = true} : vector<48x1xf32> -> vector<48x1xf32>
    %160 = vector.broadcast %159 : vector<48x1xf32> to vector<48x48xf32>
    %161 = arith.mulf %156, %160 : vector<48x48xf32>
    %162 = arith.truncf %161 : vector<48x48xf32> to vector<48x48xbf16>
    %163 = arith.truncf %151 : vector<48x32xf32> to vector<48x32xbf16>
    %cst_86 = arith.constant dense<0.000000e+00> : vector<48x32xf32>
    %164 = tpu.matmul %162, %163, %cst_86 {dimension_numbers = #tpu.dot_dimension_numbers<[1], [0], [0], [1], [0, 0, 1, 1], [], []>} : vector<48x48xbf16>, vector<48x32xbf16>, vector<48x32xf32> -> vector<48x32xf32>
    %165 = arith.truncf %164 : vector<48x32xf32> to vector<48x32xbf16>
    %c1_87 = arith.constant 1 : index
    %c96_88 = arith.constant 96 : index
    %c0_89 = arith.constant 0 : index
    %166 = vector.load %arg4[%c1_87, %c96_88, %c0_89] : memref<2x256x32xbf16, #tpu.memory_space<vmem>>, vector<1x32x32xbf16>
    %167 = vector.shape_cast %166 : vector<1x32x32xbf16> to vector<32x32xbf16>
    %cst_90 = arith.constant dense<0.000000e+00> : vector<48x32xf32>
    %168 = tpu.matmul %165, %167, %cst_90 {dimension_numbers = #tpu.dot_dimension_numbers<[1], [0], [0], [1], [0, 0, 1, 1], [], []>} : vector<48x32xbf16>, vector<32x32xbf16>, vector<48x32xf32> -> vector<48x32xf32>
    %c1_91 = arith.constant 1 : index
    %c3_92 = arith.constant 3 : index
    %c0_93 = arith.constant 0 : index
    %169 = vector.load %arg6[%c1_91, %c3_92, %c0_93] : memref<2x16x128xf32, #tpu.memory_space<vmem>>, vector<1x1x32xf32>
    %170 = vector.shape_cast %169 : vector<1x1x32xf32> to vector<1x32xf32>
    %171 = vector.broadcast %170 : vector<1x32xf32> to vector<48x32xf32>
    %172 = arith.addf %168, %171 : vector<48x32xf32>
    %173 = arith.addf %129, %172 : vector<48x32xf32>
    %c1_94 = arith.constant 1 : index
    %c4_95 = arith.constant 4 : index
    %c0_96 = arith.constant 0 : index
    %174 = vector.load %arg6[%c1_94, %c4_95, %c0_96] : memref<2x16x128xf32, #tpu.memory_space<vmem>>, vector<1x1x32xf32>
    %175 = vector.shape_cast %174 : vector<1x1x32xf32> to vector<1x32xf32>
    %c1_97 = arith.constant 1 : index
    %c5_98 = arith.constant 5 : index
    %c0_99 = arith.constant 0 : index
    %176 = vector.load %arg6[%c1_97, %c5_98, %c0_99] : memref<2x16x128xf32, #tpu.memory_space<vmem>>, vector<1x1x32xf32>
    %177 = vector.shape_cast %176 : vector<1x1x32xf32> to vector<1x32xf32>
    %cst_100 = arith.constant dense<0.000000e+00> : vector<48xf32>
    %178 = vector.multi_reduction <add>, %173, %cst_100 [1] : vector<48x32xf32> to vector<48xf32>
    %179 = vector.shape_cast %178 : vector<48xf32> to vector<48x1xf32>
    %cst_101 = arith.constant 3.200000e+01 : f32
    %180 = vector.broadcast %cst_101 : f32 to vector<48x1xf32>
    %181 = arith.divf %179, %180 : vector<48x1xf32>
    %182 = vector.broadcast %181 : vector<48x1xf32> to vector<48x32xf32>
    %183 = arith.subf %173, %182 : vector<48x32xf32>
    %184 = arith.mulf %183, %183 : vector<48x32xf32>
    %cst_102 = arith.constant dense<0.000000e+00> : vector<48xf32>
    %185 = vector.multi_reduction <add>, %184, %cst_102 [1] : vector<48x32xf32> to vector<48xf32>
    %186 = vector.shape_cast %185 : vector<48xf32> to vector<48x1xf32>
    %cst_103 = arith.constant 3.200000e+01 : f32
    %187 = vector.broadcast %cst_103 : f32 to vector<48x1xf32>
    %188 = arith.divf %186, %187 : vector<48x1xf32>
    %189 = vector.broadcast %181 : vector<48x1xf32> to vector<48x32xf32>
    %190 = arith.subf %173, %189 : vector<48x32xf32>
    %cst_104 = arith.constant 9.99999996E-13 : f32
    %191 = vector.broadcast %cst_104 : f32 to vector<48x1xf32>
    %192 = arith.addf %188, %191 : vector<48x1xf32>
    %193 = math.rsqrt %192 : vector<48x1xf32>
    %194 = vector.broadcast %193 : vector<48x1xf32> to vector<48x32xf32>
    %195 = arith.mulf %190, %194 : vector<48x32xf32>
    %196 = vector.broadcast %175 : vector<1x32xf32> to vector<48x32xf32>
    %197 = arith.mulf %195, %196 : vector<48x32xf32>
    %198 = vector.broadcast %177 : vector<1x32xf32> to vector<48x32xf32>
    %199 = arith.addf %197, %198 : vector<48x32xf32>
    %200 = arith.truncf %199 : vector<48x32xf32> to vector<48x32xbf16>
    %c1_105 = arith.constant 1 : index
    %c0_106 = arith.constant 0 : index
    %c0_107 = arith.constant 0 : index
    %201 = vector.load %arg5[%c1_105, %c0_106, %c0_107] : memref<2x32x128xbf16, #tpu.memory_space<vmem>>, vector<1x32x128xbf16>
    %202 = vector.shape_cast %201 : vector<1x32x128xbf16> to vector<32x128xbf16>
    %cst_108 = arith.constant dense<0.000000e+00> : vector<48x128xf32>
    %203 = tpu.matmul %200, %202, %cst_108 {dimension_numbers = #tpu.dot_dimension_numbers<[1], [0], [0], [1], [0, 0, 1, 1], [], []>} : vector<48x32xbf16>, vector<32x128xbf16>, vector<48x128xf32> -> vector<48x128xf32>
    %c1_109 = arith.constant 1 : index
    %c6_110 = arith.constant 6 : index
    %c0_111 = arith.constant 0 : index
    %204 = vector.load %arg6[%c1_109, %c6_110, %c0_111] : memref<2x16x128xf32, #tpu.memory_space<vmem>>, vector<1x1x128xf32>
    %205 = vector.shape_cast %204 : vector<1x1x128xf32> to vector<1x128xf32>
    %206 = vector.broadcast %205 : vector<1x128xf32> to vector<48x128xf32>
    %207 = arith.addf %203, %206 : vector<48x128xf32>
    %208 = arith.mulf %207, %207 : vector<48x128xf32>
    %209 = arith.mulf %207, %208 : vector<48x128xf32>
    %cst_112 = arith.constant 4.471500e-02 : f32
    %210 = vector.broadcast %cst_112 : f32 to vector<48x128xf32>
    %211 = arith.mulf %210, %209 : vector<48x128xf32>
    %212 = arith.addf %207, %211 : vector<48x128xf32>
    %cst_113 = arith.constant 0.797884583 : f32
    %213 = vector.broadcast %cst_113 : f32 to vector<48x128xf32>
    %214 = arith.mulf %213, %212 : vector<48x128xf32>
    %215 = math.tanh %214 : vector<48x128xf32>
    %cst_114 = arith.constant 1.000000e+00 : f32
    %216 = vector.broadcast %cst_114 : f32 to vector<48x128xf32>
    %217 = arith.addf %216, %215 : vector<48x128xf32>
    %cst_115 = arith.constant 5.000000e-01 : f32
    %218 = vector.broadcast %cst_115 : f32 to vector<48x128xf32>
    %219 = arith.mulf %218, %217 : vector<48x128xf32>
    %220 = arith.mulf %207, %219 : vector<48x128xf32>
    %221 = arith.truncf %220 : vector<48x128xf32> to vector<48x128xbf16>
    %c1_116 = arith.constant 1 : index
    %c128_117 = arith.constant 128 : index
    %c0_118 = arith.constant 0 : index
    %222 = vector.load %arg4[%c1_116, %c128_117, %c0_118] : memref<2x256x32xbf16, #tpu.memory_space<vmem>>, vector<1x128x32xbf16>
    %223 = vector.shape_cast %222 : vector<1x128x32xbf16> to vector<128x32xbf16>
    %cst_119 = arith.constant dense<0.000000e+00> : vector<48x32xf32>
    %224 = tpu.matmul %221, %223, %cst_119 {dimension_numbers = #tpu.dot_dimension_numbers<[1], [0], [0], [1], [0, 0, 1, 1], [], []>} : vector<48x128xbf16>, vector<128x32xbf16>, vector<48x32xf32> -> vector<48x32xf32>
    %c1_120 = arith.constant 1 : index
    %c7_121 = arith.constant 7 : index
    %c0_122 = arith.constant 0 : index
    %225 = vector.load %arg6[%c1_120, %c7_121, %c0_122] : memref<2x16x128xf32, #tpu.memory_space<vmem>>, vector<1x1x32xf32>
    %226 = vector.shape_cast %225 : vector<1x1x32xf32> to vector<1x32xf32>
    %227 = vector.broadcast %226 : vector<1x32xf32> to vector<48x32xf32>
    %228 = arith.addf %224, %227 : vector<48x32xf32>
    %229 = arith.addf %199, %228 : vector<48x32xf32>
    %c1_123 = arith.constant 1 : index
    %c8_124 = arith.constant 8 : index
    %c0_125 = arith.constant 0 : index
    %230 = vector.load %arg6[%c1_123, %c8_124, %c0_125] : memref<2x16x128xf32, #tpu.memory_space<vmem>>, vector<1x1x32xf32>
    %231 = vector.shape_cast %230 : vector<1x1x32xf32> to vector<1x32xf32>
    %c1_126 = arith.constant 1 : index
    %c9_127 = arith.constant 9 : index
    %c0_128 = arith.constant 0 : index
    %232 = vector.load %arg6[%c1_126, %c9_127, %c0_128] : memref<2x16x128xf32, #tpu.memory_space<vmem>>, vector<1x1x32xf32>
    %233 = vector.shape_cast %232 : vector<1x1x32xf32> to vector<1x32xf32>
    %cst_129 = arith.constant dense<0.000000e+00> : vector<48xf32>
    %234 = vector.multi_reduction <add>, %229, %cst_129 [1] : vector<48x32xf32> to vector<48xf32>
    %235 = vector.shape_cast %234 : vector<48xf32> to vector<48x1xf32>
    %cst_130 = arith.constant 3.200000e+01 : f32
    %236 = vector.broadcast %cst_130 : f32 to vector<48x1xf32>
    %237 = arith.divf %235, %236 : vector<48x1xf32>
    %238 = vector.broadcast %237 : vector<48x1xf32> to vector<48x32xf32>
    %239 = arith.subf %229, %238 : vector<48x32xf32>
    %240 = arith.mulf %239, %239 : vector<48x32xf32>
    %cst_131 = arith.constant dense<0.000000e+00> : vector<48xf32>
    %241 = vector.multi_reduction <add>, %240, %cst_131 [1] : vector<48x32xf32> to vector<48xf32>
    %242 = vector.shape_cast %241 : vector<48xf32> to vector<48x1xf32>
    %cst_132 = arith.constant 3.200000e+01 : f32
    %243 = vector.broadcast %cst_132 : f32 to vector<48x1xf32>
    %244 = arith.divf %242, %243 : vector<48x1xf32>
    %245 = vector.broadcast %237 : vector<48x1xf32> to vector<48x32xf32>
    %246 = arith.subf %229, %245 : vector<48x32xf32>
    %cst_133 = arith.constant 9.99999996E-13 : f32
    %247 = vector.broadcast %cst_133 : f32 to vector<48x1xf32>
    %248 = arith.addf %244, %247 : vector<48x1xf32>
    %249 = math.rsqrt %248 : vector<48x1xf32>
    %250 = vector.broadcast %249 : vector<48x1xf32> to vector<48x32xf32>
    %251 = arith.mulf %246, %250 : vector<48x32xf32>
    %252 = vector.broadcast %231 : vector<1x32xf32> to vector<48x32xf32>
    %253 = arith.mulf %251, %252 : vector<48x32xf32>
    %254 = vector.broadcast %233 : vector<1x32xf32> to vector<48x32xf32>
    %255 = arith.addf %253, %254 : vector<48x32xf32>
    %c0_134 = arith.constant 0 : index
    %c0_135 = arith.constant 0 : index
    %256 = vector.load %arg7[%c0_134, %c0_135] : memref<16x32xf32, #tpu.memory_space<vmem>>, vector<16x32xf32>
    %c0_136 = arith.constant 0 : index
    %c0_137 = arith.constant 0 : index
    %257 = vector.load %arg13[%c0_136, %c0_137] : memref<8x128xf32, #tpu.memory_space<vmem>>, vector<1x32xf32>
    %c1_138 = arith.constant 1 : index
    %c0_139 = arith.constant 0 : index
    %258 = vector.load %arg13[%c1_138, %c0_139] : memref<8x128xf32, #tpu.memory_space<vmem>>, vector<1x32xf32>
    %cst_140 = arith.constant dense<0.000000e+00> : vector<16xf32>
    %259 = vector.multi_reduction <add>, %256, %cst_140 [1] : vector<16x32xf32> to vector<16xf32>
    %260 = vector.shape_cast %259 : vector<16xf32> to vector<16x1xf32>
    %cst_141 = arith.constant 3.200000e+01 : f32
    %261 = vector.broadcast %cst_141 : f32 to vector<16x1xf32>
    %262 = arith.divf %260, %261 : vector<16x1xf32>
    %263 = vector.broadcast %262 : vector<16x1xf32> to vector<16x32xf32>
    %264 = arith.subf %256, %263 : vector<16x32xf32>
    %265 = arith.mulf %264, %264 : vector<16x32xf32>
    %cst_142 = arith.constant dense<0.000000e+00> : vector<16xf32>
    %266 = vector.multi_reduction <add>, %265, %cst_142 [1] : vector<16x32xf32> to vector<16xf32>
    %267 = vector.shape_cast %266 : vector<16xf32> to vector<16x1xf32>
    %cst_143 = arith.constant 3.200000e+01 : f32
    %268 = vector.broadcast %cst_143 : f32 to vector<16x1xf32>
    %269 = arith.divf %267, %268 : vector<16x1xf32>
    %270 = vector.broadcast %262 : vector<16x1xf32> to vector<16x32xf32>
    %271 = arith.subf %256, %270 : vector<16x32xf32>
    %cst_144 = arith.constant 9.99999996E-13 : f32
    %272 = vector.broadcast %cst_144 : f32 to vector<16x1xf32>
    %273 = arith.addf %269, %272 : vector<16x1xf32>
    %274 = math.rsqrt %273 : vector<16x1xf32>
    %275 = vector.broadcast %274 : vector<16x1xf32> to vector<16x32xf32>
    %276 = arith.mulf %271, %275 : vector<16x32xf32>
    %277 = vector.broadcast %257 : vector<1x32xf32> to vector<16x32xf32>
    %278 = arith.mulf %276, %277 : vector<16x32xf32>
    %279 = vector.broadcast %258 : vector<1x32xf32> to vector<16x32xf32>
    %280 = arith.addf %278, %279 : vector<16x32xf32>
    %c0_145 = arith.constant 0 : index
    %c0_146 = arith.constant 0 : index
    %281 = vector.load %arg8[%c0_145, %c0_146] : memref<16x16xf32, #tpu.memory_space<vmem>>, vector<16x16xf32>
    %282 = arith.truncf %280 : vector<16x32xf32> to vector<16x32xbf16>
    %c0_147 = arith.constant 0 : index
    %c0_148 = arith.constant 0 : index
    %c0_149 = arith.constant 0 : index
    %283 = vector.load %arg9[%c0_147, %c0_148, %c0_149] : memref<6x256x32xbf16, #tpu.memory_space<vmem>>, vector<1x32x32xbf16>
    %284 = vector.shape_cast %283 : vector<1x32x32xbf16> to vector<32x32xbf16>
    %cst_150 = arith.constant dense<0.000000e+00> : vector<16x32xf32>
    %285 = tpu.matmul %282, %284, %cst_150 {dimension_numbers = #tpu.dot_dimension_numbers<[1], [0], [0], [1], [0, 0, 1, 1], [], []>} : vector<16x32xbf16>, vector<32x32xbf16>, vector<16x32xf32> -> vector<16x32xf32>
    %c0_151 = arith.constant 0 : index
    %c0_152 = arith.constant 0 : index
    %c0_153 = arith.constant 0 : index
    %286 = vector.load %arg11[%c0_151, %c0_152, %c0_153] : memref<6x16x128xf32, #tpu.memory_space<vmem>>, vector<1x1x32xf32>
    %287 = vector.shape_cast %286 : vector<1x1x32xf32> to vector<1x32xf32>
    %288 = vector.broadcast %287 : vector<1x32xf32> to vector<16x32xf32>
    %289 = arith.addf %285, %288 : vector<16x32xf32>
    %c0_154 = arith.constant 0 : index
    %c32_155 = arith.constant 32 : index
    %c0_156 = arith.constant 0 : index
    %290 = vector.load %arg9[%c0_154, %c32_155, %c0_156] : memref<6x256x32xbf16, #tpu.memory_space<vmem>>, vector<1x32x32xbf16>
    %291 = vector.shape_cast %290 : vector<1x32x32xbf16> to vector<32x32xbf16>
    %cst_157 = arith.constant dense<0.000000e+00> : vector<16x32xf32>
    %292 = tpu.matmul %282, %291, %cst_157 {dimension_numbers = #tpu.dot_dimension_numbers<[1], [0], [0], [1], [0, 0, 1, 1], [], []>} : vector<16x32xbf16>, vector<32x32xbf16>, vector<16x32xf32> -> vector<16x32xf32>
    %c0_158 = arith.constant 0 : index
    %c1_159 = arith.constant 1 : index
    %c0_160 = arith.constant 0 : index
    %293 = vector.load %arg11[%c0_158, %c1_159, %c0_160] : memref<6x16x128xf32, #tpu.memory_space<vmem>>, vector<1x1x32xf32>
    %294 = vector.shape_cast %293 : vector<1x1x32xf32> to vector<1x32xf32>
    %295 = vector.broadcast %294 : vector<1x32xf32> to vector<16x32xf32>
    %296 = arith.addf %292, %295 : vector<16x32xf32>
    %c0_161 = arith.constant 0 : index
    %c64_162 = arith.constant 64 : index
    %c0_163 = arith.constant 0 : index
    %297 = vector.load %arg9[%c0_161, %c64_162, %c0_163] : memref<6x256x32xbf16, #tpu.memory_space<vmem>>, vector<1x32x32xbf16>
    %298 = vector.shape_cast %297 : vector<1x32x32xbf16> to vector<32x32xbf16>
    %cst_164 = arith.constant dense<0.000000e+00> : vector<16x32xf32>
    %299 = tpu.matmul %282, %298, %cst_164 {dimension_numbers = #tpu.dot_dimension_numbers<[1], [0], [0], [1], [0, 0, 1, 1], [], []>} : vector<16x32xbf16>, vector<32x32xbf16>, vector<16x32xf32> -> vector<16x32xf32>
    %c0_165 = arith.constant 0 : index
    %c2_166 = arith.constant 2 : index
    %c0_167 = arith.constant 0 : index
    %300 = vector.load %arg11[%c0_165, %c2_166, %c0_167] : memref<6x16x128xf32, #tpu.memory_space<vmem>>, vector<1x1x32xf32>
    %301 = vector.shape_cast %300 : vector<1x1x32xf32> to vector<1x32xf32>
    %302 = vector.broadcast %301 : vector<1x32xf32> to vector<16x32xf32>
    %303 = arith.addf %299, %302 : vector<16x32xf32>
    %304 = arith.truncf %289 : vector<16x32xf32> to vector<16x32xbf16>
    %305 = arith.truncf %296 : vector<16x32xf32> to vector<16x32xbf16>
    %cst_168 = arith.constant dense<0.000000e+00> : vector<16x16xf32>
    %306 = tpu.matmul %304, %305, %cst_168 {dimension_numbers = #tpu.dot_dimension_numbers<[1], [1], [0], [0], [0, 0, 1, 0], [], []>} : vector<16x32xbf16>, vector<16x32xbf16>, vector<16x16xf32> -> vector<16x16xf32>
    %307 = arith.addf %306, %281 : vector<16x16xf32>
    %308 = math.exp %307 : vector<16x16xf32>
    %cst_169 = arith.constant dense<0.000000e+00> : vector<16xf32>
    %309 = vector.multi_reduction <add>, %308, %cst_169 [1] : vector<16x16xf32> to vector<16xf32>
    %310 = vector.shape_cast %309 : vector<16xf32> to vector<16x1xf32>
    %311 = tpu.reciprocal %310 {approx = true} : vector<16x1xf32> -> vector<16x1xf32>
    %312 = vector.broadcast %311 : vector<16x1xf32> to vector<16x16xf32>
    %313 = arith.mulf %308, %312 : vector<16x16xf32>
    %314 = arith.truncf %313 : vector<16x16xf32> to vector<16x16xbf16>
    %315 = arith.truncf %303 : vector<16x32xf32> to vector<16x32xbf16>
    %cst_170 = arith.constant dense<0.000000e+00> : vector<16x32xf32>
    %316 = tpu.matmul %314, %315, %cst_170 {dimension_numbers = #tpu.dot_dimension_numbers<[1], [0], [0], [1], [0, 0, 1, 1], [], []>} : vector<16x16xbf16>, vector<16x32xbf16>, vector<16x32xf32> -> vector<16x32xf32>
    %317 = arith.truncf %316 : vector<16x32xf32> to vector<16x32xbf16>
    %c0_171 = arith.constant 0 : index
    %c96_172 = arith.constant 96 : index
    %c0_173 = arith.constant 0 : index
    %318 = vector.load %arg9[%c0_171, %c96_172, %c0_173] : memref<6x256x32xbf16, #tpu.memory_space<vmem>>, vector<1x32x32xbf16>
    %319 = vector.shape_cast %318 : vector<1x32x32xbf16> to vector<32x32xbf16>
    %cst_174 = arith.constant dense<0.000000e+00> : vector<16x32xf32>
    %320 = tpu.matmul %317, %319, %cst_174 {dimension_numbers = #tpu.dot_dimension_numbers<[1], [0], [0], [1], [0, 0, 1, 1], [], []>} : vector<16x32xbf16>, vector<32x32xbf16>, vector<16x32xf32> -> vector<16x32xf32>
    %c0_175 = arith.constant 0 : index
    %c3_176 = arith.constant 3 : index
    %c0_177 = arith.constant 0 : index
    %321 = vector.load %arg11[%c0_175, %c3_176, %c0_177] : memref<6x16x128xf32, #tpu.memory_space<vmem>>, vector<1x1x32xf32>
    %322 = vector.shape_cast %321 : vector<1x1x32xf32> to vector<1x32xf32>
    %323 = vector.broadcast %322 : vector<1x32xf32> to vector<16x32xf32>
    %324 = arith.addf %320, %323 : vector<16x32xf32>
    %325 = arith.addf %280, %324 : vector<16x32xf32>
    %c0_178 = arith.constant 0 : index
    %c4_179 = arith.constant 4 : index
    %c0_180 = arith.constant 0 : index
    %326 = vector.load %arg11[%c0_178, %c4_179, %c0_180] : memref<6x16x128xf32, #tpu.memory_space<vmem>>, vector<1x1x32xf32>
    %327 = vector.shape_cast %326 : vector<1x1x32xf32> to vector<1x32xf32>
    %c0_181 = arith.constant 0 : index
    %c5_182 = arith.constant 5 : index
    %c0_183 = arith.constant 0 : index
    %328 = vector.load %arg11[%c0_181, %c5_182, %c0_183] : memref<6x16x128xf32, #tpu.memory_space<vmem>>, vector<1x1x32xf32>
    %329 = vector.shape_cast %328 : vector<1x1x32xf32> to vector<1x32xf32>
    %cst_184 = arith.constant dense<0.000000e+00> : vector<16xf32>
    %330 = vector.multi_reduction <add>, %325, %cst_184 [1] : vector<16x32xf32> to vector<16xf32>
    %331 = vector.shape_cast %330 : vector<16xf32> to vector<16x1xf32>
    %cst_185 = arith.constant 3.200000e+01 : f32
    %332 = vector.broadcast %cst_185 : f32 to vector<16x1xf32>
    %333 = arith.divf %331, %332 : vector<16x1xf32>
    %334 = vector.broadcast %333 : vector<16x1xf32> to vector<16x32xf32>
    %335 = arith.subf %325, %334 : vector<16x32xf32>
    %336 = arith.mulf %335, %335 : vector<16x32xf32>
    %cst_186 = arith.constant dense<0.000000e+00> : vector<16xf32>
    %337 = vector.multi_reduction <add>, %336, %cst_186 [1] : vector<16x32xf32> to vector<16xf32>
    %338 = vector.shape_cast %337 : vector<16xf32> to vector<16x1xf32>
    %cst_187 = arith.constant 3.200000e+01 : f32
    %339 = vector.broadcast %cst_187 : f32 to vector<16x1xf32>
    %340 = arith.divf %338, %339 : vector<16x1xf32>
    %341 = vector.broadcast %333 : vector<16x1xf32> to vector<16x32xf32>
    %342 = arith.subf %325, %341 : vector<16x32xf32>
    %cst_188 = arith.constant 9.99999996E-13 : f32
    %343 = vector.broadcast %cst_188 : f32 to vector<16x1xf32>
    %344 = arith.addf %340, %343 : vector<16x1xf32>
    %345 = math.rsqrt %344 : vector<16x1xf32>
    %346 = vector.broadcast %345 : vector<16x1xf32> to vector<16x32xf32>
    %347 = arith.mulf %342, %346 : vector<16x32xf32>
    %348 = vector.broadcast %327 : vector<1x32xf32> to vector<16x32xf32>
    %349 = arith.mulf %347, %348 : vector<16x32xf32>
    %350 = vector.broadcast %329 : vector<1x32xf32> to vector<16x32xf32>
    %351 = arith.addf %349, %350 : vector<16x32xf32>
    %352 = arith.truncf %351 : vector<16x32xf32> to vector<16x32xbf16>
    %c0_189 = arith.constant 0 : index
    %c0_190 = arith.constant 0 : index
    %c0_191 = arith.constant 0 : index
    %353 = vector.load %arg10[%c0_189, %c0_190, %c0_191] : memref<6x32x128xbf16, #tpu.memory_space<vmem>>, vector<1x32x128xbf16>
    %354 = vector.shape_cast %353 : vector<1x32x128xbf16> to vector<32x128xbf16>
    %cst_192 = arith.constant dense<0.000000e+00> : vector<16x128xf32>
    %355 = tpu.matmul %352, %354, %cst_192 {dimension_numbers = #tpu.dot_dimension_numbers<[1], [0], [0], [1], [0, 0, 1, 1], [], []>} : vector<16x32xbf16>, vector<32x128xbf16>, vector<16x128xf32> -> vector<16x128xf32>
    %c0_193 = arith.constant 0 : index
    %c6_194 = arith.constant 6 : index
    %c0_195 = arith.constant 0 : index
    %356 = vector.load %arg11[%c0_193, %c6_194, %c0_195] : memref<6x16x128xf32, #tpu.memory_space<vmem>>, vector<1x1x128xf32>
    %357 = vector.shape_cast %356 : vector<1x1x128xf32> to vector<1x128xf32>
    %358 = vector.broadcast %357 : vector<1x128xf32> to vector<16x128xf32>
    %359 = arith.addf %355, %358 : vector<16x128xf32>
    %360 = arith.mulf %359, %359 : vector<16x128xf32>
    %361 = arith.mulf %359, %360 : vector<16x128xf32>
    %cst_196 = arith.constant 4.471500e-02 : f32
    %362 = vector.broadcast %cst_196 : f32 to vector<16x128xf32>
    %363 = arith.mulf %362, %361 : vector<16x128xf32>
    %364 = arith.addf %359, %363 : vector<16x128xf32>
    %cst_197 = arith.constant 0.797884583 : f32
    %365 = vector.broadcast %cst_197 : f32 to vector<16x128xf32>
    %366 = arith.mulf %365, %364 : vector<16x128xf32>
    %367 = math.tanh %366 : vector<16x128xf32>
    %cst_198 = arith.constant 1.000000e+00 : f32
    %368 = vector.broadcast %cst_198 : f32 to vector<16x128xf32>
    %369 = arith.addf %368, %367 : vector<16x128xf32>
    %cst_199 = arith.constant 5.000000e-01 : f32
    %370 = vector.broadcast %cst_199 : f32 to vector<16x128xf32>
    %371 = arith.mulf %370, %369 : vector<16x128xf32>
    %372 = arith.mulf %359, %371 : vector<16x128xf32>
    %373 = arith.truncf %372 : vector<16x128xf32> to vector<16x128xbf16>
    %c0_200 = arith.constant 0 : index
    %c128_201 = arith.constant 128 : index
    %c0_202 = arith.constant 0 : index
    %374 = vector.load %arg9[%c0_200, %c128_201, %c0_202] : memref<6x256x32xbf16, #tpu.memory_space<vmem>>, vector<1x128x32xbf16>
    %375 = vector.shape_cast %374 : vector<1x128x32xbf16> to vector<128x32xbf16>
    %cst_203 = arith.constant dense<0.000000e+00> : vector<16x32xf32>
    %376 = tpu.matmul %373, %375, %cst_203 {dimension_numbers = #tpu.dot_dimension_numbers<[1], [0], [0], [1], [0, 0, 1, 1], [], []>} : vector<16x128xbf16>, vector<128x32xbf16>, vector<16x32xf32> -> vector<16x32xf32>
    %c0_204 = arith.constant 0 : index
    %c7_205 = arith.constant 7 : index
    %c0_206 = arith.constant 0 : index
    %377 = vector.load %arg11[%c0_204, %c7_205, %c0_206] : memref<6x16x128xf32, #tpu.memory_space<vmem>>, vector<1x1x32xf32>
    %378 = vector.shape_cast %377 : vector<1x1x32xf32> to vector<1x32xf32>
    %379 = vector.broadcast %378 : vector<1x32xf32> to vector<16x32xf32>
    %380 = arith.addf %376, %379 : vector<16x32xf32>
    %381 = arith.addf %351, %380 : vector<16x32xf32>
    %c0_207 = arith.constant 0 : index
    %c8_208 = arith.constant 8 : index
    %c0_209 = arith.constant 0 : index
    %382 = vector.load %arg11[%c0_207, %c8_208, %c0_209] : memref<6x16x128xf32, #tpu.memory_space<vmem>>, vector<1x1x32xf32>
    %383 = vector.shape_cast %382 : vector<1x1x32xf32> to vector<1x32xf32>
    %c0_210 = arith.constant 0 : index
    %c9_211 = arith.constant 9 : index
    %c0_212 = arith.constant 0 : index
    %384 = vector.load %arg11[%c0_210, %c9_211, %c0_212] : memref<6x16x128xf32, #tpu.memory_space<vmem>>, vector<1x1x32xf32>
    %385 = vector.shape_cast %384 : vector<1x1x32xf32> to vector<1x32xf32>
    %cst_213 = arith.constant dense<0.000000e+00> : vector<16xf32>
    %386 = vector.multi_reduction <add>, %381, %cst_213 [1] : vector<16x32xf32> to vector<16xf32>
    %387 = vector.shape_cast %386 : vector<16xf32> to vector<16x1xf32>
    %cst_214 = arith.constant 3.200000e+01 : f32
    %388 = vector.broadcast %cst_214 : f32 to vector<16x1xf32>
    %389 = arith.divf %387, %388 : vector<16x1xf32>
    %390 = vector.broadcast %389 : vector<16x1xf32> to vector<16x32xf32>
    %391 = arith.subf %381, %390 : vector<16x32xf32>
    %392 = arith.mulf %391, %391 : vector<16x32xf32>
    %cst_215 = arith.constant dense<0.000000e+00> : vector<16xf32>
    %393 = vector.multi_reduction <add>, %392, %cst_215 [1] : vector<16x32xf32> to vector<16xf32>
    %394 = vector.shape_cast %393 : vector<16xf32> to vector<16x1xf32>
    %cst_216 = arith.constant 3.200000e+01 : f32
    %395 = vector.broadcast %cst_216 : f32 to vector<16x1xf32>
    %396 = arith.divf %394, %395 : vector<16x1xf32>
    %397 = vector.broadcast %389 : vector<16x1xf32> to vector<16x32xf32>
    %398 = arith.subf %381, %397 : vector<16x32xf32>
    %cst_217 = arith.constant 9.99999996E-13 : f32
    %399 = vector.broadcast %cst_217 : f32 to vector<16x1xf32>
    %400 = arith.addf %396, %399 : vector<16x1xf32>
    %401 = math.rsqrt %400 : vector<16x1xf32>
    %402 = vector.broadcast %401 : vector<16x1xf32> to vector<16x32xf32>
    %403 = arith.mulf %398, %402 : vector<16x32xf32>
    %404 = vector.broadcast %383 : vector<1x32xf32> to vector<16x32xf32>
    %405 = arith.mulf %403, %404 : vector<16x32xf32>
    %406 = vector.broadcast %385 : vector<1x32xf32> to vector<16x32xf32>
    %407 = arith.addf %405, %406 : vector<16x32xf32>
    %408 = arith.truncf %407 : vector<16x32xf32> to vector<16x32xbf16>
    %c1_218 = arith.constant 1 : index
    %c0_219 = arith.constant 0 : index
    %c0_220 = arith.constant 0 : index
    %409 = vector.load %arg9[%c1_218, %c0_219, %c0_220] : memref<6x256x32xbf16, #tpu.memory_space<vmem>>, vector<1x32x32xbf16>
    %410 = vector.shape_cast %409 : vector<1x32x32xbf16> to vector<32x32xbf16>
    %cst_221 = arith.constant dense<0.000000e+00> : vector<16x32xf32>
    %411 = tpu.matmul %408, %410, %cst_221 {dimension_numbers = #tpu.dot_dimension_numbers<[1], [0], [0], [1], [0, 0, 1, 1], [], []>} : vector<16x32xbf16>, vector<32x32xbf16>, vector<16x32xf32> -> vector<16x32xf32>
    %c1_222 = arith.constant 1 : index
    %c0_223 = arith.constant 0 : index
    %c0_224 = arith.constant 0 : index
    %412 = vector.load %arg11[%c1_222, %c0_223, %c0_224] : memref<6x16x128xf32, #tpu.memory_space<vmem>>, vector<1x1x32xf32>
    %413 = vector.shape_cast %412 : vector<1x1x32xf32> to vector<1x32xf32>
    %414 = vector.broadcast %413 : vector<1x32xf32> to vector<16x32xf32>
    %415 = arith.addf %411, %414 : vector<16x32xf32>
    %c1_225 = arith.constant 1 : index
    %c32_226 = arith.constant 32 : index
    %c0_227 = arith.constant 0 : index
    %416 = vector.load %arg9[%c1_225, %c32_226, %c0_227] : memref<6x256x32xbf16, #tpu.memory_space<vmem>>, vector<1x32x32xbf16>
    %417 = vector.shape_cast %416 : vector<1x32x32xbf16> to vector<32x32xbf16>
    %cst_228 = arith.constant dense<0.000000e+00> : vector<16x32xf32>
    %418 = tpu.matmul %408, %417, %cst_228 {dimension_numbers = #tpu.dot_dimension_numbers<[1], [0], [0], [1], [0, 0, 1, 1], [], []>} : vector<16x32xbf16>, vector<32x32xbf16>, vector<16x32xf32> -> vector<16x32xf32>
    %c1_229 = arith.constant 1 : index
    %c1_230 = arith.constant 1 : index
    %c0_231 = arith.constant 0 : index
    %419 = vector.load %arg11[%c1_229, %c1_230, %c0_231] : memref<6x16x128xf32, #tpu.memory_space<vmem>>, vector<1x1x32xf32>
    %420 = vector.shape_cast %419 : vector<1x1x32xf32> to vector<1x32xf32>
    %421 = vector.broadcast %420 : vector<1x32xf32> to vector<16x32xf32>
    %422 = arith.addf %418, %421 : vector<16x32xf32>
    %c1_232 = arith.constant 1 : index
    %c64_233 = arith.constant 64 : index
    %c0_234 = arith.constant 0 : index
    %423 = vector.load %arg9[%c1_232, %c64_233, %c0_234] : memref<6x256x32xbf16, #tpu.memory_space<vmem>>, vector<1x32x32xbf16>
    %424 = vector.shape_cast %423 : vector<1x32x32xbf16> to vector<32x32xbf16>
    %cst_235 = arith.constant dense<0.000000e+00> : vector<16x32xf32>
    %425 = tpu.matmul %408, %424, %cst_235 {dimension_numbers = #tpu.dot_dimension_numbers<[1], [0], [0], [1], [0, 0, 1, 1], [], []>} : vector<16x32xbf16>, vector<32x32xbf16>, vector<16x32xf32> -> vector<16x32xf32>
    %c1_236 = arith.constant 1 : index
    %c2_237 = arith.constant 2 : index
    %c0_238 = arith.constant 0 : index
    %426 = vector.load %arg11[%c1_236, %c2_237, %c0_238] : memref<6x16x128xf32, #tpu.memory_space<vmem>>, vector<1x1x32xf32>
    %427 = vector.shape_cast %426 : vector<1x1x32xf32> to vector<1x32xf32>
    %428 = vector.broadcast %427 : vector<1x32xf32> to vector<16x32xf32>
    %429 = arith.addf %425, %428 : vector<16x32xf32>
    %430 = arith.truncf %415 : vector<16x32xf32> to vector<16x32xbf16>
    %431 = arith.truncf %422 : vector<16x32xf32> to vector<16x32xbf16>
    %cst_239 = arith.constant dense<0.000000e+00> : vector<16x16xf32>
    %432 = tpu.matmul %430, %431, %cst_239 {dimension_numbers = #tpu.dot_dimension_numbers<[1], [1], [0], [0], [0, 0, 1, 0], [], []>} : vector<16x32xbf16>, vector<16x32xbf16>, vector<16x16xf32> -> vector<16x16xf32>
    %433 = arith.addf %432, %281 : vector<16x16xf32>
    %434 = math.exp %433 : vector<16x16xf32>
    %cst_240 = arith.constant dense<0.000000e+00> : vector<16xf32>
    %435 = vector.multi_reduction <add>, %434, %cst_240 [1] : vector<16x16xf32> to vector<16xf32>
    %436 = vector.shape_cast %435 : vector<16xf32> to vector<16x1xf32>
    %437 = tpu.reciprocal %436 {approx = true} : vector<16x1xf32> -> vector<16x1xf32>
    %438 = vector.broadcast %437 : vector<16x1xf32> to vector<16x16xf32>
    %439 = arith.mulf %434, %438 : vector<16x16xf32>
    %440 = arith.truncf %439 : vector<16x16xf32> to vector<16x16xbf16>
    %441 = arith.truncf %429 : vector<16x32xf32> to vector<16x32xbf16>
    %cst_241 = arith.constant dense<0.000000e+00> : vector<16x32xf32>
    %442 = tpu.matmul %440, %441, %cst_241 {dimension_numbers = #tpu.dot_dimension_numbers<[1], [0], [0], [1], [0, 0, 1, 1], [], []>} : vector<16x16xbf16>, vector<16x32xbf16>, vector<16x32xf32> -> vector<16x32xf32>
    %443 = arith.truncf %442 : vector<16x32xf32> to vector<16x32xbf16>
    %c1_242 = arith.constant 1 : index
    %c96_243 = arith.constant 96 : index
    %c0_244 = arith.constant 0 : index
    %444 = vector.load %arg9[%c1_242, %c96_243, %c0_244] : memref<6x256x32xbf16, #tpu.memory_space<vmem>>, vector<1x32x32xbf16>
    %445 = vector.shape_cast %444 : vector<1x32x32xbf16> to vector<32x32xbf16>
    %cst_245 = arith.constant dense<0.000000e+00> : vector<16x32xf32>
    %446 = tpu.matmul %443, %445, %cst_245 {dimension_numbers = #tpu.dot_dimension_numbers<[1], [0], [0], [1], [0, 0, 1, 1], [], []>} : vector<16x32xbf16>, vector<32x32xbf16>, vector<16x32xf32> -> vector<16x32xf32>
    %c1_246 = arith.constant 1 : index
    %c3_247 = arith.constant 3 : index
    %c0_248 = arith.constant 0 : index
    %447 = vector.load %arg11[%c1_246, %c3_247, %c0_248] : memref<6x16x128xf32, #tpu.memory_space<vmem>>, vector<1x1x32xf32>
    %448 = vector.shape_cast %447 : vector<1x1x32xf32> to vector<1x32xf32>
    %449 = vector.broadcast %448 : vector<1x32xf32> to vector<16x32xf32>
    %450 = arith.addf %446, %449 : vector<16x32xf32>
    %451 = arith.addf %407, %450 : vector<16x32xf32>
    %c1_249 = arith.constant 1 : index
    %c4_250 = arith.constant 4 : index
    %c0_251 = arith.constant 0 : index
    %452 = vector.load %arg11[%c1_249, %c4_250, %c0_251] : memref<6x16x128xf32, #tpu.memory_space<vmem>>, vector<1x1x32xf32>
    %453 = vector.shape_cast %452 : vector<1x1x32xf32> to vector<1x32xf32>
    %c1_252 = arith.constant 1 : index
    %c5_253 = arith.constant 5 : index
    %c0_254 = arith.constant 0 : index
    %454 = vector.load %arg11[%c1_252, %c5_253, %c0_254] : memref<6x16x128xf32, #tpu.memory_space<vmem>>, vector<1x1x32xf32>
    %455 = vector.shape_cast %454 : vector<1x1x32xf32> to vector<1x32xf32>
    %cst_255 = arith.constant dense<0.000000e+00> : vector<16xf32>
    %456 = vector.multi_reduction <add>, %451, %cst_255 [1] : vector<16x32xf32> to vector<16xf32>
    %457 = vector.shape_cast %456 : vector<16xf32> to vector<16x1xf32>
    %cst_256 = arith.constant 3.200000e+01 : f32
    %458 = vector.broadcast %cst_256 : f32 to vector<16x1xf32>
    %459 = arith.divf %457, %458 : vector<16x1xf32>
    %460 = vector.broadcast %459 : vector<16x1xf32> to vector<16x32xf32>
    %461 = arith.subf %451, %460 : vector<16x32xf32>
    %462 = arith.mulf %461, %461 : vector<16x32xf32>
    %cst_257 = arith.constant dense<0.000000e+00> : vector<16xf32>
    %463 = vector.multi_reduction <add>, %462, %cst_257 [1] : vector<16x32xf32> to vector<16xf32>
    %464 = vector.shape_cast %463 : vector<16xf32> to vector<16x1xf32>
    %cst_258 = arith.constant 3.200000e+01 : f32
    %465 = vector.broadcast %cst_258 : f32 to vector<16x1xf32>
    %466 = arith.divf %464, %465 : vector<16x1xf32>
    %467 = vector.broadcast %459 : vector<16x1xf32> to vector<16x32xf32>
    %468 = arith.subf %451, %467 : vector<16x32xf32>
    %cst_259 = arith.constant 9.99999996E-13 : f32
    %469 = vector.broadcast %cst_259 : f32 to vector<16x1xf32>
    %470 = arith.addf %466, %469 : vector<16x1xf32>
    %471 = math.rsqrt %470 : vector<16x1xf32>
    %472 = vector.broadcast %471 : vector<16x1xf32> to vector<16x32xf32>
    %473 = arith.mulf %468, %472 : vector<16x32xf32>
    %474 = vector.broadcast %453 : vector<1x32xf32> to vector<16x32xf32>
    %475 = arith.mulf %473, %474 : vector<16x32xf32>
    %476 = vector.broadcast %455 : vector<1x32xf32> to vector<16x32xf32>
    %477 = arith.addf %475, %476 : vector<16x32xf32>
    %478 = arith.truncf %477 : vector<16x32xf32> to vector<16x32xbf16>
    %c1_260 = arith.constant 1 : index
    %c0_261 = arith.constant 0 : index
    %c0_262 = arith.constant 0 : index
    %479 = vector.load %arg10[%c1_260, %c0_261, %c0_262] : memref<6x32x128xbf16, #tpu.memory_space<vmem>>, vector<1x32x128xbf16>
    %480 = vector.shape_cast %479 : vector<1x32x128xbf16> to vector<32x128xbf16>
    %cst_263 = arith.constant dense<0.000000e+00> : vector<16x128xf32>
    %481 = tpu.matmul %478, %480, %cst_263 {dimension_numbers = #tpu.dot_dimension_numbers<[1], [0], [0], [1], [0, 0, 1, 1], [], []>} : vector<16x32xbf16>, vector<32x128xbf16>, vector<16x128xf32> -> vector<16x128xf32>
    %c1_264 = arith.constant 1 : index
    %c6_265 = arith.constant 6 : index
    %c0_266 = arith.constant 0 : index
    %482 = vector.load %arg11[%c1_264, %c6_265, %c0_266] : memref<6x16x128xf32, #tpu.memory_space<vmem>>, vector<1x1x128xf32>
    %483 = vector.shape_cast %482 : vector<1x1x128xf32> to vector<1x128xf32>
    %484 = vector.broadcast %483 : vector<1x128xf32> to vector<16x128xf32>
    %485 = arith.addf %481, %484 : vector<16x128xf32>
    %486 = arith.mulf %485, %485 : vector<16x128xf32>
    %487 = arith.mulf %485, %486 : vector<16x128xf32>
    %cst_267 = arith.constant 4.471500e-02 : f32
    %488 = vector.broadcast %cst_267 : f32 to vector<16x128xf32>
    %489 = arith.mulf %488, %487 : vector<16x128xf32>
    %490 = arith.addf %485, %489 : vector<16x128xf32>
    %cst_268 = arith.constant 0.797884583 : f32
    %491 = vector.broadcast %cst_268 : f32 to vector<16x128xf32>
    %492 = arith.mulf %491, %490 : vector<16x128xf32>
    %493 = math.tanh %492 : vector<16x128xf32>
    %cst_269 = arith.constant 1.000000e+00 : f32
    %494 = vector.broadcast %cst_269 : f32 to vector<16x128xf32>
    %495 = arith.addf %494, %493 : vector<16x128xf32>
    %cst_270 = arith.constant 5.000000e-01 : f32
    %496 = vector.broadcast %cst_270 : f32 to vector<16x128xf32>
    %497 = arith.mulf %496, %495 : vector<16x128xf32>
    %498 = arith.mulf %485, %497 : vector<16x128xf32>
    %499 = arith.truncf %498 : vector<16x128xf32> to vector<16x128xbf16>
    %c1_271 = arith.constant 1 : index
    %c128_272 = arith.constant 128 : index
    %c0_273 = arith.constant 0 : index
    %500 = vector.load %arg9[%c1_271, %c128_272, %c0_273] : memref<6x256x32xbf16, #tpu.memory_space<vmem>>, vector<1x128x32xbf16>
    %501 = vector.shape_cast %500 : vector<1x128x32xbf16> to vector<128x32xbf16>
    %cst_274 = arith.constant dense<0.000000e+00> : vector<16x32xf32>
    %502 = tpu.matmul %499, %501, %cst_274 {dimension_numbers = #tpu.dot_dimension_numbers<[1], [0], [0], [1], [0, 0, 1, 1], [], []>} : vector<16x128xbf16>, vector<128x32xbf16>, vector<16x32xf32> -> vector<16x32xf32>
    %c1_275 = arith.constant 1 : index
    %c7_276 = arith.constant 7 : index
    %c0_277 = arith.constant 0 : index
    %503 = vector.load %arg11[%c1_275, %c7_276, %c0_277] : memref<6x16x128xf32, #tpu.memory_space<vmem>>, vector<1x1x32xf32>
    %504 = vector.shape_cast %503 : vector<1x1x32xf32> to vector<1x32xf32>
    %505 = vector.broadcast %504 : vector<1x32xf32> to vector<16x32xf32>
    %506 = arith.addf %502, %505 : vector<16x32xf32>
    %507 = arith.addf %477, %506 : vector<16x32xf32>
    %c1_278 = arith.constant 1 : index
    %c8_279 = arith.constant 8 : index
    %c0_280 = arith.constant 0 : index
    %508 = vector.load %arg11[%c1_278, %c8_279, %c0_280] : memref<6x16x128xf32, #tpu.memory_space<vmem>>, vector<1x1x32xf32>
    %509 = vector.shape_cast %508 : vector<1x1x32xf32> to vector<1x32xf32>
    %c1_281 = arith.constant 1 : index
    %c9_282 = arith.constant 9 : index
    %c0_283 = arith.constant 0 : index
    %510 = vector.load %arg11[%c1_281, %c9_282, %c0_283] : memref<6x16x128xf32, #tpu.memory_space<vmem>>, vector<1x1x32xf32>
    %511 = vector.shape_cast %510 : vector<1x1x32xf32> to vector<1x32xf32>
    %cst_284 = arith.constant dense<0.000000e+00> : vector<16xf32>
    %512 = vector.multi_reduction <add>, %507, %cst_284 [1] : vector<16x32xf32> to vector<16xf32>
    %513 = vector.shape_cast %512 : vector<16xf32> to vector<16x1xf32>
    %cst_285 = arith.constant 3.200000e+01 : f32
    %514 = vector.broadcast %cst_285 : f32 to vector<16x1xf32>
    %515 = arith.divf %513, %514 : vector<16x1xf32>
    %516 = vector.broadcast %515 : vector<16x1xf32> to vector<16x32xf32>
    %517 = arith.subf %507, %516 : vector<16x32xf32>
    %518 = arith.mulf %517, %517 : vector<16x32xf32>
    %cst_286 = arith.constant dense<0.000000e+00> : vector<16xf32>
    %519 = vector.multi_reduction <add>, %518, %cst_286 [1] : vector<16x32xf32> to vector<16xf32>
    %520 = vector.shape_cast %519 : vector<16xf32> to vector<16x1xf32>
    %cst_287 = arith.constant 3.200000e+01 : f32
    %521 = vector.broadcast %cst_287 : f32 to vector<16x1xf32>
    %522 = arith.divf %520, %521 : vector<16x1xf32>
    %523 = vector.broadcast %515 : vector<16x1xf32> to vector<16x32xf32>
    %524 = arith.subf %507, %523 : vector<16x32xf32>
    %cst_288 = arith.constant 9.99999996E-13 : f32
    %525 = vector.broadcast %cst_288 : f32 to vector<16x1xf32>
    %526 = arith.addf %522, %525 : vector<16x1xf32>
    %527 = math.rsqrt %526 : vector<16x1xf32>
    %528 = vector.broadcast %527 : vector<16x1xf32> to vector<16x32xf32>
    %529 = arith.mulf %524, %528 : vector<16x32xf32>
    %530 = vector.broadcast %509 : vector<1x32xf32> to vector<16x32xf32>
    %531 = arith.mulf %529, %530 : vector<16x32xf32>
    %532 = vector.broadcast %511 : vector<1x32xf32> to vector<16x32xf32>
    %533 = arith.addf %531, %532 : vector<16x32xf32>
    %534 = arith.truncf %533 : vector<16x32xf32> to vector<16x32xbf16>
    %c2_289 = arith.constant 2 : index
    %c0_290 = arith.constant 0 : index
    %c0_291 = arith.constant 0 : index
    %535 = vector.load %arg9[%c2_289, %c0_290, %c0_291] : memref<6x256x32xbf16, #tpu.memory_space<vmem>>, vector<1x32x32xbf16>
    %536 = vector.shape_cast %535 : vector<1x32x32xbf16> to vector<32x32xbf16>
    %cst_292 = arith.constant dense<0.000000e+00> : vector<16x32xf32>
    %537 = tpu.matmul %534, %536, %cst_292 {dimension_numbers = #tpu.dot_dimension_numbers<[1], [0], [0], [1], [0, 0, 1, 1], [], []>} : vector<16x32xbf16>, vector<32x32xbf16>, vector<16x32xf32> -> vector<16x32xf32>
    %c2_293 = arith.constant 2 : index
    %c0_294 = arith.constant 0 : index
    %c0_295 = arith.constant 0 : index
    %538 = vector.load %arg11[%c2_293, %c0_294, %c0_295] : memref<6x16x128xf32, #tpu.memory_space<vmem>>, vector<1x1x32xf32>
    %539 = vector.shape_cast %538 : vector<1x1x32xf32> to vector<1x32xf32>
    %540 = vector.broadcast %539 : vector<1x32xf32> to vector<16x32xf32>
    %541 = arith.addf %537, %540 : vector<16x32xf32>
    %c2_296 = arith.constant 2 : index
    %c32_297 = arith.constant 32 : index
    %c0_298 = arith.constant 0 : index
    %542 = vector.load %arg9[%c2_296, %c32_297, %c0_298] : memref<6x256x32xbf16, #tpu.memory_space<vmem>>, vector<1x32x32xbf16>
    %543 = vector.shape_cast %542 : vector<1x32x32xbf16> to vector<32x32xbf16>
    %cst_299 = arith.constant dense<0.000000e+00> : vector<16x32xf32>
    %544 = tpu.matmul %534, %543, %cst_299 {dimension_numbers = #tpu.dot_dimension_numbers<[1], [0], [0], [1], [0, 0, 1, 1], [], []>} : vector<16x32xbf16>, vector<32x32xbf16>, vector<16x32xf32> -> vector<16x32xf32>
    %c2_300 = arith.constant 2 : index
    %c1_301 = arith.constant 1 : index
    %c0_302 = arith.constant 0 : index
    %545 = vector.load %arg11[%c2_300, %c1_301, %c0_302] : memref<6x16x128xf32, #tpu.memory_space<vmem>>, vector<1x1x32xf32>
    %546 = vector.shape_cast %545 : vector<1x1x32xf32> to vector<1x32xf32>
    %547 = vector.broadcast %546 : vector<1x32xf32> to vector<16x32xf32>
    %548 = arith.addf %544, %547 : vector<16x32xf32>
    %c2_303 = arith.constant 2 : index
    %c64_304 = arith.constant 64 : index
    %c0_305 = arith.constant 0 : index
    %549 = vector.load %arg9[%c2_303, %c64_304, %c0_305] : memref<6x256x32xbf16, #tpu.memory_space<vmem>>, vector<1x32x32xbf16>
    %550 = vector.shape_cast %549 : vector<1x32x32xbf16> to vector<32x32xbf16>
    %cst_306 = arith.constant dense<0.000000e+00> : vector<16x32xf32>
    %551 = tpu.matmul %534, %550, %cst_306 {dimension_numbers = #tpu.dot_dimension_numbers<[1], [0], [0], [1], [0, 0, 1, 1], [], []>} : vector<16x32xbf16>, vector<32x32xbf16>, vector<16x32xf32> -> vector<16x32xf32>
    %c2_307 = arith.constant 2 : index
    %c2_308 = arith.constant 2 : index
    %c0_309 = arith.constant 0 : index
    %552 = vector.load %arg11[%c2_307, %c2_308, %c0_309] : memref<6x16x128xf32, #tpu.memory_space<vmem>>, vector<1x1x32xf32>
    %553 = vector.shape_cast %552 : vector<1x1x32xf32> to vector<1x32xf32>
    %554 = vector.broadcast %553 : vector<1x32xf32> to vector<16x32xf32>
    %555 = arith.addf %551, %554 : vector<16x32xf32>
    %556 = arith.truncf %541 : vector<16x32xf32> to vector<16x32xbf16>
    %557 = arith.truncf %548 : vector<16x32xf32> to vector<16x32xbf16>
    %cst_310 = arith.constant dense<0.000000e+00> : vector<16x16xf32>
    %558 = tpu.matmul %556, %557, %cst_310 {dimension_numbers = #tpu.dot_dimension_numbers<[1], [1], [0], [0], [0, 0, 1, 0], [], []>} : vector<16x32xbf16>, vector<16x32xbf16>, vector<16x16xf32> -> vector<16x16xf32>
    %559 = arith.addf %558, %281 : vector<16x16xf32>
    %560 = math.exp %559 : vector<16x16xf32>
    %cst_311 = arith.constant dense<0.000000e+00> : vector<16xf32>
    %561 = vector.multi_reduction <add>, %560, %cst_311 [1] : vector<16x16xf32> to vector<16xf32>
    %562 = vector.shape_cast %561 : vector<16xf32> to vector<16x1xf32>
    %563 = tpu.reciprocal %562 {approx = true} : vector<16x1xf32> -> vector<16x1xf32>
    %564 = vector.broadcast %563 : vector<16x1xf32> to vector<16x16xf32>
    %565 = arith.mulf %560, %564 : vector<16x16xf32>
    %566 = arith.truncf %565 : vector<16x16xf32> to vector<16x16xbf16>
    %567 = arith.truncf %555 : vector<16x32xf32> to vector<16x32xbf16>
    %cst_312 = arith.constant dense<0.000000e+00> : vector<16x32xf32>
    %568 = tpu.matmul %566, %567, %cst_312 {dimension_numbers = #tpu.dot_dimension_numbers<[1], [0], [0], [1], [0, 0, 1, 1], [], []>} : vector<16x16xbf16>, vector<16x32xbf16>, vector<16x32xf32> -> vector<16x32xf32>
    %569 = arith.truncf %568 : vector<16x32xf32> to vector<16x32xbf16>
    %c2_313 = arith.constant 2 : index
    %c96_314 = arith.constant 96 : index
    %c0_315 = arith.constant 0 : index
    %570 = vector.load %arg9[%c2_313, %c96_314, %c0_315] : memref<6x256x32xbf16, #tpu.memory_space<vmem>>, vector<1x32x32xbf16>
    %571 = vector.shape_cast %570 : vector<1x32x32xbf16> to vector<32x32xbf16>
    %cst_316 = arith.constant dense<0.000000e+00> : vector<16x32xf32>
    %572 = tpu.matmul %569, %571, %cst_316 {dimension_numbers = #tpu.dot_dimension_numbers<[1], [0], [0], [1], [0, 0, 1, 1], [], []>} : vector<16x32xbf16>, vector<32x32xbf16>, vector<16x32xf32> -> vector<16x32xf32>
    %c2_317 = arith.constant 2 : index
    %c3_318 = arith.constant 3 : index
    %c0_319 = arith.constant 0 : index
    %573 = vector.load %arg11[%c2_317, %c3_318, %c0_319] : memref<6x16x128xf32, #tpu.memory_space<vmem>>, vector<1x1x32xf32>
    %574 = vector.shape_cast %573 : vector<1x1x32xf32> to vector<1x32xf32>
    %575 = vector.broadcast %574 : vector<1x32xf32> to vector<16x32xf32>
    %576 = arith.addf %572, %575 : vector<16x32xf32>
    %577 = arith.addf %533, %576 : vector<16x32xf32>
    %c2_320 = arith.constant 2 : index
    %c4_321 = arith.constant 4 : index
    %c0_322 = arith.constant 0 : index
    %578 = vector.load %arg11[%c2_320, %c4_321, %c0_322] : memref<6x16x128xf32, #tpu.memory_space<vmem>>, vector<1x1x32xf32>
    %579 = vector.shape_cast %578 : vector<1x1x32xf32> to vector<1x32xf32>
    %c2_323 = arith.constant 2 : index
    %c5_324 = arith.constant 5 : index
    %c0_325 = arith.constant 0 : index
    %580 = vector.load %arg11[%c2_323, %c5_324, %c0_325] : memref<6x16x128xf32, #tpu.memory_space<vmem>>, vector<1x1x32xf32>
    %581 = vector.shape_cast %580 : vector<1x1x32xf32> to vector<1x32xf32>
    %cst_326 = arith.constant dense<0.000000e+00> : vector<16xf32>
    %582 = vector.multi_reduction <add>, %577, %cst_326 [1] : vector<16x32xf32> to vector<16xf32>
    %583 = vector.shape_cast %582 : vector<16xf32> to vector<16x1xf32>
    %cst_327 = arith.constant 3.200000e+01 : f32
    %584 = vector.broadcast %cst_327 : f32 to vector<16x1xf32>
    %585 = arith.divf %583, %584 : vector<16x1xf32>
    %586 = vector.broadcast %585 : vector<16x1xf32> to vector<16x32xf32>
    %587 = arith.subf %577, %586 : vector<16x32xf32>
    %588 = arith.mulf %587, %587 : vector<16x32xf32>
    %cst_328 = arith.constant dense<0.000000e+00> : vector<16xf32>
    %589 = vector.multi_reduction <add>, %588, %cst_328 [1] : vector<16x32xf32> to vector<16xf32>
    %590 = vector.shape_cast %589 : vector<16xf32> to vector<16x1xf32>
    %cst_329 = arith.constant 3.200000e+01 : f32
    %591 = vector.broadcast %cst_329 : f32 to vector<16x1xf32>
    %592 = arith.divf %590, %591 : vector<16x1xf32>
    %593 = vector.broadcast %585 : vector<16x1xf32> to vector<16x32xf32>
    %594 = arith.subf %577, %593 : vector<16x32xf32>
    %cst_330 = arith.constant 9.99999996E-13 : f32
    %595 = vector.broadcast %cst_330 : f32 to vector<16x1xf32>
    %596 = arith.addf %592, %595 : vector<16x1xf32>
    %597 = math.rsqrt %596 : vector<16x1xf32>
    %598 = vector.broadcast %597 : vector<16x1xf32> to vector<16x32xf32>
    %599 = arith.mulf %594, %598 : vector<16x32xf32>
    %600 = vector.broadcast %579 : vector<1x32xf32> to vector<16x32xf32>
    %601 = arith.mulf %599, %600 : vector<16x32xf32>
    %602 = vector.broadcast %581 : vector<1x32xf32> to vector<16x32xf32>
    %603 = arith.addf %601, %602 : vector<16x32xf32>
    %604 = arith.truncf %603 : vector<16x32xf32> to vector<16x32xbf16>
    %c2_331 = arith.constant 2 : index
    %c0_332 = arith.constant 0 : index
    %c0_333 = arith.constant 0 : index
    %605 = vector.load %arg10[%c2_331, %c0_332, %c0_333] : memref<6x32x128xbf16, #tpu.memory_space<vmem>>, vector<1x32x128xbf16>
    %606 = vector.shape_cast %605 : vector<1x32x128xbf16> to vector<32x128xbf16>
    %cst_334 = arith.constant dense<0.000000e+00> : vector<16x128xf32>
    %607 = tpu.matmul %604, %606, %cst_334 {dimension_numbers = #tpu.dot_dimension_numbers<[1], [0], [0], [1], [0, 0, 1, 1], [], []>} : vector<16x32xbf16>, vector<32x128xbf16>, vector<16x128xf32> -> vector<16x128xf32>
    %c2_335 = arith.constant 2 : index
    %c6_336 = arith.constant 6 : index
    %c0_337 = arith.constant 0 : index
    %608 = vector.load %arg11[%c2_335, %c6_336, %c0_337] : memref<6x16x128xf32, #tpu.memory_space<vmem>>, vector<1x1x128xf32>
    %609 = vector.shape_cast %608 : vector<1x1x128xf32> to vector<1x128xf32>
    %610 = vector.broadcast %609 : vector<1x128xf32> to vector<16x128xf32>
    %611 = arith.addf %607, %610 : vector<16x128xf32>
    %612 = arith.mulf %611, %611 : vector<16x128xf32>
    %613 = arith.mulf %611, %612 : vector<16x128xf32>
    %cst_338 = arith.constant 4.471500e-02 : f32
    %614 = vector.broadcast %cst_338 : f32 to vector<16x128xf32>
    %615 = arith.mulf %614, %613 : vector<16x128xf32>
    %616 = arith.addf %611, %615 : vector<16x128xf32>
    %cst_339 = arith.constant 0.797884583 : f32
    %617 = vector.broadcast %cst_339 : f32 to vector<16x128xf32>
    %618 = arith.mulf %617, %616 : vector<16x128xf32>
    %619 = math.tanh %618 : vector<16x128xf32>
    %cst_340 = arith.constant 1.000000e+00 : f32
    %620 = vector.broadcast %cst_340 : f32 to vector<16x128xf32>
    %621 = arith.addf %620, %619 : vector<16x128xf32>
    %cst_341 = arith.constant 5.000000e-01 : f32
    %622 = vector.broadcast %cst_341 : f32 to vector<16x128xf32>
    %623 = arith.mulf %622, %621 : vector<16x128xf32>
    %624 = arith.mulf %611, %623 : vector<16x128xf32>
    %625 = arith.truncf %624 : vector<16x128xf32> to vector<16x128xbf16>
    %c2_342 = arith.constant 2 : index
    %c128_343 = arith.constant 128 : index
    %c0_344 = arith.constant 0 : index
    %626 = vector.load %arg9[%c2_342, %c128_343, %c0_344] : memref<6x256x32xbf16, #tpu.memory_space<vmem>>, vector<1x128x32xbf16>
    %627 = vector.shape_cast %626 : vector<1x128x32xbf16> to vector<128x32xbf16>
    %cst_345 = arith.constant dense<0.000000e+00> : vector<16x32xf32>
    %628 = tpu.matmul %625, %627, %cst_345 {dimension_numbers = #tpu.dot_dimension_numbers<[1], [0], [0], [1], [0, 0, 1, 1], [], []>} : vector<16x128xbf16>, vector<128x32xbf16>, vector<16x32xf32> -> vector<16x32xf32>
    %c2_346 = arith.constant 2 : index
    %c7_347 = arith.constant 7 : index
    %c0_348 = arith.constant 0 : index
    %629 = vector.load %arg11[%c2_346, %c7_347, %c0_348] : memref<6x16x128xf32, #tpu.memory_space<vmem>>, vector<1x1x32xf32>
    %630 = vector.shape_cast %629 : vector<1x1x32xf32> to vector<1x32xf32>
    %631 = vector.broadcast %630 : vector<1x32xf32> to vector<16x32xf32>
    %632 = arith.addf %628, %631 : vector<16x32xf32>
    %633 = arith.addf %603, %632 : vector<16x32xf32>
    %c2_349 = arith.constant 2 : index
    %c8_350 = arith.constant 8 : index
    %c0_351 = arith.constant 0 : index
    %634 = vector.load %arg11[%c2_349, %c8_350, %c0_351] : memref<6x16x128xf32, #tpu.memory_space<vmem>>, vector<1x1x32xf32>
    %635 = vector.shape_cast %634 : vector<1x1x32xf32> to vector<1x32xf32>
    %c2_352 = arith.constant 2 : index
    %c9_353 = arith.constant 9 : index
    %c0_354 = arith.constant 0 : index
    %636 = vector.load %arg11[%c2_352, %c9_353, %c0_354] : memref<6x16x128xf32, #tpu.memory_space<vmem>>, vector<1x1x32xf32>
    %637 = vector.shape_cast %636 : vector<1x1x32xf32> to vector<1x32xf32>
    %cst_355 = arith.constant dense<0.000000e+00> : vector<16xf32>
    %638 = vector.multi_reduction <add>, %633, %cst_355 [1] : vector<16x32xf32> to vector<16xf32>
    %639 = vector.shape_cast %638 : vector<16xf32> to vector<16x1xf32>
    %cst_356 = arith.constant 3.200000e+01 : f32
    %640 = vector.broadcast %cst_356 : f32 to vector<16x1xf32>
    %641 = arith.divf %639, %640 : vector<16x1xf32>
    %642 = vector.broadcast %641 : vector<16x1xf32> to vector<16x32xf32>
    %643 = arith.subf %633, %642 : vector<16x32xf32>
    %644 = arith.mulf %643, %643 : vector<16x32xf32>
    %cst_357 = arith.constant dense<0.000000e+00> : vector<16xf32>
    %645 = vector.multi_reduction <add>, %644, %cst_357 [1] : vector<16x32xf32> to vector<16xf32>
    %646 = vector.shape_cast %645 : vector<16xf32> to vector<16x1xf32>
    %cst_358 = arith.constant 3.200000e+01 : f32
    %647 = vector.broadcast %cst_358 : f32 to vector<16x1xf32>
    %648 = arith.divf %646, %647 : vector<16x1xf32>
    %649 = vector.broadcast %641 : vector<16x1xf32> to vector<16x32xf32>
    %650 = arith.subf %633, %649 : vector<16x32xf32>
    %cst_359 = arith.constant 9.99999996E-13 : f32
    %651 = vector.broadcast %cst_359 : f32 to vector<16x1xf32>
    %652 = arith.addf %648, %651 : vector<16x1xf32>
    %653 = math.rsqrt %652 : vector<16x1xf32>
    %654 = vector.broadcast %653 : vector<16x1xf32> to vector<16x32xf32>
    %655 = arith.mulf %650, %654 : vector<16x32xf32>
    %656 = vector.broadcast %635 : vector<1x32xf32> to vector<16x32xf32>
    %657 = arith.mulf %655, %656 : vector<16x32xf32>
    %658 = vector.broadcast %637 : vector<1x32xf32> to vector<16x32xf32>
    %659 = arith.addf %657, %658 : vector<16x32xf32>
    %660 = arith.truncf %659 : vector<16x32xf32> to vector<16x32xbf16>
    %c3_360 = arith.constant 3 : index
    %c0_361 = arith.constant 0 : index
    %c0_362 = arith.constant 0 : index
    %661 = vector.load %arg9[%c3_360, %c0_361, %c0_362] : memref<6x256x32xbf16, #tpu.memory_space<vmem>>, vector<1x32x32xbf16>
    %662 = vector.shape_cast %661 : vector<1x32x32xbf16> to vector<32x32xbf16>
    %cst_363 = arith.constant dense<0.000000e+00> : vector<16x32xf32>
    %663 = tpu.matmul %660, %662, %cst_363 {dimension_numbers = #tpu.dot_dimension_numbers<[1], [0], [0], [1], [0, 0, 1, 1], [], []>} : vector<16x32xbf16>, vector<32x32xbf16>, vector<16x32xf32> -> vector<16x32xf32>
    %c3_364 = arith.constant 3 : index
    %c0_365 = arith.constant 0 : index
    %c0_366 = arith.constant 0 : index
    %664 = vector.load %arg11[%c3_364, %c0_365, %c0_366] : memref<6x16x128xf32, #tpu.memory_space<vmem>>, vector<1x1x32xf32>
    %665 = vector.shape_cast %664 : vector<1x1x32xf32> to vector<1x32xf32>
    %666 = vector.broadcast %665 : vector<1x32xf32> to vector<16x32xf32>
    %667 = arith.addf %663, %666 : vector<16x32xf32>
    %c3_367 = arith.constant 3 : index
    %c32_368 = arith.constant 32 : index
    %c0_369 = arith.constant 0 : index
    %668 = vector.load %arg9[%c3_367, %c32_368, %c0_369] : memref<6x256x32xbf16, #tpu.memory_space<vmem>>, vector<1x32x32xbf16>
    %669 = vector.shape_cast %668 : vector<1x32x32xbf16> to vector<32x32xbf16>
    %cst_370 = arith.constant dense<0.000000e+00> : vector<16x32xf32>
    %670 = tpu.matmul %660, %669, %cst_370 {dimension_numbers = #tpu.dot_dimension_numbers<[1], [0], [0], [1], [0, 0, 1, 1], [], []>} : vector<16x32xbf16>, vector<32x32xbf16>, vector<16x32xf32> -> vector<16x32xf32>
    %c3_371 = arith.constant 3 : index
    %c1_372 = arith.constant 1 : index
    %c0_373 = arith.constant 0 : index
    %671 = vector.load %arg11[%c3_371, %c1_372, %c0_373] : memref<6x16x128xf32, #tpu.memory_space<vmem>>, vector<1x1x32xf32>
    %672 = vector.shape_cast %671 : vector<1x1x32xf32> to vector<1x32xf32>
    %673 = vector.broadcast %672 : vector<1x32xf32> to vector<16x32xf32>
    %674 = arith.addf %670, %673 : vector<16x32xf32>
    %c3_374 = arith.constant 3 : index
    %c64_375 = arith.constant 64 : index
    %c0_376 = arith.constant 0 : index
    %675 = vector.load %arg9[%c3_374, %c64_375, %c0_376] : memref<6x256x32xbf16, #tpu.memory_space<vmem>>, vector<1x32x32xbf16>
    %676 = vector.shape_cast %675 : vector<1x32x32xbf16> to vector<32x32xbf16>
    %cst_377 = arith.constant dense<0.000000e+00> : vector<16x32xf32>
    %677 = tpu.matmul %660, %676, %cst_377 {dimension_numbers = #tpu.dot_dimension_numbers<[1], [0], [0], [1], [0, 0, 1, 1], [], []>} : vector<16x32xbf16>, vector<32x32xbf16>, vector<16x32xf32> -> vector<16x32xf32>
    %c3_378 = arith.constant 3 : index
    %c2_379 = arith.constant 2 : index
    %c0_380 = arith.constant 0 : index
    %678 = vector.load %arg11[%c3_378, %c2_379, %c0_380] : memref<6x16x128xf32, #tpu.memory_space<vmem>>, vector<1x1x32xf32>
    %679 = vector.shape_cast %678 : vector<1x1x32xf32> to vector<1x32xf32>
    %680 = vector.broadcast %679 : vector<1x32xf32> to vector<16x32xf32>
    %681 = arith.addf %677, %680 : vector<16x32xf32>
    %682 = arith.truncf %667 : vector<16x32xf32> to vector<16x32xbf16>
    %683 = arith.truncf %674 : vector<16x32xf32> to vector<16x32xbf16>
    %cst_381 = arith.constant dense<0.000000e+00> : vector<16x16xf32>
    %684 = tpu.matmul %682, %683, %cst_381 {dimension_numbers = #tpu.dot_dimension_numbers<[1], [1], [0], [0], [0, 0, 1, 0], [], []>} : vector<16x32xbf16>, vector<16x32xbf16>, vector<16x16xf32> -> vector<16x16xf32>
    %685 = arith.addf %684, %281 : vector<16x16xf32>
    %686 = math.exp %685 : vector<16x16xf32>
    %cst_382 = arith.constant dense<0.000000e+00> : vector<16xf32>
    %687 = vector.multi_reduction <add>, %686, %cst_382 [1] : vector<16x16xf32> to vector<16xf32>
    %688 = vector.shape_cast %687 : vector<16xf32> to vector<16x1xf32>
    %689 = tpu.reciprocal %688 {approx = true} : vector<16x1xf32> -> vector<16x1xf32>
    %690 = vector.broadcast %689 : vector<16x1xf32> to vector<16x16xf32>
    %691 = arith.mulf %686, %690 : vector<16x16xf32>
    %692 = arith.truncf %691 : vector<16x16xf32> to vector<16x16xbf16>
    %693 = arith.truncf %681 : vector<16x32xf32> to vector<16x32xbf16>
    %cst_383 = arith.constant dense<0.000000e+00> : vector<16x32xf32>
    %694 = tpu.matmul %692, %693, %cst_383 {dimension_numbers = #tpu.dot_dimension_numbers<[1], [0], [0], [1], [0, 0, 1, 1], [], []>} : vector<16x16xbf16>, vector<16x32xbf16>, vector<16x32xf32> -> vector<16x32xf32>
    %695 = arith.truncf %694 : vector<16x32xf32> to vector<16x32xbf16>
    %c3_384 = arith.constant 3 : index
    %c96_385 = arith.constant 96 : index
    %c0_386 = arith.constant 0 : index
    %696 = vector.load %arg9[%c3_384, %c96_385, %c0_386] : memref<6x256x32xbf16, #tpu.memory_space<vmem>>, vector<1x32x32xbf16>
    %697 = vector.shape_cast %696 : vector<1x32x32xbf16> to vector<32x32xbf16>
    %cst_387 = arith.constant dense<0.000000e+00> : vector<16x32xf32>
    %698 = tpu.matmul %695, %697, %cst_387 {dimension_numbers = #tpu.dot_dimension_numbers<[1], [0], [0], [1], [0, 0, 1, 1], [], []>} : vector<16x32xbf16>, vector<32x32xbf16>, vector<16x32xf32> -> vector<16x32xf32>
    %c3_388 = arith.constant 3 : index
    %c3_389 = arith.constant 3 : index
    %c0_390 = arith.constant 0 : index
    %699 = vector.load %arg11[%c3_388, %c3_389, %c0_390] : memref<6x16x128xf32, #tpu.memory_space<vmem>>, vector<1x1x32xf32>
    %700 = vector.shape_cast %699 : vector<1x1x32xf32> to vector<1x32xf32>
    %701 = vector.broadcast %700 : vector<1x32xf32> to vector<16x32xf32>
    %702 = arith.addf %698, %701 : vector<16x32xf32>
    %703 = arith.addf %659, %702 : vector<16x32xf32>
    %c3_391 = arith.constant 3 : index
    %c4_392 = arith.constant 4 : index
    %c0_393 = arith.constant 0 : index
    %704 = vector.load %arg11[%c3_391, %c4_392, %c0_393] : memref<6x16x128xf32, #tpu.memory_space<vmem>>, vector<1x1x32xf32>
    %705 = vector.shape_cast %704 : vector<1x1x32xf32> to vector<1x32xf32>
    %c3_394 = arith.constant 3 : index
    %c5_395 = arith.constant 5 : index
    %c0_396 = arith.constant 0 : index
    %706 = vector.load %arg11[%c3_394, %c5_395, %c0_396] : memref<6x16x128xf32, #tpu.memory_space<vmem>>, vector<1x1x32xf32>
    %707 = vector.shape_cast %706 : vector<1x1x32xf32> to vector<1x32xf32>
    %cst_397 = arith.constant dense<0.000000e+00> : vector<16xf32>
    %708 = vector.multi_reduction <add>, %703, %cst_397 [1] : vector<16x32xf32> to vector<16xf32>
    %709 = vector.shape_cast %708 : vector<16xf32> to vector<16x1xf32>
    %cst_398 = arith.constant 3.200000e+01 : f32
    %710 = vector.broadcast %cst_398 : f32 to vector<16x1xf32>
    %711 = arith.divf %709, %710 : vector<16x1xf32>
    %712 = vector.broadcast %711 : vector<16x1xf32> to vector<16x32xf32>
    %713 = arith.subf %703, %712 : vector<16x32xf32>
    %714 = arith.mulf %713, %713 : vector<16x32xf32>
    %cst_399 = arith.constant dense<0.000000e+00> : vector<16xf32>
    %715 = vector.multi_reduction <add>, %714, %cst_399 [1] : vector<16x32xf32> to vector<16xf32>
    %716 = vector.shape_cast %715 : vector<16xf32> to vector<16x1xf32>
    %cst_400 = arith.constant 3.200000e+01 : f32
    %717 = vector.broadcast %cst_400 : f32 to vector<16x1xf32>
    %718 = arith.divf %716, %717 : vector<16x1xf32>
    %719 = vector.broadcast %711 : vector<16x1xf32> to vector<16x32xf32>
    %720 = arith.subf %703, %719 : vector<16x32xf32>
    %cst_401 = arith.constant 9.99999996E-13 : f32
    %721 = vector.broadcast %cst_401 : f32 to vector<16x1xf32>
    %722 = arith.addf %718, %721 : vector<16x1xf32>
    %723 = math.rsqrt %722 : vector<16x1xf32>
    %724 = vector.broadcast %723 : vector<16x1xf32> to vector<16x32xf32>
    %725 = arith.mulf %720, %724 : vector<16x32xf32>
    %726 = vector.broadcast %705 : vector<1x32xf32> to vector<16x32xf32>
    %727 = arith.mulf %725, %726 : vector<16x32xf32>
    %728 = vector.broadcast %707 : vector<1x32xf32> to vector<16x32xf32>
    %729 = arith.addf %727, %728 : vector<16x32xf32>
    %730 = arith.truncf %729 : vector<16x32xf32> to vector<16x32xbf16>
    %c3_402 = arith.constant 3 : index
    %c0_403 = arith.constant 0 : index
    %c0_404 = arith.constant 0 : index
    %731 = vector.load %arg10[%c3_402, %c0_403, %c0_404] : memref<6x32x128xbf16, #tpu.memory_space<vmem>>, vector<1x32x128xbf16>
    %732 = vector.shape_cast %731 : vector<1x32x128xbf16> to vector<32x128xbf16>
    %cst_405 = arith.constant dense<0.000000e+00> : vector<16x128xf32>
    %733 = tpu.matmul %730, %732, %cst_405 {dimension_numbers = #tpu.dot_dimension_numbers<[1], [0], [0], [1], [0, 0, 1, 1], [], []>} : vector<16x32xbf16>, vector<32x128xbf16>, vector<16x128xf32> -> vector<16x128xf32>
    %c3_406 = arith.constant 3 : index
    %c6_407 = arith.constant 6 : index
    %c0_408 = arith.constant 0 : index
    %734 = vector.load %arg11[%c3_406, %c6_407, %c0_408] : memref<6x16x128xf32, #tpu.memory_space<vmem>>, vector<1x1x128xf32>
    %735 = vector.shape_cast %734 : vector<1x1x128xf32> to vector<1x128xf32>
    %736 = vector.broadcast %735 : vector<1x128xf32> to vector<16x128xf32>
    %737 = arith.addf %733, %736 : vector<16x128xf32>
    %738 = arith.mulf %737, %737 : vector<16x128xf32>
    %739 = arith.mulf %737, %738 : vector<16x128xf32>
    %cst_409 = arith.constant 4.471500e-02 : f32
    %740 = vector.broadcast %cst_409 : f32 to vector<16x128xf32>
    %741 = arith.mulf %740, %739 : vector<16x128xf32>
    %742 = arith.addf %737, %741 : vector<16x128xf32>
    %cst_410 = arith.constant 0.797884583 : f32
    %743 = vector.broadcast %cst_410 : f32 to vector<16x128xf32>
    %744 = arith.mulf %743, %742 : vector<16x128xf32>
    %745 = math.tanh %744 : vector<16x128xf32>
    %cst_411 = arith.constant 1.000000e+00 : f32
    %746 = vector.broadcast %cst_411 : f32 to vector<16x128xf32>
    %747 = arith.addf %746, %745 : vector<16x128xf32>
    %cst_412 = arith.constant 5.000000e-01 : f32
    %748 = vector.broadcast %cst_412 : f32 to vector<16x128xf32>
    %749 = arith.mulf %748, %747 : vector<16x128xf32>
    %750 = arith.mulf %737, %749 : vector<16x128xf32>
    %751 = arith.truncf %750 : vector<16x128xf32> to vector<16x128xbf16>
    %c3_413 = arith.constant 3 : index
    %c128_414 = arith.constant 128 : index
    %c0_415 = arith.constant 0 : index
    %752 = vector.load %arg9[%c3_413, %c128_414, %c0_415] : memref<6x256x32xbf16, #tpu.memory_space<vmem>>, vector<1x128x32xbf16>
    %753 = vector.shape_cast %752 : vector<1x128x32xbf16> to vector<128x32xbf16>
    %cst_416 = arith.constant dense<0.000000e+00> : vector<16x32xf32>
    %754 = tpu.matmul %751, %753, %cst_416 {dimension_numbers = #tpu.dot_dimension_numbers<[1], [0], [0], [1], [0, 0, 1, 1], [], []>} : vector<16x128xbf16>, vector<128x32xbf16>, vector<16x32xf32> -> vector<16x32xf32>
    %c3_417 = arith.constant 3 : index
    %c7_418 = arith.constant 7 : index
    %c0_419 = arith.constant 0 : index
    %755 = vector.load %arg11[%c3_417, %c7_418, %c0_419] : memref<6x16x128xf32, #tpu.memory_space<vmem>>, vector<1x1x32xf32>
    %756 = vector.shape_cast %755 : vector<1x1x32xf32> to vector<1x32xf32>
    %757 = vector.broadcast %756 : vector<1x32xf32> to vector<16x32xf32>
    %758 = arith.addf %754, %757 : vector<16x32xf32>
    %759 = arith.addf %729, %758 : vector<16x32xf32>
    %c3_420 = arith.constant 3 : index
    %c8_421 = arith.constant 8 : index
    %c0_422 = arith.constant 0 : index
    %760 = vector.load %arg11[%c3_420, %c8_421, %c0_422] : memref<6x16x128xf32, #tpu.memory_space<vmem>>, vector<1x1x32xf32>
    %761 = vector.shape_cast %760 : vector<1x1x32xf32> to vector<1x32xf32>
    %c3_423 = arith.constant 3 : index
    %c9_424 = arith.constant 9 : index
    %c0_425 = arith.constant 0 : index
    %762 = vector.load %arg11[%c3_423, %c9_424, %c0_425] : memref<6x16x128xf32, #tpu.memory_space<vmem>>, vector<1x1x32xf32>
    %763 = vector.shape_cast %762 : vector<1x1x32xf32> to vector<1x32xf32>
    %cst_426 = arith.constant dense<0.000000e+00> : vector<16xf32>
    %764 = vector.multi_reduction <add>, %759, %cst_426 [1] : vector<16x32xf32> to vector<16xf32>
    %765 = vector.shape_cast %764 : vector<16xf32> to vector<16x1xf32>
    %cst_427 = arith.constant 3.200000e+01 : f32
    %766 = vector.broadcast %cst_427 : f32 to vector<16x1xf32>
    %767 = arith.divf %765, %766 : vector<16x1xf32>
    %768 = vector.broadcast %767 : vector<16x1xf32> to vector<16x32xf32>
    %769 = arith.subf %759, %768 : vector<16x32xf32>
    %770 = arith.mulf %769, %769 : vector<16x32xf32>
    %cst_428 = arith.constant dense<0.000000e+00> : vector<16xf32>
    %771 = vector.multi_reduction <add>, %770, %cst_428 [1] : vector<16x32xf32> to vector<16xf32>
    %772 = vector.shape_cast %771 : vector<16xf32> to vector<16x1xf32>
    %cst_429 = arith.constant 3.200000e+01 : f32
    %773 = vector.broadcast %cst_429 : f32 to vector<16x1xf32>
    %774 = arith.divf %772, %773 : vector<16x1xf32>
    %775 = vector.broadcast %767 : vector<16x1xf32> to vector<16x32xf32>
    %776 = arith.subf %759, %775 : vector<16x32xf32>
    %cst_430 = arith.constant 9.99999996E-13 : f32
    %777 = vector.broadcast %cst_430 : f32 to vector<16x1xf32>
    %778 = arith.addf %774, %777 : vector<16x1xf32>
    %779 = math.rsqrt %778 : vector<16x1xf32>
    %780 = vector.broadcast %779 : vector<16x1xf32> to vector<16x32xf32>
    %781 = arith.mulf %776, %780 : vector<16x32xf32>
    %782 = vector.broadcast %761 : vector<1x32xf32> to vector<16x32xf32>
    %783 = arith.mulf %781, %782 : vector<16x32xf32>
    %784 = vector.broadcast %763 : vector<1x32xf32> to vector<16x32xf32>
    %785 = arith.addf %783, %784 : vector<16x32xf32>
    %786 = arith.truncf %785 : vector<16x32xf32> to vector<16x32xbf16>
    %c4_431 = arith.constant 4 : index
    %c0_432 = arith.constant 0 : index
    %c0_433 = arith.constant 0 : index
    %787 = vector.load %arg9[%c4_431, %c0_432, %c0_433] : memref<6x256x32xbf16, #tpu.memory_space<vmem>>, vector<1x32x32xbf16>
    %788 = vector.shape_cast %787 : vector<1x32x32xbf16> to vector<32x32xbf16>
    %cst_434 = arith.constant dense<0.000000e+00> : vector<16x32xf32>
    %789 = tpu.matmul %786, %788, %cst_434 {dimension_numbers = #tpu.dot_dimension_numbers<[1], [0], [0], [1], [0, 0, 1, 1], [], []>} : vector<16x32xbf16>, vector<32x32xbf16>, vector<16x32xf32> -> vector<16x32xf32>
    %c4_435 = arith.constant 4 : index
    %c0_436 = arith.constant 0 : index
    %c0_437 = arith.constant 0 : index
    %790 = vector.load %arg11[%c4_435, %c0_436, %c0_437] : memref<6x16x128xf32, #tpu.memory_space<vmem>>, vector<1x1x32xf32>
    %791 = vector.shape_cast %790 : vector<1x1x32xf32> to vector<1x32xf32>
    %792 = vector.broadcast %791 : vector<1x32xf32> to vector<16x32xf32>
    %793 = arith.addf %789, %792 : vector<16x32xf32>
    %c4_438 = arith.constant 4 : index
    %c32_439 = arith.constant 32 : index
    %c0_440 = arith.constant 0 : index
    %794 = vector.load %arg9[%c4_438, %c32_439, %c0_440] : memref<6x256x32xbf16, #tpu.memory_space<vmem>>, vector<1x32x32xbf16>
    %795 = vector.shape_cast %794 : vector<1x32x32xbf16> to vector<32x32xbf16>
    %cst_441 = arith.constant dense<0.000000e+00> : vector<16x32xf32>
    %796 = tpu.matmul %786, %795, %cst_441 {dimension_numbers = #tpu.dot_dimension_numbers<[1], [0], [0], [1], [0, 0, 1, 1], [], []>} : vector<16x32xbf16>, vector<32x32xbf16>, vector<16x32xf32> -> vector<16x32xf32>
    %c4_442 = arith.constant 4 : index
    %c1_443 = arith.constant 1 : index
    %c0_444 = arith.constant 0 : index
    %797 = vector.load %arg11[%c4_442, %c1_443, %c0_444] : memref<6x16x128xf32, #tpu.memory_space<vmem>>, vector<1x1x32xf32>
    %798 = vector.shape_cast %797 : vector<1x1x32xf32> to vector<1x32xf32>
    %799 = vector.broadcast %798 : vector<1x32xf32> to vector<16x32xf32>
    %800 = arith.addf %796, %799 : vector<16x32xf32>
    %c4_445 = arith.constant 4 : index
    %c64_446 = arith.constant 64 : index
    %c0_447 = arith.constant 0 : index
    %801 = vector.load %arg9[%c4_445, %c64_446, %c0_447] : memref<6x256x32xbf16, #tpu.memory_space<vmem>>, vector<1x32x32xbf16>
    %802 = vector.shape_cast %801 : vector<1x32x32xbf16> to vector<32x32xbf16>
    %cst_448 = arith.constant dense<0.000000e+00> : vector<16x32xf32>
    %803 = tpu.matmul %786, %802, %cst_448 {dimension_numbers = #tpu.dot_dimension_numbers<[1], [0], [0], [1], [0, 0, 1, 1], [], []>} : vector<16x32xbf16>, vector<32x32xbf16>, vector<16x32xf32> -> vector<16x32xf32>
    %c4_449 = arith.constant 4 : index
    %c2_450 = arith.constant 2 : index
    %c0_451 = arith.constant 0 : index
    %804 = vector.load %arg11[%c4_449, %c2_450, %c0_451] : memref<6x16x128xf32, #tpu.memory_space<vmem>>, vector<1x1x32xf32>
    %805 = vector.shape_cast %804 : vector<1x1x32xf32> to vector<1x32xf32>
    %806 = vector.broadcast %805 : vector<1x32xf32> to vector<16x32xf32>
    %807 = arith.addf %803, %806 : vector<16x32xf32>
    %808 = arith.truncf %793 : vector<16x32xf32> to vector<16x32xbf16>
    %809 = arith.truncf %800 : vector<16x32xf32> to vector<16x32xbf16>
    %cst_452 = arith.constant dense<0.000000e+00> : vector<16x16xf32>
    %810 = tpu.matmul %808, %809, %cst_452 {dimension_numbers = #tpu.dot_dimension_numbers<[1], [1], [0], [0], [0, 0, 1, 0], [], []>} : vector<16x32xbf16>, vector<16x32xbf16>, vector<16x16xf32> -> vector<16x16xf32>
    %811 = arith.addf %810, %281 : vector<16x16xf32>
    %812 = math.exp %811 : vector<16x16xf32>
    %cst_453 = arith.constant dense<0.000000e+00> : vector<16xf32>
    %813 = vector.multi_reduction <add>, %812, %cst_453 [1] : vector<16x16xf32> to vector<16xf32>
    %814 = vector.shape_cast %813 : vector<16xf32> to vector<16x1xf32>
    %815 = tpu.reciprocal %814 {approx = true} : vector<16x1xf32> -> vector<16x1xf32>
    %816 = vector.broadcast %815 : vector<16x1xf32> to vector<16x16xf32>
    %817 = arith.mulf %812, %816 : vector<16x16xf32>
    %818 = arith.truncf %817 : vector<16x16xf32> to vector<16x16xbf16>
    %819 = arith.truncf %807 : vector<16x32xf32> to vector<16x32xbf16>
    %cst_454 = arith.constant dense<0.000000e+00> : vector<16x32xf32>
    %820 = tpu.matmul %818, %819, %cst_454 {dimension_numbers = #tpu.dot_dimension_numbers<[1], [0], [0], [1], [0, 0, 1, 1], [], []>} : vector<16x16xbf16>, vector<16x32xbf16>, vector<16x32xf32> -> vector<16x32xf32>
    %821 = arith.truncf %820 : vector<16x32xf32> to vector<16x32xbf16>
    %c4_455 = arith.constant 4 : index
    %c96_456 = arith.constant 96 : index
    %c0_457 = arith.constant 0 : index
    %822 = vector.load %arg9[%c4_455, %c96_456, %c0_457] : memref<6x256x32xbf16, #tpu.memory_space<vmem>>, vector<1x32x32xbf16>
    %823 = vector.shape_cast %822 : vector<1x32x32xbf16> to vector<32x32xbf16>
    %cst_458 = arith.constant dense<0.000000e+00> : vector<16x32xf32>
    %824 = tpu.matmul %821, %823, %cst_458 {dimension_numbers = #tpu.dot_dimension_numbers<[1], [0], [0], [1], [0, 0, 1, 1], [], []>} : vector<16x32xbf16>, vector<32x32xbf16>, vector<16x32xf32> -> vector<16x32xf32>
    %c4_459 = arith.constant 4 : index
    %c3_460 = arith.constant 3 : index
    %c0_461 = arith.constant 0 : index
    %825 = vector.load %arg11[%c4_459, %c3_460, %c0_461] : memref<6x16x128xf32, #tpu.memory_space<vmem>>, vector<1x1x32xf32>
    %826 = vector.shape_cast %825 : vector<1x1x32xf32> to vector<1x32xf32>
    %827 = vector.broadcast %826 : vector<1x32xf32> to vector<16x32xf32>
    %828 = arith.addf %824, %827 : vector<16x32xf32>
    %829 = arith.addf %785, %828 : vector<16x32xf32>
    %c4_462 = arith.constant 4 : index
    %c4_463 = arith.constant 4 : index
    %c0_464 = arith.constant 0 : index
    %830 = vector.load %arg11[%c4_462, %c4_463, %c0_464] : memref<6x16x128xf32, #tpu.memory_space<vmem>>, vector<1x1x32xf32>
    %831 = vector.shape_cast %830 : vector<1x1x32xf32> to vector<1x32xf32>
    %c4_465 = arith.constant 4 : index
    %c5_466 = arith.constant 5 : index
    %c0_467 = arith.constant 0 : index
    %832 = vector.load %arg11[%c4_465, %c5_466, %c0_467] : memref<6x16x128xf32, #tpu.memory_space<vmem>>, vector<1x1x32xf32>
    %833 = vector.shape_cast %832 : vector<1x1x32xf32> to vector<1x32xf32>
    %cst_468 = arith.constant dense<0.000000e+00> : vector<16xf32>
    %834 = vector.multi_reduction <add>, %829, %cst_468 [1] : vector<16x32xf32> to vector<16xf32>
    %835 = vector.shape_cast %834 : vector<16xf32> to vector<16x1xf32>
    %cst_469 = arith.constant 3.200000e+01 : f32
    %836 = vector.broadcast %cst_469 : f32 to vector<16x1xf32>
    %837 = arith.divf %835, %836 : vector<16x1xf32>
    %838 = vector.broadcast %837 : vector<16x1xf32> to vector<16x32xf32>
    %839 = arith.subf %829, %838 : vector<16x32xf32>
    %840 = arith.mulf %839, %839 : vector<16x32xf32>
    %cst_470 = arith.constant dense<0.000000e+00> : vector<16xf32>
    %841 = vector.multi_reduction <add>, %840, %cst_470 [1] : vector<16x32xf32> to vector<16xf32>
    %842 = vector.shape_cast %841 : vector<16xf32> to vector<16x1xf32>
    %cst_471 = arith.constant 3.200000e+01 : f32
    %843 = vector.broadcast %cst_471 : f32 to vector<16x1xf32>
    %844 = arith.divf %842, %843 : vector<16x1xf32>
    %845 = vector.broadcast %837 : vector<16x1xf32> to vector<16x32xf32>
    %846 = arith.subf %829, %845 : vector<16x32xf32>
    %cst_472 = arith.constant 9.99999996E-13 : f32
    %847 = vector.broadcast %cst_472 : f32 to vector<16x1xf32>
    %848 = arith.addf %844, %847 : vector<16x1xf32>
    %849 = math.rsqrt %848 : vector<16x1xf32>
    %850 = vector.broadcast %849 : vector<16x1xf32> to vector<16x32xf32>
    %851 = arith.mulf %846, %850 : vector<16x32xf32>
    %852 = vector.broadcast %831 : vector<1x32xf32> to vector<16x32xf32>
    %853 = arith.mulf %851, %852 : vector<16x32xf32>
    %854 = vector.broadcast %833 : vector<1x32xf32> to vector<16x32xf32>
    %855 = arith.addf %853, %854 : vector<16x32xf32>
    %856 = arith.truncf %855 : vector<16x32xf32> to vector<16x32xbf16>
    %c4_473 = arith.constant 4 : index
    %c0_474 = arith.constant 0 : index
    %c0_475 = arith.constant 0 : index
    %857 = vector.load %arg10[%c4_473, %c0_474, %c0_475] : memref<6x32x128xbf16, #tpu.memory_space<vmem>>, vector<1x32x128xbf16>
    %858 = vector.shape_cast %857 : vector<1x32x128xbf16> to vector<32x128xbf16>
    %cst_476 = arith.constant dense<0.000000e+00> : vector<16x128xf32>
    %859 = tpu.matmul %856, %858, %cst_476 {dimension_numbers = #tpu.dot_dimension_numbers<[1], [0], [0], [1], [0, 0, 1, 1], [], []>} : vector<16x32xbf16>, vector<32x128xbf16>, vector<16x128xf32> -> vector<16x128xf32>
    %c4_477 = arith.constant 4 : index
    %c6_478 = arith.constant 6 : index
    %c0_479 = arith.constant 0 : index
    %860 = vector.load %arg11[%c4_477, %c6_478, %c0_479] : memref<6x16x128xf32, #tpu.memory_space<vmem>>, vector<1x1x128xf32>
    %861 = vector.shape_cast %860 : vector<1x1x128xf32> to vector<1x128xf32>
    %862 = vector.broadcast %861 : vector<1x128xf32> to vector<16x128xf32>
    %863 = arith.addf %859, %862 : vector<16x128xf32>
    %864 = arith.mulf %863, %863 : vector<16x128xf32>
    %865 = arith.mulf %863, %864 : vector<16x128xf32>
    %cst_480 = arith.constant 4.471500e-02 : f32
    %866 = vector.broadcast %cst_480 : f32 to vector<16x128xf32>
    %867 = arith.mulf %866, %865 : vector<16x128xf32>
    %868 = arith.addf %863, %867 : vector<16x128xf32>
    %cst_481 = arith.constant 0.797884583 : f32
    %869 = vector.broadcast %cst_481 : f32 to vector<16x128xf32>
    %870 = arith.mulf %869, %868 : vector<16x128xf32>
    %871 = math.tanh %870 : vector<16x128xf32>
    %cst_482 = arith.constant 1.000000e+00 : f32
    %872 = vector.broadcast %cst_482 : f32 to vector<16x128xf32>
    %873 = arith.addf %872, %871 : vector<16x128xf32>
    %cst_483 = arith.constant 5.000000e-01 : f32
    %874 = vector.broadcast %cst_483 : f32 to vector<16x128xf32>
    %875 = arith.mulf %874, %873 : vector<16x128xf32>
    %876 = arith.mulf %863, %875 : vector<16x128xf32>
    %877 = arith.truncf %876 : vector<16x128xf32> to vector<16x128xbf16>
    %c4_484 = arith.constant 4 : index
    %c128_485 = arith.constant 128 : index
    %c0_486 = arith.constant 0 : index
    %878 = vector.load %arg9[%c4_484, %c128_485, %c0_486] : memref<6x256x32xbf16, #tpu.memory_space<vmem>>, vector<1x128x32xbf16>
    %879 = vector.shape_cast %878 : vector<1x128x32xbf16> to vector<128x32xbf16>
    %cst_487 = arith.constant dense<0.000000e+00> : vector<16x32xf32>
    %880 = tpu.matmul %877, %879, %cst_487 {dimension_numbers = #tpu.dot_dimension_numbers<[1], [0], [0], [1], [0, 0, 1, 1], [], []>} : vector<16x128xbf16>, vector<128x32xbf16>, vector<16x32xf32> -> vector<16x32xf32>
    %c4_488 = arith.constant 4 : index
    %c7_489 = arith.constant 7 : index
    %c0_490 = arith.constant 0 : index
    %881 = vector.load %arg11[%c4_488, %c7_489, %c0_490] : memref<6x16x128xf32, #tpu.memory_space<vmem>>, vector<1x1x32xf32>
    %882 = vector.shape_cast %881 : vector<1x1x32xf32> to vector<1x32xf32>
    %883 = vector.broadcast %882 : vector<1x32xf32> to vector<16x32xf32>
    %884 = arith.addf %880, %883 : vector<16x32xf32>
    %885 = arith.addf %855, %884 : vector<16x32xf32>
    %c4_491 = arith.constant 4 : index
    %c8_492 = arith.constant 8 : index
    %c0_493 = arith.constant 0 : index
    %886 = vector.load %arg11[%c4_491, %c8_492, %c0_493] : memref<6x16x128xf32, #tpu.memory_space<vmem>>, vector<1x1x32xf32>
    %887 = vector.shape_cast %886 : vector<1x1x32xf32> to vector<1x32xf32>
    %c4_494 = arith.constant 4 : index
    %c9_495 = arith.constant 9 : index
    %c0_496 = arith.constant 0 : index
    %888 = vector.load %arg11[%c4_494, %c9_495, %c0_496] : memref<6x16x128xf32, #tpu.memory_space<vmem>>, vector<1x1x32xf32>
    %889 = vector.shape_cast %888 : vector<1x1x32xf32> to vector<1x32xf32>
    %cst_497 = arith.constant dense<0.000000e+00> : vector<16xf32>
    %890 = vector.multi_reduction <add>, %885, %cst_497 [1] : vector<16x32xf32> to vector<16xf32>
    %891 = vector.shape_cast %890 : vector<16xf32> to vector<16x1xf32>
    %cst_498 = arith.constant 3.200000e+01 : f32
    %892 = vector.broadcast %cst_498 : f32 to vector<16x1xf32>
    %893 = arith.divf %891, %892 : vector<16x1xf32>
    %894 = vector.broadcast %893 : vector<16x1xf32> to vector<16x32xf32>
    %895 = arith.subf %885, %894 : vector<16x32xf32>
    %896 = arith.mulf %895, %895 : vector<16x32xf32>
    %cst_499 = arith.constant dense<0.000000e+00> : vector<16xf32>
    %897 = vector.multi_reduction <add>, %896, %cst_499 [1] : vector<16x32xf32> to vector<16xf32>
    %898 = vector.shape_cast %897 : vector<16xf32> to vector<16x1xf32>
    %cst_500 = arith.constant 3.200000e+01 : f32
    %899 = vector.broadcast %cst_500 : f32 to vector<16x1xf32>
    %900 = arith.divf %898, %899 : vector<16x1xf32>
    %901 = vector.broadcast %893 : vector<16x1xf32> to vector<16x32xf32>
    %902 = arith.subf %885, %901 : vector<16x32xf32>
    %cst_501 = arith.constant 9.99999996E-13 : f32
    %903 = vector.broadcast %cst_501 : f32 to vector<16x1xf32>
    %904 = arith.addf %900, %903 : vector<16x1xf32>
    %905 = math.rsqrt %904 : vector<16x1xf32>
    %906 = vector.broadcast %905 : vector<16x1xf32> to vector<16x32xf32>
    %907 = arith.mulf %902, %906 : vector<16x32xf32>
    %908 = vector.broadcast %887 : vector<1x32xf32> to vector<16x32xf32>
    %909 = arith.mulf %907, %908 : vector<16x32xf32>
    %910 = vector.broadcast %889 : vector<1x32xf32> to vector<16x32xf32>
    %911 = arith.addf %909, %910 : vector<16x32xf32>
    %912 = arith.truncf %911 : vector<16x32xf32> to vector<16x32xbf16>
    %c5_502 = arith.constant 5 : index
    %c0_503 = arith.constant 0 : index
    %c0_504 = arith.constant 0 : index
    %913 = vector.load %arg9[%c5_502, %c0_503, %c0_504] : memref<6x256x32xbf16, #tpu.memory_space<vmem>>, vector<1x32x32xbf16>
    %914 = vector.shape_cast %913 : vector<1x32x32xbf16> to vector<32x32xbf16>
    %cst_505 = arith.constant dense<0.000000e+00> : vector<16x32xf32>
    %915 = tpu.matmul %912, %914, %cst_505 {dimension_numbers = #tpu.dot_dimension_numbers<[1], [0], [0], [1], [0, 0, 1, 1], [], []>} : vector<16x32xbf16>, vector<32x32xbf16>, vector<16x32xf32> -> vector<16x32xf32>
    %c5_506 = arith.constant 5 : index
    %c0_507 = arith.constant 0 : index
    %c0_508 = arith.constant 0 : index
    %916 = vector.load %arg11[%c5_506, %c0_507, %c0_508] : memref<6x16x128xf32, #tpu.memory_space<vmem>>, vector<1x1x32xf32>
    %917 = vector.shape_cast %916 : vector<1x1x32xf32> to vector<1x32xf32>
    %918 = vector.broadcast %917 : vector<1x32xf32> to vector<16x32xf32>
    %919 = arith.addf %915, %918 : vector<16x32xf32>
    %c5_509 = arith.constant 5 : index
    %c32_510 = arith.constant 32 : index
    %c0_511 = arith.constant 0 : index
    %920 = vector.load %arg9[%c5_509, %c32_510, %c0_511] : memref<6x256x32xbf16, #tpu.memory_space<vmem>>, vector<1x32x32xbf16>
    %921 = vector.shape_cast %920 : vector<1x32x32xbf16> to vector<32x32xbf16>
    %cst_512 = arith.constant dense<0.000000e+00> : vector<16x32xf32>
    %922 = tpu.matmul %912, %921, %cst_512 {dimension_numbers = #tpu.dot_dimension_numbers<[1], [0], [0], [1], [0, 0, 1, 1], [], []>} : vector<16x32xbf16>, vector<32x32xbf16>, vector<16x32xf32> -> vector<16x32xf32>
    %c5_513 = arith.constant 5 : index
    %c1_514 = arith.constant 1 : index
    %c0_515 = arith.constant 0 : index
    %923 = vector.load %arg11[%c5_513, %c1_514, %c0_515] : memref<6x16x128xf32, #tpu.memory_space<vmem>>, vector<1x1x32xf32>
    %924 = vector.shape_cast %923 : vector<1x1x32xf32> to vector<1x32xf32>
    %925 = vector.broadcast %924 : vector<1x32xf32> to vector<16x32xf32>
    %926 = arith.addf %922, %925 : vector<16x32xf32>
    %c5_516 = arith.constant 5 : index
    %c64_517 = arith.constant 64 : index
    %c0_518 = arith.constant 0 : index
    %927 = vector.load %arg9[%c5_516, %c64_517, %c0_518] : memref<6x256x32xbf16, #tpu.memory_space<vmem>>, vector<1x32x32xbf16>
    %928 = vector.shape_cast %927 : vector<1x32x32xbf16> to vector<32x32xbf16>
    %cst_519 = arith.constant dense<0.000000e+00> : vector<16x32xf32>
    %929 = tpu.matmul %912, %928, %cst_519 {dimension_numbers = #tpu.dot_dimension_numbers<[1], [0], [0], [1], [0, 0, 1, 1], [], []>} : vector<16x32xbf16>, vector<32x32xbf16>, vector<16x32xf32> -> vector<16x32xf32>
    %c5_520 = arith.constant 5 : index
    %c2_521 = arith.constant 2 : index
    %c0_522 = arith.constant 0 : index
    %930 = vector.load %arg11[%c5_520, %c2_521, %c0_522] : memref<6x16x128xf32, #tpu.memory_space<vmem>>, vector<1x1x32xf32>
    %931 = vector.shape_cast %930 : vector<1x1x32xf32> to vector<1x32xf32>
    %932 = vector.broadcast %931 : vector<1x32xf32> to vector<16x32xf32>
    %933 = arith.addf %929, %932 : vector<16x32xf32>
    %934 = arith.truncf %919 : vector<16x32xf32> to vector<16x32xbf16>
    %935 = arith.truncf %926 : vector<16x32xf32> to vector<16x32xbf16>
    %cst_523 = arith.constant dense<0.000000e+00> : vector<16x16xf32>
    %936 = tpu.matmul %934, %935, %cst_523 {dimension_numbers = #tpu.dot_dimension_numbers<[1], [1], [0], [0], [0, 0, 1, 0], [], []>} : vector<16x32xbf16>, vector<16x32xbf16>, vector<16x16xf32> -> vector<16x16xf32>
    %937 = arith.addf %936, %281 : vector<16x16xf32>
    %938 = math.exp %937 : vector<16x16xf32>
    %cst_524 = arith.constant dense<0.000000e+00> : vector<16xf32>
    %939 = vector.multi_reduction <add>, %938, %cst_524 [1] : vector<16x16xf32> to vector<16xf32>
    %940 = vector.shape_cast %939 : vector<16xf32> to vector<16x1xf32>
    %941 = tpu.reciprocal %940 {approx = true} : vector<16x1xf32> -> vector<16x1xf32>
    %942 = vector.broadcast %941 : vector<16x1xf32> to vector<16x16xf32>
    %943 = arith.mulf %938, %942 : vector<16x16xf32>
    %944 = arith.truncf %943 : vector<16x16xf32> to vector<16x16xbf16>
    %945 = arith.truncf %933 : vector<16x32xf32> to vector<16x32xbf16>
    %cst_525 = arith.constant dense<0.000000e+00> : vector<16x32xf32>
    %946 = tpu.matmul %944, %945, %cst_525 {dimension_numbers = #tpu.dot_dimension_numbers<[1], [0], [0], [1], [0, 0, 1, 1], [], []>} : vector<16x16xbf16>, vector<16x32xbf16>, vector<16x32xf32> -> vector<16x32xf32>
    %947 = arith.truncf %946 : vector<16x32xf32> to vector<16x32xbf16>
    %c5_526 = arith.constant 5 : index
    %c96_527 = arith.constant 96 : index
    %c0_528 = arith.constant 0 : index
    %948 = vector.load %arg9[%c5_526, %c96_527, %c0_528] : memref<6x256x32xbf16, #tpu.memory_space<vmem>>, vector<1x32x32xbf16>
    %949 = vector.shape_cast %948 : vector<1x32x32xbf16> to vector<32x32xbf16>
    %cst_529 = arith.constant dense<0.000000e+00> : vector<16x32xf32>
    %950 = tpu.matmul %947, %949, %cst_529 {dimension_numbers = #tpu.dot_dimension_numbers<[1], [0], [0], [1], [0, 0, 1, 1], [], []>} : vector<16x32xbf16>, vector<32x32xbf16>, vector<16x32xf32> -> vector<16x32xf32>
    %c5_530 = arith.constant 5 : index
    %c3_531 = arith.constant 3 : index
    %c0_532 = arith.constant 0 : index
    %951 = vector.load %arg11[%c5_530, %c3_531, %c0_532] : memref<6x16x128xf32, #tpu.memory_space<vmem>>, vector<1x1x32xf32>
    %952 = vector.shape_cast %951 : vector<1x1x32xf32> to vector<1x32xf32>
    %953 = vector.broadcast %952 : vector<1x32xf32> to vector<16x32xf32>
    %954 = arith.addf %950, %953 : vector<16x32xf32>
    %955 = arith.addf %911, %954 : vector<16x32xf32>
    %c5_533 = arith.constant 5 : index
    %c4_534 = arith.constant 4 : index
    %c0_535 = arith.constant 0 : index
    %956 = vector.load %arg11[%c5_533, %c4_534, %c0_535] : memref<6x16x128xf32, #tpu.memory_space<vmem>>, vector<1x1x32xf32>
    %957 = vector.shape_cast %956 : vector<1x1x32xf32> to vector<1x32xf32>
    %c5_536 = arith.constant 5 : index
    %c5_537 = arith.constant 5 : index
    %c0_538 = arith.constant 0 : index
    %958 = vector.load %arg11[%c5_536, %c5_537, %c0_538] : memref<6x16x128xf32, #tpu.memory_space<vmem>>, vector<1x1x32xf32>
    %959 = vector.shape_cast %958 : vector<1x1x32xf32> to vector<1x32xf32>
    %cst_539 = arith.constant dense<0.000000e+00> : vector<16xf32>
    %960 = vector.multi_reduction <add>, %955, %cst_539 [1] : vector<16x32xf32> to vector<16xf32>
    %961 = vector.shape_cast %960 : vector<16xf32> to vector<16x1xf32>
    %cst_540 = arith.constant 3.200000e+01 : f32
    %962 = vector.broadcast %cst_540 : f32 to vector<16x1xf32>
    %963 = arith.divf %961, %962 : vector<16x1xf32>
    %964 = vector.broadcast %963 : vector<16x1xf32> to vector<16x32xf32>
    %965 = arith.subf %955, %964 : vector<16x32xf32>
    %966 = arith.mulf %965, %965 : vector<16x32xf32>
    %cst_541 = arith.constant dense<0.000000e+00> : vector<16xf32>
    %967 = vector.multi_reduction <add>, %966, %cst_541 [1] : vector<16x32xf32> to vector<16xf32>
    %968 = vector.shape_cast %967 : vector<16xf32> to vector<16x1xf32>
    %cst_542 = arith.constant 3.200000e+01 : f32
    %969 = vector.broadcast %cst_542 : f32 to vector<16x1xf32>
    %970 = arith.divf %968, %969 : vector<16x1xf32>
    %971 = vector.broadcast %963 : vector<16x1xf32> to vector<16x32xf32>
    %972 = arith.subf %955, %971 : vector<16x32xf32>
    %cst_543 = arith.constant 9.99999996E-13 : f32
    %973 = vector.broadcast %cst_543 : f32 to vector<16x1xf32>
    %974 = arith.addf %970, %973 : vector<16x1xf32>
    %975 = math.rsqrt %974 : vector<16x1xf32>
    %976 = vector.broadcast %975 : vector<16x1xf32> to vector<16x32xf32>
    %977 = arith.mulf %972, %976 : vector<16x32xf32>
    %978 = vector.broadcast %957 : vector<1x32xf32> to vector<16x32xf32>
    %979 = arith.mulf %977, %978 : vector<16x32xf32>
    %980 = vector.broadcast %959 : vector<1x32xf32> to vector<16x32xf32>
    %981 = arith.addf %979, %980 : vector<16x32xf32>
    %982 = arith.truncf %981 : vector<16x32xf32> to vector<16x32xbf16>
    %c5_544 = arith.constant 5 : index
    %c0_545 = arith.constant 0 : index
    %c0_546 = arith.constant 0 : index
    %983 = vector.load %arg10[%c5_544, %c0_545, %c0_546] : memref<6x32x128xbf16, #tpu.memory_space<vmem>>, vector<1x32x128xbf16>
    %984 = vector.shape_cast %983 : vector<1x32x128xbf16> to vector<32x128xbf16>
    %cst_547 = arith.constant dense<0.000000e+00> : vector<16x128xf32>
    %985 = tpu.matmul %982, %984, %cst_547 {dimension_numbers = #tpu.dot_dimension_numbers<[1], [0], [0], [1], [0, 0, 1, 1], [], []>} : vector<16x32xbf16>, vector<32x128xbf16>, vector<16x128xf32> -> vector<16x128xf32>
    %c5_548 = arith.constant 5 : index
    %c6_549 = arith.constant 6 : index
    %c0_550 = arith.constant 0 : index
    %986 = vector.load %arg11[%c5_548, %c6_549, %c0_550] : memref<6x16x128xf32, #tpu.memory_space<vmem>>, vector<1x1x128xf32>
    %987 = vector.shape_cast %986 : vector<1x1x128xf32> to vector<1x128xf32>
    %988 = vector.broadcast %987 : vector<1x128xf32> to vector<16x128xf32>
    %989 = arith.addf %985, %988 : vector<16x128xf32>
    %990 = arith.mulf %989, %989 : vector<16x128xf32>
    %991 = arith.mulf %989, %990 : vector<16x128xf32>
    %cst_551 = arith.constant 4.471500e-02 : f32
    %992 = vector.broadcast %cst_551 : f32 to vector<16x128xf32>
    %993 = arith.mulf %992, %991 : vector<16x128xf32>
    %994 = arith.addf %989, %993 : vector<16x128xf32>
    %cst_552 = arith.constant 0.797884583 : f32
    %995 = vector.broadcast %cst_552 : f32 to vector<16x128xf32>
    %996 = arith.mulf %995, %994 : vector<16x128xf32>
    %997 = math.tanh %996 : vector<16x128xf32>
    %cst_553 = arith.constant 1.000000e+00 : f32
    %998 = vector.broadcast %cst_553 : f32 to vector<16x128xf32>
    %999 = arith.addf %998, %997 : vector<16x128xf32>
    %cst_554 = arith.constant 5.000000e-01 : f32
    %1000 = vector.broadcast %cst_554 : f32 to vector<16x128xf32>
    %1001 = arith.mulf %1000, %999 : vector<16x128xf32>
    %1002 = arith.mulf %989, %1001 : vector<16x128xf32>
    %1003 = arith.truncf %1002 : vector<16x128xf32> to vector<16x128xbf16>
    %c5_555 = arith.constant 5 : index
    %c128_556 = arith.constant 128 : index
    %c0_557 = arith.constant 0 : index
    %1004 = vector.load %arg9[%c5_555, %c128_556, %c0_557] : memref<6x256x32xbf16, #tpu.memory_space<vmem>>, vector<1x128x32xbf16>
    %1005 = vector.shape_cast %1004 : vector<1x128x32xbf16> to vector<128x32xbf16>
    %cst_558 = arith.constant dense<0.000000e+00> : vector<16x32xf32>
    %1006 = tpu.matmul %1003, %1005, %cst_558 {dimension_numbers = #tpu.dot_dimension_numbers<[1], [0], [0], [1], [0, 0, 1, 1], [], []>} : vector<16x128xbf16>, vector<128x32xbf16>, vector<16x32xf32> -> vector<16x32xf32>
    %c5_559 = arith.constant 5 : index
    %c7_560 = arith.constant 7 : index
    %c0_561 = arith.constant 0 : index
    %1007 = vector.load %arg11[%c5_559, %c7_560, %c0_561] : memref<6x16x128xf32, #tpu.memory_space<vmem>>, vector<1x1x32xf32>
    %1008 = vector.shape_cast %1007 : vector<1x1x32xf32> to vector<1x32xf32>
    %1009 = vector.broadcast %1008 : vector<1x32xf32> to vector<16x32xf32>
    %1010 = arith.addf %1006, %1009 : vector<16x32xf32>
    %1011 = arith.addf %981, %1010 : vector<16x32xf32>
    %c5_562 = arith.constant 5 : index
    %c8_563 = arith.constant 8 : index
    %c0_564 = arith.constant 0 : index
    %1012 = vector.load %arg11[%c5_562, %c8_563, %c0_564] : memref<6x16x128xf32, #tpu.memory_space<vmem>>, vector<1x1x32xf32>
    %1013 = vector.shape_cast %1012 : vector<1x1x32xf32> to vector<1x32xf32>
    %c5_565 = arith.constant 5 : index
    %c9_566 = arith.constant 9 : index
    %c0_567 = arith.constant 0 : index
    %1014 = vector.load %arg11[%c5_565, %c9_566, %c0_567] : memref<6x16x128xf32, #tpu.memory_space<vmem>>, vector<1x1x32xf32>
    %1015 = vector.shape_cast %1014 : vector<1x1x32xf32> to vector<1x32xf32>
    %cst_568 = arith.constant dense<0.000000e+00> : vector<16xf32>
    %1016 = vector.multi_reduction <add>, %1011, %cst_568 [1] : vector<16x32xf32> to vector<16xf32>
    %1017 = vector.shape_cast %1016 : vector<16xf32> to vector<16x1xf32>
    %cst_569 = arith.constant 3.200000e+01 : f32
    %1018 = vector.broadcast %cst_569 : f32 to vector<16x1xf32>
    %1019 = arith.divf %1017, %1018 : vector<16x1xf32>
    %1020 = vector.broadcast %1019 : vector<16x1xf32> to vector<16x32xf32>
    %1021 = arith.subf %1011, %1020 : vector<16x32xf32>
    %1022 = arith.mulf %1021, %1021 : vector<16x32xf32>
    %cst_570 = arith.constant dense<0.000000e+00> : vector<16xf32>
    %1023 = vector.multi_reduction <add>, %1022, %cst_570 [1] : vector<16x32xf32> to vector<16xf32>
    %1024 = vector.shape_cast %1023 : vector<16xf32> to vector<16x1xf32>
    %cst_571 = arith.constant 3.200000e+01 : f32
    %1025 = vector.broadcast %cst_571 : f32 to vector<16x1xf32>
    %1026 = arith.divf %1024, %1025 : vector<16x1xf32>
    %1027 = vector.broadcast %1019 : vector<16x1xf32> to vector<16x32xf32>
    %1028 = arith.subf %1011, %1027 : vector<16x32xf32>
    %cst_572 = arith.constant 9.99999996E-13 : f32
    %1029 = vector.broadcast %cst_572 : f32 to vector<16x1xf32>
    %1030 = arith.addf %1026, %1029 : vector<16x1xf32>
    %1031 = math.rsqrt %1030 : vector<16x1xf32>
    %1032 = vector.broadcast %1031 : vector<16x1xf32> to vector<16x32xf32>
    %1033 = arith.mulf %1028, %1032 : vector<16x32xf32>
    %1034 = vector.broadcast %1013 : vector<1x32xf32> to vector<16x32xf32>
    %1035 = arith.mulf %1033, %1034 : vector<16x32xf32>
    %1036 = vector.broadcast %1015 : vector<1x32xf32> to vector<16x32xf32>
    %1037 = arith.addf %1035, %1036 : vector<16x32xf32>
    %1038 = vector.extract_strided_slice %255 {offsets = [0, 0], sizes = [1, 32], strides = [1, 1]} : vector<48x32xf32> to vector<1x32xf32>
    %1039 = vector.extract_strided_slice %255 {offsets = [24, 0], sizes = [1, 32], strides = [1, 1]} : vector<48x32xf32> to vector<1x32xf32>
    %1040 = tpu.concatenate %1038, %1039 in 0 : vector<1x32xf32>, vector<1x32xf32> -> vector<2x32xf32>
    %1041 = vector.extract_strided_slice %1037 {offsets = [0, 0], sizes = [1, 32], strides = [1, 1]} : vector<16x32xf32> to vector<1x32xf32>
    %1042 = vector.extract_strided_slice %1037 {offsets = [8, 0], sizes = [1, 32], strides = [1, 1]} : vector<16x32xf32> to vector<1x32xf32>
    %1043 = tpu.concatenate %1041, %1042 in 0 : vector<1x32xf32>, vector<1x32xf32> -> vector<2x32xf32>
    %1044 = arith.truncf %1040 : vector<2x32xf32> to vector<2x32xbf16>
    %c0_573 = arith.constant 0 : index
    %c0_574 = arith.constant 0 : index
    %1045 = vector.load %arg12[%c0_573, %c0_574] : memref<96x32xbf16, #tpu.memory_space<vmem>>, vector<32x32xbf16>
    %cst_575 = arith.constant dense<0.000000e+00> : vector<2x32xf32>
    %1046 = tpu.matmul %1044, %1045, %cst_575 {dimension_numbers = #tpu.dot_dimension_numbers<[1], [0], [0], [1], [0, 0, 1, 1], [], []>} : vector<2x32xbf16>, vector<32x32xbf16>, vector<2x32xf32> -> vector<2x32xf32>
    %1047 = arith.truncf %1043 : vector<2x32xf32> to vector<2x32xbf16>
    %c32_576 = arith.constant 32 : index
    %c0_577 = arith.constant 0 : index
    %1048 = vector.load %arg12[%c32_576, %c0_577] : memref<96x32xbf16, #tpu.memory_space<vmem>>, vector<32x32xbf16>
    %cst_578 = arith.constant dense<0.000000e+00> : vector<2x32xf32>
    %1049 = tpu.matmul %1047, %1048, %cst_578 {dimension_numbers = #tpu.dot_dimension_numbers<[1], [0], [0], [1], [0, 0, 1, 1], [], []>} : vector<2x32xbf16>, vector<32x32xbf16>, vector<2x32xf32> -> vector<2x32xf32>
    %c2_579 = arith.constant 2 : index
    %c0_580 = arith.constant 0 : index
    %1050 = vector.load %arg13[%c2_579, %c0_580] : memref<8x128xf32, #tpu.memory_space<vmem>>, vector<1x32xf32>
    %c3_581 = arith.constant 3 : index
    %c0_582 = arith.constant 0 : index
    %1051 = vector.load %arg13[%c3_581, %c0_582] : memref<8x128xf32, #tpu.memory_space<vmem>>, vector<1x32xf32>
    %c64_583 = arith.constant 64 : index
    %c0_584 = arith.constant 0 : index
    %1052 = vector.load %arg12[%c64_583, %c0_584] : memref<96x32xbf16, #tpu.memory_space<vmem>>, vector<32x32xbf16>
    %1053 = arith.addf %1046, %1049 : vector<2x32xf32>
    %1054 = vector.broadcast %1050 : vector<1x32xf32> to vector<2x32xf32>
    %1055 = arith.addf %1053, %1054 : vector<2x32xf32>
    %1056 = arith.truncf %1055 : vector<2x32xf32> to vector<2x32xbf16>
    %cst_585 = arith.constant dense<0.000000e+00> : vector<2x32xf32>
    %1057 = tpu.matmul %1056, %1052, %cst_585 {dimension_numbers = #tpu.dot_dimension_numbers<[1], [0], [0], [1], [0, 0, 1, 1], [], []>} : vector<2x32xbf16>, vector<32x32xbf16>, vector<2x32xf32> -> vector<2x32xf32>
    %1058 = vector.broadcast %1051 : vector<1x32xf32> to vector<2x32xf32>
    %1059 = arith.addf %1057, %1058 : vector<2x32xf32>
    %1060 = vector.extract_strided_slice %1049 {offsets = [0, 0], sizes = [1, 32], strides = [1, 1]} : vector<2x32xf32> to vector<1x32xf32>
    %c0_586 = arith.constant 0 : index
    %c0_587 = arith.constant 0 : index
    %c0_588 = arith.constant 0 : index
    %1061 = vector.load %arg15[%c0_586, %c0_587, %c0_588] : memref<2x1x32xf32, #tpu.memory_space<vmem>>, vector<1x1x32xf32>
    %1062 = vector.shape_cast %1061 : vector<1x1x32xf32> to vector<1x32xf32>
    %1063 = vector.shape_cast %1060 : vector<1x32xf32> to vector<1x1x32xf32>
    tpu.vector_store %arg15[%c0_586, %c0_587, %c0_588], %1063 {strides = array<i32>} : memref<2x1x32xf32, #tpu.memory_space<vmem>>, vector<1x1x32xf32>,
    %1064 = vector.extract_strided_slice %1049 {offsets = [1, 0], sizes = [1, 32], strides = [1, 1]} : vector<2x32xf32> to vector<1x32xf32>
    %c1_589 = arith.constant 1 : index
    %c0_590 = arith.constant 0 : index
    %c0_591 = arith.constant 0 : index
    %1065 = vector.load %arg15[%c1_589, %c0_590, %c0_591] : memref<2x1x32xf32, #tpu.memory_space<vmem>>, vector<1x1x32xf32>
    %1066 = vector.shape_cast %1065 : vector<1x1x32xf32> to vector<1x32xf32>
    %1067 = vector.shape_cast %1064 : vector<1x32xf32> to vector<1x1x32xf32>
    tpu.vector_store %arg15[%c1_589, %c0_590, %c0_591], %1067 {strides = array<i32>} : memref<2x1x32xf32, #tpu.memory_space<vmem>>, vector<1x1x32xf32>,
    %c0_592 = arith.constant 0 : index
    %1068 = memref.load %arg0[%c0_592] : memref<2xi32, #tpu.memory_space<smem>>
    %1069 = arith.index_cast %1068 : i32 to index
    %c0_593 = arith.constant 0 : index
    %c0_594 = arith.constant 0 : index
    %1070 = vector.load %arg15[%1069, %c0_593, %c0_594] : memref<2x1x32xf32, #tpu.memory_space<vmem>>, vector<1x1x32xf32>
    %1071 = vector.shape_cast %1070 : vector<1x1x32xf32> to vector<1x32xf32>
    %c1_595 = arith.constant 1 : index
    %1072 = memref.load %arg0[%c1_595] : memref<2xi32, #tpu.memory_space<smem>>
    %1073 = arith.index_cast %1072 : i32 to index
    %c0_596 = arith.constant 0 : index
    %c0_597 = arith.constant 0 : index
    %1074 = vector.load %arg15[%1073, %c0_596, %c0_597] : memref<2x1x32xf32, #tpu.memory_space<vmem>>, vector<1x1x32xf32>
    %1075 = vector.shape_cast %1074 : vector<1x1x32xf32> to vector<1x32xf32>
    %1076 = tpu.concatenate %1071, %1075 in 0 : vector<1x32xf32>, vector<1x32xf32> -> vector<2x32xf32>
    %1077 = arith.addf %1046, %1076 : vector<2x32xf32>
    %1078 = vector.broadcast %1050 : vector<1x32xf32> to vector<2x32xf32>
    %1079 = arith.addf %1077, %1078 : vector<2x32xf32>
    %1080 = arith.truncf %1079 : vector<2x32xf32> to vector<2x32xbf16>
    %cst_598 = arith.constant dense<0.000000e+00> : vector<2x32xf32>
    %1081 = tpu.matmul %1080, %1052, %cst_598 {dimension_numbers = #tpu.dot_dimension_numbers<[1], [0], [0], [1], [0, 0, 1, 1], [], []>} : vector<2x32xbf16>, vector<32x32xbf16>, vector<2x32xf32> -> vector<2x32xf32>
    %1082 = vector.broadcast %1051 : vector<1x32xf32> to vector<2x32xf32>
    %1083 = arith.addf %1081, %1082 : vector<2x32xf32>
    %1084 = tpu.concatenate %1059, %1083 in 0 : vector<2x32xf32>, vector<2x32xf32> -> vector<4x32xf32>
    %c0_599 = arith.constant 0 : index
    %c0_600 = arith.constant 0 : index
    %1085 = vector.load %arg14[%c0_599, %c0_600] : memref<4x32xf32, #tpu.memory_space<vmem>>, vector<4x32xf32>
    tpu.vector_store %arg14[%c0_599, %c0_600], %1084 {strides = array<i32>} : memref<4x32xf32, #tpu.memory_space<vmem>>, vector<4x32xf32>,
    return
  }
}

</mosaic_0001>

<bundles_post_ra>
// kernel: eq.17
= control target key start
LH: loop header
LB: loop body
LE: loop exit
PB: predicated region body
PF: predicated region fallthrough
CT: control target
= control target key end

     0   :  { %vm7_vm0 = vcmask 195584   ;;  %vm13_vm1 = vcmask 392384   ;;  %s39_s0 = inlined_call_operand.vmem [shape: s32[2,24], index: 0, kind: input, shape index: {}]   ;;  %s40_s1 = inlined_call_operand.vmem [shape: s32[48], index: 1, kind: output, shape index: {}]  }
   0x1   :  { %v4_v0 = vld [vmem:[%s39_s0] sm:$0x3]  ;;  %s22_s0 = smov 24  }
   0x2   :  { %5 = vst [vmem:[#allocation1] sm:$0x3] %v4_v0 }
   0x9   :  { %v10_v1 = vld [vmem:[#allocation1 + $0x1] sm:$0x1]   ;;  %v6_v2 = vld [vmem:[#allocation1] sm:$0x1]  }
   0xa   :  { %11 = vrot.lane.b32.xlu0 %v10_v1, %s22_s0  ;;  %8 = vst.msk [vmem:[#allocation0] sm:$0x1] %vm7_vm0, %v6_v2  }
  0x7c   :  { %v12_v3 = vpop.permute.xlu0 %11  }
  0x7d   :  { %14 = vst.msk [vmem:[#allocation0] sm:$0x1] %vm13_vm1, %v12_v3  }
  0x84   :  { %v18_v4 = vld [vmem:[#allocation0] sm:$0x1] }
  0x85   :  { %20 = vst [vmem:[%s40_s1] sm:$0x1] %v18_v4 }

// kernel: tile.8
= control target key start
LH: loop header
LB: loop body
LE: loop exit
PB: predicated region body
PF: predicated region fallthrough
CT: control target
= control target key end

     0   :  { %v13_v2 = vmov 0   ;;  %s30_s0 = inlined_call_operand.vmem [shape: pred[24], index: 0, kind: input, shape index: {}]   ;;  %s31_s1 = inlined_call_operand.vmem [shape: pred[2,24], index: 1, kind: output, shape index: {}]  }
   0x1   :  { %v4_v0 = vld [vmem:[%s30_s0] ss:$0 sm:$0xff] }
   0x2   :  { %v7_v1 = vand.u32 255, %v4_v0 }
   0x4   :  { %v8_v3 = vpack.c.b16 %v13_v2, %v7_v1 }
   0x6   :  { %v9_v4 = vpack.c.b8 %v13_v2, %v8_v3 }
   0x8   :  { %11 = vst [vmem:[%s31_s1] sm:$0x1] %v9_v4 }

// kernel: image_text_matching_forward.1
= control target key start
LH: loop header
LB: loop body
LE: loop exit
PB: predicated region body
PF: predicated region fallthrough
CT: control target
= control target key end

     0   :  { %19 = vsyncpa [#allocation4], 0  ;;  %s10313_s0 = inlined_call_operand.vmem [shape: s32[2], index: 0, kind: input, shape index: {}]   ;;  %s10314_s1 = inlined_call_operand.vmem [shape: bf16[48,128], index: 1, kind: input, shape index: {}]   ;;  %s10315_s2 = inlined_call_operand.vmem [shape: bf16[128,32], index: 2, kind: input, shape index: {}]   ;;  %s10316_s3 = inlined_call_operand.vmem [shape: f32[48,48], index: 3, kind: input, shape index: {}]   ;;  %s10317_s4 = inlined_call_operand.vmem [shape: bf16[2,256,32], index: 4, kind: input, shape index: {}]   ;;  %s10318_s5 = inlined_call_operand.vmem [shape: bf16[2,32,128], index: 5, kind: input, shape index: {}]   ;;  %s10319_s6 = inlined_call_operand.vmem [shape: f32[2,16,128], index: 6, kind: input, shape index: {}]   ;;  %s10320_s7 = inlined_call_operand.vmem [shape: f32[16,32], index: 7, kind: input, shape index: {}]   ;;  %s10321_s8 = inlined_call_operand.vmem [shape: f32[16,16], index: 8, kind: input, shape index: {}]   ;;  %s10322_s9 = inlined_call_operand.vmem [shape: bf16[6,256,32], index: 9, kind: input, shape index: {}]   ;;  %s10323_s10 = inlined_call_operand.vmem [shape: bf16[6,32,128], index: 10, kind: input, shape index: {}]   ;;  %s10324_s11 = inlined_call_operand.vmem [shape: f32[6,16,128], index: 11, kind: input, shape index: {}]   ;;  %s10325_s12 = inlined_call_operand.vmem [shape: bf16[96,32], index: 12, kind: input, shape index: {}]   ;;  %s10326_s13 = inlined_call_operand.vmem [shape: f32[8,128], index: 13, kind: input, shape index: {}]   ;;  %s10327_s14 = inlined_call_operand.vmem [shape: f32[4,32], index: 14, kind: output, shape index: {}]  }
   0x1   :  { %s26_s15 = sshll.u32 %s10313_s0, 4  ;;  %s27_s15 = int_to_ptr.vmem [resolvable:$true] %s26_s15 }
   0x2   :  { %s8471_s16 = scalar_lea.vmem %s27_s15, 16  ;;  %p8476_p1 = scmp.lt.s32.totalorder %s27_s15, %s27_s15 }
   0x3   :  { %p8472_p0 = scmp.ne.s32.totalorder %s27_s15, %s8471_s16  ;;  %p8477_p2 = scmp.lt.s32.totalorder %s8471_s16, %s8471_s16 }
   0x5   :  { %p8478_p3 = por %p8477_p2, %p8476_p1 }
   0x7   :  { %p8479_p4 = pnand %p8478_p3, %p8472_p0 }
   0x9   :  { %8482 = shalt.err (!%p8479_p4)
}
   0xa   :  { %s8485_s17 = smov [#allocation3]  }
   0xb   :  { %29 = dma.vmem_to_smem %s27_s15, 16, %s8485_s17, [#allocation4]  }
   0xc   :  { %8483 = dma.done.wait [#allocation4], 16  }
   0xd   :  { %8484 = vsyncadd [#allocation4], 4294967280 }
   0xe   :  { %59 = sfence }
   0xf   :  { %v8066_v0 = vld [vmem:[%s10315_s2] sm:$0xff]   ;;  %v8486_v1 = vmov 0.0   ;;  %v8067_v2 = vld [vmem:[%s10315_s2 + $0x8] sm:$0xff]   ;;  %vm8487_vm0 = vmmov 0   ;;  %v8068_v3 = vld [vmem:[%s10315_s2 + $0x10] sm:$0xff]   ;;  %vm236_vm1 = vcmask 261120  }
  0x10   :  { %7283 = vmatprep.subr.bf16.mxu0 %v8486_v1  ;;  %7311 = vmatprep.subr.bf16.mxu1 %v8486_v1  ;;  %v8069_v4 = vld [vmem:[%s10315_s2 + $0x18] sm:$0xff]   ;;  %v8077_v5 = vld [vmem:[%s10317_s4] sm:$0xff]   ;;  %v8071_v7 = vld [vmem:[%s10315_s2 + $0x28] sm:$0xff]   ;;  %vm552_vm2 = vcmask 392192   ;;  %vm2469_vm3 = vcmask 130048   ;;  %vm6109_vm4 = vcmask 1040384  }
  0x11   :  { %7284 = vmatpush3.bf16.msra.mxu0 %v8066_v0  ;;  %7299 = vmatprep.mubr.msk.bf16.mxu0 %vm8487_vm0, %v8486_v1  ;;  %v8070_v6 = vld [vmem:[%s10315_s2 + $0x20] sm:$0xff]   ;;  %v8072_v8 = vld [vmem:[%s10315_s2 + $0x30] sm:$0xff]   ;;  %v8073_v9 = vld [vmem:[%s10315_s2 + $0x38] sm:$0xff]   ;;  %s6312_s24 = sld [smem:[#allocation3]]  ;;  %s6993_s25 = sld [smem:[#allocation3 + $0x1]]  ;;  %vm6307_vm5 = vcmask 253952  }
  0x12   :  { %7285 = vmatprep.subr.bf16.mxu0 %v8486_v1  ;;  %7315 = vmatprep.mubr.msk.bf16.mxu1 %vm8487_vm0, %v8486_v1  ;;  %v8074_v10 = vld [vmem:[%s10314_s1] sm:$0xff]   ;;  %v8075_v12 = vld [vmem:[%s10314_s1 + $0x8] sm:$0xff]   ;;  %v8076_v13 = vld [vmem:[%s10314_s1 + $0x10] sm:$0xff]   ;;  %vm6310_vm6 = vcmask 254977   ;;  %vm6374_vm7 = vcmask 1041408   ;;  %vm6376_vm8 = vcmask 257024  }
  0x13   :  { %7312 = vmatpush3.bf16.msra.mxu1 %v8077_v5  ;;  %v8078_v11 = vld [vmem:[%s10317_s4 + $0x20] sm:$0xff]   ;;  %v8079_v14 = vld [vmem:[%s10317_s4 + $0x8] sm:$0xff]   ;;  %v8081_v19 = vld [vmem:[%s10317_s4 + $0x10] sm:$0xff]  }
  0x14   :  { %7313 = vmatprep.subr.bf16.mxu1 %v8486_v1  ;;  %v8080_v15 = vld [vmem:[%s10317_s4 + $0x28] sm:$0xff]   ;;  %v8082_v22 = vld [vmem:[%s10317_s4 + $0x18] sm:$0xff]   ;;  %v6396_v33 = vld [vmem:[%s10319_s6] ss:$0 sm:$0xff] }
  0x15   :  { %7286 = vmatpush3.bf16.msra.mxu0 %v8067_v2  ;;  %v6408_v35 = vld [vmem:[%s10319_s6 + $0x2] ss:$0 sm:$0xff] }
  0x16   :  { %7287 = vmatprep.subr.bf16.mxu0 %v8486_v1 }
  0x17   :  { %7314 = vmatpush3.bf16.msra.mxu1 %v8079_v14  ;;  %v6402_v14 = vld [vmem:[%s10319_s6 + $0x1] ss:$0 sm:$0xff]  ;;  %s6316_s28 = scalar_lea.vmem [#allocation2], %s6993_s25 }
  0x18   :  { %7327 = vmatprep.subr.bf16.mxu1 %v8486_v1 }
  0x19   :  { %7288 = vmatpush3.bf16.msra.mxu0 %v8068_v3 }
  0x1a   :  { %7289 = vmatprep.subr.bf16.mxu0 %v8486_v1 }
  0x1d   :  { %7290 = vmatpush3.bf16.msra.mxu0 %v8069_v4 }
  0x1e   :  { %7291 = vmatprep.subr.bf16.mxu0 %v8486_v1 }
  0x21   :  { %7292 = vmatpush3.bf16.msra.mxu0 %v8070_v6 }
  0x22   :  { %7293 = vmatprep.subr.bf16.mxu0 %v8486_v1 }
  0x25   :  { %7294 = vmatpush3.bf16.msra.mxu0 %v8071_v7 }
  0x26   :  { %7295 = vmatprep.subr.bf16.mxu0 %v8486_v1 }
  0x29   :  { %7296 = vmatpush3.bf16.msra.mxu0 %v8072_v8 }
  0x2a   :  { %7297 = vmatprep.subr.bf16.mxu0 %v8486_v1 }
  0x2d   :  { %7298 = vmatpush3.bf16.msra.mxu0 %v8073_v9 }
  0x2e   :  { %7343 = vmatprep.subr.bf16.mxu0 %v8486_v1 }
  0x30   :  { %7300 = vmatmul.mubr.bf16.vlgmr.msra.gmra.mrb[0].mxu0 %v8074_v10 }
  0x31   :  { %7303 = vmatprep.mubr.msk.bf16.mxu0 %vm8487_vm0, %v8486_v1  ;;  %7344 = vmatpush3.bf16.msra.mxu0 %v8078_v11 }
  0x32   :  { %7345 = vmatprep.subr.bf16.mxu0 %v8486_v1 }
  0x35   :  { %7346 = vmatpush3.bf16.msra.mxu0 %v8080_v15 }
  0x36   :  { %7377 = vmatprep.subr.bf16.mxu0 %v8486_v1 }
  0x38   :  { %7304 = vmatmul.mubr.bf16.gmra.mrb[4].mxu0 %v8075_v12 }
  0x39   :  { %7307 = vmatprep.mubr.msk.bf16.mxu0 %vm8487_vm0, %v8486_v1 }
  0x40   :  { %7308 = vmatmul.mubr.bf16.gmra.mrb[8].mxu0 %v8076_v13 }
  0x41   :  { %7347 = vmatprep.mubr.msk.bf16.mxu0 %vm8487_vm0, %v8486_v1 }
 0x103   :  { %v8635_v16 = vpop.f32.mrb[0].mxu0 }
 0x104   :  { %v7301_v17 = vpop.f32.mrb[1].mxu0 }
 0x105   :  { %v8637_v18 = vpop.f32.mrb[2].mxu0 }
 0x106   :  { %v212_v20 = vpack.c.bf16 %v8637_v18, %v8635_v16  ;;  %v7302_v21 = vpop.f32.mrb[3].mxu0 }
 0x108   :  { %7316 = vmatmul.mubr.msk.bf16.vlgmr.msra.gmra.mrb[0].mxu1 %vm236_vm1, %v212_v20  ;;  %7348 = vmatmul.mubr.msk.bf16.vlgmr.msra.gmra.mrb[12].mxu0 %vm236_vm1, %v212_v20 }
 0x109   :  { %7328 = vmatpush3.bf16.msra.mxu1 %v8081_v19  ;;  %7319 = vmatprep.mubr.msk.bf16.mxu1 %vm8487_vm0, %v8486_v1 }
 0x10a   :  { %7351 = vmatprep.mubr.msk.bf16.mxu0 %vm8487_vm0, %v8486_v1  ;;  %7329 = vmatprep.subr.bf16.mxu1 %v8486_v1 }
 0x10b   :  { %v8654_v23 = vpop.f32.mrb[4].mxu0 }
 0x10c   :  { %v7305_v24 = vpop.f32.mrb[5].mxu0 }
 0x10d   :  { %v8656_v25 = vpop.f32.mrb[6].mxu0  ;;  %7330 = vmatpush3.bf16.msra.mxu1 %v8082_v22 }
 0x10e   :  { %v213_v26 = vpack.c.bf16 %v8656_v25, %v8654_v23  ;;  %v7306_v27 = vpop.f32.mrb[7].mxu0  ;;  %7359 = vmatprep.subr.bf16.mxu1 %v8486_v1 }
 0x110   :  { %7320 = vmatmul.mubr.msk.bf16.gmra.mrb[4].mxu1 %vm236_vm1, %v213_v26  ;;  %7352 = vmatmul.mubr.msk.bf16.gmra.mrb[16].mxu0 %vm236_vm1, %v213_v26 }
 0x111   :  { %7323 = vmatprep.mubr.msk.bf16.mxu1 %vm8487_vm0, %v8486_v1  ;;  %7355 = vmatprep.mubr.msk.bf16.mxu0 %vm8487_vm0, %v8486_v1 }
 0x113   :  { %v8667_v28 = vpop.f32.mrb[8].mxu0 }
 0x114   :  { %v7309_v29 = vpop.f32.mrb[9].mxu0 }
 0x115   :  { %v8669_v30 = vpop.f32.mrb[10].mxu0 }
 0x116   :  { %v214_v31 = vpack.c.bf16 %v8669_v30, %v8667_v28  ;;  %v7310_v32 = vpop.f32.mrb[11].mxu0 }
 0x118   :  { %7324 = vmatmul.mubr.msk.bf16.gmra.mrb[8].mxu1 %vm236_vm1, %v214_v31  ;;  %7356 = vmatmul.mubr.msk.bf16.gmra.mrb[20].mxu0 %vm236_vm1, %v214_v31 }
 0x119   :  { %7331 = vmatprep.mubr.msk.bf16.mxu1 %vm8487_vm0, %v8486_v1  ;;  %7383 = vmatprep.mubr.msk.bf16.mxu0 %vm8487_vm0, %v8486_v1 }
 0x120   :  { %7332 = vmatmul.mubr.msk.bf16.vlgmr.msra.gmra.mrb[12].mxu1 %vm236_vm1, %v212_v20 }
 0x121   :  { %7335 = vmatprep.mubr.msk.bf16.mxu1 %vm8487_vm0, %v8486_v1 }
 0x128   :  { %7336 = vmatmul.mubr.msk.bf16.gmra.mrb[16].mxu1 %vm236_vm1, %v213_v26 }
 0x129   :  { %7339 = vmatprep.mubr.msk.bf16.mxu1 %vm8487_vm0, %v8486_v1 }
 0x130   :  { %7340 = vmatmul.mubr.msk.bf16.gmra.mrb[20].mxu1 %vm236_vm1, %v214_v31 }
 0x131   :  { %7365 = vmatprep.mubr.msk.bf16.mxu1 %vm8487_vm0, %v8486_v1 }
 0x1db   :  { %v280_v34 = vpop.f32.mrb[0].mxu1  ;;  %v436_v36 = vpop.f32.mrb[12].mxu0 }
 0x1dc   :  { %v7317_v37 = vpop.f32.mrb[1].mxu1  ;;  %v7349_v38 = vpop.f32.mrb[13].mxu0  ;;  %v8694_v41 = vadd.f32 %v6396_v33, %v280_v34  ;;  %v437_v42 = vadd.f32 %v6408_v35, %v436_v36 }
 0x1dd   :  { %v283_v39 = vpop.f32.mrb[2].mxu1  ;;  %v439_v40 = vpop.f32.mrb[14].mxu0 }
 0x1de   :  { %v8696_v43 = vadd.f32 %v6396_v33, %v283_v39  ;;  %v440_v44 = vadd.f32 %v6408_v35, %v439_v40  ;;  %v7318_v45 = vpop.f32.mrb[3].mxu1  ;;  %v7350_v46 = vpop.f32.mrb[15].mxu0 }
 0x1e0   :  { %v459_v47 = vpack.c.bf16 %v8696_v43, %v8694_v41  ;;  %v586_v48 = vpack.c.bf16 %v440_v44, %v437_v42  ;;  %v207_v43 = vld [vmem:[%s10316_s3 + $0x8] sm:$0xff] }
 0x1e2   :  { %7378 = vmatpush3.bf16.msra.mxu0 %v586_v48  ;;  %v206_v48 = vld [vmem:[%s10316_s3] sm:$0xff] }
 0x1e3   :  { %v288_v49 = vpop.f32.mrb[4].mxu1  ;;  %v444_v50 = vpop.f32.mrb[16].mxu0  ;;  %7379 = vmatprep.subr.bf16.mxu0 %v8486_v1 }
 0x1e4   :  { %v7321_v51 = vpop.f32.mrb[5].mxu1  ;;  %v7353_v52 = vpop.f32.mrb[17].mxu0  ;;  %v289_v55 = vadd.f32 %v6396_v33, %v288_v49  ;;  %v445_v56 = vadd.f32 %v6408_v35, %v444_v50 }
 0x1e5   :  { %v291_v53 = vpop.f32.mrb[6].mxu1  ;;  %v447_v54 = vpop.f32.mrb[18].mxu0 }
 0x1e6   :  { %v292_v57 = vadd.f32 %v6396_v33, %v291_v53  ;;  %v448_v58 = vadd.f32 %v6408_v35, %v447_v54  ;;  %v7322_v59 = vpop.f32.mrb[7].mxu1  ;;  %v7354_v60 = vpop.f32.mrb[19].mxu0 }
 0x1e8   :  { %v460_v61 = vpack.c.bf16 %v292_v57, %v289_v55  ;;  %v587_v62 = vpack.c.bf16 %v448_v58, %v445_v56  ;;  %v208_v55 = vld [vmem:[%s10316_s3 + $0x10] sm:$0xff]  ;;  %v209_v57 = vld [vmem:[%s10316_s3 + $0x18] sm:$0xff] }
 0x1ea   :  { %7380 = vmatpush3.bf16.msra.mxu0 %v587_v62 }
 0x1eb   :  { %v296_v63 = vpop.f32.mrb[8].mxu1  ;;  %v452_v0 = vpop.f32.mrb[20].mxu0  ;;  %7381 = vmatprep.subr.bf16.mxu0 %v8486_v1 }
 0x1ec   :  { %v7325_v2 = vpop.f32.mrb[9].mxu1  ;;  %v7357_v3 = vpop.f32.mrb[21].mxu0  ;;  %v297_v6 = vadd.f32 %v6396_v33, %v296_v63  ;;  %v453_v7 = vadd.f32 %v6408_v35, %v452_v0 }
 0x1ed   :  { %v299_v4 = vpop.f32.mrb[10].mxu1  ;;  %v455_v5 = vpop.f32.mrb[22].mxu0  ;;  %v210_v2 = vld [vmem:[%s10316_s3 + $0x20] sm:$0xff] }
 0x1ee   :  { %v300_v8 = vadd.f32 %v6396_v33, %v299_v4  ;;  %v456_v9 = vadd.f32 %v6408_v35, %v455_v5  ;;  %v7326_v10 = vpop.f32.mrb[11].mxu1  ;;  %v7358_v11 = vpop.f32.mrb[23].mxu0 }
 0x1f0   :  { %v461_v12 = vpack.c.bf16 %v300_v8, %v297_v6  ;;  %v588_v13 = vpack.c.bf16 %v456_v9, %v453_v7  ;;  %v211_v6 = vld [vmem:[%s10316_s3 + $0x28] sm:$0xff] }
 0x1f2   :  { %7382 = vmatpush3.bf16.msra.mxu0 %v588_v13 }
 0x1f3   :  { %v358_v15 = vpop.f32.mrb[12].mxu1  ;;  %7411 = vmatprep.subr.bf16.mxu0 %v8486_v1 }
 0x1f4   :  { %v7333_v17 = vpop.f32.mrb[13].mxu1  ;;  %v359_v20 = vadd.f32 %v6402_v14, %v358_v15 }
 0x1f5   :  { %v361_v19 = vpop.f32.mrb[14].mxu1 }
 0x1f6   :  { %v362_v21 = vadd.f32 %v6402_v14, %v361_v19  ;;  %v7334_v22 = vpop.f32.mrb[15].mxu1 }
 0x1f8   :  { %v462_v24 = vpack.c.bf16 %v362_v21, %v359_v20 }
 0x1fa   :  { %v475_v26 = vsel %vm236_vm1, %v462_v24, 0 }
 0x1fb   :  { %v366_v27 = vpop.f32.mrb[16].mxu1  ;;  %7360 = vmatpush3.bf16.xpose.msra.mxu1 %v475_v26 }
 0x1fc   :  { %v7337_v29 = vpop.f32.mrb[17].mxu1  ;;  %7361 = vmatprep.subr.bf16.mxu1 %v8486_v1  ;;  %v367_v32 = vadd.f32 %v6402_v14, %v366_v27 }
 0x1fd   :  { %v369_v31 = vpop.f32.mrb[18].mxu1  ;;  %v8083_v29 = vld [vmem:[%s10317_s4 + $0x30] sm:$0xff]  }
 0x1fe   :  { %v370_v33 = vadd.f32 %v6402_v14, %v369_v31  ;;  %v7338_v34 = vpop.f32.mrb[19].mxu1  ;;  %v8084_v31 = vld [vmem:[%s10317_s4 + $0x38] sm:$0xff]  }
 0x200   :  { %v463_v35 = vpack.c.bf16 %v370_v33, %v367_v32 }
 0x202   :  { %v478_v36 = vsel %vm236_vm1, %v463_v35, 0 }
 0x203   :  { %v374_v37 = vpop.f32.mrb[20].mxu1  ;;  %7362 = vmatpush3.bf16.xpose.msra.mxu1 %v478_v36 }
 0x204   :  { %v7341_v38 = vpop.f32.mrb[21].mxu1  ;;  %7363 = vmatprep.subr.bf16.mxu1 %v8486_v1  ;;  %v375_v40 = vadd.f32 %v6402_v14, %v374_v37 }
 0x205   :  { %v377_v39 = vpop.f32.mrb[22].mxu1 }
 0x206   :  { %v378_v42 = vadd.f32 %v6402_v14, %v377_v39  ;;  %v7342_v44 = vpop.f32.mrb[23].mxu1 }
 0x208   :  { %v464_v45 = vpack.c.bf16 %v378_v42, %v375_v40 }
 0x20a   :  { %v481_v46 = vsel %vm236_vm1, %v464_v45, 0 }
 0x20b   :  { %7364 = vmatpush3.bf16.xpose.msra.mxu1 %v481_v46 }
 0x20c   :  { %7395 = vmatprep.subr.bf16.mxu1 %v8486_v1 }
 0x212   :  { %7366 = vmatmul.mubr.msk.bf16.vlgmr.msra.gmra.mrb[24].mxu1 %vm236_vm1, %v459_v47 }
 0x213   :  { %7369 = vmatprep.mubr.msk.bf16.mxu1 %vm8487_vm0, %v8486_v1  ;;  %7396 = vmatpush3.bf16.msra.mxu1 %v8083_v29 }
 0x214   :  { %7397 = vmatprep.subr.bf16.mxu1 %v8486_v1 }
 0x217   :  { %7398 = vmatpush3.bf16.msra.mxu1 %v8084_v31 }
 0x218   :  { %7427 = vmatprep.subr.bf16.mxu1 %v8486_v1 }
 0x21a   :  { %7370 = vmatmul.mubr.msk.bf16.gmra.mrb[28].mxu1 %vm236_vm1, %v460_v61 }
 0x21b   :  { %7373 = vmatprep.mubr.msk.bf16.mxu1 %vm8487_vm0, %v8486_v1 }
 0x222   :  { %7374 = vmatmul.mubr.msk.bf16.gmra.mrb[32].mxu1 %vm236_vm1, %v461_v12 }
 0x223   :  { %7399 = vmatprep.mubr.msk.bf16.mxu1 %vm8487_vm0, %v8486_v1 }
 0x2e5   :  { %v517_v41 = vpop.f32.mrb[24].mxu1 }
 0x2e6   :  { %v518_v47 = vadd.f32 %v517_v41, %v206_v48  ;;  %v7367_v49 = vpop.f32.mrb[25].mxu1 }
 0x2e7   :  { %v520_v50 = vpop.f32.mrb[26].mxu1 }
 0x2e8   :  { %v540_v51 = vmul.f32 1.442695, %v518_v47  ;;  %v521_v52 = vadd.f32 %v520_v50, %v207_v43  ;;  %v7368_v53 = vpop.f32.mrb[27].mxu1 }
 0x2ea   :  { %8227 = vpow2.f32 %v540_v51  ;;  %v542_v54 = vmul.f32 1.442695, %v521_v52 }
 0x2ec   :  { %8229 = vpow2.f32 %v542_v54 }
 0x2ed   :  { %v525_v56 = vpop.f32.mrb[28].mxu1 }
 0x2ee   :  { %v526_v58 = vadd.f32 %v525_v56, %v208_v55  ;;  %v7371_v59 = vpop.f32.mrb[29].mxu1 }
 0x2ef   :  { %v528_v60 = vpop.f32.mrb[30].mxu1 }
 0x2f0   :  { %v544_v61 = vmul.f32 1.442695, %v526_v58  ;;  %v529_v62 = vadd.f32 %v528_v60, %v209_v57  ;;  %v7372_v63 = vpop.f32.mrb[31].mxu1 }
 0x2f2   :  { %8231 = vpow2.f32 %v544_v61  ;;  %v546_v0 = vmul.f32 1.442695, %v529_v62 }
 0x2f4   :  { %v8228_v3 = vpop.eup %8227  ;;  %8233 = vpow2.f32 %v546_v0 }
 0x2f5   :  { %v533_v4 = vpop.f32.mrb[32].mxu1  ;;  %v553_v5 = vsel %vm552_vm2, %v8228_v3, 0.0 }
 0x2f6   :  { %v8230_v7 = vpop.eup %8229  ;;  %v534_v8 = vadd.f32 %v533_v4, %v210_v2  ;;  %554 = vadd.xlane.f32.xlu0 %v553_v5  ;;  %v7375_v9 = vpop.f32.mrb[33].mxu1  ;;  %v6420_v5 = vld [vmem:[%s10319_s6 + $0x3] ss:$0 sm:$0xff] }
 0x2f7   :  { %v536_v10 = vpop.f32.mrb[34].mxu1  ;;  %v556_v14 = vsel %vm552_vm2, %v8230_v7, 0.0 }
 0x2f8   :  { %v548_v11 = vmul.f32 1.442695, %v534_v8  ;;  %v537_v12 = vadd.f32 %v536_v10, %v211_v6  ;;  %v7376_v13 = vpop.f32.mrb[35].mxu1 }
 0x2fa   :  { %8235 = vpow2.f32 %v548_v11  ;;  %v550_v15 = vmul.f32 1.442695, %v537_v12  ;;  %557 = vadd.xlane.f32.xlu0 %v556_v14 }
 0x2fc   :  { %v8232_v17 = vpop.eup %8231  ;;  %8237 = vpow2.f32 %v550_v15 }
 0x2fd   :  { %v559_v19 = vsel %vm552_vm2, %v8232_v17, 0.0 }
 0x2fe   :  { %v8234_v20 = vpop.eup %8233  ;;  %560 = vadd.xlane.f32.xlu1 %v559_v19 }
 0x2ff   :  { %v562_v21 = vsel %vm552_vm2, %v8234_v20, 0.0 }
 0x302   :  { %563 = vadd.xlane.f32.xlu1 %v562_v21 }
 0x304   :  { %v8236_v22 = vpop.eup %8235 }
 0x305   :  { %v565_v24 = vsel %vm552_vm2, %v8236_v22, 0.0 }
 0x306   :  { %v8238_v26 = vpop.eup %8237  ;;  %566 = vadd.xlane.f32.xlu0 %v565_v24 }
 0x307   :  { %v568_v27 = vsel %vm552_vm2, %v8238_v26, 0.0 }
 0x308   :  { %569 = vadd.xlane.f32.xlu1 %v568_v27 }
 0x383   :  { %v555_v32 = vpop.xlane.xlu0 %554 }
 0x384   :  { %8239 = vrcp.f32 %v555_v32 }
 0x387   :  { %v558_v33 = vpop.xlane.xlu0 %557 }
 0x388   :  { %8241 = vrcp.f32 %v558_v33 }
 0x38b   :  { %v561_v34 = vpop.xlane.xlu1 %560 }
 0x38c   :  { %8243 = vrcp.f32 %v561_v34 }
 0x38e   :  { %v8240_v36 = vpop.eup %8239 }
 0x38f   :  { %v564_v35 = vpop.xlane.xlu1 %563  ;;  %v577_v38 = vmul.f32 %v8240_v36, %v8228_v3 }
 0x390   :  { %8245 = vrcp.f32 %v564_v35 }
 0x392   :  { %v8242_v37 = vpop.eup %8241 }
 0x393   :  { %v578_v39 = vmul.f32 %v8242_v37, %v8230_v7  ;;  %v567_v40 = vpop.xlane.xlu0 %566 }
 0x394   :  { %8247 = vrcp.f32 %v567_v40 }
 0x395   :  { %v583_v42 = vpack.c.bf16 %v578_v39, %v577_v38  ;;  %v570_v44 = vpop.xlane.xlu1 %569 }
 0x396   :  { %8249 = vrcp.f32 %v570_v44  ;;  %v8244_v45 = vpop.eup %8243 }
 0x397   :  { %7384 = vmatmul.mubr.msk.bf16.vlgmr.msra.gmra.mrb[24].mxu0 %vm552_vm2, %v583_v42  ;;  %v579_v48 = vmul.f32 %v8244_v45, %v8232_v17 }
 0x398   :  { %7387 = vmatprep.mubr.msk.bf16.mxu0 %vm8487_vm0, %v8486_v1 }
 0x39a   :  { %v8246_v46 = vpop.eup %8245 }
 0x39b   :  { %v580_v41 = vmul.f32 %v8246_v46, %v8234_v20 }
 0x39d   :  { %v584_v43 = vpack.c.bf16 %v580_v41, %v579_v48 }
 0x39e   :  { %v8248_v47 = vpop.eup %8247 }
 0x39f   :  { %7388 = vmatmul.mubr.msk.bf16.gmra.mrb[28].mxu0 %vm552_vm2, %v584_v43  ;;  %v581_v51 = vmul.f32 %v8248_v47, %v8236_v22 }
 0x3a0   :  { %v8250_v49 = vpop.eup %8249  ;;  %7391 = vmatprep.mubr.msk.bf16.mxu0 %vm8487_vm0, %v8486_v1 }
 0x3a1   :  { %v582_v50 = vmul.f32 %v8250_v49, %v8238_v26 }
 0x3a3   :  { %v585_v52 = vpack.c.bf16 %v582_v50, %v581_v51 }
 0x3a7   :  { %7392 = vmatmul.mubr.msk.bf16.gmra.mrb[32].mxu0 %vm552_vm2, %v585_v52 }
 0x3a8   :  { %7415 = vmatprep.mubr.msk.bf16.mxu0 %vm8487_vm0, %v8486_v1 }
 0x46a   :  { %v632_v53 = vpop.f32.mrb[24].mxu0 }
 0x46b   :  { %v7385_v54 = vpop.f32.mrb[25].mxu0 }
 0x46c   :  { %v635_v55 = vpop.f32.mrb[26].mxu0 }
 0x46d   :  { %v655_v56 = vpack.c.bf16 %v635_v55, %v632_v53  ;;  %v7386_v57 = vpop.f32.mrb[27].mxu0 }
 0x46f   :  { %7400 = vmatmul.mubr.msk.bf16.vlgmr.msra.gmra.mrb[36].mxu1 %vm236_vm1, %v655_v56 }
 0x470   :  { %7403 = vmatprep.mubr.msk.bf16.mxu1 %vm8487_vm0, %v8486_v1 }
 0x472   :  { %v640_v58 = vpop.f32.mrb[28].mxu0 }
 0x473   :  { %v7389_v59 = vpop.f32.mrb[29].mxu0 }
 0x474   :  { %v643_v60 = vpop.f32.mrb[30].mxu0 }
 0x475   :  { %v656_v61 = vpack.c.bf16 %v643_v60, %v640_v58  ;;  %v7390_v62 = vpop.f32.mrb[31].mxu0 }
 0x477   :  { %7404 = vmatmul.mubr.msk.bf16.gmra.mrb[40].mxu1 %vm236_vm1, %v656_v61 }
 0x478   :  { %7407 = vmatprep.mubr.msk.bf16.mxu1 %vm8487_vm0, %v8486_v1 }
 0x47a   :  { %v648_v63 = vpop.f32.mrb[32].mxu0 }
 0x47b   :  { %v7393_v0 = vpop.f32.mrb[33].mxu0 }
 0x47c   :  { %v651_v2 = vpop.f32.mrb[34].mxu0 }
 0x47d   :  { %v657_v3 = vpack.c.bf16 %v651_v2, %v648_v63  ;;  %v7394_v4 = vpop.f32.mrb[35].mxu0 }
 0x47e   :  { %v8086_v4 = vld [vmem:[%s10318_s5 + $0x8] sm:$0xff]  }
 0x47f   :  { %7408 = vmatmul.mubr.msk.bf16.gmra.mrb[44].mxu1 %vm236_vm1, %v657_v3  ;;  %v8085_v3 = vld [vmem:[%s10318_s5] sm:$0xff]  }
 0x480   :  { %7443 = vmatprep.mubr.msk.bf16.mxu1 %vm8487_vm0, %v8486_v1  ;;  %7412 = vmatpush3.bf16.msra.mxu0 %v8085_v3 }
 0x481   :  { %7413 = vmatprep.subr.bf16.mxu0 %v8486_v1 }
 0x484   :  { %7414 = vmatpush3.bf16.msra.mxu0 %v8086_v4 }
 0x485   :  { %7455 = vmatprep.subr.bf16.mxu0 %v8486_v1 }
 0x542   :  { %v722_v6 = vpop.f32.mrb[36].mxu1 }
 0x543   :  { %v723_v7 = vadd.f32 %v6420_v5, %v722_v6  ;;  %v7401_v8 = vpop.f32.mrb[37].mxu1 }
 0x544   :  { %v725_v9 = vpop.f32.mrb[38].mxu1 }
 0x545   :  { %v726_v10 = vadd.f32 %v6420_v5, %v725_v9  ;;  %v7402_v11 = vpop.f32.mrb[39].mxu1  ;;  %v745_v12 = vadd.f32 %v723_v7, %v8635_v16 }
 0x547   :  { %v753_v13 = vsel %vm236_vm1, %v745_v12, 0.0  ;;  %v746_v14 = vadd.f32 %v726_v10, %v8637_v18 }
 0x548   :  { %754 = vadd.xlane.f32.xlu0 %v753_v13 }
 0x549   :  { %v756_v15 = vsel %vm236_vm1, %v746_v14, 0.0 }
 0x54a   :  { %757 = vadd.xlane.f32.xlu1 %v756_v15  ;;  %v730_v17 = vpop.f32.mrb[40].mxu1 }
 0x54b   :  { %v731_v19 = vadd.f32 %v6420_v5, %v730_v17  ;;  %v7405_v20 = vpop.f32.mrb[41].mxu1 }
 0x54c   :  { %v733_v21 = vpop.f32.mrb[42].mxu1  ;;  %v6426_v20 = vld [vmem:[%s10319_s6 + $0x4] ss:$0 sm:$0xff] }
 0x54d   :  { %v734_v22 = vadd.f32 %v6420_v5, %v733_v21  ;;  %v7406_v24 = vpop.f32.mrb[43].mxu1  ;;  %v747_v26 = vadd.f32 %v731_v19, %v8654_v23 }
 0x54f   :  { %v759_v27 = vsel %vm236_vm1, %v747_v26, 0.0  ;;  %v748_v16 = vadd.f32 %v734_v22, %v8656_v25 }
 0x550   :  { %760 = vadd.xlane.f32.xlu0 %v759_v27 }
 0x551   :  { %v762_v29 = vsel %vm236_vm1, %v748_v16, 0.0 }
 0x552   :  { %763 = vadd.xlane.f32.xlu1 %v762_v29  ;;  %v738_v18 = vpop.f32.mrb[44].mxu1 }
 0x553   :  { %v739_v31 = vadd.f32 %v6420_v5, %v738_v18  ;;  %v7409_v32 = vpop.f32.mrb[45].mxu1  ;;  %v6427_v18 = vld [vmem:[%s10319_s6 + $0x5] ss:$0 sm:$0xff] }
 0x554   :  { %v741_v33 = vpop.f32.mrb[46].mxu1 }
 0x555   :  { %v742_v34 = vadd.f32 %v6420_v5, %v741_v33  ;;  %v7410_v35 = vpop.f32.mrb[47].mxu1  ;;  %v749_v36 = vadd.f32 %v739_v31, %v8667_v28 }
 0x557   :  { %v765_v37 = vsel %vm236_vm1, %v749_v36, 0.0  ;;  %v750_v23 = vadd.f32 %v742_v34, %v8669_v30 }
 0x558   :  { %766 = vadd.xlane.f32.xlu0 %v765_v37 }
 0x559   :  { %v768_v38 = vsel %vm236_vm1, %v750_v23, 0.0 }
 0x55a   :  { %769 = vadd.xlane.f32.xlu1 %v768_v38 }
 0x5d5   :  { %v755_v25 = vpop.xlane.xlu0 %754 }
 0x5d6   :  { %v772_v39 = vmul.f32 0.03125, %v755_v25 }
 0x5d7   :  { %v758_v40 = vpop.xlane.xlu1 %757 }
 0x5d8   :  { %v778_v42 = vsub.f32 %v745_v12, %v772_v39  ;;  %v773_v44 = vmul.f32 0.03125, %v758_v40 }
 0x5da   :  { %v779_v45 = vsub.f32 %v746_v14, %v773_v44  ;;  %v784_v46 = vmul.f32 %v778_v42, %v778_v42 }
 0x5dc   :  { %v790_v48 = vsel %vm236_vm1, %v784_v46, 0.0  ;;  %v785_v41 = vmul.f32 %v779_v45, %v779_v45 }
 0x5dd   :  { %v761_v43 = vpop.xlane.xlu0 %760  ;;  %791 = vadd.xlane.f32.xlu0 %v790_v48 }
 0x5de   :  { %v774_v28 = vmul.f32 0.03125, %v761_v43  ;;  %v793_v47 = vsel %vm236_vm1, %v785_v41, 0.0 }
 0x5df   :  { %v764_v30 = vpop.xlane.xlu1 %763  ;;  %794 = vadd.xlane.f32.xlu1 %v793_v47 }
 0x5e0   :  { %v8791_v49 = vsub.f32 %v747_v26, %v774_v28  ;;  %v775_v50 = vmul.f32 0.03125, %v764_v30 }
 0x5e2   :  { %v8793_v51 = vsub.f32 %v748_v16, %v775_v50  ;;  %v786_v52 = vmul.f32 %v8791_v49, %v8791_v49 }
 0x5e4   :  { %v796_v53 = vsel %vm236_vm1, %v786_v52, 0.0  ;;  %v787_v54 = vmul.f32 %v8793_v51, %v8793_v51  ;;  %v8087_v52 = vld [vmem:[%s10317_s4 + $0x40] sm:$0xff]  }
 0x5e5   :  { %797 = vadd.xlane.f32.xlu0 %v796_v53  ;;  %v767_v55 = vpop.xlane.xlu0 %766  ;;  %7428 = vmatpush3.bf16.msra.mxu1 %v8087_v52  ;;  %v8088_v53 = vld [vmem:[%s10317_s4 + $0x48] sm:$0xff]  }
 0x5e6   :  { %v776_v56 = vmul.f32 0.03125, %v767_v55  ;;  %v799_v57 = vsel %vm236_vm1, %v787_v54, 0.0  ;;  %7429 = vmatprep.subr.bf16.mxu1 %v8486_v1  ;;  %v8089_v54 = vld [vmem:[%s10317_s4 + $0x50] sm:$0xff]   ;;  %v8090_v55 = vld [vmem:[%s10317_s4 + $0x58] sm:$0xff]  }
 0x5e7   :  { %800 = vadd.xlane.f32.xlu1 %v799_v57  ;;  %v770_v58 = vpop.xlane.xlu1 %769  ;;  %v8092_v57 = vld [vmem:[%s10317_s4 + $0x68] sm:$0xff]  }
 0x5e8   :  { %v782_v59 = vsub.f32 %v749_v36, %v776_v56  ;;  %v777_v60 = vmul.f32 0.03125, %v770_v58  ;;  %v8091_v56 = vld [vmem:[%s10317_s4 + $0x60] sm:$0xff]   ;;  %v8093_v58 = vld [vmem:[%s10317_s4 + $0x70] sm:$0xff]  }
 0x5e9   :  { %7430 = vmatpush3.bf16.msra.mxu1 %v8088_v53 }
 0x5ea   :  { %v8801_v61 = vsub.f32 %v750_v23, %v777_v60  ;;  %v788_v62 = vmul.f32 %v782_v59, %v782_v59  ;;  %7431 = vmatprep.subr.bf16.mxu1 %v8486_v1  ;;  %v6428_v60 = vld [vmem:[%s10319_s6 + $0x6] ss:$0 sm:$0xff] }
 0x5ec   :  { %v802_v63 = vsel %vm236_vm1, %v788_v62, 0.0  ;;  %v789_v0 = vmul.f32 %v8801_v61, %v8801_v61 }
 0x5ed   :  { %803 = vadd.xlane.f32.xlu0 %v802_v63  ;;  %7432 = vmatpush3.bf16.msra.mxu1 %v8089_v54 }
 0x5ee   :  { %v805_v2 = vsel %vm236_vm1, %v789_v0, 0.0  ;;  %7433 = vmatprep.subr.bf16.mxu1 %v8486_v1 }
 0x5ef   :  { %806 = vadd.xlane.f32.xlu1 %v805_v2 }
 0x5f1   :  { %7434 = vmatpush3.bf16.msra.mxu1 %v8090_v55 }
 0x5f2   :  { %7435 = vmatprep.subr.bf16.mxu1 %v8486_v1 }
 0x5f5   :  { %7436 = vmatpush3.bf16.msra.mxu1 %v8091_v56 }
 0x5f6   :  { %7437 = vmatprep.subr.bf16.mxu1 %v8486_v1 }
 0x5f9   :  { %7438 = vmatpush3.bf16.msra.mxu1 %v8092_v57 }
 0x5fa   :  { %7439 = vmatprep.subr.bf16.mxu1 %v8486_v1 }
 0x5fd   :  { %7440 = vmatpush3.bf16.msra.mxu1 %v8093_v58 }
 0x5fe   :  { %7441 = vmatprep.subr.bf16.mxu1 %v8486_v1 }
 0x66a   :  { %v792_v5 = vpop.xlane.xlu0 %791 }
 0x66b   :  { %v808_v6 = vmul.f32 0.03125, %v792_v5 }
 0x66c   :  { %v795_v7 = vpop.xlane.xlu1 %794 }
 0x66d   :  { %v814_v8 = vadd.f32 1e-12, %v808_v6  ;;  %v809_v9 = vmul.f32 0.03125, %v795_v7 }
 0x66f   :  { %8251 = vrsqrt.f32 %v814_v8  ;;  %v815_v10 = vadd.f32 1e-12, %v809_v9 }
 0x671   :  { %8253 = vrsqrt.f32 %v815_v10 }
 0x672   :  { %v798_v11 = vpop.xlane.xlu0 %797 }
 0x673   :  { %v810_v12 = vmul.f32 0.03125, %v798_v11 }
 0x674   :  { %v801_v13 = vpop.xlane.xlu1 %800 }
 0x675   :  { %v816_v14 = vadd.f32 1e-12, %v810_v12  ;;  %v811_v15 = vmul.f32 0.03125, %v801_v13 }
 0x677   :  { %8255 = vrsqrt.f32 %v816_v14  ;;  %v817_v17 = vadd.f32 1e-12, %v811_v15 }
 0x679   :  { %v8252_v19 = vpop.eup %8251  ;;  %8257 = vrsqrt.f32 %v817_v17 }
 0x67a   :  { %v826_v21 = vmul.f32 %v8252_v19, %v778_v42  ;;  %v804_v22 = vpop.xlane.xlu0 %803 }
 0x67b   :  { %v8254_v24 = vpop.eup %8253  ;;  %v812_v26 = vmul.f32 0.03125, %v804_v22 }
 0x67c   :  { %v836_v27 = vmul.f32 %v6426_v20, %v826_v21  ;;  %v827_v16 = vmul.f32 %v8254_v24, %v779_v45  ;;  %v807_v29 = vpop.xlane.xlu1 %806 }
 0x67d   :  { %v818_v31 = vadd.f32 1e-12, %v812_v26  ;;  %v813_v32 = vmul.f32 0.03125, %v807_v29 }
 0x67e   :  { %v837_v33 = vmul.f32 %v6426_v20, %v827_v16  ;;  %v8821_v35 = vadd.f32 %v6427_v18, %v836_v27 }
 0x67f   :  { %8259 = vrsqrt.f32 %v818_v31  ;;  %v819_v34 = vadd.f32 1e-12, %v813_v32 }
 0x680   :  { %v8823_v36 = vadd.f32 %v6427_v18, %v837_v33 }
 0x681   :  { %v8256_v37 = vpop.eup %8255  ;;  %8261 = vrsqrt.f32 %v819_v34 }
 0x682   :  { %v852_v23 = vpack.c.bf16 %v8823_v36, %v8821_v35  ;;  %v828_v38 = vmul.f32 %v8256_v37, %v8791_v49 }
 0x683   :  { %v8258_v25 = vpop.eup %8257 }
 0x684   :  { %7416 = vmatmul.mubr.msk.bf16.vlgmr.msra.gmra.mrb[36].mxu0 %vm236_vm1, %v852_v23  ;;  %v829_v39 = vmul.f32 %v8258_v25, %v8793_v51  ;;  %v838_v40 = vmul.f32 %v6426_v20, %v828_v38 }
 0x685   :  { %7419 = vmatprep.mubr.msk.bf16.mxu0 %vm8487_vm0, %v8486_v1 }
 0x686   :  { %v839_v42 = vmul.f32 %v6426_v20, %v829_v39  ;;  %v8832_v44 = vadd.f32 %v6427_v18, %v838_v40 }
 0x688   :  { %v8834_v45 = vadd.f32 %v6427_v18, %v839_v42 }
 0x689   :  { %v8260_v46 = vpop.eup %8259 }
 0x68a   :  { %v853_v48 = vpack.c.bf16 %v8834_v45, %v8832_v44  ;;  %v830_v41 = vmul.f32 %v8260_v46, %v782_v59  ;;  %v8094_v59 = vld [vmem:[%s10317_s4 + $0x78] sm:$0xff]  }
 0x68b   :  { %v8262_v43 = vpop.eup %8261  ;;  %7442 = vmatpush3.bf16.msra.mxu1 %v8094_v59 }
 0x68c   :  { %7420 = vmatmul.mubr.msk.bf16.gmra.mrb[40].mxu0 %vm236_vm1, %v853_v48  ;;  %v831_v28 = vmul.f32 %v8262_v43, %v8801_v61  ;;  %v840_v47 = vmul.f32 %v6426_v20, %v830_v41  ;;  %7471 = vmatprep.subr.bf16.mxu1 %v8486_v1 }
 0x68d   :  { %7423 = vmatprep.mubr.msk.bf16.mxu0 %vm8487_vm0, %v8486_v1 }
 0x68e   :  { %v841_v30 = vmul.f32 %v6426_v20, %v831_v28  ;;  %v8842_v49 = vadd.f32 %v6427_v18, %v840_v47 }
 0x690   :  { %v8844_v50 = vadd.f32 %v6427_v18, %v841_v30 }
 0x692   :  { %v854_v51 = vpack.c.bf16 %v8844_v50, %v8842_v49 }
 0x694   :  { %7424 = vmatmul.mubr.msk.bf16.gmra.mrb[44].mxu0 %vm236_vm1, %v854_v51 }
 0x695   :  { %7459 = vmatprep.mubr.msk.bf16.mxu0 %vm8487_vm0, %v8486_v1 }
 0x757   :  { %v919_v61 = vpop.f32.mrb[36].mxu0 }
 0x758   :  { %v920_v62 = vadd.f32 %v6428_v60, %v919_v61  ;;  %v7417_v63 = vpop.f32.mrb[37].mxu0 }
 0x759   :  { %v922_v0 = vpop.f32.mrb[38].mxu0 }
 0x75a   :  { %v942_v2 = vmul.f32 %v920_v62, %v920_v62  ;;  %v923_v3 = vadd.f32 %v6428_v60, %v922_v0  ;;  %v7418_v4 = vpop.f32.mrb[39].mxu0 }
 0x75c   :  { %v948_v5 = vmul.f32 %v942_v2, %v920_v62  ;;  %v943_v6 = vmul.f32 %v923_v3, %v923_v3 }
 0x75e   :  { %v954_v7 = vmul.f32 0.044715, %v948_v5  ;;  %v949_v8 = vmul.f32 %v943_v6, %v923_v3 }
 0x75f   :  { %v927_v9 = vpop.f32.mrb[40].mxu0 }
 0x760   :  { %v960_v10 = vadd.f32 %v954_v7, %v920_v62  ;;  %v955_v11 = vmul.f32 0.044715, %v949_v8  ;;  %v928_v12 = vadd.f32 %v6428_v60, %v927_v9  ;;  %v7421_v13 = vpop.f32.mrb[41].mxu0 }
 0x761   :  { %v930_v14 = vpop.f32.mrb[42].mxu0 }
 0x762   :  { %v966_v15 = vmul.f32 0.7978846, %v960_v10  ;;  %v961_v17 = vadd.f32 %v955_v11, %v923_v3  ;;  %v944_v19 = vmul.f32 %v928_v12, %v928_v12  ;;  %v931_v20 = vadd.f32 %v6428_v60, %v930_v14  ;;  %v7422_v21 = vpop.f32.mrb[43].mxu0 }
 0x764   :  { %8263 = vtanh.f32 %v966_v15  ;;  %v967_v22 = vmul.f32 0.7978846, %v961_v17  ;;  %v950_v24 = vmul.f32 %v944_v19, %v928_v12  ;;  %v945_v26 = vmul.f32 %v931_v20, %v931_v20 }
 0x766   :  { %8265 = vtanh.f32 %v967_v22  ;;  %v956_v27 = vmul.f32 0.044715, %v950_v24  ;;  %v951_v16 = vmul.f32 %v945_v26, %v931_v20 }
 0x767   :  { %v935_v29 = vpop.f32.mrb[44].mxu0 }
 0x768   :  { %v962_v18 = vadd.f32 %v956_v27, %v928_v12  ;;  %v957_v31 = vmul.f32 0.044715, %v951_v16  ;;  %v936_v32 = vadd.f32 %v6428_v60, %v935_v29  ;;  %v7425_v33 = vpop.f32.mrb[45].mxu0 }
 0x769   :  { %v938_v34 = vpop.f32.mrb[46].mxu0 }
 0x76a   :  { %v968_v37 = vmul.f32 0.7978846, %v962_v18  ;;  %v963_v23 = vadd.f32 %v957_v31, %v931_v20  ;;  %v946_v38 = vmul.f32 %v936_v32, %v936_v32  ;;  %v939_v25 = vadd.f32 %v6428_v60, %v938_v34  ;;  %v7426_v39 = vpop.f32.mrb[47].mxu0 }
 0x76c   :  { %8267 = vtanh.f32 %v968_v37  ;;  %v969_v40 = vmul.f32 0.7978846, %v963_v23  ;;  %v952_v42 = vmul.f32 %v946_v38, %v936_v32  ;;  %v947_v46 = vmul.f32 %v939_v25, %v939_v25 }
 0x76e   :  { %v8264_v48 = vpop.eup %8263  ;;  %8269 = vtanh.f32 %v969_v40  ;;  %v958_v41 = vmul.f32 0.044715, %v952_v42  ;;  %v953_v43 = vmul.f32 %v947_v46, %v939_v25 }
 0x76f   :  { %v978_v28 = vadd.f32 1.0, %v8264_v48 }
 0x770   :  { %v8266_v47 = vpop.eup %8265  ;;  %v964_v30 = vadd.f32 %v958_v41, %v936_v32  ;;  %v959_v51 = vmul.f32 0.044715, %v953_v43 }
 0x771   :  { %v984_v52 = vmul.f32 0.5, %v978_v28  ;;  %v979_v53 = vadd.f32 1.0, %v8266_v47 }
 0x772   :  { %v970_v54 = vmul.f32 0.7978846, %v964_v30  ;;  %v965_v55 = vadd.f32 %v959_v51, %v939_v25 }
 0x773   :  { %v985_v56 = vmul.f32 0.5, %v979_v53  ;;  %v990_v58 = vmul.f32 %v984_v52, %v920_v62 }
 0x774   :  { %8271 = vtanh.f32 %v970_v54  ;;  %v971_v57 = vmul.f32 0.7978846, %v965_v55 }
 0x775   :  { %v991_v59 = vmul.f32 %v985_v56, %v923_v3 }
 0x776   :  { %v8268_v60 = vpop.eup %8267  ;;  %8273 = vtanh.f32 %v971_v57 }
 0x777   :  { %v996_v61 = vpack.c.bf16 %v991_v59, %v990_v58  ;;  %v980_v63 = vadd.f32 1.0, %v8268_v60 }
 0x778   :  { %v8270_v0 = vpop.eup %8269 }
 0x779   :  { %7444 = vmatmul.mubr.bf16.vlgmr.msra.gmra.mrb[48].mxu1 %v996_v61  ;;  %v981_v2 = vadd.f32 1.0, %v8270_v0  ;;  %v986_v4 = vmul.f32 0.5, %v980_v63 }
 0x77a   :  { %7447 = vmatprep.mubr.msk.bf16.mxu1 %vm8487_vm0, %v8486_v1 }
 0x77b   :  { %v987_v5 = vmul.f32 0.5, %v981_v2  ;;  %v992_v6 = vmul.f32 %v986_v4, %v928_v12  ;;  %v6434_v12 = vld [vmem:[%s10319_s6 + $0x7] ss:$0 sm:$0xff] }
 0x77d   :  { %v993_v7 = vmul.f32 %v987_v5, %v931_v20 }
 0x77e   :  { %v8272_v8 = vpop.eup %8271 }
 0x77f   :  { %v997_v9 = vpack.c.bf16 %v993_v7, %v992_v6  ;;  %v982_v10 = vadd.f32 1.0, %v8272_v8 }
 0x780   :  { %v8274_v11 = vpop.eup %8273 }
 0x781   :  { %7448 = vmatmul.mubr.bf16.gmra.mrb[52].mxu1 %v997_v9  ;;  %v983_v62 = vadd.f32 1.0, %v8274_v11  ;;  %v988_v3 = vmul.f32 0.5, %v982_v10 }
 0x782   :  { %7451 = vmatprep.mubr.msk.bf16.mxu1 %vm8487_vm0, %v8486_v1 }
 0x783   :  { %v989_v13 = vmul.f32 0.5, %v983_v62  ;;  %v994_v14 = vmul.f32 %v988_v3, %v936_v32 }
 0x785   :  { %v995_v15 = vmul.f32 %v989_v13, %v939_v25 }
 0x787   :  { %v998_v17 = vpack.c.bf16 %v995_v15, %v994_v14  ;;  %v8095_v15 = vld [vmem:[%s10317_s4 + $0x90] sm:$0xff]  }
 0x788   :  { %7472 = vmatpush3.bf16.msra.mxu1 %v8095_v15 }
 0x789   :  { %7452 = vmatmul.mubr.bf16.gmra.mrb[56].mxu1 %v998_v17  ;;  %v8096_v17 = vld [vmem:[%s10317_s4 + $0x80] sm:$0xff]   ;;  %7473 = vmatprep.subr.bf16.mxu1 %v8486_v1 }
 0x78a   :  { %7475 = vmatprep.mubr.msk.bf16.mxu1 %vm8487_vm0, %v8486_v1  ;;  %7456 = vmatpush3.bf16.msra.mxu0 %v8096_v17 }
 0x78b   :  { %7457 = vmatprep.subr.bf16.mxu0 %v8486_v1 }
 0x84c   :  { %v1102_v19 = vpop.f32.mrb[48].mxu1 }
 0x84d   :  { %v1103_v20 = vadd.f32 %v6434_v12, %v1102_v19  ;;  %v7445_v21 = vpop.f32.mrb[49].mxu1  ;;  %v8098_v19 = vld [vmem:[%s10317_s4 + $0x88] sm:$0xff]  }
 0x84e   :  { %v1105_v22 = vpop.f32.mrb[50].mxu1  ;;  %7458 = vmatpush3.bf16.msra.mxu0 %v8098_v19 }
 0x84f   :  { %v1106_v24 = vadd.f32 %v6434_v12, %v1105_v22  ;;  %v7446_v26 = vpop.f32.mrb[51].mxu1  ;;  %v1125_v27 = vadd.f32 %v1103_v20, %v8821_v35  ;;  %7487 = vmatprep.subr.bf16.mxu0 %v8486_v1 }
 0x851   :  { %v1133_v16 = vsel %vm236_vm1, %v1125_v27, 0.0  ;;  %v1126_v29 = vadd.f32 %v1106_v24, %v8823_v36 }
 0x852   :  { %1134 = vadd.xlane.f32.xlu0 %v1133_v16 }
 0x853   :  { %v1136_v18 = vsel %vm236_vm1, %v1126_v29, 0.0 }
 0x854   :  { %1137 = vadd.xlane.f32.xlu1 %v1136_v18  ;;  %v1110_v31 = vpop.f32.mrb[52].mxu1 }
 0x855   :  { %v1111_v32 = vadd.f32 %v6434_v12, %v1110_v31  ;;  %v7449_v33 = vpop.f32.mrb[53].mxu1 }
 0x856   :  { %v1113_v34 = vpop.f32.mrb[54].mxu1 }
 0x857   :  { %v1114_v37 = vadd.f32 %v6434_v12, %v1113_v34  ;;  %v7450_v23 = vpop.f32.mrb[55].mxu1  ;;  %v1127_v38 = vadd.f32 %v1111_v32, %v8832_v44 }
 0x859   :  { %v1139_v25 = vsel %vm236_vm1, %v1127_v38, 0.0  ;;  %v1128_v35 = vadd.f32 %v1114_v37, %v8834_v45  ;;  %v6443_v37 = vld [vmem:[%s10319_s6 + $0x8] ss:$0 sm:$0xff] }
 0x85a   :  { %1140 = vadd.xlane.f32.xlu0 %v1139_v25 }
 0x85b   :  { %v1142_v39 = vsel %vm236_vm1, %v1128_v35, 0.0 }
 0x85c   :  { %1143 = vadd.xlane.f32.xlu1 %v1142_v39  ;;  %v1118_v36 = vpop.f32.mrb[56].mxu1 }
 0x85d   :  { %v1119_v40 = vadd.f32 %v6434_v12, %v1118_v36  ;;  %v7453_v42 = vpop.f32.mrb[57].mxu1 }
 0x85e   :  { %v1121_v46 = vpop.f32.mrb[58].mxu1  ;;  %v6444_v42 = vld [vmem:[%s10319_s6 + $0x9] ss:$0 sm:$0xff] }
 0x85f   :  { %v1122_v48 = vadd.f32 %v6434_v12, %v1121_v46  ;;  %v7454_v41 = vpop.f32.mrb[59].mxu1  ;;  %v1129_v43 = vadd.f32 %v1119_v40, %v8842_v49  ;;  %v8097_v12 = vld [vmem:[%s10317_s4 + $0x98] sm:$0xff]  }
 0x860   :  { %7474 = vmatpush3.bf16.msra.mxu1 %v8097_v12 }
 0x861   :  { %v1145_v28 = vsel %vm236_vm1, %v1129_v43, 0.0  ;;  %v1130_v44 = vadd.f32 %v1122_v48, %v8844_v50  ;;  %7503 = vmatprep.subr.bf16.mxu1 %v8486_v1 }
 0x862   :  { %1146 = vadd.xlane.f32.xlu0 %v1145_v28 }
 0x863   :  { %v1148_v47 = vsel %vm236_vm1, %v1130_v44, 0.0 }
 0x864   :  { %1149 = vadd.xlane.f32.xlu1 %v1148_v47 }
 0x8df   :  { %v1135_v45 = vpop.xlane.xlu0 %1134 }
 0x8e0   :  { %v1151_v30 = vmul.f32 0.03125, %v1135_v45 }
 0x8e1   :  { %v1138_v51 = vpop.xlane.xlu1 %1137 }
 0x8e2   :  { %v8907_v52 = vsub.f32 %v1125_v27, %v1151_v30  ;;  %v1152_v53 = vmul.f32 0.03125, %v1138_v51  ;;  %v8099_v51 = vld [vmem:[%s10317_s4 + $0xa0] sm:$0xff]  }
 0x8e4   :  { %v8909_v54 = vsub.f32 %v1126_v29, %v1152_v53  ;;  %v1163_v55 = vmul.f32 %v8907_v52, %v8907_v52 }
 0x8e6   :  { %v1169_v49 = vsel %vm236_vm1, %v1163_v55, 0.0  ;;  %v1164_v50 = vmul.f32 %v8909_v54, %v8909_v54 }
 0x8e7   :  { %v1141_v56 = vpop.xlane.xlu0 %1140  ;;  %1170 = vadd.xlane.f32.xlu0 %v1169_v49  ;;  %v8100_v49 = vld [vmem:[%s10317_s4 + $0xa8] sm:$0xff]  }
 0x8e8   :  { %v1153_v57 = vmul.f32 0.03125, %v1141_v56  ;;  %v1172_v58 = vsel %vm236_vm1, %v1164_v50, 0.0 }
 0x8e9   :  { %v1144_v59 = vpop.xlane.xlu1 %1143  ;;  %1173 = vadd.xlane.f32.xlu1 %v1172_v58 }
 0x8ea   :  { %v8917_v60 = vsub.f32 %v1127_v38, %v1153_v57  ;;  %v1154_v61 = vmul.f32 0.03125, %v1144_v59 }
 0x8ec   :  { %v8919_v63 = vsub.f32 %v1128_v35, %v1154_v61  ;;  %v1165_v0 = vmul.f32 %v8917_v60, %v8917_v60 }
 0x8ee   :  { %v1175_v2 = vsel %vm236_vm1, %v1165_v0, 0.0  ;;  %v1166_v4 = vmul.f32 %v8919_v63, %v8919_v63 }
 0x8ef   :  { %1176 = vadd.xlane.f32.xlu0 %v1175_v2  ;;  %v1147_v5 = vpop.xlane.xlu0 %1146 }
 0x8f0   :  { %v1155_v6 = vmul.f32 0.03125, %v1147_v5  ;;  %v1178_v7 = vsel %vm236_vm1, %v1166_v4, 0.0 }
 0x8f1   :  { %1179 = vadd.xlane.f32.xlu1 %v1178_v7  ;;  %v1150_v8 = vpop.xlane.xlu1 %1149 }
 0x8f2   :  { %v8927_v9 = vsub.f32 %v1129_v43, %v1155_v6  ;;  %v1156_v10 = vmul.f32 0.03125, %v1150_v8  ;;  %v6450_v6 = vld [vmem:[%s10319_s6 + $0x10] ss:$0 sm:$0xff]  ;;  %v6461_v8 = vld [vmem:[%s10319_s6 + $0x11] ss:$0 sm:$0xff] }
 0x8f4   :  { %v8929_v11 = vsub.f32 %v1130_v44, %v1156_v10  ;;  %v1167_v62 = vmul.f32 %v8927_v9, %v8927_v9 }
 0x8f6   :  { %v1181_v3 = vsel %vm236_vm1, %v1167_v62, 0.0  ;;  %v1168_v13 = vmul.f32 %v8929_v11, %v8929_v11 }
 0x8f7   :  { %1182 = vadd.xlane.f32.xlu0 %v1181_v3 }
 0x8f8   :  { %v1184_v14 = vsel %vm236_vm1, %v1168_v13, 0.0 }
 0x8f9   :  { %1185 = vadd.xlane.f32.xlu1 %v1184_v14 }
 0x974   :  { %v1171_v20 = vpop.xlane.xlu0 %1170 }
 0x975   :  { %v1187_v21 = vmul.f32 0.03125, %v1171_v20 }
 0x976   :  { %v1174_v22 = vpop.xlane.xlu1 %1173 }
 0x977   :  { %v1193_v24 = vadd.f32 1e-12, %v1187_v21  ;;  %v1188_v26 = vmul.f32 0.03125, %v1174_v22 }
 0x979   :  { %8275 = vrsqrt.f32 %v1193_v24  ;;  %v1194_v27 = vadd.f32 1e-12, %v1188_v26 }
 0x97b   :  { %8277 = vrsqrt.f32 %v1194_v27 }
 0x97c   :  { %v1177_v16 = vpop.xlane.xlu0 %1176 }
 0x97d   :  { %v1189_v29 = vmul.f32 0.03125, %v1177_v16 }
 0x97e   :  { %v1180_v18 = vpop.xlane.xlu1 %1179 }
 0x97f   :  { %v1195_v31 = vadd.f32 1e-12, %v1189_v29  ;;  %v1190_v32 = vmul.f32 0.03125, %v1180_v18 }
 0x981   :  { %8279 = vrsqrt.f32 %v1195_v31  ;;  %v1196_v33 = vadd.f32 1e-12, %v1190_v32 }
 0x983   :  { %v8276_v34 = vpop.eup %8275  ;;  %8281 = vrsqrt.f32 %v1196_v33 }
 0x984   :  { %v1205_v23 = vmul.f32 %v8276_v34, %v8907_v52  ;;  %v1183_v38 = vpop.xlane.xlu0 %1182 }
 0x985   :  { %v8278_v25 = vpop.eup %8277  ;;  %v1191_v35 = vmul.f32 0.03125, %v1183_v38 }
 0x986   :  { %v1215_v39 = vmul.f32 %v6443_v37, %v1205_v23  ;;  %v1206_v36 = vmul.f32 %v8278_v25, %v8909_v54  ;;  %v1186_v40 = vpop.xlane.xlu1 %1185 }
 0x987   :  { %v1197_v46 = vadd.f32 1e-12, %v1191_v35  ;;  %v1192_v48 = vmul.f32 0.03125, %v1186_v40 }
 0x988   :  { %v1216_v41 = vmul.f32 %v6443_v37, %v1206_v36  ;;  %v8961_v28 = vadd.f32 %v6444_v42, %v1215_v39 }
 0x989   :  { %8283 = vrsqrt.f32 %v1197_v46  ;;  %v1198_v43 = vadd.f32 1e-12, %v1192_v48 }
 0x98a   :  { %v8963_v44 = vadd.f32 %v6444_v42, %v1216_v41 }
 0x98b   :  { %v8280_v47 = vpop.eup %8279  ;;  %8285 = vrsqrt.f32 %v1198_v43 }
 0x98c   :  { %v1207_v45 = vmul.f32 %v8280_v47, %v8917_v60  ;;  %v1231_v30 = vpack.c.bf16 %v8963_v44, %v8961_v28 }
 0x98d   :  { %v8282_v52 = vpop.eup %8281 }
 0x98e   :  { %v1208_v53 = vmul.f32 %v8282_v52, %v8919_v63  ;;  %7460 = vmatmul.mubr.msk.bf16.vlgmr.msra.gmra.mrb[48].mxu0 %vm236_vm1, %v1231_v30  ;;  %7476 = vmatmul.mubr.msk.bf16.vlgmr.msra.gmra.mrb[60].mxu1 %vm236_vm1, %v1231_v30  ;;  %v1217_v54 = vmul.f32 %v6443_v37, %v1207_v45 }
 0x98f   :  { %7463 = vmatprep.mubr.msk.bf16.mxu0 %vm8487_vm0, %v8486_v1  ;;  %7479 = vmatprep.mubr.msk.bf16.mxu1 %vm8487_vm0, %v8486_v1 }
 0x990   :  { %v1218_v55 = vmul.f32 %v6443_v37, %v1208_v53  ;;  %7488 = vmatpush3.bf16.msra.mxu0 %v8099_v51  ;;  %v8982_v50 = vadd.f32 %v6444_v42, %v1217_v54 }
 0x991   :  { %7489 = vmatprep.subr.bf16.mxu0 %v8486_v1 }
 0x992   :  { %v8984_v56 = vadd.f32 %v6444_v42, %v1218_v55  ;;  %v6472_v55 = vld [vmem:[%s10319_s6 + $0x12] ss:$0 sm:$0xff] }
 0x993   :  { %v8284_v57 = vpop.eup %8283 }
 0x994   :  { %v1209_v58 = vmul.f32 %v8284_v57, %v8927_v9  ;;  %v1232_v59 = vpack.c.bf16 %v8984_v56, %v8982_v50  ;;  %7490 = vmatpush3.bf16.msra.mxu0 %v8100_v49 }
 0x995   :  { %v8286_v60 = vpop.eup %8285  ;;  %7521 = vmatprep.subr.bf16.mxu0 %v8486_v1 }
 0x996   :  { %v1210_v61 = vmul.f32 %v8286_v60, %v8929_v11  ;;  %7464 = vmatmul.mubr.msk.bf16.gmra.mrb[52].mxu0 %vm236_vm1, %v1232_v59  ;;  %7480 = vmatmul.mubr.msk.bf16.gmra.mrb[64].mxu1 %vm236_vm1, %v1232_v59  ;;  %v1219_v63 = vmul.f32 %v6443_v37, %v1209_v58 }
 0x997   :  { %7467 = vmatprep.mubr.msk.bf16.mxu0 %vm8487_vm0, %v8486_v1  ;;  %7483 = vmatprep.mubr.msk.bf16.mxu1 %vm8487_vm0, %v8486_v1 }
 0x998   :  { %v1220_v0 = vmul.f32 %v6443_v37, %v1210_v61  ;;  %v8997_v2 = vadd.f32 %v6444_v42, %v1219_v63 }
 0x99a   :  { %v8999_v4 = vadd.f32 %v6444_v42, %v1220_v0 }
 0x99c   :  { %v1233_v5 = vpack.c.bf16 %v8999_v4, %v8997_v2 }
 0x99e   :  { %7468 = vmatmul.mubr.msk.bf16.gmra.mrb[56].mxu0 %vm236_vm1, %v1233_v5  ;;  %7484 = vmatmul.mubr.msk.bf16.gmra.mrb[68].mxu1 %vm236_vm1, %v1233_v5 }
 0x99f   :  { %7491 = vmatprep.mubr.msk.bf16.mxu0 %vm8487_vm0, %v8486_v1  ;;  %7509 = vmatprep.mubr.msk.bf16.mxu1 %vm8487_vm0, %v8486_v1 }
 0x9a6   :  { %7492 = vmatmul.mubr.msk.bf16.vlgmr.msra.gmra.mrb[60].mxu0 %vm236_vm1, %v1231_v30 }
 0x9a7   :  { %7495 = vmatprep.mubr.msk.bf16.mxu0 %vm8487_vm0, %v8486_v1 }
 0x9ae   :  { %7496 = vmatmul.mubr.msk.bf16.gmra.mrb[64].mxu0 %vm236_vm1, %v1232_v59 }
 0x9af   :  { %7499 = vmatprep.mubr.msk.bf16.mxu0 %vm8487_vm0, %v8486_v1 }
 0x9b6   :  { %7500 = vmatmul.mubr.msk.bf16.gmra.mrb[68].mxu0 %vm236_vm1, %v1233_v5 }
 0x9b7   :  { %7527 = vmatprep.mubr.msk.bf16.mxu0 %vm8487_vm0, %v8486_v1 }
 0xa61   :  { %v1300_v7 = vpop.f32.mrb[48].mxu0  ;;  %v1378_v9 = vpop.f32.mrb[60].mxu1 }
 0xa62   :  { %v7461_v10 = vpop.f32.mrb[49].mxu0  ;;  %v7477_v11 = vpop.f32.mrb[61].mxu1  ;;  %v1301_v13 = vadd.f32 %v6450_v6, %v1300_v7  ;;  %v1379_v14 = vadd.f32 %v6461_v8, %v1378_v9 }
 0xa63   :  { %v1303_v62 = vpop.f32.mrb[50].mxu0  ;;  %v1381_v3 = vpop.f32.mrb[62].mxu1 }
 0xa64   :  { %v1304_v15 = vadd.f32 %v6450_v6, %v1303_v62  ;;  %v1382_v17 = vadd.f32 %v6461_v8, %v1381_v3  ;;  %v7462_v12 = vpop.f32.mrb[51].mxu0  ;;  %v7478_v19 = vpop.f32.mrb[63].mxu1 }
 0xa65   :  { %v8463_v19 = vld [vmem:[%s10316_s3] sm:$0xff] }
 0xa66   :  { %v1479_v20 = vpack.c.bf16 %v1304_v15, %v1301_v13  ;;  %v1482_v21 = vpack.c.bf16 %v1382_v17, %v1379_v14 }
 0xa68   :  { %v1495_v22 = vsel %vm236_vm1, %v1482_v21, 0 }
 0xa69   :  { %v1308_v24 = vpop.f32.mrb[52].mxu0  ;;  %v1386_v26 = vpop.f32.mrb[64].mxu1  ;;  %7504 = vmatpush3.bf16.xpose.msra.mxu1 %v1495_v22 }
 0xa6a   :  { %v7465_v27 = vpop.f32.mrb[53].mxu0  ;;  %v7481_v16 = vpop.f32.mrb[65].mxu1  ;;  %7505 = vmatprep.subr.bf16.mxu1 %v8486_v1  ;;  %v1309_v31 = vadd.f32 %v6450_v6, %v1308_v24  ;;  %v1387_v32 = vadd.f32 %v6461_v8, %v1386_v26  ;;  %v8464_v26 = vld [vmem:[%s10316_s3 + $0x8] sm:$0xff] }
 0xa6b   :  { %v1311_v29 = vpop.f32.mrb[54].mxu0  ;;  %v1389_v18 = vpop.f32.mrb[66].mxu1 }
 0xa6c   :  { %v1312_v33 = vadd.f32 %v6450_v6, %v1311_v29  ;;  %v1390_v34 = vadd.f32 %v6461_v8, %v1389_v18  ;;  %v7466_v37 = vpop.f32.mrb[55].mxu0  ;;  %v7482_v23 = vpop.f32.mrb[67].mxu1 }
 0xa6d   :  { %v8466_v23 = vld [vmem:[%s10316_s3 + $0x18] sm:$0xff] }
 0xa6e   :  { %v1480_v38 = vpack.c.bf16 %v1312_v33, %v1309_v31  ;;  %v1483_v25 = vpack.c.bf16 %v1390_v34, %v1387_v32  ;;  %v8465_v31 = vld [vmem:[%s10316_s3 + $0x10] sm:$0xff] }
 0xa70   :  { %v1498_v35 = vsel %vm236_vm1, %v1483_v25, 0 }
 0xa71   :  { %v1316_v39 = vpop.f32.mrb[56].mxu0  ;;  %v1394_v36 = vpop.f32.mrb[68].mxu1  ;;  %7506 = vmatpush3.bf16.xpose.msra.mxu1 %v1498_v35 }
 0xa72   :  { %v7469_v40 = vpop.f32.mrb[57].mxu0  ;;  %v7485_v42 = vpop.f32.mrb[69].mxu1  ;;  %7507 = vmatprep.subr.bf16.mxu1 %v8486_v1  ;;  %v1317_v41 = vadd.f32 %v6450_v6, %v1316_v39  ;;  %v1395_v43 = vadd.f32 %v6461_v8, %v1394_v36 }
 0xa73   :  { %v1319_v46 = vpop.f32.mrb[58].mxu0  ;;  %v1397_v48 = vpop.f32.mrb[70].mxu1 }
 0xa74   :  { %v1320_v47 = vadd.f32 %v6450_v6, %v1319_v46  ;;  %v1398_v45 = vadd.f32 %v6461_v8, %v1397_v48  ;;  %v7470_v30 = vpop.f32.mrb[59].mxu0  ;;  %v7486_v51 = vpop.f32.mrb[71].mxu1  ;;  %v8467_v46 = vld [vmem:[%s10316_s3 + $0x20] sm:$0xff] }
 0xa75   :  { %v8468_v30 = vld [vmem:[%s10316_s3 + $0x28] sm:$0xff] }
 0xa76   :  { %v1481_v52 = vpack.c.bf16 %v1320_v47, %v1317_v41  ;;  %v1484_v53 = vpack.c.bf16 %v1398_v45, %v1395_v43 }
 0xa78   :  { %v1501_v54 = vsel %vm236_vm1, %v1484_v53, 0 }
 0xa79   :  { %v1456_v49 = vpop.f32.mrb[60].mxu0  ;;  %7508 = vmatpush3.bf16.xpose.msra.mxu1 %v1501_v54 }
 0xa7a   :  { %v7493_v57 = vpop.f32.mrb[61].mxu0  ;;  %7539 = vmatprep.subr.bf16.mxu1 %v8486_v1  ;;  %v1457_v59 = vadd.f32 %v6472_v55, %v1456_v49 }
 0xa7b   :  { %v1459_v58 = vpop.f32.mrb[62].mxu0 }
 0xa7c   :  { %v1460_v60 = vadd.f32 %v6472_v55, %v1459_v58  ;;  %v7494_v61 = vpop.f32.mrb[63].mxu0 }
 0xa7e   :  { %v1605_v63 = vpack.c.bf16 %v1460_v60, %v1457_v59 }
 0xa80   :  { %7510 = vmatmul.mubr.msk.bf16.vlgmr.msra.gmra.mrb[72].mxu1 %vm236_vm1, %v1479_v20  ;;  %7522 = vmatpush3.bf16.msra.mxu0 %v1605_v63  ;;  %v8101_v63 = vld [vmem:[%s10317_s4 + $0xb0] sm:$0xff]  }
 0xa81   :  { %v1464_v0 = vpop.f32.mrb[64].mxu0  ;;  %7513 = vmatprep.mubr.msk.bf16.mxu1 %vm8487_vm0, %v8486_v1  ;;  %7523 = vmatprep.subr.bf16.mxu0 %v8486_v1 }
 0xa82   :  { %v7497_v5 = vpop.f32.mrb[65].mxu0  ;;  %v1465_v7 = vadd.f32 %v6472_v55, %v1464_v0  ;;  %7540 = vmatpush3.bf16.msra.mxu1 %v8101_v63  ;;  %v8102_v0 = vld [vmem:[%s10317_s4 + $0xb8] sm:$0xff]  }
 0xa83   :  { %v1467_v6 = vpop.f32.mrb[66].mxu0  ;;  %7541 = vmatprep.subr.bf16.mxu1 %v8486_v1 }
 0xa84   :  { %v1468_v8 = vadd.f32 %v6472_v55, %v1467_v6  ;;  %v7498_v9 = vpop.f32.mrb[67].mxu0 }
 0xa86   :  { %v1606_v10 = vpack.c.bf16 %v1468_v8, %v1465_v7  ;;  %7542 = vmatpush3.bf16.msra.mxu1 %v8102_v0 }
 0xa87   :  { %7571 = vmatprep.subr.bf16.mxu1 %v8486_v1 }
 0xa88   :  { %7514 = vmatmul.mubr.msk.bf16.gmra.mrb[76].mxu1 %vm236_vm1, %v1480_v38  ;;  %7524 = vmatpush3.bf16.msra.mxu0 %v1606_v10 }
 0xa89   :  { %v1472_v11 = vpop.f32.mrb[68].mxu0  ;;  %7517 = vmatprep.mubr.msk.bf16.mxu1 %vm8487_vm0, %v8486_v1  ;;  %7525 = vmatprep.subr.bf16.mxu0 %v8486_v1 }
 0xa8a   :  { %v7501_v62 = vpop.f32.mrb[69].mxu0  ;;  %v1473_v13 = vadd.f32 %v6472_v55, %v1472_v11 }
 0xa8b   :  { %v1475_v3 = vpop.f32.mrb[70].mxu0 }
 0xa8c   :  { %v1476_v14 = vadd.f32 %v6472_v55, %v1475_v3  ;;  %v7502_v15 = vpop.f32.mrb[71].mxu0 }
 0xa8e   :  { %v1607_v17 = vpack.c.bf16 %v1476_v14, %v1473_v13 }
 0xa90   :  { %7518 = vmatmul.mubr.msk.bf16.gmra.mrb[80].mxu1 %vm236_vm1, %v1481_v52  ;;  %7526 = vmatpush3.bf16.msra.mxu0 %v1607_v17 }
 0xa91   :  { %7543 = vmatprep.mubr.msk.bf16.mxu1 %vm8487_vm0, %v8486_v1  ;;  %7555 = vmatprep.subr.bf16.mxu0 %v8486_v1 }
 0xb53   :  { %v1537_v12 = vpop.f32.mrb[72].mxu1 }
 0xb54   :  { %v1538_v20 = vadd.f32 %v8463_v19, %v1537_v12  ;;  %v7511_v21 = vpop.f32.mrb[73].mxu1 }
 0xb55   :  { %v1540_v22 = vpop.f32.mrb[74].mxu1 }
 0xb56   :  { %v1560_v24 = vmul.f32 1.442695, %v1538_v20  ;;  %v1541_v27 = vadd.f32 %v8464_v26, %v1540_v22  ;;  %v7512_v16 = vpop.f32.mrb[75].mxu1 }
 0xb58   :  { %8287 = vpow2.f32 %v1560_v24  ;;  %v1562_v29 = vmul.f32 1.442695, %v1541_v27 }
 0xb5a   :  { %8289 = vpow2.f32 %v1562_v29 }
 0xb5b   :  { %v1545_v18 = vpop.f32.mrb[76].mxu1 }
 0xb5c   :  { %v1546_v32 = vadd.f32 %v8465_v31, %v1545_v18  ;;  %v7515_v33 = vpop.f32.mrb[77].mxu1 }
 0xb5d   :  { %v1548_v34 = vpop.f32.mrb[78].mxu1 }
 0xb5e   :  { %v1564_v37 = vmul.f32 1.442695, %v1546_v32  ;;  %v1549_v38 = vadd.f32 %v8466_v23, %v1548_v34  ;;  %v7516_v25 = vpop.f32.mrb[79].mxu1 }
 0xb60   :  { %8291 = vpow2.f32 %v1564_v37  ;;  %v1566_v35 = vmul.f32 1.442695, %v1549_v38 }
 0xb62   :  { %v8288_v39 = vpop.eup %8287  ;;  %8293 = vpow2.f32 %v1566_v35 }
 0xb63   :  { %v1553_v36 = vpop.f32.mrb[80].mxu1  ;;  %v1572_v40 = vsel %vm552_vm2, %v8288_v39, 0.0 }
 0xb64   :  { %v8290_v42 = vpop.eup %8289  ;;  %v1554_v48 = vadd.f32 %v8467_v46, %v1553_v36  ;;  %1573 = vadd.xlane.f32.xlu0 %v1572_v40  ;;  %v7519_v41 = vpop.f32.mrb[81].mxu1 }
 0xb65   :  { %v1556_v43 = vpop.f32.mrb[82].mxu1  ;;  %v1575_v47 = vsel %vm552_vm2, %v8290_v42, 0.0 }
 0xb66   :  { %v1568_v45 = vmul.f32 1.442695, %v1554_v48  ;;  %v1557_v51 = vadd.f32 %v8468_v30, %v1556_v43  ;;  %1576 = vadd.xlane.f32.xlu1 %v1575_v47  ;;  %v7520_v52 = vpop.f32.mrb[83].mxu1 }
 0xb68   :  { %8295 = vpow2.f32 %v1568_v45  ;;  %v1570_v53 = vmul.f32 1.442695, %v1557_v51 }
 0xb6a   :  { %v8292_v54 = vpop.eup %8291  ;;  %8297 = vpow2.f32 %v1570_v53 }
 0xb6b   :  { %v1578_v55 = vsel %vm552_vm2, %v8292_v54, 0.0 }
 0xb6c   :  { %v8294_v49 = vpop.eup %8293  ;;  %1579 = vadd.xlane.f32.xlu0 %v1578_v55 }
 0xb6d   :  { %v1581_v57 = vsel %vm552_vm2, %v8294_v49, 0.0 }
 0xb6e   :  { %1582 = vadd.xlane.f32.xlu1 %v1581_v57 }
 0xb72   :  { %v8296_v58 = vpop.eup %8295 }
 0xb73   :  { %v1584_v59 = vsel %vm552_vm2, %v8296_v58, 0.0 }
 0xb74   :  { %v8298_v60 = vpop.eup %8297  ;;  %1585 = vadd.xlane.f32.xlu0 %v1584_v59 }
 0xb75   :  { %v1587_v61 = vsel %vm552_vm2, %v8298_v60, 0.0 }
 0xb76   :  { %1588 = vadd.xlane.f32.xlu1 %v1587_v61 }
 0xbf1   :  { %v1574_v5 = vpop.xlane.xlu0 %1573 }
 0xbf2   :  { %8299 = vrcp.f32 %v1574_v5 }
 0xbf3   :  { %v1577_v6 = vpop.xlane.xlu1 %1576 }
 0xbf4   :  { %8301 = vrcp.f32 %v1577_v6 }
 0xbf9   :  { %v1580_v7 = vpop.xlane.xlu0 %1579 }
 0xbfa   :  { %8303 = vrcp.f32 %v1580_v7 }
 0xbfb   :  { %v1583_v8 = vpop.xlane.xlu1 %1582 }
 0xbfc   :  { %v8300_v9 = vpop.eup %8299  ;;  %8305 = vrcp.f32 %v1583_v8 }
 0xbfd   :  { %v1596_v11 = vmul.f32 %v8300_v9, %v8288_v39 }
 0xbfe   :  { %v8302_v10 = vpop.eup %8301 }
 0xbff   :  { %v1597_v62 = vmul.f32 %v8302_v10, %v8290_v42  ;;  %v6489_v42 = vld [vmem:[%s10319_s6 + $0x13] ss:$0 sm:$0xff] }
 0xc01   :  { %v1602_v3 = vpack.c.bf16 %v1597_v62, %v1596_v11  ;;  %v1586_v13 = vpop.xlane.xlu0 %1585  ;;  %v2183_v11 = vld [vmem:[%s10320_s7 + $0x8] sm:$0xff] }
 0xc02   :  { %8307 = vrcp.f32 %v1586_v13 }
 0xc03   :  { %v1589_v14 = vpop.xlane.xlu1 %1588  ;;  %7528 = vmatmul.mubr.msk.bf16.vlgmr.msra.gmra.mrb[72].mxu0 %vm552_vm2, %v1602_v3 }
 0xc04   :  { %v8304_v15 = vpop.eup %8303  ;;  %8309 = vrcp.f32 %v1589_v14  ;;  %7531 = vmatprep.mubr.msk.bf16.mxu0 %vm8487_vm0, %v8486_v1 }
 0xc05   :  { %v1598_v12 = vmul.f32 %v8304_v15, %v8292_v54 }
 0xc06   :  { %v8306_v17 = vpop.eup %8305 }
 0xc07   :  { %v1599_v19 = vmul.f32 %v8306_v17, %v8294_v49 }
 0xc09   :  { %v1603_v20 = vpack.c.bf16 %v1599_v19, %v1598_v12 }
 0xc0b   :  { %7532 = vmatmul.mubr.msk.bf16.gmra.mrb[76].mxu0 %vm552_vm2, %v1603_v20 }
 0xc0c   :  { %v8308_v21 = vpop.eup %8307  ;;  %7535 = vmatprep.mubr.msk.bf16.mxu0 %vm8487_vm0, %v8486_v1 }
 0xc0d   :  { %v1600_v24 = vmul.f32 %v8308_v21, %v8296_v58 }
 0xc0e   :  { %v8310_v22 = vpop.eup %8309 }
 0xc0f   :  { %v1601_v26 = vmul.f32 %v8310_v22, %v8298_v60 }
 0xc11   :  { %v1604_v27 = vpack.c.bf16 %v1601_v26, %v1600_v24 }
 0xc13   :  { %7536 = vmatmul.mubr.msk.bf16.gmra.mrb[80].mxu0 %vm552_vm2, %v1604_v27 }
 0xc14   :  { %7559 = vmatprep.mubr.msk.bf16.mxu0 %vm8487_vm0, %v8486_v1 }
 0xcd6   :  { %v1651_v16 = vpop.f32.mrb[72].mxu0 }
 0xcd7   :  { %v7529_v29 = vpop.f32.mrb[73].mxu0 }
 0xcd8   :  { %v1654_v18 = vpop.f32.mrb[74].mxu0 }
 0xcd9   :  { %v1674_v31 = vpack.c.bf16 %v1654_v18, %v1651_v16  ;;  %v7530_v32 = vpop.f32.mrb[75].mxu0 }
 0xcdb   :  { %7544 = vmatmul.mubr.msk.bf16.vlgmr.msra.gmra.mrb[84].mxu1 %vm236_vm1, %v1674_v31 }
 0xcdc   :  { %7547 = vmatprep.mubr.msk.bf16.mxu1 %vm8487_vm0, %v8486_v1 }
 0xcde   :  { %v1659_v33 = vpop.f32.mrb[76].mxu0 }
 0xcdf   :  { %v7533_v34 = vpop.f32.mrb[77].mxu0 }
 0xce0   :  { %v1662_v37 = vpop.f32.mrb[78].mxu0 }
 0xce1   :  { %v1675_v23 = vpack.c.bf16 %v1662_v37, %v1659_v33  ;;  %v7534_v38 = vpop.f32.mrb[79].mxu0 }
 0xce3   :  { %7548 = vmatmul.mubr.msk.bf16.gmra.mrb[88].mxu1 %vm236_vm1, %v1675_v23 }
 0xce4   :  { %7551 = vmatprep.mubr.msk.bf16.mxu1 %vm8487_vm0, %v8486_v1 }
 0xce6   :  { %v1667_v25 = vpop.f32.mrb[80].mxu0 }
 0xce7   :  { %v7537_v35 = vpop.f32.mrb[81].mxu0 }
 0xce8   :  { %v1670_v39 = vpop.f32.mrb[82].mxu0 }
 0xce9   :  { %v1676_v36 = vpack.c.bf16 %v1670_v39, %v1667_v25  ;;  %v7538_v40 = vpop.f32.mrb[83].mxu0 }
 0xceb   :  { %7552 = vmatmul.mubr.msk.bf16.gmra.mrb[92].mxu1 %vm236_vm1, %v1676_v36 }
 0xcec   :  { %7587 = vmatprep.mubr.msk.bf16.mxu1 %vm8487_vm0, %v8486_v1 }
 0xdae   :  { %v1741_v46 = vpop.f32.mrb[84].mxu1 }
 0xdaf   :  { %v1742_v48 = vadd.f32 %v6489_v42, %v1741_v46  ;;  %v7545_v41 = vpop.f32.mrb[85].mxu1 }
 0xdb0   :  { %v1744_v43 = vpop.f32.mrb[86].mxu1 }
 0xdb1   :  { %v1745_v47 = vadd.f32 %v6489_v42, %v1744_v43  ;;  %v7546_v45 = vpop.f32.mrb[87].mxu1  ;;  %v1764_v30 = vadd.f32 %v1742_v48, %v8961_v28 }
 0xdb3   :  { %v1772_v51 = vsel %vm236_vm1, %v1764_v30, 0.0  ;;  %v1765_v52 = vadd.f32 %v1745_v47, %v8963_v44 }
 0xdb4   :  { %1773 = vadd.xlane.f32.xlu0 %v1772_v51 }
 0xdb5   :  { %v1775_v53 = vsel %vm236_vm1, %v1765_v52, 0.0 }
 0xdb6   :  { %1776 = vadd.xlane.f32.xlu1 %v1775_v53  ;;  %v1749_v54 = vpop.f32.mrb[88].mxu1 }
 0xdb7   :  { %v1750_v55 = vadd.f32 %v6489_v42, %v1749_v54  ;;  %v7549_v49 = vpop.f32.mrb[89].mxu1 }
 0xdb8   :  { %v1752_v57 = vpop.f32.mrb[90].mxu1  ;;  %v8104_v49 = vld [vmem:[%s10318_s5 + $0x18] sm:$0xff]  }
 0xdb9   :  { %v1753_v58 = vadd.f32 %v6489_v42, %v1752_v57  ;;  %v7550_v59 = vpop.f32.mrb[91].mxu1  ;;  %v1766_v60 = vadd.f32 %v1750_v55, %v8982_v50  ;;  %v2182_v50 = vld [vmem:[%s10320_s7] sm:$0xff]  ;;  %v8103_v55 = vld [vmem:[%s10318_s5 + $0x10] sm:$0xff]  }
 0xdba   :  { %v2186_v3 = vsel %vm236_vm1, %v2182_v50, 0.0  ;;  %7556 = vmatpush3.bf16.msra.mxu0 %v8103_v55  ;;  %v6540_v55 = vld [vmem:[%s10326_s13] ss:$0 sm:$0xff] }
 0xdbb   :  { %v1778_v61 = vsel %vm236_vm1, %v1766_v60, 0.0  ;;  %v1767_v28 = vadd.f32 %v1753_v58, %v8984_v56  ;;  %7557 = vmatprep.subr.bf16.mxu0 %v8486_v1 }
 0xdbc   :  { %1779 = vadd.xlane.f32.xlu0 %v1778_v61 }
 0xdbd   :  { %v1781_v63 = vsel %vm236_vm1, %v1767_v28, 0.0 }
 0xdbe   :  { %1782 = vadd.xlane.f32.xlu1 %v1781_v63  ;;  %v1757_v44 = vpop.f32.mrb[92].mxu1  ;;  %7558 = vmatpush3.bf16.msra.mxu0 %v8104_v49 }
 0xdbf   :  { %v1758_v0 = vadd.f32 %v6489_v42, %v1757_v44  ;;  %v7553_v5 = vpop.f32.mrb[93].mxu1  ;;  %7599 = vmatprep.subr.bf16.mxu0 %v8486_v1 }
 0xdc0   :  { %v1760_v6 = vpop.f32.mrb[94].mxu1 }
 0xdc1   :  { %v1761_v7 = vadd.f32 %v6489_v42, %v1760_v6  ;;  %v7554_v8 = vpop.f32.mrb[95].mxu1  ;;  %v1768_v9 = vadd.f32 %v1758_v0, %v8997_v2  ;;  %v2189_v2 = vsel %vm236_vm1, %v2183_v11, 0.0 }
 0xdc3   :  { %v1784_v10 = vsel %vm236_vm1, %v1768_v9, 0.0  ;;  %v1769_v56 = vadd.f32 %v1761_v7, %v8999_v4 }
 0xdc4   :  { %1785 = vadd.xlane.f32.xlu0 %v1784_v10 }
 0xdc5   :  { %v1787_v62 = vsel %vm236_vm1, %v1769_v56, 0.0 }
 0xdc6   :  { %1788 = vadd.xlane.f32.xlu1 %v1787_v62 }
 0xdc8   :  { %2187 = vadd.xlane.f32.xlu0 %v2186_v3 }
 0xdca   :  { %2190 = vadd.xlane.f32.xlu1 %v2189_v2 }
 0xe41   :  { %v1774_v13 = vpop.xlane.xlu0 %1773 }
 0xe42   :  { %v1790_v14 = vmul.f32 0.03125, %v1774_v13  ;;  %v6498_v13 = vld [vmem:[%s10319_s6 + $0x15] ss:$0 sm:$0xff] }
 0xe43   :  { %v1777_v15 = vpop.xlane.xlu1 %1776 }
 0xe44   :  { %v9118_v17 = vsub.f32 %v1764_v30, %v1790_v14  ;;  %v1791_v4 = vmul.f32 0.03125, %v1777_v15 }
 0xe46   :  { %v9120_v12 = vsub.f32 %v1765_v52, %v1791_v4  ;;  %v1802_v19 = vmul.f32 %v9118_v17, %v9118_v17 }
 0xe48   :  { %v1808_v20 = vsel %vm236_vm1, %v1802_v19, 0.0  ;;  %v1803_v21 = vmul.f32 %v9120_v12, %v9120_v12 }
 0xe49   :  { %v1780_v22 = vpop.xlane.xlu0 %1779  ;;  %1809 = vadd.xlane.f32.xlu0 %v1808_v20 }
 0xe4a   :  { %v1792_v24 = vmul.f32 0.03125, %v1780_v22  ;;  %v1811_v26 = vsel %vm236_vm1, %v1803_v21, 0.0 }
 0xe4b   :  { %v1783_v27 = vpop.xlane.xlu1 %1782  ;;  %1812 = vadd.xlane.f32.xlu1 %v1811_v26 }
 0xe4c   :  { %v9128_v16 = vsub.f32 %v1766_v60, %v1792_v24  ;;  %v1793_v29 = vmul.f32 0.03125, %v1783_v27 }
 0xe4e   :  { %v9130_v18 = vsub.f32 %v1767_v28, %v1793_v29  ;;  %v1804_v31 = vmul.f32 %v9128_v16, %v9128_v16  ;;  %v8105_v29 = vld [vmem:[%s10322_s9] sm:$0xff]  }
 0xe50   :  { %v1814_v32 = vsel %vm236_vm1, %v1804_v31, 0.0  ;;  %v1805_v33 = vmul.f32 %v9130_v18, %v9130_v18 }
 0xe51   :  { %1815 = vadd.xlane.f32.xlu0 %v1814_v32  ;;  %v1786_v34 = vpop.xlane.xlu0 %1785 }
 0xe52   :  { %v1794_v37 = vmul.f32 0.03125, %v1786_v34  ;;  %v1817_v23 = vsel %vm236_vm1, %v1805_v33, 0.0 }
 0xe53   :  { %1818 = vadd.xlane.f32.xlu1 %v1817_v23  ;;  %v1789_v38 = vpop.xlane.xlu1 %1788 }
 0xe54   :  { %v9138_v25 = vsub.f32 %v1768_v9, %v1794_v37  ;;  %v1795_v35 = vmul.f32 0.03125, %v1789_v38  ;;  %v6497_v9 = vld [vmem:[%s10319_s6 + $0x14] ss:$0 sm:$0xff]  ;;  %v8106_v38 = vld [vmem:[%s10322_s9 + $0x8] sm:$0xff]  }
 0xe55   :  { %v2188_v39 = vpop.xlane.xlu0 %2187 }
 0xe56   :  { %v9140_v36 = vsub.f32 %v1769_v56, %v1795_v35  ;;  %v2192_v40 = vmul.f32 0.03125, %v2188_v39  ;;  %v1806_v42 = vmul.f32 %v9138_v25, %v9138_v25 }
 0xe57   :  { %v2191_v46 = vpop.xlane.xlu1 %2190 }
 0xe58   :  { %v9144_v48 = vsub.f32 %v2182_v50, %v2192_v40  ;;  %v2193_v41 = vmul.f32 0.03125, %v2191_v46  ;;  %v1820_v43 = vsel %vm236_vm1, %v1806_v42, 0.0  ;;  %v1807_v47 = vmul.f32 %v9140_v36, %v9140_v36 }
 0xe59   :  { %1821 = vadd.xlane.f32.xlu0 %v1820_v43 }
 0xe5a   :  { %v9149_v45 = vsub.f32 %v2183_v11, %v2193_v41  ;;  %v1823_v30 = vsel %vm236_vm1, %v1807_v47, 0.0  ;;  %v2196_v51 = vmul.f32 %v9144_v48, %v9144_v48 }
 0xe5b   :  { %1824 = vadd.xlane.f32.xlu1 %v1823_v30 }
 0xe5c   :  { %v2198_v52 = vsel %vm236_vm1, %v2196_v51, 0.0  ;;  %v2197_v53 = vmul.f32 %v9149_v45, %v9149_v45 }
 0xe5d   :  { %2199 = vadd.xlane.f32.xlu0 %v2198_v52 }
 0xe5e   :  { %v2201_v54 = vsel %vm236_vm1, %v2197_v53, 0.0 }
 0xe5f   :  { %2202 = vadd.xlane.f32.xlu1 %v2201_v54 }
 0xed6   :  { %v1810_v57 = vpop.xlane.xlu0 %1809 }
 0xed7   :  { %v1826_v58 = vmul.f32 0.03125, %v1810_v57 }
 0xed8   :  { %v1813_v59 = vpop.xlane.xlu1 %1812 }
 0xed9   :  { %v1832_v60 = vadd.f32 1e-12, %v1826_v58  ;;  %v1827_v61 = vmul.f32 0.03125, %v1813_v59  ;;  %v6541_v58 = vld [vmem:[%s10326_s13 + $0x1] ss:$0 sm:$0xff]  ;;  %v8107_v59 = vld [vmem:[%s10322_s9 + $0x10] sm:$0xff]  }
 0xedb   :  { %8311 = vrsqrt.f32 %v1832_v60  ;;  %v1833_v28 = vadd.f32 1e-12, %v1827_v61  ;;  %v8108_v61 = vld [vmem:[%s10322_s9 + $0x18] sm:$0xff]  }
 0xedd   :  { %8313 = vrsqrt.f32 %v1833_v28  ;;  %v8109_v28 = vld [vmem:[%s10322_s9 + $0x20] sm:$0xff]  }
 0xede   :  { %v1816_v63 = vpop.xlane.xlu0 %1815 }
 0xedf   :  { %v1828_v44 = vmul.f32 0.03125, %v1816_v63  ;;  %v8110_v63 = vld [vmem:[%s10322_s9 + $0x28] sm:$0xff]  }
 0xee0   :  { %v1819_v0 = vpop.xlane.xlu1 %1818 }
 0xee1   :  { %v1834_v5 = vadd.f32 1e-12, %v1828_v44  ;;  %v1829_v6 = vmul.f32 0.03125, %v1819_v0  ;;  %v8111_v44 = vld [vmem:[%s10317_s4 + $0xc0] sm:$0xff]   ;;  %v8112_v0 = vld [vmem:[%s10317_s4 + $0xc8] sm:$0xff]  }
 0xee2   :  { %7572 = vmatpush3.bf16.msra.mxu1 %v8111_v44 }
 0xee3   :  { %8315 = vrsqrt.f32 %v1834_v5  ;;  %v1835_v7 = vadd.f32 1e-12, %v1829_v6  ;;  %7573 = vmatprep.subr.bf16.mxu1 %v8486_v1  ;;  %v8113_v5 = vld [vmem:[%s10317_s4 + $0xd0] sm:$0xff]   ;;  %v8114_v6 = vld [vmem:[%s10317_s4 + $0xd8] sm:$0xff]  }
 0xee5   :  { %v8312_v8 = vpop.eup %8311  ;;  %8317 = vrsqrt.f32 %v1835_v7  ;;  %v8115_v7 = vld [vmem:[%s10317_s4 + $0xe0] sm:$0xff]  }
 0xee6   :  { %v1844_v50 = vmul.f32 %v8312_v8, %v9118_v17  ;;  %v1822_v10 = vpop.xlane.xlu0 %1821  ;;  %7574 = vmatpush3.bf16.msra.mxu1 %v8112_v0  ;;  %v8116_v8 = vld [vmem:[%s10317_s4 + $0xe8] sm:$0xff]  }
 0xee7   :  { %v8314_v56 = vpop.eup %8313  ;;  %v1830_v11 = vmul.f32 0.03125, %v1822_v10  ;;  %7575 = vmatprep.subr.bf16.mxu1 %v8486_v1  ;;  %v6504_v10 = vld [vmem:[%s10319_s6 + $0x16] ss:$0 sm:$0xff] }
 0xee8   :  { %v1854_v62 = vmul.f32 %v6497_v9, %v1844_v50  ;;  %v1845_v3 = vmul.f32 %v8314_v56, %v9120_v12  ;;  %v1825_v2 = vpop.xlane.xlu1 %1824  ;;  %v8118_v50 = vld [vmem:[%s10317_s4 + $0xf8] sm:$0xff]  }
 0xee9   :  { %v1836_v14 = vadd.f32 1e-12, %v1830_v11  ;;  %v1831_v15 = vmul.f32 0.03125, %v1825_v2 }
 0xeea   :  { %v1855_v4 = vmul.f32 %v6497_v9, %v1845_v3  ;;  %v2200_v19 = vpop.xlane.xlu0 %2199  ;;  %v9174_v22 = vadd.f32 %v6498_v13, %v1854_v62  ;;  %7576 = vmatpush3.bf16.msra.mxu1 %v8113_v5 }
 0xeeb   :  { %8319 = vrsqrt.f32 %v1836_v14  ;;  %v1837_v20 = vadd.f32 1e-12, %v1831_v15  ;;  %v2204_v21 = vmul.f32 0.03125, %v2200_v19  ;;  %7577 = vmatprep.subr.bf16.mxu1 %v8486_v1 }
 0xeec   :  { %v1865_v17 = vadd.f32 %v6498_v13, %v1855_v4  ;;  %v2203_v24 = vpop.xlane.xlu1 %2202 }
 0xeed   :  { %v8316_v26 = vpop.eup %8315  ;;  %8321 = vrsqrt.f32 %v1837_v20  ;;  %v2206_v27 = vadd.f32 1e-12, %v2204_v21  ;;  %v2205_v12 = vmul.f32 0.03125, %v2203_v24 }
 0xeee   :  { %v1846_v31 = vmul.f32 %v8316_v26, %v9128_v16  ;;  %v1870_v32 = vpack.c.bf16 %v1865_v17, %v9174_v22  ;;  %7578 = vmatpush3.bf16.msra.mxu1 %v8114_v6 }
 0xeef   :  { %v8318_v33 = vpop.eup %8317  ;;  %8323 = vrsqrt.f32 %v2206_v27  ;;  %v2207_v34 = vadd.f32 1e-12, %v2205_v12  ;;  %7579 = vmatprep.subr.bf16.mxu1 %v8486_v1 }
 0xef0   :  { %v1847_v37 = vmul.f32 %v8318_v33, %v9130_v18  ;;  %7560 = vmatmul.mubr.msk.bf16.vlgmr.msra.gmra.mrb[84].mxu0 %vm236_vm1, %v1870_v32  ;;  %v1856_v23 = vmul.f32 %v6497_v9, %v1846_v31 }
 0xef1   :  { %8325 = vrsqrt.f32 %v2207_v34  ;;  %7563 = vmatprep.mubr.msk.bf16.mxu0 %vm8487_vm0, %v8486_v1  ;;  %7600 = vmatpush3.bf16.msra.mxu0 %v8105_v29 }
 0xef2   :  { %v1857_v16 = vmul.f32 %v6497_v9, %v1847_v37  ;;  %7601 = vmatprep.subr.bf16.mxu0 %v8486_v1  ;;  %v1866_v35 = vadd.f32 %v6498_v13, %v1856_v23  ;;  %7580 = vmatpush3.bf16.msra.mxu1 %v8115_v7 }
 0xef3   :  { %7581 = vmatprep.subr.bf16.mxu1 %v8486_v1 }
 0xef4   :  { %v9189_v39 = vadd.f32 %v6498_v13, %v1857_v16 }
 0xef5   :  { %v8320_v40 = vpop.eup %8319  ;;  %7602 = vmatpush3.bf16.msra.mxu0 %v8106_v38 }
 0xef6   :  { %v1848_v18 = vmul.f32 %v8320_v40, %v9138_v25  ;;  %v1871_v42 = vpack.c.bf16 %v9189_v39, %v1866_v35  ;;  %7607 = vmatprep.subr.bf16.mxu0 %v8486_v1  ;;  %7582 = vmatpush3.bf16.msra.mxu1 %v8116_v8 }
 0xef7   :  { %v8322_v46 = vpop.eup %8321  ;;  %7583 = vmatprep.subr.bf16.mxu1 %v8486_v1 }
 0xef8   :  { %v1849_v41 = vmul.f32 %v8322_v46, %v9140_v36  ;;  %7564 = vmatmul.mubr.msk.bf16.gmra.mrb[88].mxu0 %vm236_vm1, %v1871_v42  ;;  %v1858_v43 = vmul.f32 %v6497_v9, %v1848_v18 }
 0xef9   :  { %v8324_v47 = vpop.eup %8323  ;;  %7567 = vmatprep.mubr.msk.bf16.mxu0 %vm8487_vm0, %v8486_v1 }
 0xefa   :  { %v1859_v30 = vmul.f32 %v6497_v9, %v1849_v41  ;;  %v2210_v52 = vmul.f32 %v8324_v47, %v9144_v48  ;;  %v1868_v53 = vadd.f32 %v6498_v13, %v1858_v43  ;;  %v8117_v9 = vld [vmem:[%s10317_s4 + $0xf0] sm:$0xff]  }
 0xefb   :  { %v8326_v51 = vpop.eup %8325  ;;  %7584 = vmatpush3.bf16.msra.mxu1 %v8117_v9 }
 0xefc   :  { %v2211_v25 = vmul.f32 %v8326_v51, %v9149_v45  ;;  %v1869_v54 = vadd.f32 %v6498_v13, %v1859_v30  ;;  %v2216_v57 = vmul.f32 %v6540_v55, %v2210_v52  ;;  %7585 = vmatprep.subr.bf16.mxu1 %v8486_v1 }
 0xefe   :  { %v2217_v36 = vmul.f32 %v6540_v55, %v2211_v25  ;;  %v1872_v49 = vpack.c.bf16 %v1869_v54, %v1868_v53  ;;  %v9211_v45 = vadd.f32 %v6541_v58, %v2216_v57 }
 0xeff   :  { %7586 = vmatpush3.bf16.msra.mxu1 %v8118_v50 }
 0xf00   :  { %7568 = vmatmul.mubr.msk.bf16.gmra.mrb[92].mxu0 %vm236_vm1, %v1872_v49  ;;  %v9209_v48 = vadd.f32 %v6541_v58, %v2217_v36  ;;  %7623 = vmatprep.subr.bf16.mxu1 %v8486_v1 }
 0xf01   :  { %7603 = vmatprep.mubr.msk.bf16.mxu0 %vm8487_vm0, %v8486_v1 }
 0xf02   :  { %v2226_v60 = vpack.c.bf16 %v9209_v48, %v9211_v45 }
 0xf08   :  { %7604 = vmatmul.mubr.msk.bf16.vlgmr.msra.gmra.mrb[96].mxu0 %vm236_vm1, %v2226_v60 }
 0xf09   :  { %7608 = vmatpush3.bf16.msra.mxu0 %v8107_v59  ;;  %7611 = vmatprep.mubr.msk.bf16.mxu0 %vm8487_vm0, %v8486_v1  ;;  %v6542_v59 = vld [vmem:[%s10324_s11] ss:$0 sm:$0xff] }
 0xf0a   :  { %7609 = vmatprep.subr.bf16.mxu0 %v8486_v1 }
 0xf0d   :  { %7610 = vmatpush3.bf16.msra.mxu0 %v8108_v61 }
 0xf0e   :  { %7615 = vmatprep.subr.bf16.mxu0 %v8486_v1 }
 0xf10   :  { %7612 = vmatmul.mubr.msk.bf16.vlgmr.msra.gmra.mrb[100].mxu0 %vm236_vm1, %v2226_v60 }
 0xf11   :  { %7616 = vmatpush3.bf16.msra.mxu0 %v8109_v28  ;;  %7619 = vmatprep.mubr.msk.bf16.mxu0 %vm8487_vm0, %v8486_v1 }
 0xf12   :  { %7617 = vmatprep.subr.bf16.mxu0 %v8486_v1 }
 0xf15   :  { %7618 = vmatpush3.bf16.msra.mxu0 %v8110_v63 }
 0xf16   :  { %7629 = vmatprep.subr.bf16.mxu0 %v8486_v1 }
 0xf18   :  { %7620 = vmatmul.mubr.msk.bf16.vlgmr.msra.gmra.mrb[104].mxu0 %vm236_vm1, %v2226_v60 }
 0xf19   :  { %7631 = vmatprep.mubr.msk.bf16.mxu0 %vm8487_vm0, %v8486_v1 }
 0xfc3   :  { %v1938_v56 = vpop.f32.mrb[84].mxu0 }
 0xfc4   :  { %v9275_v11 = vadd.f32 %v6504_v10, %v1938_v56  ;;  %v7561_v62 = vpop.f32.mrb[85].mxu0 }
 0xfc5   :  { %v1941_v3 = vpop.f32.mrb[86].mxu0 }
 0xfc6   :  { %v1961_v2 = vmul.f32 %v9275_v11, %v9275_v11  ;;  %v9279_v13 = vadd.f32 %v6504_v10, %v1941_v3  ;;  %v7562_v14 = vpop.f32.mrb[87].mxu0 }
 0xfc8   :  { %v1967_v15 = vmul.f32 %v1961_v2, %v9275_v11  ;;  %v1962_v4 = vmul.f32 %v9279_v13, %v9279_v13 }
 0xfca   :  { %v1973_v19 = vmul.f32 0.044715, %v1967_v15  ;;  %v1968_v20 = vmul.f32 %v1962_v4, %v9279_v13 }
 0xfcb   :  { %v1946_v21 = vpop.f32.mrb[88].mxu0 }
 0xfcc   :  { %v1979_v17 = vadd.f32 %v1973_v19, %v9275_v11  ;;  %v1974_v24 = vmul.f32 0.044715, %v1968_v20  ;;  %v9286_v26 = vadd.f32 %v6504_v10, %v1946_v21  ;;  %v7565_v27 = vpop.f32.mrb[89].mxu0  ;;  %v6546_v19 = vld [vmem:[%s10324_s11 + $0x1] ss:$0 sm:$0xff] }
 0xfcd   :  { %v1949_v12 = vpop.f32.mrb[90].mxu0 }
 0xfce   :  { %v1985_v29 = vmul.f32 0.7978846, %v1979_v17  ;;  %v1980_v31 = vadd.f32 %v1974_v24, %v9279_v13  ;;  %v1963_v32 = vmul.f32 %v9286_v26, %v9286_v26  ;;  %v9291_v33 = vadd.f32 %v6504_v10, %v1949_v12  ;;  %v7566_v34 = vpop.f32.mrb[91].mxu0 }
 0xfd0   :  { %8327 = vtanh.f32 %v1985_v29  ;;  %v1986_v37 = vmul.f32 0.7978846, %v1980_v31  ;;  %v1969_v23 = vmul.f32 %v1963_v32, %v9286_v26  ;;  %v1964_v38 = vmul.f32 %v9291_v33, %v9291_v33 }
 0xfd2   :  { %8329 = vtanh.f32 %v1986_v37  ;;  %v1975_v16 = vmul.f32 0.044715, %v1969_v23  ;;  %v1970_v35 = vmul.f32 %v1964_v38, %v9291_v33 }
 0xfd3   :  { %v1954_v40 = vpop.f32.mrb[92].mxu0 }
 0xfd4   :  { %v1981_v18 = vadd.f32 %v1975_v16, %v9286_v26  ;;  %v1976_v42 = vmul.f32 0.044715, %v1970_v35  ;;  %v9298_v46 = vadd.f32 %v6504_v10, %v1954_v40  ;;  %v7569_v41 = vpop.f32.mrb[93].mxu0  ;;  %v6550_v35 = vld [vmem:[%s10324_s11 + $0x2] ss:$0 sm:$0xff] }
 0xfd5   :  { %v1957_v43 = vpop.f32.mrb[94].mxu0 }
 0xfd6   :  { %v1987_v47 = vmul.f32 0.7978846, %v1981_v18  ;;  %v1982_v30 = vadd.f32 %v1976_v42, %v9291_v33  ;;  %v1965_v51 = vmul.f32 %v9298_v46, %v9298_v46  ;;  %v9303_v52 = vadd.f32 %v6504_v10, %v1957_v43  ;;  %v7570_v25 = vpop.f32.mrb[95].mxu0 }
 0xfd8   :  { %8331 = vtanh.f32 %v1987_v47  ;;  %v1988_v53 = vmul.f32 0.7978846, %v1982_v30  ;;  %v1971_v54 = vmul.f32 %v1965_v51, %v9298_v46  ;;  %v1966_v55 = vmul.f32 %v9303_v52, %v9303_v52 }
 0xfda   :  { %v8328_v36 = vpop.eup %8327  ;;  %8333 = vtanh.f32 %v1988_v53  ;;  %v1977_v49 = vmul.f32 0.044715, %v1971_v54  ;;  %v1972_v57 = vmul.f32 %v1966_v55, %v9303_v52 }
 0xfdb   :  { %v1997_v58 = vadd.f32 1.0, %v8328_v36  ;;  %v2285_v60 = vpop.f32.mrb[96].mxu0 }
 0xfdc   :  { %v8330_v61 = vpop.eup %8329  ;;  %v1983_v28 = vadd.f32 %v1977_v49, %v9298_v46  ;;  %v1978_v63 = vmul.f32 0.044715, %v1972_v57  ;;  %v7605_v44 = vpop.f32.mrb[97].mxu0  ;;  %v2286_v9 = vadd.f32 %v6542_v59, %v2285_v60 }
 0xfdd   :  { %v2003_v0 = vmul.f32 0.5, %v1997_v58  ;;  %v1998_v5 = vadd.f32 1.0, %v8330_v61  ;;  %v2288_v6 = vpop.f32.mrb[98].mxu0 }
 0xfde   :  { %v1989_v7 = vmul.f32 0.7978846, %v1983_v28  ;;  %v1984_v8 = vadd.f32 %v1978_v63, %v9303_v52  ;;  %v2289_v50 = vadd.f32 %v6542_v59, %v2288_v6  ;;  %v7606_v10 = vpop.f32.mrb[99].mxu0  ;;  %v9345_v6 = vld [vmem:[%s10321_s8] sm:$0xff] }
 0xfdf   :  { %v2004_v56 = vmul.f32 0.5, %v1998_v5  ;;  %v2009_v2 = vmul.f32 %v2003_v0, %v9275_v11 }
 0xfe0   :  { %8335 = vtanh.f32 %v1989_v7  ;;  %v1990_v62 = vmul.f32 0.7978846, %v1984_v8  ;;  %v2416_v3 = vpack.c.bf16 %v2289_v50, %v2286_v9  ;;  %v9350_v8 = vld [vmem:[%s10321_s8 + $0x8] sm:$0xff] }
 0xfe1   :  { %v2010_v14 = vmul.f32 %v2004_v56, %v9279_v13 }
 0xfe2   :  { %v8332_v15 = vpop.eup %8331  ;;  %8337 = vtanh.f32 %v1990_v62 }
 0xfe3   :  { %v2015_v4 = vpack.c.bf16 %v2010_v14, %v2009_v2  ;;  %v2347_v20 = vpop.f32.mrb[100].mxu0  ;;  %v1999_v21 = vadd.f32 1.0, %v8332_v15 }
 0xfe4   :  { %v8334_v17 = vpop.eup %8333  ;;  %v7613_v24 = vpop.f32.mrb[101].mxu0  ;;  %v2348_v31 = vadd.f32 %v6546_v19, %v2347_v20  ;;  %v8119_v20 = vld [vmem:[%s10322_s9 + $0x30] sm:$0xff]  }
 0xfe5   :  { %7588 = vmatmul.mubr.bf16.vlgmr.msra.gmra.mrb[96].mxu1 %v2015_v4  ;;  %v2350_v27 = vpop.f32.mrb[102].mxu0  ;;  %v2000_v12 = vadd.f32 1.0, %v8334_v17  ;;  %v2005_v29 = vmul.f32 0.5, %v1999_v21 }
 0xfe6   :  { %v2351_v32 = vadd.f32 %v6546_v19, %v2350_v27  ;;  %v7614_v11 = vpop.f32.mrb[103].mxu0  ;;  %7591 = vmatprep.mubr.msk.bf16.mxu1 %vm8487_vm0, %v8486_v1 }
 0xfe7   :  { %v2006_v13 = vmul.f32 0.5, %v2000_v12  ;;  %v2011_v37 = vmul.f32 %v2005_v29, %v9286_v26 }
 0xfe8   :  { %v2417_v34 = vpack.c.bf16 %v2351_v32, %v2348_v31  ;;  %v8120_v32 = vld [vmem:[%s10322_s9 + $0x38] sm:$0xff]  }
 0xfe9   :  { %v2012_v23 = vmul.f32 %v2006_v13, %v9291_v33 }
 0xfea   :  { %v8336_v38 = vpop.eup %8335  ;;  %v2422_v16 = vsel %vm236_vm1, %v2417_v34, 0 }
 0xfeb   :  { %v2409_v40 = vpop.f32.mrb[104].mxu0  ;;  %7624 = vmatpush3.bf16.xpose.msra.mxu1 %v2422_v16  ;;  %v2016_v18 = vpack.c.bf16 %v2012_v23, %v2011_v37  ;;  %v2001_v42 = vadd.f32 1.0, %v8336_v38  ;;  %v6556_v38 = vld [vmem:[%s10324_s11 + $0x3] ss:$0 sm:$0xff] }
 0xfec   :  { %v8338_v41 = vpop.eup %8337  ;;  %v7621_v43 = vpop.f32.mrb[105].mxu0  ;;  %7635 = vmatprep.subr.bf16.mxu1 %v8486_v1  ;;  %v2410_v33 = vadd.f32 %v6550_v35, %v2409_v40 }
 0xfed   :  { %7592 = vmatmul.mubr.bf16.gmra.mrb[100].mxu1 %v2016_v18  ;;  %v2412_v47 = vpop.f32.mrb[106].mxu0  ;;  %v2002_v26 = vadd.f32 1.0, %v8338_v41  ;;  %v2007_v30 = vmul.f32 0.5, %v2001_v42 }
 0xfee   :  { %v2413_v51 = vadd.f32 %v6550_v35, %v2412_v47  ;;  %v7622_v25 = vpop.f32.mrb[107].mxu0  ;;  %7595 = vmatprep.mubr.msk.bf16.mxu1 %vm8487_vm0, %v8486_v1 }
 0xfef   :  { %v2008_v53 = vmul.f32 0.5, %v2002_v26  ;;  %v2013_v55 = vmul.f32 %v2007_v30, %v9298_v46 }
 0xff0   :  { %v2481_v54 = vpack.c.bf16 %v2413_v51, %v2410_v33 }
 0xff1   :  { %v2014_v36 = vmul.f32 %v2008_v53, %v9303_v52 }
 0xff2   :  { %7630 = vmatpush3.bf16.msra.mxu0 %v2481_v54 }
 0xff3   :  { %v2017_v49 = vpack.c.bf16 %v2014_v36, %v2013_v55  ;;  %7643 = vmatprep.subr.bf16.mxu0 %v8486_v1 }
 0xff5   :  { %7596 = vmatmul.mubr.bf16.gmra.mrb[104].mxu1 %v2017_v49 }
 0xff6   :  { %7625 = vmatprep.mubr.msk.bf16.mxu1 %vm8487_vm0, %v8486_v1 }
 0xffd   :  { %7626 = vmatmul.mubr.msk.bf16.vlgmr.msra.gmra.mrb[108].mxu1 %vm236_vm1, %v2416_v3 }
 0xffe   :  { %7639 = vmatprep.mubr.msk.bf16.mxu1 %vm8487_vm0, %v8486_v1  ;;  %7636 = vmatpush3.bf16.msra.mxu1 %v8119_v20  ;;  %v8126_v20 = vld [vmem:[%s10322_s9 + $0x58] sm:$0xff]  }
 0xfff   :  { %7637 = vmatprep.subr.bf16.mxu1 %v8486_v1 }
0x1002   :  { %7638 = vmatpush3.bf16.msra.mxu1 %v8120_v32 }
0x1003   :  { %7651 = vmatprep.subr.bf16.mxu1 %v8486_v1 }
0x10b8   :  { %v9338_v57 = vpop.f32.mrb[96].mxu1 }
0x10b9   :  { %v7589_v58 = vpop.f32.mrb[97].mxu1 }
0x10ba   :  { %v2124_v59 = vpop.f32.mrb[98].mxu1 }
0x10bb   :  { %v7590_v46 = vpop.f32.mrb[99].mxu1  ;;  %v8122_v59 = vld [vmem:[%s10323_s10 + $0x8] sm:$0xff]  }
0x10c0   :  { %v2128_v60 = vpop.f32.mrb[100].mxu1 }
0x10c1   :  { %v7593_v52 = vpop.f32.mrb[101].mxu1 }
0x10c2   :  { %v9340_v61 = vpop.f32.mrb[102].mxu1 }
0x10c3   :  { %v7594_v28 = vpop.f32.mrb[103].mxu1 }
0x10c8   :  { %v2135_v63 = vpop.f32.mrb[104].mxu1 }
0x10c9   :  { %v7597_v44 = vpop.f32.mrb[105].mxu1 }
0x10ca   :  { %v2137_v0 = vpop.f32.mrb[106].mxu1 }
0x10cb   :  { %v7598_v5 = vpop.f32.mrb[107].mxu1 }
0x10cc   :  { %v6560_v5 = vld [vmem:[%s10324_s11 + $0x4] ss:$0 sm:$0xff] }
0x10d0   :  { %v2458_v7 = vpop.f32.mrb[108].mxu1 }
0x10d1   :  { %v2459_v9 = vadd.f32 %v2458_v7, %v9345_v6  ;;  %v7627_v50 = vpop.f32.mrb[109].mxu1 }
0x10d2   :  { %v2461_v10 = vpop.f32.mrb[110].mxu1 }
0x10d3   :  { %v2465_v56 = vmul.f32 1.442695, %v2459_v9  ;;  %v2462_v62 = vadd.f32 %v2461_v10, %v9350_v8  ;;  %v7628_v3 = vpop.f32.mrb[111].mxu1 }
0x10d5   :  { %8339 = vpow2.f32 %v2465_v56  ;;  %v2467_v2 = vmul.f32 1.442695, %v2462_v62  ;;  %v6561_v56 = vld [vmem:[%s10324_s11 + $0x5] ss:$0 sm:$0xff] }
0x10d7   :  { %8341 = vpow2.f32 %v2467_v2 }
0x10df   :  { %v8340_v14 = vpop.eup %8339 }
0x10e0   :  { %v2470_v15 = vsel %vm2469_vm3, %v8340_v14, 0.0 }
0x10e1   :  { %v8342_v4 = vpop.eup %8341  ;;  %2471 = vadd.xlane.f32.xlu0 %v2470_v15  ;;  %v8123_v15 = vld [vmem:[%s10322_s9 + $0x40] sm:$0xff]  }
0x10e2   :  { %v2473_v19 = vsel %vm2469_vm3, %v8342_v4, 0.0 }
0x10e3   :  { %2474 = vadd.xlane.f32.xlu1 %v2473_v19  ;;  %v8125_v19 = vld [vmem:[%s10322_s9 + $0x50] sm:$0xff]  }
0x116e   :  { %v2472_v21 = vpop.xlane.xlu0 %2471 }
0x116f   :  { %8343 = vrcp.f32 %v2472_v21  ;;  %v8127_v21 = vld [vmem:[%s10322_s9 + $0x60] sm:$0xff]  }
0x1170   :  { %v2475_v17 = vpop.xlane.xlu1 %2474 }
0x1171   :  { %8345 = vrcp.f32 %v2475_v17  ;;  %v8128_v17 = vld [vmem:[%s10322_s9 + $0x68] sm:$0xff]  }
0x1179   :  { %v8344_v24 = vpop.eup %8343 }
0x117a   :  { %v2478_v12 = vmul.f32 %v8344_v24, %v8340_v14  ;;  %v8129_v24 = vld [vmem:[%s10322_s9 + $0x70] sm:$0xff]  }
0x117b   :  { %v8346_v27 = vpop.eup %8345 }
0x117c   :  { %v2479_v29 = vmul.f32 %v8346_v27, %v8342_v4  ;;  %v8124_v4 = vld [vmem:[%s10322_s9 + $0x48] sm:$0xff]   ;;  %v8130_v27 = vld [vmem:[%s10322_s9 + $0x78] sm:$0xff]  }
0x117e   :  { %v2480_v31 = vpack.c.bf16 %v2479_v29, %v2478_v12  ;;  %v6562_v12 = vld [vmem:[%s10324_s11 + $0x6] ss:$0 sm:$0xff] }
0x1180   :  { %7632 = vmatmul.mubr.msk.bf16.vlgmr.msra.gmra.mrb[108].mxu0 %vm2469_vm3, %v2480_v31 }
0x1181   :  { %7647 = vmatprep.mubr.msk.bf16.mxu0 %vm8487_vm0, %v8486_v1 }
0x1253   :  { %v2519_v11 = vpop.f32.mrb[108].mxu0 }
0x1254   :  { %v7633_v13 = vpop.f32.mrb[109].mxu0 }
0x1255   :  { %v2522_v34 = vpop.f32.mrb[110].mxu0 }
0x1256   :  { %v2526_v37 = vpack.c.bf16 %v2522_v34, %v2519_v11  ;;  %v7634_v23 = vpop.f32.mrb[111].mxu0 }
0x1258   :  { %7640 = vmatmul.mubr.msk.bf16.vlgmr.msra.gmra.mrb[112].mxu1 %vm236_vm1, %v2526_v37 }
0x1259   :  { %7667 = vmatprep.mubr.msk.bf16.mxu1 %vm8487_vm0, %v8486_v1  ;;  %7652 = vmatpush3.bf16.msra.mxu1 %v8123_v15 }
0x125a   :  { %7653 = vmatprep.subr.bf16.mxu1 %v8486_v1 }
0x125d   :  { %7654 = vmatpush3.bf16.msra.mxu1 %v8124_v4 }
0x125e   :  { %7655 = vmatprep.subr.bf16.mxu1 %v8486_v1 }
0x1261   :  { %7656 = vmatpush3.bf16.msra.mxu1 %v8125_v19 }
0x1262   :  { %7657 = vmatprep.subr.bf16.mxu1 %v8486_v1 }
0x1265   :  { %7658 = vmatpush3.bf16.msra.mxu1 %v8126_v20 }
0x1266   :  { %7659 = vmatprep.subr.bf16.mxu1 %v8486_v1 }
0x1269   :  { %7660 = vmatpush3.bf16.msra.mxu1 %v8127_v21 }
0x126a   :  { %7661 = vmatprep.subr.bf16.mxu1 %v8486_v1 }
0x126d   :  { %7662 = vmatpush3.bf16.msra.mxu1 %v8128_v17 }
0x126e   :  { %7663 = vmatprep.subr.bf16.mxu1 %v8486_v1 }
0x1271   :  { %7664 = vmatpush3.bf16.msra.mxu1 %v8129_v24 }
0x1272   :  { %7665 = vmatprep.subr.bf16.mxu1 %v8486_v1 }
0x1275   :  { %7666 = vmatpush3.bf16.msra.mxu1 %v8130_v27  ;;  %v6575_v27 = vld [vmem:[%s10324_s11 + $0x8] ss:$0 sm:$0xff] }
0x1276   :  { %7701 = vmatprep.subr.bf16.mxu1 %v8486_v1 }
0x132b   :  { %v2585_v16 = vpop.f32.mrb[112].mxu1 }
0x132c   :  { %v2586_v35 = vadd.f32 %v6556_v38, %v2585_v16  ;;  %v7641_v40 = vpop.f32.mrb[113].mxu1 }
0x132d   :  { %v2588_v18 = vpop.f32.mrb[114].mxu1 }
0x132e   :  { %v2589_v42 = vadd.f32 %v6556_v38, %v2588_v18  ;;  %v7642_v41 = vpop.f32.mrb[115].mxu1  ;;  %v2592_v43 = vadd.f32 %v2586_v35, %v9211_v45 }
0x1330   :  { %v2596_v47 = vsel %vm236_vm1, %v2592_v43, 0.0  ;;  %v2593_v26 = vadd.f32 %v2589_v42, %v9209_v48  ;;  %v8121_v48 = vld [vmem:[%s10323_s10] sm:$0xff]  }
0x1331   :  { %2597 = vadd.xlane.f32.xlu0 %v2596_v47  ;;  %7644 = vmatpush3.bf16.msra.mxu0 %v8121_v48 }
0x1332   :  { %v2599_v30 = vsel %vm236_vm1, %v2593_v26, 0.0  ;;  %7645 = vmatprep.subr.bf16.mxu0 %v8486_v1 }
0x1333   :  { %2600 = vadd.xlane.f32.xlu1 %v2599_v30 }
0x1335   :  { %7646 = vmatpush3.bf16.msra.mxu0 %v8122_v59 }
0x1336   :  { %7671 = vmatprep.subr.bf16.mxu0 %v8486_v1 }
0x13be   :  { %v2598_v33 = vpop.xlane.xlu0 %2597 }
0x13bf   :  { %v2602_v51 = vmul.f32 0.03125, %v2598_v33 }
0x13c0   :  { %v2601_v25 = vpop.xlane.xlu1 %2600 }
0x13c1   :  { %v2604_v53 = vsub.f32 %v2592_v43, %v2602_v51  ;;  %v2603_v54 = vmul.f32 0.03125, %v2601_v25 }
0x13c3   :  { %v2605_v55 = vsub.f32 %v2593_v26, %v2603_v54  ;;  %v2606_v36 = vmul.f32 %v2604_v53, %v2604_v53 }
0x13c5   :  { %v2608_v49 = vsel %vm236_vm1, %v2606_v36, 0.0  ;;  %v2607_v58 = vmul.f32 %v2605_v55, %v2605_v55  ;;  %v6566_v36 = vld [vmem:[%s10324_s11 + $0x7] ss:$0 sm:$0xff] }
0x13c6   :  { %2609 = vadd.xlane.f32.xlu0 %v2608_v49 }
0x13c7   :  { %v2611_v45 = vsel %vm236_vm1, %v2607_v58, 0.0 }
0x13c8   :  { %2612 = vadd.xlane.f32.xlu1 %v2611_v45 }
0x1453   :  { %v2610_v46 = vpop.xlane.xlu0 %2609 }
0x1454   :  { %v2614_v60 = vmul.f32 0.03125, %v2610_v46 }
0x1455   :  { %v2613_v52 = vpop.xlane.xlu1 %2612 }
0x1456   :  { %v2616_v28 = vadd.f32 1e-12, %v2614_v60  ;;  %v2615_v63 = vmul.f32 0.03125, %v2613_v52 }
0x1458   :  { %8347 = vrsqrt.f32 %v2616_v28  ;;  %v2617_v44 = vadd.f32 1e-12, %v2615_v63 }
0x145a   :  { %8349 = vrsqrt.f32 %v2617_v44 }
0x1462   :  { %v8348_v0 = vpop.eup %8347 }
0x1463   :  { %v2620_v7 = vmul.f32 %v8348_v0, %v2604_v53 }
0x1464   :  { %v8350_v9 = vpop.eup %8349 }
0x1465   :  { %v2626_v50 = vmul.f32 %v6560_v5, %v2620_v7  ;;  %v2621_v10 = vmul.f32 %v8350_v9, %v2605_v55 }
0x1467   :  { %v2627_v62 = vmul.f32 %v6560_v5, %v2621_v10  ;;  %v9393_v3 = vadd.f32 %v6561_v56, %v2626_v50 }
0x1469   :  { %v9395_v2 = vadd.f32 %v6561_v56, %v2627_v62 }
0x146b   :  { %v2634_v14 = vpack.c.bf16 %v9395_v2, %v9393_v3 }
0x146d   :  { %7648 = vmatmul.mubr.msk.bf16.vlgmr.msra.gmra.mrb[112].mxu0 %vm236_vm1, %v2634_v14  ;;  %v8132_v14 = vld [vmem:[%s10322_s9 + $0x88] sm:$0xff]  }
0x146e   :  { %7675 = vmatprep.mubr.msk.bf16.mxu0 %vm8487_vm0, %v8486_v1 }
0x1540   :  { %v2693_v29 = vpop.f32.mrb[112].mxu0 }
0x1541   :  { %v2694_v31 = vadd.f32 %v6562_v12, %v2693_v29  ;;  %v7649_v32 = vpop.f32.mrb[113].mxu0 }
0x1542   :  { %v2696_v11 = vpop.f32.mrb[114].mxu0 }
0x1543   :  { %v2700_v13 = vmul.f32 %v2694_v31, %v2694_v31  ;;  %v2697_v34 = vadd.f32 %v6562_v12, %v2696_v11  ;;  %v7650_v37 = vpop.f32.mrb[115].mxu0  ;;  %v6576_v11 = vld [vmem:[%s10324_s11 + $0x9] ss:$0 sm:$0xff] }
0x1545   :  { %v2702_v23 = vmul.f32 %v2700_v13, %v2694_v31  ;;  %v2701_v38 = vmul.f32 %v2697_v34, %v2697_v34 }
0x1547   :  { %v2704_v16 = vmul.f32 0.044715, %v2702_v23  ;;  %v2703_v35 = vmul.f32 %v2701_v38, %v2697_v34  ;;  %v8133_v23 = vld [vmem:[%s10322_s9 + $0x90] sm:$0xff]  }
0x1549   :  { %v2706_v40 = vadd.f32 %v2704_v16, %v2694_v31  ;;  %v2705_v18 = vmul.f32 0.044715, %v2703_v35  ;;  %v8134_v16 = vld [vmem:[%s10322_s9 + $0x98] sm:$0xff]   ;;  %v8135_v35 = vld [vmem:[%s10322_s9 + $0xa0] sm:$0xff]  }
0x154b   :  { %v2708_v42 = vmul.f32 0.7978846, %v2706_v40  ;;  %v2707_v41 = vadd.f32 %v2705_v18, %v2697_v34  ;;  %v8136_v40 = vld [vmem:[%s10322_s9 + $0xa8] sm:$0xff]   ;;  %v6582_v18 = vld [vmem:[%s10324_s11 + $0x10] ss:$0 sm:$0xff] }
0x154d   :  { %8351 = vtanh.f32 %v2708_v42  ;;  %v2709_v43 = vmul.f32 0.7978846, %v2707_v41 }
0x154f   :  { %8353 = vtanh.f32 %v2709_v43 }
0x1557   :  { %v8352_v47 = vpop.eup %8351 }
0x1558   :  { %v2712_v26 = vadd.f32 1.0, %v8352_v47 }
0x1559   :  { %v8354_v30 = vpop.eup %8353 }
0x155a   :  { %v2714_v33 = vmul.f32 0.5, %v2712_v26  ;;  %v2713_v51 = vadd.f32 1.0, %v8354_v30 }
0x155c   :  { %v2715_v25 = vmul.f32 0.5, %v2713_v51  ;;  %v2716_v53 = vmul.f32 %v2714_v33, %v2694_v31  ;;  %v6591_v51 = vld [vmem:[%s10324_s11 + $0x11] ss:$0 sm:$0xff] }
0x155e   :  { %v2717_v54 = vmul.f32 %v2715_v25, %v2697_v34 }
0x1560   :  { %v2718_v55 = vpack.c.bf16 %v2717_v54, %v2716_v53 }
0x1562   :  { %7668 = vmatmul.mubr.bf16.vlgmr.msra.gmra.mrb[116].mxu1 %v2718_v55 }
0x1563   :  { %7703 = vmatprep.mubr.msk.bf16.mxu1 %vm8487_vm0, %v8486_v1 }
0x1635   :  { %v2822_v49 = vpop.f32.mrb[116].mxu1 }
0x1636   :  { %v2823_v58 = vadd.f32 %v6566_v36, %v2822_v49  ;;  %v7669_v45 = vpop.f32.mrb[117].mxu1 }
0x1637   :  { %v2825_v48 = vpop.f32.mrb[118].mxu1 }
0x1638   :  { %v2826_v59 = vadd.f32 %v6566_v36, %v2825_v48  ;;  %v7670_v46 = vpop.f32.mrb[119].mxu1  ;;  %v2829_v60 = vadd.f32 %v2823_v58, %v9393_v3  ;;  %v6600_v48 = vld [vmem:[%s10324_s11 + $0x12] ss:$0 sm:$0xff] }
0x163a   :  { %v2833_v52 = vsel %vm236_vm1, %v2829_v60, 0.0  ;;  %v2830_v28 = vadd.f32 %v2826_v59, %v9395_v2  ;;  %v8131_v2 = vld [vmem:[%s10322_s9 + $0x80] sm:$0xff]  }
0x163b   :  { %2834 = vadd.xlane.f32.xlu0 %v2833_v52  ;;  %7672 = vmatpush3.bf16.msra.mxu0 %v8131_v2 }
0x163c   :  { %v2836_v63 = vsel %vm236_vm1, %v2830_v28, 0.0  ;;  %7673 = vmatprep.subr.bf16.mxu0 %v8486_v1 }
0x163d   :  { %2837 = vadd.xlane.f32.xlu1 %v2836_v63 }
0x163f   :  { %7674 = vmatpush3.bf16.msra.mxu0 %v8132_v14 }
0x1640   :  { %7679 = vmatprep.subr.bf16.mxu0 %v8486_v1 }
0x16c8   :  { %v2835_v44 = vpop.xlane.xlu0 %2834 }
0x16c9   :  { %v2839_v0 = vmul.f32 0.03125, %v2835_v44 }
0x16ca   :  { %v2838_v5 = vpop.xlane.xlu1 %2837 }
0x16cb   :  { %v2841_v7 = vsub.f32 %v2829_v60, %v2839_v0  ;;  %v2840_v9 = vmul.f32 0.03125, %v2838_v5 }
0x16cd   :  { %v2842_v50 = vsub.f32 %v2830_v28, %v2840_v9  ;;  %v2843_v10 = vmul.f32 %v2841_v7, %v2841_v7 }
0x16cf   :  { %v2845_v56 = vsel %vm236_vm1, %v2843_v10, 0.0  ;;  %v2844_v62 = vmul.f32 %v2842_v50, %v2842_v50 }
0x16d0   :  { %2846 = vadd.xlane.f32.xlu0 %v2845_v56 }
0x16d1   :  { %v2848_v3 = vsel %vm236_vm1, %v2844_v62, 0.0 }
0x16d2   :  { %2849 = vadd.xlane.f32.xlu1 %v2848_v3 }
0x175d   :  { %v2847_v15 = vpop.xlane.xlu0 %2846 }
0x175e   :  { %v2851_v4 = vmul.f32 0.03125, %v2847_v15 }
0x175f   :  { %v2850_v19 = vpop.xlane.xlu1 %2849 }
0x1760   :  { %v2853_v20 = vadd.f32 1e-12, %v2851_v4  ;;  %v2852_v21 = vmul.f32 0.03125, %v2850_v19  ;;  %v8137_v4 = vld [vmem:[%s10322_s9 + $0xb0] sm:$0xff]  }
0x1762   :  { %8355 = vrsqrt.f32 %v2853_v20  ;;  %v2854_v17 = vadd.f32 1e-12, %v2852_v21 }
0x1764   :  { %8357 = vrsqrt.f32 %v2854_v17 }
0x176c   :  { %v8356_v24 = vpop.eup %8355 }
0x176d   :  { %v2857_v12 = vmul.f32 %v8356_v24, %v2841_v7 }
0x176e   :  { %v8358_v29 = vpop.eup %8357 }
0x176f   :  { %v2863_v31 = vmul.f32 %v6575_v27, %v2857_v12  ;;  %v2858_v32 = vmul.f32 %v8358_v29, %v2842_v50  ;;  %v8138_v29 = vld [vmem:[%s10322_s9 + $0xb8] sm:$0xff]  }
0x1771   :  { %v2864_v13 = vmul.f32 %v6575_v27, %v2858_v32  ;;  %v9462_v34 = vadd.f32 %v6576_v11, %v2863_v31 }
0x1773   :  { %v9464_v37 = vadd.f32 %v6576_v11, %v2864_v13 }
0x1775   :  { %v2871_v38 = vpack.c.bf16 %v9464_v37, %v9462_v34 }
0x1777   :  { %7676 = vmatmul.mubr.msk.bf16.vlgmr.msra.gmra.mrb[116].mxu0 %vm236_vm1, %v2871_v38 }
0x1778   :  { %7680 = vmatpush3.bf16.msra.mxu0 %v8133_v23  ;;  %7683 = vmatprep.mubr.msk.bf16.mxu0 %vm8487_vm0, %v8486_v1 }
0x1779   :  { %7681 = vmatprep.subr.bf16.mxu0 %v8486_v1 }
0x177c   :  { %7682 = vmatpush3.bf16.msra.mxu0 %v8134_v16 }
0x177d   :  { %7687 = vmatprep.subr.bf16.mxu0 %v8486_v1 }
0x177f   :  { %7684 = vmatmul.mubr.msk.bf16.vlgmr.msra.gmra.mrb[120].mxu0 %vm236_vm1, %v2871_v38 }
0x1780   :  { %7688 = vmatpush3.bf16.msra.mxu0 %v8135_v35  ;;  %7691 = vmatprep.mubr.msk.bf16.mxu0 %vm8487_vm0, %v8486_v1 }
0x1781   :  { %7689 = vmatprep.subr.bf16.mxu0 %v8486_v1 }
0x1784   :  { %7690 = vmatpush3.bf16.msra.mxu0 %v8136_v40 }
0x1785   :  { %7695 = vmatprep.subr.bf16.mxu0 %v8486_v1 }
0x1787   :  { %7692 = vmatmul.mubr.msk.bf16.vlgmr.msra.gmra.mrb[124].mxu0 %vm236_vm1, %v2871_v38  ;;  %v6611_v38 = vld [vmem:[%s10324_s11 + $0x13] ss:$0 sm:$0xff] }
0x1788   :  { %7697 = vmatprep.mubr.msk.bf16.mxu0 %vm8487_vm0, %v8486_v1 }
0x184a   :  { %v2932_v42 = vpop.f32.mrb[116].mxu0 }
0x184b   :  { %v7677_v41 = vpop.f32.mrb[117].mxu0  ;;  %v2933_v47 = vadd.f32 %v6582_v18, %v2932_v42 }
0x184c   :  { %v2935_v43 = vpop.f32.mrb[118].mxu0 }
0x184d   :  { %v2936_v26 = vadd.f32 %v6582_v18, %v2935_v43  ;;  %v7678_v30 = vpop.f32.mrb[119].mxu0 }
0x184f   :  { %v3063_v33 = vpack.c.bf16 %v2936_v26, %v2933_v47 }
0x1852   :  { %v2994_v25 = vpop.f32.mrb[120].mxu0 }
0x1853   :  { %v7685_v53 = vpop.f32.mrb[121].mxu0  ;;  %v2995_v55 = vadd.f32 %v6591_v51, %v2994_v25 }
0x1854   :  { %v2997_v54 = vpop.f32.mrb[122].mxu0 }
0x1855   :  { %v2998_v36 = vadd.f32 %v6591_v51, %v2997_v54  ;;  %v7686_v49 = vpop.f32.mrb[123].mxu0 }
0x1857   :  { %v3064_v58 = vpack.c.bf16 %v2998_v36, %v2995_v55 }
0x1859   :  { %v3069_v45 = vsel %vm236_vm1, %v3064_v58, 0 }
0x185a   :  { %v3056_v59 = vpop.f32.mrb[124].mxu0  ;;  %7696 = vmatpush3.bf16.xpose.msra.mxu0 %v3069_v45  ;;  %v8140_v45 = vld [vmem:[%s10323_s10 + $0x18] sm:$0xff]  }
0x185b   :  { %v7693_v46 = vpop.f32.mrb[125].mxu0  ;;  %7707 = vmatprep.subr.bf16.mxu0 %v8486_v1  ;;  %v3057_v52 = vadd.f32 %v6600_v48, %v3056_v59 }
0x185c   :  { %v3059_v60 = vpop.f32.mrb[126].mxu0 }
0x185d   :  { %v3060_v28 = vadd.f32 %v6600_v48, %v3059_v60  ;;  %v7694_v63 = vpop.f32.mrb[127].mxu0 }
0x185f   :  { %v3127_v44 = vpack.c.bf16 %v3060_v28, %v3057_v52 }
0x1861   :  { %7698 = vmatmul.mubr.msk.bf16.vlgmr.msra.gmra.mrb[128].mxu0 %vm236_vm1, %v3063_v33  ;;  %7702 = vmatpush3.bf16.msra.mxu1 %v3127_v44  ;;  %v6617_v44 = vld [vmem:[%s10324_s11 + $0x14] ss:$0 sm:$0xff] }
0x1862   :  { %7711 = vmatprep.mubr.msk.bf16.mxu0 %vm8487_vm0, %v8486_v1  ;;  %7715 = vmatprep.subr.bf16.mxu1 %v8486_v1 }
0x1863   :  { %7708 = vmatpush3.bf16.msra.mxu0 %v8137_v4  ;;  %v8144_v4 = vld [vmem:[%s10322_s9 + $0xd8] sm:$0xff]  }
0x1864   :  { %7709 = vmatprep.subr.bf16.mxu0 %v8486_v1 }
0x1867   :  { %7710 = vmatpush3.bf16.msra.mxu0 %v8138_v29 }
0x1868   :  { %7723 = vmatprep.subr.bf16.mxu0 %v8486_v1 }
0x1934   :  { %v3105_v0 = vpop.f32.mrb[128].mxu0 }
0x1935   :  { %v3106_v5 = vadd.f32 %v3105_v0, %v9345_v6  ;;  %v7699_v7 = vpop.f32.mrb[129].mxu0 }
0x1936   :  { %v3108_v9 = vpop.f32.mrb[130].mxu0 }
0x1937   :  { %v3112_v50 = vmul.f32 1.442695, %v3106_v5  ;;  %v3109_v10 = vadd.f32 %v3108_v9, %v9350_v8  ;;  %v7700_v56 = vpop.f32.mrb[131].mxu0 }
0x1939   :  { %8359 = vpow2.f32 %v3112_v50  ;;  %v3114_v62 = vmul.f32 1.442695, %v3109_v10  ;;  %v6618_v50 = vld [vmem:[%s10324_s11 + $0x15] ss:$0 sm:$0xff] }
0x193b   :  { %8361 = vpow2.f32 %v3114_v62 }
0x1943   :  { %v8360_v3 = vpop.eup %8359 }
0x1944   :  { %v3116_v2 = vsel %vm2469_vm3, %v8360_v3, 0.0 }
0x1945   :  { %v8362_v14 = vpop.eup %8361  ;;  %3117 = vadd.xlane.f32.xlu0 %v3116_v2  ;;  %v8141_v2 = vld [vmem:[%s10322_s9 + $0xc0] sm:$0xff]  }
0x1946   :  { %v3119_v15 = vsel %vm2469_vm3, %v8362_v14, 0.0 }
0x1947   :  { %3120 = vadd.xlane.f32.xlu1 %v3119_v15  ;;  %v8143_v15 = vld [vmem:[%s10322_s9 + $0xd0] sm:$0xff]  }
0x19d2   :  { %v3118_v19 = vpop.xlane.xlu0 %3117 }
0x19d3   :  { %8363 = vrcp.f32 %v3118_v19  ;;  %v8145_v19 = vld [vmem:[%s10322_s9 + $0xe0] sm:$0xff]  }
0x19d4   :  { %v3121_v20 = vpop.xlane.xlu1 %3120 }
0x19d5   :  { %8365 = vrcp.f32 %v3121_v20  ;;  %v8146_v20 = vld [vmem:[%s10322_s9 + $0xe8] sm:$0xff]  }
0x19dd   :  { %v8364_v21 = vpop.eup %8363 }
0x19de   :  { %v3124_v24 = vmul.f32 %v8364_v21, %v8360_v3  ;;  %v8147_v21 = vld [vmem:[%s10322_s9 + $0xf0] sm:$0xff]  }
0x19df   :  { %v8366_v17 = vpop.eup %8365 }
0x19e0   :  { %v3125_v27 = vmul.f32 %v8366_v17, %v8362_v14  ;;  %v8142_v14 = vld [vmem:[%s10322_s9 + $0xc8] sm:$0xff]   ;;  %v8148_v17 = vld [vmem:[%s10322_s9 + $0xf8] sm:$0xff]  }
0x19e2   :  { %v3126_v12 = vpack.c.bf16 %v3125_v27, %v3124_v24  ;;  %v6624_v24 = vld [vmem:[%s10324_s11 + $0x16] ss:$0 sm:$0xff] }
0x19e4   :  { %7704 = vmatmul.mubr.msk.bf16.vlgmr.msra.gmra.mrb[120].mxu1 %vm2469_vm3, %v3126_v12 }
0x19e5   :  { %7719 = vmatprep.mubr.msk.bf16.mxu1 %vm8487_vm0, %v8486_v1 }
0x1ab7   :  { %v3165_v31 = vpop.f32.mrb[120].mxu1 }
0x1ab8   :  { %v7705_v32 = vpop.f32.mrb[121].mxu1 }
0x1ab9   :  { %v3168_v11 = vpop.f32.mrb[122].mxu1 }
0x1aba   :  { %v3172_v13 = vpack.c.bf16 %v3168_v11, %v3165_v31  ;;  %v7706_v23 = vpop.f32.mrb[123].mxu1 }
0x1abc   :  { %7712 = vmatmul.mubr.msk.bf16.vlgmr.msra.gmra.mrb[132].mxu0 %vm236_vm1, %v3172_v13 }
0x1abd   :  { %7739 = vmatprep.mubr.msk.bf16.mxu0 %vm8487_vm0, %v8486_v1  ;;  %7724 = vmatpush3.bf16.msra.mxu0 %v8141_v2 }
0x1abe   :  { %7725 = vmatprep.subr.bf16.mxu0 %v8486_v1 }
0x1ac1   :  { %7726 = vmatpush3.bf16.msra.mxu0 %v8142_v14 }
0x1ac2   :  { %7727 = vmatprep.subr.bf16.mxu0 %v8486_v1 }
0x1ac5   :  { %7728 = vmatpush3.bf16.msra.mxu0 %v8143_v15 }
0x1ac6   :  { %7729 = vmatprep.subr.bf16.mxu0 %v8486_v1 }
0x1ac9   :  { %7730 = vmatpush3.bf16.msra.mxu0 %v8144_v4 }
0x1aca   :  { %7731 = vmatprep.subr.bf16.mxu0 %v8486_v1 }
0x1acd   :  { %7732 = vmatpush3.bf16.msra.mxu0 %v8145_v19 }
0x1ace   :  { %7733 = vmatprep.subr.bf16.mxu0 %v8486_v1 }
0x1ad1   :  { %7734 = vmatpush3.bf16.msra.mxu0 %v8146_v20 }
0x1ad2   :  { %7735 = vmatprep.subr.bf16.mxu0 %v8486_v1 }
0x1ad5   :  { %7736 = vmatpush3.bf16.msra.mxu0 %v8147_v21 }
0x1ad6   :  { %7737 = vmatprep.subr.bf16.mxu0 %v8486_v1 }
0x1ad9   :  { %7738 = vmatpush3.bf16.msra.mxu0 %v8148_v17  ;;  %v6656_v17 = vld [vmem:[%s10324_s11 + $0x18] ss:$0 sm:$0xff] }
0x1ada   :  { %7773 = vmatprep.subr.bf16.mxu0 %v8486_v1 }
0x1b8f   :  { %v3231_v16 = vpop.f32.mrb[132].mxu0 }
0x1b90   :  { %v3232_v35 = vadd.f32 %v6611_v38, %v3231_v16  ;;  %v7713_v40 = vpop.f32.mrb[133].mxu0 }
0x1b91   :  { %v3234_v18 = vpop.f32.mrb[134].mxu0 }
0x1b92   :  { %v3235_v42 = vadd.f32 %v6611_v38, %v3234_v18  ;;  %v7714_v41 = vpop.f32.mrb[135].mxu0  ;;  %v3238_v43 = vadd.f32 %v3232_v35, %v9462_v34 }
0x1b94   :  { %v3242_v47 = vsel %vm236_vm1, %v3238_v43, 0.0  ;;  %v3239_v26 = vadd.f32 %v3235_v42, %v9464_v37  ;;  %v8139_v37 = vld [vmem:[%s10323_s10 + $0x10] sm:$0xff]  }
0x1b95   :  { %3243 = vadd.xlane.f32.xlu0 %v3242_v47  ;;  %7716 = vmatpush3.bf16.msra.mxu1 %v8139_v37 }
0x1b96   :  { %v3245_v30 = vsel %vm236_vm1, %v3239_v26, 0.0  ;;  %7717 = vmatprep.subr.bf16.mxu1 %v8486_v1 }
0x1b97   :  { %3246 = vadd.xlane.f32.xlu1 %v3245_v30 }
0x1b99   :  { %7718 = vmatpush3.bf16.msra.mxu1 %v8140_v45 }
0x1b9a   :  { %7743 = vmatprep.subr.bf16.mxu1 %v8486_v1 }
0x1c22   :  { %v3244_v33 = vpop.xlane.xlu0 %3243 }
0x1c23   :  { %v3248_v51 = vmul.f32 0.03125, %v3244_v33 }
0x1c24   :  { %v3247_v25 = vpop.xlane.xlu1 %3246 }
0x1c25   :  { %v3250_v53 = vsub.f32 %v3238_v43, %v3248_v51  ;;  %v3249_v54 = vmul.f32 0.03125, %v3247_v25 }
0x1c27   :  { %v3251_v55 = vsub.f32 %v3239_v26, %v3249_v54  ;;  %v3252_v36 = vmul.f32 %v3250_v53, %v3250_v53 }
0x1c29   :  { %v3254_v49 = vsel %vm236_vm1, %v3252_v36, 0.0  ;;  %v3253_v58 = vmul.f32 %v3251_v55, %v3251_v55  ;;  %v6645_v36 = vld [vmem:[%s10324_s11 + $0x17] ss:$0 sm:$0xff] }
0x1c2a   :  { %3255 = vadd.xlane.f32.xlu0 %v3254_v49 }
0x1c2b   :  { %v3257_v34 = vsel %vm236_vm1, %v3253_v58, 0.0 }
0x1c2c   :  { %3258 = vadd.xlane.f32.xlu1 %v3257_v34 }
0x1cb7   :  { %v3256_v48 = vpop.xlane.xlu0 %3255 }
0x1cb8   :  { %v3260_v59 = vmul.f32 0.03125, %v3256_v48 }
0x1cb9   :  { %v3259_v46 = vpop.xlane.xlu1 %3258 }
0x1cba   :  { %v3262_v60 = vadd.f32 1e-12, %v3260_v59  ;;  %v3261_v52 = vmul.f32 0.03125, %v3259_v46 }
0x1cbc   :  { %8367 = vrsqrt.f32 %v3262_v60  ;;  %v3263_v28 = vadd.f32 1e-12, %v3261_v52 }
0x1cbe   :  { %8369 = vrsqrt.f32 %v3263_v28 }
0x1cc6   :  { %v8368_v63 = vpop.eup %8367 }
0x1cc7   :  { %v3266_v0 = vmul.f32 %v8368_v63, %v3250_v53 }
0x1cc8   :  { %v8370_v5 = vpop.eup %8369 }
0x1cc9   :  { %v3272_v7 = vmul.f32 %v6617_v44, %v3266_v0  ;;  %v3267_v9 = vmul.f32 %v8370_v5, %v3251_v55 }
0x1ccb   :  { %v3273_v10 = vmul.f32 %v6617_v44, %v3267_v9  ;;  %v9549_v56 = vadd.f32 %v6618_v50, %v3272_v7 }
0x1ccd   :  { %v9551_v62 = vadd.f32 %v6618_v50, %v3273_v10 }
0x1ccf   :  { %v3280_v3 = vpack.c.bf16 %v9551_v62, %v9549_v56 }
0x1cd1   :  { %7720 = vmatmul.mubr.msk.bf16.vlgmr.msra.gmra.mrb[124].mxu1 %vm236_vm1, %v3280_v3  ;;  %v8150_v3 = vld [vmem:[%s10322_s9 + $0x108] sm:$0xff]  }
0x1cd2   :  { %7747 = vmatprep.mubr.msk.bf16.mxu1 %vm8487_vm0, %v8486_v1 }
0x1da4   :  { %v3340_v27 = vpop.f32.mrb[124].mxu1 }
0x1da5   :  { %v3341_v12 = vadd.f32 %v6624_v24, %v3340_v27  ;;  %v7721_v29 = vpop.f32.mrb[125].mxu1 }
0x1da6   :  { %v3343_v31 = vpop.f32.mrb[126].mxu1 }
0x1da7   :  { %v3347_v32 = vmul.f32 %v3341_v12, %v3341_v12  ;;  %v3344_v11 = vadd.f32 %v6624_v24, %v3343_v31  ;;  %v7722_v13 = vpop.f32.mrb[127].mxu1  ;;  %v6657_v31 = vld [vmem:[%s10324_s11 + $0x19] ss:$0 sm:$0xff] }
0x1da9   :  { %v3349_v23 = vmul.f32 %v3347_v32, %v3341_v12  ;;  %v3348_v38 = vmul.f32 %v3344_v11, %v3344_v11 }
0x1dab   :  { %v3351_v16 = vmul.f32 0.044715, %v3349_v23  ;;  %v3350_v35 = vmul.f32 %v3348_v38, %v3344_v11  ;;  %v8151_v23 = vld [vmem:[%s10322_s9 + $0x110] sm:$0xff]  }
0x1dad   :  { %v3353_v40 = vadd.f32 %v3351_v16, %v3341_v12  ;;  %v3352_v18 = vmul.f32 0.044715, %v3350_v35  ;;  %v8152_v16 = vld [vmem:[%s10322_s9 + $0x118] sm:$0xff]   ;;  %v8153_v35 = vld [vmem:[%s10322_s9 + $0x120] sm:$0xff]  }
0x1daf   :  { %v3355_v42 = vmul.f32 0.7978846, %v3353_v40  ;;  %v3354_v41 = vadd.f32 %v3352_v18, %v3344_v11  ;;  %v8154_v40 = vld [vmem:[%s10322_s9 + $0x128] sm:$0xff]   ;;  %v6663_v18 = vld [vmem:[%s10324_s11 + $0x20] ss:$0 sm:$0xff] }
0x1db1   :  { %8371 = vtanh.f32 %v3355_v42  ;;  %v3356_v43 = vmul.f32 0.7978846, %v3354_v41 }
0x1db3   :  { %8373 = vtanh.f32 %v3356_v43 }
0x1dbb   :  { %v8372_v47 = vpop.eup %8371 }
0x1dbc   :  { %v3359_v26 = vadd.f32 1.0, %v8372_v47 }
0x1dbd   :  { %v8374_v30 = vpop.eup %8373 }
0x1dbe   :  { %v3361_v33 = vmul.f32 0.5, %v3359_v26  ;;  %v3360_v51 = vadd.f32 1.0, %v8374_v30 }
0x1dc0   :  { %v3362_v25 = vmul.f32 0.5, %v3360_v51  ;;  %v3363_v53 = vmul.f32 %v3361_v33, %v3341_v12  ;;  %v6672_v51 = vld [vmem:[%s10324_s11 + $0x21] ss:$0 sm:$0xff] }
0x1dc2   :  { %v3364_v54 = vmul.f32 %v3362_v25, %v3344_v11 }
0x1dc4   :  { %v3365_v55 = vpack.c.bf16 %v3364_v54, %v3363_v53 }
0x1dc6   :  { %7740 = vmatmul.mubr.bf16.vlgmr.msra.gmra.mrb[136].mxu0 %v3365_v55 }
0x1dc7   :  { %7775 = vmatprep.mubr.msk.bf16.mxu0 %vm8487_vm0, %v8486_v1 }
0x1e99   :  { %v3469_v49 = vpop.f32.mrb[136].mxu0 }
0x1e9a   :  { %v3470_v58 = vadd.f32 %v6645_v36, %v3469_v49  ;;  %v7741_v34 = vpop.f32.mrb[137].mxu0 }
0x1e9b   :  { %v3472_v37 = vpop.f32.mrb[138].mxu0 }
0x1e9c   :  { %v3473_v45 = vadd.f32 %v6645_v36, %v3472_v37  ;;  %v7742_v48 = vpop.f32.mrb[139].mxu0  ;;  %v3476_v59 = vadd.f32 %v3470_v58, %v9549_v56  ;;  %v6681_v37 = vld [vmem:[%s10324_s11 + $0x22] ss:$0 sm:$0xff] }
0x1e9e   :  { %v3480_v46 = vsel %vm236_vm1, %v3476_v59, 0.0  ;;  %v3477_v60 = vadd.f32 %v3473_v45, %v9551_v62  ;;  %v8149_v62 = vld [vmem:[%s10322_s9 + $0x100] sm:$0xff]  }
0x1e9f   :  { %3481 = vadd.xlane.f32.xlu0 %v3480_v46  ;;  %7744 = vmatpush3.bf16.msra.mxu1 %v8149_v62 }
0x1ea0   :  { %v3483_v52 = vsel %vm236_vm1, %v3477_v60, 0.0  ;;  %7745 = vmatprep.subr.bf16.mxu1 %v8486_v1 }
0x1ea1   :  { %3484 = vadd.xlane.f32.xlu1 %v3483_v52 }
0x1ea3   :  { %7746 = vmatpush3.bf16.msra.mxu1 %v8150_v3 }
0x1ea4   :  { %7751 = vmatprep.subr.bf16.mxu1 %v8486_v1 }
0x1f2c   :  { %v3482_v28 = vpop.xlane.xlu0 %3481 }
0x1f2d   :  { %v3486_v63 = vmul.f32 0.03125, %v3482_v28 }
0x1f2e   :  { %v3485_v44 = vpop.xlane.xlu1 %3484 }
0x1f2f   :  { %v3488_v0 = vsub.f32 %v3476_v59, %v3486_v63  ;;  %v3487_v5 = vmul.f32 0.03125, %v3485_v44 }
0x1f31   :  { %v3489_v7 = vsub.f32 %v3477_v60, %v3487_v5  ;;  %v3490_v9 = vmul.f32 %v3488_v0, %v3488_v0 }
0x1f33   :  { %v3492_v50 = vsel %vm236_vm1, %v3490_v9, 0.0  ;;  %v3491_v10 = vmul.f32 %v3489_v7, %v3489_v7 }
0x1f34   :  { %3493 = vadd.xlane.f32.xlu0 %v3492_v50 }
0x1f35   :  { %v3495_v56 = vsel %vm236_vm1, %v3491_v10, 0.0 }
0x1f36   :  { %3496 = vadd.xlane.f32.xlu1 %v3495_v56 }
0x1fc1   :  { %v3494_v2 = vpop.xlane.xlu0 %3493 }
0x1fc2   :  { %v3498_v14 = vmul.f32 0.03125, %v3494_v2 }
0x1fc3   :  { %v3497_v15 = vpop.xlane.xlu1 %3496 }
0x1fc4   :  { %v3500_v4 = vadd.f32 1e-12, %v3498_v14  ;;  %v3499_v19 = vmul.f32 0.03125, %v3497_v15 }
0x1fc6   :  { %8375 = vrsqrt.f32 %v3500_v4  ;;  %v3501_v20 = vadd.f32 1e-12, %v3499_v19 }
0x1fc8   :  { %8377 = vrsqrt.f32 %v3501_v20 }
0x1fd0   :  { %v8376_v21 = vpop.eup %8375 }
0x1fd1   :  { %v3504_v24 = vmul.f32 %v8376_v21, %v3488_v0 }
0x1fd2   :  { %v8378_v27 = vpop.eup %8377 }
0x1fd3   :  { %v3510_v12 = vmul.f32 %v6656_v17, %v3504_v24  ;;  %v3505_v29 = vmul.f32 %v8378_v27, %v3489_v7 }
0x1fd5   :  { %v3511_v32 = vmul.f32 %v6656_v17, %v3505_v29  ;;  %v9618_v11 = vadd.f32 %v6657_v31, %v3510_v12  ;;  %v8156_v17 = vld [vmem:[%s10322_s9 + $0x138] sm:$0xff]  }
0x1fd7   :  { %v9620_v13 = vadd.f32 %v6657_v31, %v3511_v32  ;;  %v6692_v32 = vld [vmem:[%s10324_s11 + $0x23] ss:$0 sm:$0xff] }
0x1fd9   :  { %v3518_v38 = vpack.c.bf16 %v9620_v13, %v9618_v11 }
0x1fdb   :  { %7748 = vmatmul.mubr.msk.bf16.vlgmr.msra.gmra.mrb[128].mxu1 %vm236_vm1, %v3518_v38 }
0x1fdc   :  { %7752 = vmatpush3.bf16.msra.mxu1 %v8151_v23  ;;  %7755 = vmatprep.mubr.msk.bf16.mxu1 %vm8487_vm0, %v8486_v1 }
0x1fdd   :  { %7753 = vmatprep.subr.bf16.mxu1 %v8486_v1 }
0x1fe0   :  { %7754 = vmatpush3.bf16.msra.mxu1 %v8152_v16 }
0x1fe1   :  { %7759 = vmatprep.subr.bf16.mxu1 %v8486_v1 }
0x1fe3   :  { %7756 = vmatmul.mubr.msk.bf16.vlgmr.msra.gmra.mrb[132].mxu1 %vm236_vm1, %v3518_v38 }
0x1fe4   :  { %7760 = vmatpush3.bf16.msra.mxu1 %v8153_v35  ;;  %7763 = vmatprep.mubr.msk.bf16.mxu1 %vm8487_vm0, %v8486_v1 }
0x1fe5   :  { %7761 = vmatprep.subr.bf16.mxu1 %v8486_v1 }
0x1fe8   :  { %7762 = vmatpush3.bf16.msra.mxu1 %v8154_v40 }
0x1fe9   :  { %7767 = vmatprep.subr.bf16.mxu1 %v8486_v1 }
0x1feb   :  { %7764 = vmatmul.mubr.msk.bf16.vlgmr.msra.gmra.mrb[136].mxu1 %vm236_vm1, %v3518_v38 }
0x1fec   :  { %7769 = vmatprep.mubr.msk.bf16.mxu1 %vm8487_vm0, %v8486_v1 }
0x20ae   :  { %v3579_v42 = vpop.f32.mrb[128].mxu1 }
0x20af   :  { %v7749_v41 = vpop.f32.mrb[129].mxu1  ;;  %v3580_v47 = vadd.f32 %v6663_v18, %v3579_v42 }
0x20b0   :  { %v3582_v43 = vpop.f32.mrb[130].mxu1 }
0x20b1   :  { %v3583_v26 = vadd.f32 %v6663_v18, %v3582_v43  ;;  %v7750_v30 = vpop.f32.mrb[131].mxu1 }
0x20b3   :  { %v3710_v33 = vpack.c.bf16 %v3583_v26, %v3580_v47 }
0x20b6   :  { %v3641_v25 = vpop.f32.mrb[132].mxu1 }
0x20b7   :  { %v7757_v53 = vpop.f32.mrb[133].mxu1  ;;  %v3642_v55 = vadd.f32 %v6672_v51, %v3641_v25 }
0x20b8   :  { %v3644_v54 = vpop.f32.mrb[134].mxu1 }
0x20b9   :  { %v3645_v36 = vadd.f32 %v6672_v51, %v3644_v54  ;;  %v7758_v49 = vpop.f32.mrb[135].mxu1 }
0x20ba   :  { %v8158_v49 = vld [vmem:[%s10323_s10 + $0x28] sm:$0xff]  }
0x20bb   :  { %v3711_v58 = vpack.c.bf16 %v3645_v36, %v3642_v55 }
0x20bd   :  { %v3716_v34 = vsel %vm236_vm1, %v3711_v58, 0 }
0x20be   :  { %v3703_v45 = vpop.f32.mrb[136].mxu1  ;;  %7768 = vmatpush3.bf16.xpose.msra.mxu1 %v3716_v34 }
0x20bf   :  { %v7765_v48 = vpop.f32.mrb[137].mxu1  ;;  %7779 = vmatprep.subr.bf16.mxu1 %v8486_v1  ;;  %v3704_v46 = vadd.f32 %v6681_v37, %v3703_v45 }
0x20c0   :  { %v3706_v59 = vpop.f32.mrb[138].mxu1 }
0x20c1   :  { %v3707_v60 = vadd.f32 %v6681_v37, %v3706_v59  ;;  %v7766_v52 = vpop.f32.mrb[139].mxu1 }
0x20c3   :  { %v3774_v28 = vpack.c.bf16 %v3707_v60, %v3704_v46  ;;  %v6698_v60 = vld [vmem:[%s10324_s11 + $0x24] ss:$0 sm:$0xff] }
0x20c5   :  { %7770 = vmatmul.mubr.msk.bf16.vlgmr.msra.gmra.mrb[140].mxu1 %vm236_vm1, %v3710_v33  ;;  %7774 = vmatpush3.bf16.msra.mxu0 %v3774_v28 }
0x20c6   :  { %7783 = vmatprep.mubr.msk.bf16.mxu1 %vm8487_vm0, %v8486_v1  ;;  %7787 = vmatprep.subr.bf16.mxu0 %v8486_v1 }
0x2198   :  { %v3752_v63 = vpop.f32.mrb[140].mxu1 }
0x2199   :  { %v3753_v44 = vadd.f32 %v3752_v63, %v9345_v6  ;;  %v7771_v0 = vpop.f32.mrb[141].mxu1  ;;  %v8155_v6 = vld [vmem:[%s10322_s9 + $0x130] sm:$0xff]  }
0x219a   :  { %v3755_v5 = vpop.f32.mrb[142].mxu1  ;;  %7780 = vmatpush3.bf16.msra.mxu1 %v8155_v6  ;;  %v6699_v0 = vld [vmem:[%s10324_s11 + $0x25] ss:$0 sm:$0xff]  ;;  %v8164_v6 = vld [vmem:[%s10322_s9 + $0x168] sm:$0xff]  }
0x219b   :  { %v3759_v7 = vmul.f32 1.442695, %v3753_v44  ;;  %v3756_v9 = vadd.f32 %v3755_v5, %v9350_v8  ;;  %v7772_v50 = vpop.f32.mrb[143].mxu1  ;;  %7781 = vmatprep.subr.bf16.mxu1 %v8486_v1 }
0x219d   :  { %8379 = vpow2.f32 %v3759_v7  ;;  %v3761_v10 = vmul.f32 1.442695, %v3756_v9 }
0x219e   :  { %7782 = vmatpush3.bf16.msra.mxu1 %v8156_v17 }
0x219f   :  { %8381 = vpow2.f32 %v3761_v10  ;;  %7795 = vmatprep.subr.bf16.mxu1 %v8486_v1  ;;  %v8159_v10 = vld [vmem:[%s10322_s9 + $0x140] sm:$0xff]  }
0x21a7   :  { %v8380_v56 = vpop.eup %8379 }
0x21a8   :  { %v3763_v62 = vsel %vm2469_vm3, %v8380_v56, 0.0 }
0x21a9   :  { %v8382_v3 = vpop.eup %8381  ;;  %3764 = vadd.xlane.f32.xlu0 %v3763_v62  ;;  %v8161_v62 = vld [vmem:[%s10322_s9 + $0x150] sm:$0xff]  }
0x21aa   :  { %v3766_v2 = vsel %vm2469_vm3, %v8382_v3, 0.0 }
0x21ab   :  { %3767 = vadd.xlane.f32.xlu1 %v3766_v2  ;;  %v8163_v2 = vld [vmem:[%s10322_s9 + $0x160] sm:$0xff]  }
0x2236   :  { %v3765_v8 = vpop.xlane.xlu0 %3764 }
0x2237   :  { %8383 = vrcp.f32 %v3765_v8  ;;  %v8165_v8 = vld [vmem:[%s10322_s9 + $0x170] sm:$0xff]  }
0x2238   :  { %v3768_v14 = vpop.xlane.xlu1 %3767 }
0x2239   :  { %8385 = vrcp.f32 %v3768_v14  ;;  %v8166_v14 = vld [vmem:[%s10322_s9 + $0x178] sm:$0xff]  }
0x2241   :  { %v8384_v15 = vpop.eup %8383 }
0x2242   :  { %v3771_v19 = vmul.f32 %v8384_v15, %v8380_v56  ;;  %v8160_v56 = vld [vmem:[%s10322_s9 + $0x148] sm:$0xff]   ;;  %v6705_v15 = vld [vmem:[%s10324_s11 + $0x26] ss:$0 sm:$0xff] }
0x2243   :  { %v8386_v4 = vpop.eup %8385 }
0x2244   :  { %v3772_v20 = vmul.f32 %v8386_v4, %v8382_v3  ;;  %v8162_v3 = vld [vmem:[%s10322_s9 + $0x158] sm:$0xff]  }
0x2246   :  { %v3773_v21 = vpack.c.bf16 %v3772_v20, %v3771_v19 }
0x2248   :  { %7776 = vmatmul.mubr.msk.bf16.vlgmr.msra.gmra.mrb[140].mxu0 %vm2469_vm3, %v3773_v21 }
0x2249   :  { %7791 = vmatprep.mubr.msk.bf16.mxu0 %vm8487_vm0, %v8486_v1 }
0x231b   :  { %v3812_v24 = vpop.f32.mrb[140].mxu0 }
0x231c   :  { %v7777_v27 = vpop.f32.mrb[141].mxu0 }
0x231d   :  { %v3815_v12 = vpop.f32.mrb[142].mxu0 }
0x231e   :  { %v3819_v29 = vpack.c.bf16 %v3815_v12, %v3812_v24  ;;  %v7778_v31 = vpop.f32.mrb[143].mxu0 }
0x2320   :  { %7784 = vmatmul.mubr.msk.bf16.vlgmr.msra.gmra.mrb[144].mxu1 %vm236_vm1, %v3819_v29 }
0x2321   :  { %7811 = vmatprep.mubr.msk.bf16.mxu1 %vm8487_vm0, %v8486_v1  ;;  %7796 = vmatpush3.bf16.msra.mxu1 %v8159_v10 }
0x2322   :  { %7797 = vmatprep.subr.bf16.mxu1 %v8486_v1 }
0x2325   :  { %7798 = vmatpush3.bf16.msra.mxu1 %v8160_v56 }
0x2326   :  { %7799 = vmatprep.subr.bf16.mxu1 %v8486_v1 }
0x2329   :  { %7800 = vmatpush3.bf16.msra.mxu1 %v8161_v62 }
0x232a   :  { %7801 = vmatprep.subr.bf16.mxu1 %v8486_v1 }
0x232d   :  { %7802 = vmatpush3.bf16.msra.mxu1 %v8162_v3 }
0x232e   :  { %7803 = vmatprep.subr.bf16.mxu1 %v8486_v1 }
0x2331   :  { %7804 = vmatpush3.bf16.msra.mxu1 %v8163_v2 }
0x2332   :  { %7805 = vmatprep.subr.bf16.mxu1 %v8486_v1 }
0x2335   :  { %7806 = vmatpush3.bf16.msra.mxu1 %v8164_v6  ;;  %v6737_v6 = vld [vmem:[%s10324_s11 + $0x28] ss:$0 sm:$0xff] }
0x2336   :  { %7807 = vmatprep.subr.bf16.mxu1 %v8486_v1 }
0x2339   :  { %7808 = vmatpush3.bf16.msra.mxu1 %v8165_v8 }
0x233a   :  { %7809 = vmatprep.subr.bf16.mxu1 %v8486_v1 }
0x233d   :  { %7810 = vmatpush3.bf16.msra.mxu1 %v8166_v14 }
0x233e   :  { %7845 = vmatprep.subr.bf16.mxu1 %v8486_v1 }
0x23f3   :  { %v3878_v23 = vpop.f32.mrb[144].mxu1 }
0x23f4   :  { %v3879_v38 = vadd.f32 %v6692_v32, %v3878_v23  ;;  %v7785_v16 = vpop.f32.mrb[145].mxu1 }
0x23f5   :  { %v3881_v35 = vpop.f32.mrb[146].mxu1 }
0x23f6   :  { %v3882_v40 = vadd.f32 %v6692_v32, %v3881_v35  ;;  %v7786_v18 = vpop.f32.mrb[147].mxu1  ;;  %v3885_v42 = vadd.f32 %v3879_v38, %v9618_v11 }
0x23f8   :  { %v3889_v41 = vsel %vm236_vm1, %v3885_v42, 0.0  ;;  %v3886_v43 = vadd.f32 %v3882_v40, %v9620_v13  ;;  %v8157_v13 = vld [vmem:[%s10323_s10 + $0x20] sm:$0xff]  }
0x23f9   :  { %3890 = vadd.xlane.f32.xlu0 %v3889_v41  ;;  %7788 = vmatpush3.bf16.msra.mxu0 %v8157_v13 }
0x23fa   :  { %v3892_v47 = vsel %vm236_vm1, %v3886_v43, 0.0  ;;  %7789 = vmatprep.subr.bf16.mxu0 %v8486_v1 }
0x23fb   :  { %3893 = vadd.xlane.f32.xlu1 %v3892_v47 }
0x23fd   :  { %7790 = vmatpush3.bf16.msra.mxu0 %v8158_v49 }
0x23fe   :  { %7815 = vmatprep.subr.bf16.mxu0 %v8486_v1 }
0x2486   :  { %v3891_v26 = vpop.xlane.xlu0 %3890 }
0x2487   :  { %v3895_v30 = vmul.f32 0.03125, %v3891_v26 }
0x2488   :  { %v3894_v33 = vpop.xlane.xlu1 %3893 }
0x2489   :  { %v3897_v51 = vsub.f32 %v3885_v42, %v3895_v30  ;;  %v3896_v25 = vmul.f32 0.03125, %v3894_v33 }
0x248b   :  { %v3898_v53 = vsub.f32 %v3886_v43, %v3896_v25  ;;  %v3899_v54 = vmul.f32 %v3897_v51, %v3897_v51  ;;  %v6726_v25 = vld [vmem:[%s10324_s11 + $0x27] ss:$0 sm:$0xff] }
0x248d   :  { %v3901_v55 = vsel %vm236_vm1, %v3899_v54, 0.0  ;;  %v3900_v36 = vmul.f32 %v3898_v53, %v3898_v53 }
0x248e   :  { %3902 = vadd.xlane.f32.xlu0 %v3901_v55 }
0x248f   :  { %v3904_v11 = vsel %vm236_vm1, %v3900_v36, 0.0 }
0x2490   :  { %3905 = vadd.xlane.f32.xlu1 %v3904_v11 }
0x251b   :  { %v3903_v58 = vpop.xlane.xlu0 %3902 }
0x251c   :  { %v3907_v34 = vmul.f32 0.03125, %v3903_v58 }
0x251d   :  { %v3906_v37 = vpop.xlane.xlu1 %3905 }
0x251e   :  { %v3909_v45 = vadd.f32 1e-12, %v3907_v34  ;;  %v3908_v48 = vmul.f32 0.03125, %v3906_v37 }
0x2520   :  { %8387 = vrsqrt.f32 %v3909_v45  ;;  %v3910_v59 = vadd.f32 1e-12, %v3908_v48 }
0x2522   :  { %8389 = vrsqrt.f32 %v3910_v59 }
0x252a   :  { %v8388_v46 = vpop.eup %8387 }
0x252b   :  { %v3913_v52 = vmul.f32 %v8388_v46, %v3897_v51 }
0x252c   :  { %v8390_v28 = vpop.eup %8389 }
0x252d   :  { %v3919_v63 = vmul.f32 %v6698_v60, %v3913_v52  ;;  %v3914_v44 = vmul.f32 %v8390_v28, %v3898_v53 }
0x252f   :  { %v3920_v5 = vmul.f32 %v6698_v60, %v3914_v44  ;;  %v9705_v7 = vadd.f32 %v6699_v0, %v3919_v63 }
0x2531   :  { %v9707_v9 = vadd.f32 %v6699_v0, %v3920_v5  ;;  %v8167_v5 = vld [vmem:[%s10322_s9 + $0x180] sm:$0xff]  }
0x2533   :  { %v3927_v50 = vpack.c.bf16 %v9707_v9, %v9705_v7 }
0x2535   :  { %7792 = vmatmul.mubr.msk.bf16.vlgmr.msra.gmra.mrb[144].mxu0 %vm236_vm1, %v3927_v50 }
0x2536   :  { %7819 = vmatprep.mubr.msk.bf16.mxu0 %vm8487_vm0, %v8486_v1  ;;  %7816 = vmatpush3.bf16.msra.mxu0 %v8167_v5 }
0x2537   :  { %7817 = vmatprep.subr.bf16.mxu0 %v8486_v1 }
0x2608   :  { %v3987_v4 = vpop.f32.mrb[144].mxu0 }
0x2609   :  { %v3988_v19 = vadd.f32 %v6705_v15, %v3987_v4  ;;  %v7793_v20 = vpop.f32.mrb[145].mxu0 }
0x260a   :  { %v3990_v21 = vpop.f32.mrb[146].mxu0 }
0x260b   :  { %v3994_v17 = vmul.f32 %v3988_v19, %v3988_v19  ;;  %v3991_v24 = vadd.f32 %v6705_v15, %v3990_v21  ;;  %v7794_v27 = vpop.f32.mrb[147].mxu0 }
0x260d   :  { %v3996_v12 = vmul.f32 %v3994_v17, %v3988_v19  ;;  %v3995_v29 = vmul.f32 %v3991_v24, %v3991_v24 }
0x260f   :  { %v3998_v31 = vmul.f32 0.044715, %v3996_v12  ;;  %v3997_v32 = vmul.f32 %v3995_v29, %v3991_v24  ;;  %v8170_v12 = vld [vmem:[%s10322_s9 + $0x198] sm:$0xff]   ;;  %v8171_v29 = vld [vmem:[%s10322_s9 + $0x1a0] sm:$0xff]  }
0x2611   :  { %v4000_v23 = vadd.f32 %v3998_v31, %v3988_v19  ;;  %v3999_v38 = vmul.f32 0.044715, %v3997_v32  ;;  %v8172_v31 = vld [vmem:[%s10322_s9 + $0x1a8] sm:$0xff]   ;;  %v6744_v32 = vld [vmem:[%s10324_s11 + $0x30] ss:$0 sm:$0xff] }
0x2613   :  { %v4002_v16 = vmul.f32 0.7978846, %v4000_v23  ;;  %v4001_v35 = vadd.f32 %v3999_v38, %v3991_v24 }
0x2615   :  { %8391 = vtanh.f32 %v4002_v16  ;;  %v4003_v40 = vmul.f32 0.7978846, %v4001_v35 }
0x2617   :  { %8393 = vtanh.f32 %v4003_v40 }
0x261f   :  { %v8392_v18 = vpop.eup %8391 }
0x2620   :  { %v4006_v42 = vadd.f32 1.0, %v8392_v18 }
0x2621   :  { %v8394_v41 = vpop.eup %8393 }
0x2622   :  { %v4008_v43 = vmul.f32 0.5, %v4006_v42  ;;  %v4007_v47 = vadd.f32 1.0, %v8394_v41  ;;  %v6753_v41 = vld [vmem:[%s10324_s11 + $0x31] ss:$0 sm:$0xff] }
0x2624   :  { %v4009_v26 = vmul.f32 0.5, %v4007_v47  ;;  %v4010_v30 = vmul.f32 %v4008_v43, %v3988_v19  ;;  %v6738_v19 = vld [vmem:[%s10324_s11 + $0x29] ss:$0 sm:$0xff] }
0x2626   :  { %v4011_v33 = vmul.f32 %v4009_v26, %v3991_v24  ;;  %v8169_v24 = vld [vmem:[%s10322_s9 + $0x190] sm:$0xff]  }
0x2628   :  { %v4012_v51 = vpack.c.bf16 %v4011_v33, %v4010_v30 }
0x262a   :  { %7812 = vmatmul.mubr.bf16.vlgmr.msra.gmra.mrb[148].mxu1 %v4012_v51 }
0x262b   :  { %7847 = vmatprep.mubr.msk.bf16.mxu1 %vm8487_vm0, %v8486_v1 }
0x26fd   :  { %v4116_v53 = vpop.f32.mrb[148].mxu1 }
0x26fe   :  { %v4117_v54 = vadd.f32 %v6726_v25, %v4116_v53  ;;  %v7813_v55 = vpop.f32.mrb[149].mxu1 }
0x26ff   :  { %v4119_v36 = vpop.f32.mrb[150].mxu1 }
0x2700   :  { %v4120_v11 = vadd.f32 %v6726_v25, %v4119_v36  ;;  %v7814_v13 = vpop.f32.mrb[151].mxu1  ;;  %v4123_v49 = vadd.f32 %v4117_v54, %v9705_v7  ;;  %v8168_v7 = vld [vmem:[%s10322_s9 + $0x188] sm:$0xff]   ;;  %v6762_v54 = vld [vmem:[%s10324_s11 + $0x32] ss:$0 sm:$0xff] }
0x2701   :  { %7818 = vmatpush3.bf16.msra.mxu0 %v8168_v7 }
0x2702   :  { %v4127_v58 = vsel %vm236_vm1, %v4123_v49, 0.0  ;;  %v4124_v34 = vadd.f32 %v4120_v11, %v9707_v9  ;;  %7823 = vmatprep.subr.bf16.mxu0 %v8486_v1 }
0x2703   :  { %4128 = vadd.xlane.f32.xlu0 %v4127_v58 }
0x2704   :  { %v4130_v37 = vsel %vm236_vm1, %v4124_v34, 0.0 }
0x2705   :  { %4131 = vadd.xlane.f32.xlu1 %v4130_v37 }
0x2790   :  { %v4129_v45 = vpop.xlane.xlu0 %4128 }
0x2791   :  { %v4133_v48 = vmul.f32 0.03125, %v4129_v45  ;;  %v9823_v45 = vld [vmem:[%s10321_s8] sm:$0xff] }
0x2792   :  { %v4132_v59 = vpop.xlane.xlu1 %4131 }
0x2793   :  { %v4135_v46 = vsub.f32 %v4123_v49, %v4133_v48  ;;  %v4134_v60 = vmul.f32 0.03125, %v4132_v59 }
0x2795   :  { %v4136_v52 = vsub.f32 %v4124_v34, %v4134_v60  ;;  %v4137_v28 = vmul.f32 %v4135_v46, %v4135_v46 }
0x2797   :  { %v4139_v63 = vsel %vm236_vm1, %v4137_v28, 0.0  ;;  %v4138_v44 = vmul.f32 %v4136_v52, %v4136_v52 }
0x2798   :  { %4140 = vadd.xlane.f32.xlu0 %v4139_v63 }
0x2799   :  { %v4142_v0 = vsel %vm236_vm1, %v4138_v44, 0.0 }
0x279a   :  { %4143 = vadd.xlane.f32.xlu1 %v4142_v0 }
0x2825   :  { %v4141_v9 = vpop.xlane.xlu0 %4140 }
0x2826   :  { %v4145_v50 = vmul.f32 0.03125, %v4141_v9 }
0x2827   :  { %v4144_v10 = vpop.xlane.xlu1 %4143 }
0x2828   :  { %v4147_v56 = vadd.f32 1e-12, %v4145_v50  ;;  %v4146_v62 = vmul.f32 0.03125, %v4144_v10  ;;  %v8173_v50 = vld [vmem:[%s10322_s9 + $0x1b0] sm:$0xff]  }
0x282a   :  { %8395 = vrsqrt.f32 %v4147_v56  ;;  %v4148_v3 = vadd.f32 1e-12, %v4146_v62 }
0x282c   :  { %8397 = vrsqrt.f32 %v4148_v3 }
0x2834   :  { %v8396_v2 = vpop.eup %8395 }
0x2835   :  { %v4151_v8 = vmul.f32 %v8396_v2, %v4135_v46 }
0x2836   :  { %v8398_v14 = vpop.eup %8397 }
0x2837   :  { %v4157_v15 = vmul.f32 %v6737_v6, %v4151_v8  ;;  %v4152_v4 = vmul.f32 %v8398_v14, %v4136_v52  ;;  %v9829_v52 = vld [vmem:[%s10321_s8 + $0x8] sm:$0xff]  ;;  %v8174_v14 = vld [vmem:[%s10322_s9 + $0x1b8] sm:$0xff]  }
0x2839   :  { %v4158_v20 = vmul.f32 %v6737_v6, %v4152_v4  ;;  %v9774_v21 = vadd.f32 %v6738_v19, %v4157_v15 }
0x283b   :  { %v9776_v17 = vadd.f32 %v6738_v19, %v4158_v20 }
0x283d   :  { %v4165_v27 = vpack.c.bf16 %v9776_v17, %v9774_v21 }
0x283f   :  { %7820 = vmatmul.mubr.msk.bf16.vlgmr.msra.gmra.mrb[148].mxu0 %vm236_vm1, %v4165_v27 }
0x2840   :  { %7824 = vmatpush3.bf16.msra.mxu0 %v8169_v24  ;;  %7827 = vmatprep.mubr.msk.bf16.mxu0 %vm8487_vm0, %v8486_v1 }
0x2841   :  { %7825 = vmatprep.subr.bf16.mxu0 %v8486_v1 }
0x2844   :  { %7826 = vmatpush3.bf16.msra.mxu0 %v8170_v12 }
0x2845   :  { %7831 = vmatprep.subr.bf16.mxu0 %v8486_v1 }
0x2847   :  { %7828 = vmatmul.mubr.msk.bf16.vlgmr.msra.gmra.mrb[152].mxu0 %vm236_vm1, %v4165_v27 }
0x2848   :  { %7832 = vmatpush3.bf16.msra.mxu0 %v8171_v29  ;;  %7835 = vmatprep.mubr.msk.bf16.mxu0 %vm8487_vm0, %v8486_v1 }
0x2849   :  { %7833 = vmatprep.subr.bf16.mxu0 %v8486_v1 }
0x284c   :  { %7834 = vmatpush3.bf16.msra.mxu0 %v8172_v31 }
0x284d   :  { %7839 = vmatprep.subr.bf16.mxu0 %v8486_v1 }
0x284f   :  { %7836 = vmatmul.mubr.msk.bf16.vlgmr.msra.gmra.mrb[156].mxu0 %vm236_vm1, %v4165_v27  ;;  %v6773_v27 = vld [vmem:[%s10324_s11 + $0x33] ss:$0 sm:$0xff] }
0x2850   :  { %7841 = vmatprep.mubr.msk.bf16.mxu0 %vm8487_vm0, %v8486_v1 }
0x2912   :  { %v4226_v23 = vpop.f32.mrb[148].mxu0 }
0x2913   :  { %v7821_v38 = vpop.f32.mrb[149].mxu0  ;;  %v4227_v35 = vadd.f32 %v6744_v32, %v4226_v23 }
0x2914   :  { %v4229_v16 = vpop.f32.mrb[150].mxu0 }
0x2915   :  { %v4230_v40 = vadd.f32 %v6744_v32, %v4229_v16  ;;  %v7822_v18 = vpop.f32.mrb[151].mxu0 }
0x2917   :  { %v4357_v42 = vpack.c.bf16 %v4230_v40, %v4227_v35 }
0x291a   :  { %v4288_v43 = vpop.f32.mrb[152].mxu0 }
0x291b   :  { %v7829_v47 = vpop.f32.mrb[153].mxu0  ;;  %v4289_v30 = vadd.f32 %v6753_v41, %v4288_v43 }
0x291c   :  { %v4291_v26 = vpop.f32.mrb[154].mxu0 }
0x291d   :  { %v4292_v33 = vadd.f32 %v6753_v41, %v4291_v26  ;;  %v7830_v51 = vpop.f32.mrb[155].mxu0 }
0x291f   :  { %v4358_v25 = vpack.c.bf16 %v4292_v33, %v4289_v30 }
0x2921   :  { %v4363_v53 = vsel %vm236_vm1, %v4358_v25, 0 }
0x2922   :  { %v4350_v55 = vpop.f32.mrb[156].mxu0  ;;  %7840 = vmatpush3.bf16.xpose.msra.mxu0 %v4363_v53  ;;  %v8176_v53 = vld [vmem:[%s10323_s10 + $0x38] sm:$0xff]  }
0x2923   :  { %v7837_v36 = vpop.f32.mrb[157].mxu0  ;;  %7851 = vmatprep.subr.bf16.mxu0 %v8486_v1  ;;  %v4351_v13 = vadd.f32 %v6762_v54, %v4350_v55 }
0x2924   :  { %v4353_v11 = vpop.f32.mrb[158].mxu0 }
0x2925   :  { %v4354_v49 = vadd.f32 %v6762_v54, %v4353_v11  ;;  %v7838_v58 = vpop.f32.mrb[159].mxu0 }
0x2927   :  { %v4421_v34 = vpack.c.bf16 %v4354_v49, %v4351_v13 }
0x2929   :  { %7842 = vmatmul.mubr.msk.bf16.vlgmr.msra.gmra.mrb[160].mxu0 %vm236_vm1, %v4357_v42  ;;  %7846 = vmatpush3.bf16.msra.mxu1 %v4421_v34  ;;  %v6779_v34 = vld [vmem:[%s10324_s11 + $0x34] ss:$0 sm:$0xff] }
0x292a   :  { %7855 = vmatprep.mubr.msk.bf16.mxu0 %vm8487_vm0, %v8486_v1  ;;  %7859 = vmatprep.subr.bf16.mxu1 %v8486_v1 }
0x292b   :  { %7852 = vmatpush3.bf16.msra.mxu0 %v8173_v50  ;;  %v8180_v50 = vld [vmem:[%s10322_s9 + $0x1d8] sm:$0xff]  }
0x292c   :  { %7853 = vmatprep.subr.bf16.mxu0 %v8486_v1 }
0x292f   :  { %7854 = vmatpush3.bf16.msra.mxu0 %v8174_v14 }
0x2930   :  { %7867 = vmatprep.subr.bf16.mxu0 %v8486_v1 }
0x29fc   :  { %v4399_v37 = vpop.f32.mrb[160].mxu0 }
0x29fd   :  { %v4400_v48 = vadd.f32 %v9823_v45, %v4399_v37  ;;  %v7843_v59 = vpop.f32.mrb[161].mxu0 }
0x29fe   :  { %v4402_v46 = vpop.f32.mrb[162].mxu0 }
0x29ff   :  { %v4406_v60 = vmul.f32 1.442695, %v4400_v48  ;;  %v4403_v28 = vadd.f32 %v9829_v52, %v4402_v46  ;;  %v7844_v63 = vpop.f32.mrb[163].mxu0 }
0x2a01   :  { %8399 = vpow2.f32 %v4406_v60  ;;  %v4408_v44 = vmul.f32 1.442695, %v4403_v28  ;;  %v6780_v60 = vld [vmem:[%s10324_s11 + $0x35] ss:$0 sm:$0xff] }
0x2a03   :  { %8401 = vpow2.f32 %v4408_v44 }
0x2a0b   :  { %v8400_v0 = vpop.eup %8399 }
0x2a0c   :  { %v4410_v5 = vsel %vm2469_vm3, %v8400_v0, 0.0 }
0x2a0d   :  { %v8402_v7 = vpop.eup %8401  ;;  %4411 = vadd.xlane.f32.xlu0 %v4410_v5  ;;  %v8177_v5 = vld [vmem:[%s10322_s9 + $0x1c0] sm:$0xff]  }
0x2a0e   :  { %v4413_v9 = vsel %vm2469_vm3, %v8402_v7, 0.0 }
0x2a0f   :  { %4414 = vadd.xlane.f32.xlu1 %v4413_v9  ;;  %v8179_v9 = vld [vmem:[%s10322_s9 + $0x1d0] sm:$0xff]  }
0x2a9a   :  { %v4412_v10 = vpop.xlane.xlu0 %4411 }
0x2a9b   :  { %8403 = vrcp.f32 %v4412_v10  ;;  %v8181_v10 = vld [vmem:[%s10322_s9 + $0x1e0] sm:$0xff]  }
0x2a9c   :  { %v4415_v56 = vpop.xlane.xlu1 %4414 }
0x2a9d   :  { %8405 = vrcp.f32 %v4415_v56  ;;  %v8182_v56 = vld [vmem:[%s10322_s9 + $0x1e8] sm:$0xff]  }
0x2aa5   :  { %v8404_v62 = vpop.eup %8403 }
0x2aa6   :  { %v4418_v2 = vmul.f32 %v8404_v62, %v8400_v0  ;;  %v8183_v62 = vld [vmem:[%s10322_s9 + $0x1f0] sm:$0xff]  }
0x2aa7   :  { %v8406_v3 = vpop.eup %8405 }
0x2aa8   :  { %v4419_v6 = vmul.f32 %v8406_v3, %v8402_v7  ;;  %v8178_v7 = vld [vmem:[%s10322_s9 + $0x1c8] sm:$0xff]   ;;  %v8184_v3 = vld [vmem:[%s10322_s9 + $0x1f8] sm:$0xff]  }
0x2aaa   :  { %v4420_v8 = vpack.c.bf16 %v4419_v6, %v4418_v2  ;;  %v6786_v2 = vld [vmem:[%s10324_s11 + $0x36] ss:$0 sm:$0xff] }
0x2aac   :  { %7848 = vmatmul.mubr.msk.bf16.vlgmr.msra.gmra.mrb[152].mxu1 %vm2469_vm3, %v4420_v8 }
0x2aad   :  { %7863 = vmatprep.mubr.msk.bf16.mxu1 %vm8487_vm0, %v8486_v1 }
0x2b7f   :  { %v4459_v15 = vpop.f32.mrb[152].mxu1 }
0x2b80   :  { %v7849_v4 = vpop.f32.mrb[153].mxu1 }
0x2b81   :  { %v4462_v19 = vpop.f32.mrb[154].mxu1 }
0x2b82   :  { %v4466_v20 = vpack.c.bf16 %v4462_v19, %v4459_v15  ;;  %v7850_v24 = vpop.f32.mrb[155].mxu1 }
0x2b84   :  { %7856 = vmatmul.mubr.msk.bf16.vlgmr.msra.gmra.mrb[164].mxu0 %vm236_vm1, %v4466_v20 }
0x2b85   :  { %7883 = vmatprep.mubr.msk.bf16.mxu0 %vm8487_vm0, %v8486_v1  ;;  %7868 = vmatpush3.bf16.msra.mxu0 %v8177_v5 }
0x2b86   :  { %7869 = vmatprep.subr.bf16.mxu0 %v8486_v1 }
0x2b89   :  { %7870 = vmatpush3.bf16.msra.mxu0 %v8178_v7 }
0x2b8a   :  { %7871 = vmatprep.subr.bf16.mxu0 %v8486_v1 }
0x2b8d   :  { %7872 = vmatpush3.bf16.msra.mxu0 %v8179_v9 }
0x2b8e   :  { %7873 = vmatprep.subr.bf16.mxu0 %v8486_v1 }
0x2b91   :  { %7874 = vmatpush3.bf16.msra.mxu0 %v8180_v50 }
0x2b92   :  { %7875 = vmatprep.subr.bf16.mxu0 %v8486_v1 }
0x2b95   :  { %7876 = vmatpush3.bf16.msra.mxu0 %v8181_v10 }
0x2b96   :  { %7877 = vmatprep.subr.bf16.mxu0 %v8486_v1 }
0x2b99   :  { %7878 = vmatpush3.bf16.msra.mxu0 %v8182_v56 }
0x2b9a   :  { %7879 = vmatprep.subr.bf16.mxu0 %v8486_v1 }
0x2b9d   :  { %7880 = vmatpush3.bf16.msra.mxu0 %v8183_v62 }
0x2b9e   :  { %7881 = vmatprep.subr.bf16.mxu0 %v8486_v1 }
0x2ba1   :  { %7882 = vmatpush3.bf16.msra.mxu0 %v8184_v3  ;;  %v6818_v3 = vld [vmem:[%s10324_s11 + $0x38] ss:$0 sm:$0xff] }
0x2ba2   :  { %7917 = vmatprep.subr.bf16.mxu0 %v8486_v1 }
0x2c57   :  { %v4525_v12 = vpop.f32.mrb[164].mxu0 }
0x2c58   :  { %v4526_v29 = vadd.f32 %v6773_v27, %v4525_v12  ;;  %v7857_v31 = vpop.f32.mrb[165].mxu0 }
0x2c59   :  { %v4528_v32 = vpop.f32.mrb[166].mxu0 }
0x2c5a   :  { %v4529_v23 = vadd.f32 %v6773_v27, %v4528_v32  ;;  %v7858_v38 = vpop.f32.mrb[167].mxu0  ;;  %v4532_v16 = vadd.f32 %v4526_v29, %v9774_v21 }
0x2c5c   :  { %v4536_v35 = vsel %vm236_vm1, %v4532_v16, 0.0  ;;  %v4533_v40 = vadd.f32 %v4529_v23, %v9776_v17  ;;  %v8175_v17 = vld [vmem:[%s10323_s10 + $0x30] sm:$0xff]  }
0x2c5d   :  { %4537 = vadd.xlane.f32.xlu0 %v4536_v35  ;;  %7860 = vmatpush3.bf16.msra.mxu1 %v8175_v17 }
0x2c5e   :  { %v4539_v18 = vsel %vm236_vm1, %v4533_v40, 0.0  ;;  %7861 = vmatprep.subr.bf16.mxu1 %v8486_v1 }
0x2c5f   :  { %4540 = vadd.xlane.f32.xlu1 %v4539_v18 }
0x2c61   :  { %7862 = vmatpush3.bf16.msra.mxu1 %v8176_v53 }
0x2c62   :  { %7887 = vmatprep.subr.bf16.mxu1 %v8486_v1 }
0x2cea   :  { %v4538_v42 = vpop.xlane.xlu0 %4537 }
0x2ceb   :  { %v4542_v41 = vmul.f32 0.03125, %v4538_v42 }
0x2cec   :  { %v4541_v43 = vpop.xlane.xlu1 %4540 }
0x2ced   :  { %v4544_v47 = vsub.f32 %v4532_v16, %v4542_v41  ;;  %v4543_v26 = vmul.f32 0.03125, %v4541_v43 }
0x2cef   :  { %v4545_v30 = vsub.f32 %v4533_v40, %v4543_v26  ;;  %v4546_v33 = vmul.f32 %v4544_v47, %v4544_v47 }
0x2cf1   :  { %v4548_v51 = vsel %vm236_vm1, %v4546_v33, 0.0  ;;  %v4547_v25 = vmul.f32 %v4545_v30, %v4545_v30  ;;  %v6807_v33 = vld [vmem:[%s10324_s11 + $0x37] ss:$0 sm:$0xff] }
0x2cf2   :  { %4549 = vadd.xlane.f32.xlu0 %v4548_v51 }
0x2cf3   :  { %v4551_v21 = vsel %vm236_vm1, %v4547_v25, 0.0 }
0x2cf4   :  { %4552 = vadd.xlane.f32.xlu1 %v4551_v21 }
0x2d7f   :  { %v4550_v54 = vpop.xlane.xlu0 %4549 }
0x2d80   :  { %v4554_v55 = vmul.f32 0.03125, %v4550_v54 }
0x2d81   :  { %v4553_v36 = vpop.xlane.xlu1 %4552 }
0x2d82   :  { %v4556_v11 = vadd.f32 1e-12, %v4554_v55  ;;  %v4555_v13 = vmul.f32 0.03125, %v4553_v36 }
0x2d84   :  { %8407 = vrsqrt.f32 %v4556_v11  ;;  %v4557_v49 = vadd.f32 1e-12, %v4555_v13 }
0x2d86   :  { %8409 = vrsqrt.f32 %v4557_v49 }
0x2d8e   :  { %v8408_v58 = vpop.eup %8407 }
0x2d8f   :  { %v4560_v37 = vmul.f32 %v8408_v58, %v4544_v47 }
0x2d90   :  { %v8410_v48 = vpop.eup %8409 }
0x2d91   :  { %v4566_v59 = vmul.f32 %v6779_v34, %v4560_v37  ;;  %v4561_v46 = vmul.f32 %v8410_v48, %v4545_v30 }
0x2d93   :  { %v4567_v28 = vmul.f32 %v6779_v34, %v4561_v46  ;;  %v9871_v63 = vadd.f32 %v6780_v60, %v4566_v59 }
0x2d95   :  { %v9873_v44 = vadd.f32 %v6780_v60, %v4567_v28 }
0x2d97   :  { %v4574_v0 = vpack.c.bf16 %v9873_v44, %v9871_v63 }
0x2d99   :  { %7864 = vmatmul.mubr.msk.bf16.vlgmr.msra.gmra.mrb[156].mxu1 %vm236_vm1, %v4574_v0  ;;  %v8186_v0 = vld [vmem:[%s10322_s9 + $0x208] sm:$0xff]  }
0x2d9a   :  { %7891 = vmatprep.mubr.msk.bf16.mxu1 %vm8487_vm0, %v8486_v1 }
0x2e6c   :  { %v4634_v6 = vpop.f32.mrb[156].mxu1 }
0x2e6d   :  { %v4635_v8 = vadd.f32 %v6786_v2, %v4634_v6  ;;  %v7865_v14 = vpop.f32.mrb[157].mxu1 }
0x2e6e   :  { %v4637_v15 = vpop.f32.mrb[158].mxu1 }
0x2e6f   :  { %v4641_v4 = vmul.f32 %v4635_v8, %v4635_v8  ;;  %v4638_v19 = vadd.f32 %v6786_v2, %v4637_v15  ;;  %v7866_v20 = vpop.f32.mrb[159].mxu1  ;;  %v6819_v15 = vld [vmem:[%s10324_s11 + $0x39] ss:$0 sm:$0xff] }
0x2e71   :  { %v4643_v24 = vmul.f32 %v4641_v4, %v4635_v8  ;;  %v4642_v27 = vmul.f32 %v4638_v19, %v4638_v19 }
0x2e73   :  { %v4645_v12 = vmul.f32 0.044715, %v4643_v24  ;;  %v4644_v29 = vmul.f32 %v4642_v27, %v4638_v19  ;;  %v8187_v24 = vld [vmem:[%s10322_s9 + $0x210] sm:$0xff]  }
0x2e75   :  { %v4647_v31 = vadd.f32 %v4645_v12, %v4635_v8  ;;  %v4646_v32 = vmul.f32 0.044715, %v4644_v29  ;;  %v8188_v12 = vld [vmem:[%s10322_s9 + $0x218] sm:$0xff]   ;;  %v8189_v29 = vld [vmem:[%s10322_s9 + $0x220] sm:$0xff]  }
0x2e77   :  { %v4649_v23 = vmul.f32 0.7978846, %v4647_v31  ;;  %v4648_v38 = vadd.f32 %v4646_v32, %v4638_v19  ;;  %v8190_v31 = vld [vmem:[%s10322_s9 + $0x228] sm:$0xff]   ;;  %v6825_v32 = vld [vmem:[%s10324_s11 + $0x40] ss:$0 sm:$0xff] }
0x2e79   :  { %8411 = vtanh.f32 %v4649_v23  ;;  %v4650_v16 = vmul.f32 0.7978846, %v4648_v38 }
0x2e7b   :  { %8413 = vtanh.f32 %v4650_v16 }
0x2e83   :  { %v8412_v35 = vpop.eup %8411 }
0x2e84   :  { %v4653_v40 = vadd.f32 1.0, %v8412_v35 }
0x2e85   :  { %v8414_v18 = vpop.eup %8413 }
0x2e86   :  { %v4655_v42 = vmul.f32 0.5, %v4653_v40  ;;  %v4654_v41 = vadd.f32 1.0, %v8414_v18 }
0x2e88   :  { %v4656_v43 = vmul.f32 0.5, %v4654_v41  ;;  %v4657_v47 = vmul.f32 %v4655_v42, %v4635_v8  ;;  %v6834_v41 = vld [vmem:[%s10324_s11 + $0x41] ss:$0 sm:$0xff] }
0x2e8a   :  { %v4658_v26 = vmul.f32 %v4656_v43, %v4638_v19 }
0x2e8c   :  { %v4659_v30 = vpack.c.bf16 %v4658_v26, %v4657_v47 }
0x2e8e   :  { %7884 = vmatmul.mubr.bf16.vlgmr.msra.gmra.mrb[168].mxu0 %v4659_v30 }
0x2e8f   :  { %7919 = vmatprep.mubr.msk.bf16.mxu0 %vm8487_vm0, %v8486_v1 }
0x2f61   :  { %v4763_v51 = vpop.f32.mrb[168].mxu0 }
0x2f62   :  { %v4764_v25 = vadd.f32 %v6807_v33, %v4763_v51  ;;  %v7885_v21 = vpop.f32.mrb[169].mxu0 }
0x2f63   :  { %v4766_v17 = vpop.f32.mrb[170].mxu0 }
0x2f64   :  { %v4767_v53 = vadd.f32 %v6807_v33, %v4766_v17  ;;  %v7886_v54 = vpop.f32.mrb[171].mxu0  ;;  %v4770_v55 = vadd.f32 %v4764_v25, %v9871_v63  ;;  %v6843_v17 = vld [vmem:[%s10324_s11 + $0x42] ss:$0 sm:$0xff] }
0x2f66   :  { %v4774_v36 = vsel %vm236_vm1, %v4770_v55, 0.0  ;;  %v4771_v11 = vadd.f32 %v4767_v53, %v9873_v44  ;;  %v8185_v44 = vld [vmem:[%s10322_s9 + $0x200] sm:$0xff]  }
0x2f67   :  { %4775 = vadd.xlane.f32.xlu0 %v4774_v36  ;;  %7888 = vmatpush3.bf16.msra.mxu1 %v8185_v44 }
0x2f68   :  { %v4777_v13 = vsel %vm236_vm1, %v4771_v11, 0.0  ;;  %7889 = vmatprep.subr.bf16.mxu1 %v8486_v1 }
0x2f69   :  { %4778 = vadd.xlane.f32.xlu1 %v4777_v13 }
0x2f6b   :  { %7890 = vmatpush3.bf16.msra.mxu1 %v8186_v0 }
0x2f6c   :  { %7895 = vmatprep.subr.bf16.mxu1 %v8486_v1 }
0x2ff4   :  { %v4776_v49 = vpop.xlane.xlu0 %4775 }
0x2ff5   :  { %v4780_v58 = vmul.f32 0.03125, %v4776_v49 }
0x2ff6   :  { %v4779_v34 = vpop.xlane.xlu1 %4778 }
0x2ff7   :  { %v4782_v37 = vsub.f32 %v4770_v55, %v4780_v58  ;;  %v4781_v48 = vmul.f32 0.03125, %v4779_v34 }
0x2ff9   :  { %v4783_v59 = vsub.f32 %v4771_v11, %v4781_v48  ;;  %v4784_v46 = vmul.f32 %v4782_v37, %v4782_v37 }
0x2ffb   :  { %v4786_v60 = vsel %vm236_vm1, %v4784_v46, 0.0  ;;  %v4785_v28 = vmul.f32 %v4783_v59, %v4783_v59 }
0x2ffc   :  { %4787 = vadd.xlane.f32.xlu0 %v4786_v60 }
0x2ffd   :  { %v4789_v63 = vsel %vm236_vm1, %v4785_v28, 0.0 }
0x2ffe   :  { %4790 = vadd.xlane.f32.xlu1 %v4789_v63 }
0x3089   :  { %v4788_v5 = vpop.xlane.xlu0 %4787 }
0x308a   :  { %v4792_v7 = vmul.f32 0.03125, %v4788_v5 }
0x308b   :  { %v4791_v9 = vpop.xlane.xlu1 %4790 }
0x308c   :  { %v4794_v50 = vadd.f32 1e-12, %v4792_v7  ;;  %v4793_v10 = vmul.f32 0.03125, %v4791_v9  ;;  %v8191_v7 = vld [vmem:[%s10322_s9 + $0x230] sm:$0xff]  }
0x308e   :  { %8415 = vrsqrt.f32 %v4794_v50  ;;  %v4795_v56 = vadd.f32 1e-12, %v4793_v10 }
0x3090   :  { %8417 = vrsqrt.f32 %v4795_v56 }
0x3098   :  { %v8416_v62 = vpop.eup %8415 }
0x3099   :  { %v4798_v2 = vmul.f32 %v8416_v62, %v4782_v37 }
0x309a   :  { %v8418_v6 = vpop.eup %8417 }
0x309b   :  { %v4804_v8 = vmul.f32 %v6818_v3, %v4798_v2  ;;  %v4799_v14 = vmul.f32 %v8418_v6, %v4783_v59  ;;  %v8192_v6 = vld [vmem:[%s10322_s9 + $0x238] sm:$0xff]  }
0x309d   :  { %v4805_v4 = vmul.f32 %v6818_v3, %v4799_v14  ;;  %v9940_v19 = vadd.f32 %v6819_v15, %v4804_v8 }
0x309f   :  { %v9942_v20 = vadd.f32 %v6819_v15, %v4805_v4 }
0x30a1   :  { %v4812_v27 = vpack.c.bf16 %v9942_v20, %v9940_v19 }
0x30a3   :  { %7892 = vmatmul.mubr.msk.bf16.vlgmr.msra.gmra.mrb[160].mxu1 %vm236_vm1, %v4812_v27 }
0x30a4   :  { %7896 = vmatpush3.bf16.msra.mxu1 %v8187_v24  ;;  %7899 = vmatprep.mubr.msk.bf16.mxu1 %vm8487_vm0, %v8486_v1 }
0x30a5   :  { %7897 = vmatprep.subr.bf16.mxu1 %v8486_v1 }
0x30a8   :  { %7898 = vmatpush3.bf16.msra.mxu1 %v8188_v12 }
0x30a9   :  { %7903 = vmatprep.subr.bf16.mxu1 %v8486_v1 }
0x30ab   :  { %7900 = vmatmul.mubr.msk.bf16.vlgmr.msra.gmra.mrb[164].mxu1 %vm236_vm1, %v4812_v27 }
0x30ac   :  { %7904 = vmatpush3.bf16.msra.mxu1 %v8189_v29  ;;  %7907 = vmatprep.mubr.msk.bf16.mxu1 %vm8487_vm0, %v8486_v1 }
0x30ad   :  { %7905 = vmatprep.subr.bf16.mxu1 %v8486_v1 }
0x30b0   :  { %7906 = vmatpush3.bf16.msra.mxu1 %v8190_v31 }
0x30b1   :  { %7911 = vmatprep.subr.bf16.mxu1 %v8486_v1 }
0x30b3   :  { %7908 = vmatmul.mubr.msk.bf16.vlgmr.msra.gmra.mrb[168].mxu1 %vm236_vm1, %v4812_v27  ;;  %v6854_v27 = vld [vmem:[%s10324_s11 + $0x43] ss:$0 sm:$0xff] }
0x30b4   :  { %7913 = vmatprep.mubr.msk.bf16.mxu1 %vm8487_vm0, %v8486_v1 }
0x3176   :  { %v4873_v23 = vpop.f32.mrb[160].mxu1 }
0x3177   :  { %v7893_v38 = vpop.f32.mrb[161].mxu1  ;;  %v4874_v35 = vadd.f32 %v6825_v32, %v4873_v23 }
0x3178   :  { %v4876_v16 = vpop.f32.mrb[162].mxu1 }
0x3179   :  { %v4877_v40 = vadd.f32 %v6825_v32, %v4876_v16  ;;  %v7894_v18 = vpop.f32.mrb[163].mxu1 }
0x317b   :  { %v5004_v42 = vpack.c.bf16 %v4877_v40, %v4874_v35 }
0x317e   :  { %v4935_v43 = vpop.f32.mrb[164].mxu1 }
0x317f   :  { %v7901_v47 = vpop.f32.mrb[165].mxu1  ;;  %v4936_v30 = vadd.f32 %v6834_v41, %v4935_v43 }
0x3180   :  { %v4938_v26 = vpop.f32.mrb[166].mxu1 }
0x3181   :  { %v4939_v33 = vadd.f32 %v6834_v41, %v4938_v26  ;;  %v7902_v51 = vpop.f32.mrb[167].mxu1 }
0x3183   :  { %v5005_v25 = vpack.c.bf16 %v4939_v33, %v4936_v30 }
0x3185   :  { %v5010_v21 = vsel %vm236_vm1, %v5005_v25, 0 }
0x3186   :  { %v4997_v53 = vpop.f32.mrb[168].mxu1  ;;  %7912 = vmatpush3.bf16.xpose.msra.mxu1 %v5010_v21  ;;  %v8194_v21 = vld [vmem:[%s10323_s10 + $0x48] sm:$0xff]  }
0x3187   :  { %v7909_v54 = vpop.f32.mrb[169].mxu1  ;;  %7923 = vmatprep.subr.bf16.mxu1 %v8486_v1  ;;  %v4998_v36 = vadd.f32 %v6843_v17, %v4997_v53 }
0x3188   :  { %v5000_v55 = vpop.f32.mrb[170].mxu1 }
0x3189   :  { %v5001_v11 = vadd.f32 %v6843_v17, %v5000_v55  ;;  %v7910_v13 = vpop.f32.mrb[171].mxu1 }
0x318b   :  { %v5068_v49 = vpack.c.bf16 %v5001_v11, %v4998_v36 }
0x318d   :  { %7914 = vmatmul.mubr.msk.bf16.vlgmr.msra.gmra.mrb[172].mxu1 %vm236_vm1, %v5004_v42  ;;  %7918 = vmatpush3.bf16.msra.mxu0 %v5068_v49  ;;  %v6860_v49 = vld [vmem:[%s10324_s11 + $0x44] ss:$0 sm:$0xff] }
0x318e   :  { %7927 = vmatprep.mubr.msk.bf16.mxu1 %vm8487_vm0, %v8486_v1  ;;  %7931 = vmatprep.subr.bf16.mxu0 %v8486_v1 }
0x318f   :  { %7924 = vmatpush3.bf16.msra.mxu1 %v8191_v7  ;;  %v8198_v7 = vld [vmem:[%s10322_s9 + $0x258] sm:$0xff]  }
0x3190   :  { %7925 = vmatprep.subr.bf16.mxu1 %v8486_v1 }
0x3193   :  { %7926 = vmatpush3.bf16.msra.mxu1 %v8192_v6 }
0x3194   :  { %7939 = vmatprep.subr.bf16.mxu1 %v8486_v1 }
0x3260   :  { %v5046_v58 = vpop.f32.mrb[172].mxu1 }
0x3261   :  { %v5047_v34 = vadd.f32 %v9823_v45, %v5046_v58  ;;  %v7915_v37 = vpop.f32.mrb[173].mxu1 }
0x3262   :  { %v5049_v48 = vpop.f32.mrb[174].mxu1 }
0x3263   :  { %v5053_v59 = vmul.f32 1.442695, %v5047_v34  ;;  %v5050_v46 = vadd.f32 %v9829_v52, %v5049_v48  ;;  %v7916_v60 = vpop.f32.mrb[175].mxu1 }
0x3265   :  { %8419 = vpow2.f32 %v5053_v59  ;;  %v5055_v28 = vmul.f32 1.442695, %v5050_v46  ;;  %v6861_v59 = vld [vmem:[%s10324_s11 + $0x45] ss:$0 sm:$0xff] }
0x3267   :  { %8421 = vpow2.f32 %v5055_v28 }
0x326f   :  { %v8420_v63 = vpop.eup %8419 }
0x3270   :  { %v5057_v44 = vsel %vm2469_vm3, %v8420_v63, 0.0 }
0x3271   :  { %v8422_v0 = vpop.eup %8421  ;;  %5058 = vadd.xlane.f32.xlu0 %v5057_v44  ;;  %v8195_v44 = vld [vmem:[%s10322_s9 + $0x240] sm:$0xff]  }
0x3272   :  { %v5060_v5 = vsel %vm2469_vm3, %v8422_v0, 0.0 }
0x3273   :  { %5061 = vadd.xlane.f32.xlu1 %v5060_v5  ;;  %v8197_v5 = vld [vmem:[%s10322_s9 + $0x250] sm:$0xff]  }
0x32fe   :  { %v5059_v9 = vpop.xlane.xlu0 %5058 }
0x32ff   :  { %8423 = vrcp.f32 %v5059_v9  ;;  %v8199_v9 = vld [vmem:[%s10322_s9 + $0x260] sm:$0xff]  }
0x3300   :  { %v5062_v50 = vpop.xlane.xlu1 %5061 }
0x3301   :  { %8425 = vrcp.f32 %v5062_v50  ;;  %v8200_v50 = vld [vmem:[%s10322_s9 + $0x268] sm:$0xff]  }
0x3309   :  { %v8424_v10 = vpop.eup %8423 }
0x330a   :  { %v5065_v62 = vmul.f32 %v8424_v10, %v8420_v63  ;;  %v8201_v10 = vld [vmem:[%s10322_s9 + $0x270] sm:$0xff]  }
0x330b   :  { %v8426_v56 = vpop.eup %8425 }
0x330c   :  { %v5066_v3 = vmul.f32 %v8426_v56, %v8422_v0  ;;  %v8196_v0 = vld [vmem:[%s10322_s9 + $0x248] sm:$0xff]   ;;  %v8202_v56 = vld [vmem:[%s10322_s9 + $0x278] sm:$0xff]  }
0x330e   :  { %v5067_v2 = vpack.c.bf16 %v5066_v3, %v5065_v62  ;;  %v6867_v62 = vld [vmem:[%s10324_s11 + $0x46] ss:$0 sm:$0xff] }
0x3310   :  { %7920 = vmatmul.mubr.msk.bf16.vlgmr.msra.gmra.mrb[172].mxu0 %vm2469_vm3, %v5067_v2 }
0x3311   :  { %7935 = vmatprep.mubr.msk.bf16.mxu0 %vm8487_vm0, %v8486_v1 }
0x33e3   :  { %v5106_v8 = vpop.f32.mrb[172].mxu0 }
0x33e4   :  { %v7921_v14 = vpop.f32.mrb[173].mxu0 }
0x33e5   :  { %v5109_v15 = vpop.f32.mrb[174].mxu0 }
0x33e6   :  { %v5113_v4 = vpack.c.bf16 %v5109_v15, %v5106_v8  ;;  %v7922_v24 = vpop.f32.mrb[175].mxu0 }
0x33e8   :  { %7928 = vmatmul.mubr.msk.bf16.vlgmr.msra.gmra.mrb[176].mxu1 %vm236_vm1, %v5113_v4 }
0x33e9   :  { %7955 = vmatprep.mubr.msk.bf16.mxu1 %vm8487_vm0, %v8486_v1  ;;  %7940 = vmatpush3.bf16.msra.mxu1 %v8195_v44 }
0x33ea   :  { %7941 = vmatprep.subr.bf16.mxu1 %v8486_v1 }
0x33ed   :  { %7942 = vmatpush3.bf16.msra.mxu1 %v8196_v0 }
0x33ee   :  { %7943 = vmatprep.subr.bf16.mxu1 %v8486_v1 }
0x33f1   :  { %7944 = vmatpush3.bf16.msra.mxu1 %v8197_v5 }
0x33f2   :  { %7945 = vmatprep.subr.bf16.mxu1 %v8486_v1 }
0x33f5   :  { %7946 = vmatpush3.bf16.msra.mxu1 %v8198_v7 }
0x33f6   :  { %7947 = vmatprep.subr.bf16.mxu1 %v8486_v1 }
0x33f9   :  { %7948 = vmatpush3.bf16.msra.mxu1 %v8199_v9 }
0x33fa   :  { %7949 = vmatprep.subr.bf16.mxu1 %v8486_v1 }
0x33fd   :  { %7950 = vmatpush3.bf16.msra.mxu1 %v8200_v50 }
0x33fe   :  { %7951 = vmatprep.subr.bf16.mxu1 %v8486_v1 }
0x3401   :  { %7952 = vmatpush3.bf16.msra.mxu1 %v8201_v10 }
0x3402   :  { %7953 = vmatprep.subr.bf16.mxu1 %v8486_v1 }
0x3405   :  { %7954 = vmatpush3.bf16.msra.mxu1 %v8202_v56  ;;  %v6899_v56 = vld [vmem:[%s10324_s11 + $0x48] ss:$0 sm:$0xff] }
0x3406   :  { %7989 = vmatprep.subr.bf16.mxu1 %v8486_v1 }
0x34bb   :  { %v5172_v12 = vpop.f32.mrb[176].mxu1 }
0x34bc   :  { %v5173_v29 = vadd.f32 %v6854_v27, %v5172_v12  ;;  %v7929_v31 = vpop.f32.mrb[177].mxu1 }
0x34bd   :  { %v5175_v32 = vpop.f32.mrb[178].mxu1 }
0x34be   :  { %v5176_v23 = vadd.f32 %v6854_v27, %v5175_v32  ;;  %v7930_v38 = vpop.f32.mrb[179].mxu1  ;;  %v5179_v16 = vadd.f32 %v5173_v29, %v9940_v19 }
0x34c0   :  { %v5183_v35 = vsel %vm236_vm1, %v5179_v16, 0.0  ;;  %v5180_v40 = vadd.f32 %v5176_v23, %v9942_v20  ;;  %v8193_v20 = vld [vmem:[%s10323_s10 + $0x40] sm:$0xff]  }
0x34c1   :  { %5184 = vadd.xlane.f32.xlu0 %v5183_v35  ;;  %7932 = vmatpush3.bf16.msra.mxu0 %v8193_v20 }
0x34c2   :  { %v5186_v18 = vsel %vm236_vm1, %v5180_v40, 0.0  ;;  %7933 = vmatprep.subr.bf16.mxu0 %v8486_v1 }
0x34c3   :  { %5187 = vadd.xlane.f32.xlu1 %v5186_v18 }
0x34c5   :  { %7934 = vmatpush3.bf16.msra.mxu0 %v8194_v21 }
0x34c6   :  { %7959 = vmatprep.subr.bf16.mxu0 %v8486_v1 }
0x354e   :  { %v5185_v42 = vpop.xlane.xlu0 %5184 }
0x354f   :  { %v5189_v41 = vmul.f32 0.03125, %v5185_v42 }
0x3550   :  { %v5188_v43 = vpop.xlane.xlu1 %5187 }
0x3551   :  { %v5191_v47 = vsub.f32 %v5179_v16, %v5189_v41  ;;  %v5190_v26 = vmul.f32 0.03125, %v5188_v43 }
0x3553   :  { %v5192_v30 = vsub.f32 %v5180_v40, %v5190_v26  ;;  %v5193_v33 = vmul.f32 %v5191_v47, %v5191_v47 }
0x3555   :  { %v5195_v51 = vsel %vm236_vm1, %v5193_v33, 0.0  ;;  %v5194_v25 = vmul.f32 %v5192_v30, %v5192_v30  ;;  %v6888_v33 = vld [vmem:[%s10324_s11 + $0x47] ss:$0 sm:$0xff] }
0x3556   :  { %5196 = vadd.xlane.f32.xlu0 %v5195_v51 }
0x3557   :  { %v5198_v19 = vsel %vm236_vm1, %v5194_v25, 0.0 }
0x3558   :  { %5199 = vadd.xlane.f32.xlu1 %v5198_v19 }
0x35e3   :  { %v5197_v17 = vpop.xlane.xlu0 %5196 }
0x35e4   :  { %v5201_v53 = vmul.f32 0.03125, %v5197_v17 }
0x35e5   :  { %v5200_v54 = vpop.xlane.xlu1 %5199 }
0x35e6   :  { %v5203_v55 = vadd.f32 1e-12, %v5201_v53  ;;  %v5202_v36 = vmul.f32 0.03125, %v5200_v54 }
0x35e8   :  { %8427 = vrsqrt.f32 %v5203_v55  ;;  %v5204_v11 = vadd.f32 1e-12, %v5202_v36 }
0x35ea   :  { %8429 = vrsqrt.f32 %v5204_v11 }
0x35f2   :  { %v8428_v13 = vpop.eup %8427 }
0x35f3   :  { %v5207_v58 = vmul.f32 %v8428_v13, %v5191_v47 }
0x35f4   :  { %v8430_v34 = vpop.eup %8429 }
0x35f5   :  { %v5213_v37 = vmul.f32 %v6860_v49, %v5207_v58  ;;  %v5208_v48 = vmul.f32 %v8430_v34, %v5192_v30 }
0x35f7   :  { %v5214_v46 = vmul.f32 %v6860_v49, %v5208_v48  ;;  %v10027_v60 = vadd.f32 %v6861_v59, %v5213_v37 }
0x35f9   :  { %v10029_v28 = vadd.f32 %v6861_v59, %v5214_v46 }
0x35fb   :  { %v5221_v63 = vpack.c.bf16 %v10029_v28, %v10027_v60 }
0x35fd   :  { %7936 = vmatmul.mubr.msk.bf16.vlgmr.msra.gmra.mrb[176].mxu0 %vm236_vm1, %v5221_v63  ;;  %v8204_v63 = vld [vmem:[%s10322_s9 + $0x288] sm:$0xff]  }
0x35fe   :  { %7963 = vmatprep.mubr.msk.bf16.mxu0 %vm8487_vm0, %v8486_v1 }
0x36d0   :  { %v5281_v3 = vpop.f32.mrb[176].mxu0 }
0x36d1   :  { %v5282_v2 = vadd.f32 %v6867_v62, %v5281_v3  ;;  %v7937_v6 = vpop.f32.mrb[177].mxu0 }
0x36d2   :  { %v5284_v8 = vpop.f32.mrb[178].mxu0 }
0x36d3   :  { %v5288_v14 = vmul.f32 %v5282_v2, %v5282_v2  ;;  %v5285_v15 = vadd.f32 %v6867_v62, %v5284_v8  ;;  %v7938_v4 = vpop.f32.mrb[179].mxu0  ;;  %v6900_v8 = vld [vmem:[%s10324_s11 + $0x49] ss:$0 sm:$0xff] }
0x36d5   :  { %v5290_v24 = vmul.f32 %v5288_v14, %v5282_v2  ;;  %v5289_v27 = vmul.f32 %v5285_v15, %v5285_v15 }
0x36d7   :  { %v5292_v12 = vmul.f32 0.044715, %v5290_v24  ;;  %v5291_v29 = vmul.f32 %v5289_v27, %v5285_v15  ;;  %v8205_v24 = vld [vmem:[%s10322_s9 + $0x290] sm:$0xff]  }
0x36d9   :  { %v5294_v31 = vadd.f32 %v5292_v12, %v5282_v2  ;;  %v5293_v32 = vmul.f32 0.044715, %v5291_v29  ;;  %v8206_v12 = vld [vmem:[%s10322_s9 + $0x298] sm:$0xff]   ;;  %v8207_v29 = vld [vmem:[%s10322_s9 + $0x2a0] sm:$0xff]  }
0x36db   :  { %v5296_v23 = vmul.f32 0.7978846, %v5294_v31  ;;  %v5295_v38 = vadd.f32 %v5293_v32, %v5285_v15  ;;  %v8208_v31 = vld [vmem:[%s10322_s9 + $0x2a8] sm:$0xff]   ;;  %v6906_v32 = vld [vmem:[%s10324_s11 + $0x50] ss:$0 sm:$0xff] }
0x36dd   :  { %8431 = vtanh.f32 %v5296_v23  ;;  %v5297_v16 = vmul.f32 0.7978846, %v5295_v38 }
0x36df   :  { %8433 = vtanh.f32 %v5297_v16 }
0x36e7   :  { %v8432_v35 = vpop.eup %8431 }
0x36e8   :  { %v5300_v40 = vadd.f32 1.0, %v8432_v35 }
0x36e9   :  { %v8434_v18 = vpop.eup %8433 }
0x36ea   :  { %v5302_v42 = vmul.f32 0.5, %v5300_v40  ;;  %v5301_v41 = vadd.f32 1.0, %v8434_v18 }
0x36ec   :  { %v5303_v43 = vmul.f32 0.5, %v5301_v41  ;;  %v5304_v47 = vmul.f32 %v5302_v42, %v5282_v2  ;;  %v6915_v41 = vld [vmem:[%s10324_s11 + $0x51] ss:$0 sm:$0xff] }
0x36ee   :  { %v5305_v26 = vmul.f32 %v5303_v43, %v5285_v15 }
0x36f0   :  { %v5306_v30 = vpack.c.bf16 %v5305_v26, %v5304_v47 }
0x36f2   :  { %7956 = vmatmul.mubr.bf16.vlgmr.msra.gmra.mrb[180].mxu1 %v5306_v30 }
0x36f3   :  { %7991 = vmatprep.mubr.msk.bf16.mxu1 %vm8487_vm0, %v8486_v1 }
0x37c5   :  { %v5410_v51 = vpop.f32.mrb[180].mxu1 }
0x37c6   :  { %v5411_v25 = vadd.f32 %v6888_v33, %v5410_v51  ;;  %v7957_v19 = vpop.f32.mrb[181].mxu1 }
0x37c7   :  { %v5413_v20 = vpop.f32.mrb[182].mxu1 }
0x37c8   :  { %v5417_v21 = vadd.f32 %v5411_v25, %v10027_v60  ;;  %v5414_v17 = vadd.f32 %v6888_v33, %v5413_v20  ;;  %v7958_v53 = vpop.f32.mrb[183].mxu1  ;;  %v6924_v20 = vld [vmem:[%s10324_s11 + $0x52] ss:$0 sm:$0xff] }
0x37ca   :  { %v5418_v54 = vadd.f32 %v5414_v17, %v10029_v28  ;;  %v5421_v55 = vsel %vm236_vm1, %v5417_v21, 0.0  ;;  %v8203_v28 = vld [vmem:[%s10322_s9 + $0x280] sm:$0xff]  }
0x37cb   :  { %5422 = vadd.xlane.f32.xlu0 %v5421_v55  ;;  %7960 = vmatpush3.bf16.msra.mxu0 %v8203_v28 }
0x37cc   :  { %v5424_v36 = vsel %vm236_vm1, %v5418_v54, 0.0  ;;  %7961 = vmatprep.subr.bf16.mxu0 %v8486_v1 }
0x37cd   :  { %5425 = vadd.xlane.f32.xlu1 %v5424_v36 }
0x37cf   :  { %7962 = vmatpush3.bf16.msra.mxu0 %v8204_v63 }
0x37d0   :  { %7967 = vmatprep.subr.bf16.mxu0 %v8486_v1 }
0x3858   :  { %v5423_v11 = vpop.xlane.xlu0 %5422 }
0x3859   :  { %v5427_v13 = vmul.f32 0.03125, %v5423_v11 }
0x385a   :  { %v5426_v49 = vpop.xlane.xlu1 %5425 }
0x385b   :  { %v5429_v58 = vsub.f32 %v5417_v21, %v5427_v13  ;;  %v5428_v34 = vmul.f32 0.03125, %v5426_v49 }
0x385d   :  { %v5430_v37 = vsub.f32 %v5418_v54, %v5428_v34  ;;  %v5431_v48 = vmul.f32 %v5429_v58, %v5429_v58 }
0x385f   :  { %v5433_v59 = vsel %vm236_vm1, %v5431_v48, 0.0  ;;  %v5432_v46 = vmul.f32 %v5430_v37, %v5430_v37 }
0x3860   :  { %5434 = vadd.xlane.f32.xlu0 %v5433_v59 }
0x3861   :  { %v5436_v60 = vsel %vm236_vm1, %v5432_v46, 0.0 }
0x3862   :  { %5437 = vadd.xlane.f32.xlu1 %v5436_v60 }
0x38ed   :  { %v5435_v44 = vpop.xlane.xlu0 %5434 }
0x38ee   :  { %v5439_v0 = vmul.f32 0.03125, %v5435_v44 }
0x38ef   :  { %v5438_v5 = vpop.xlane.xlu1 %5437 }
0x38f0   :  { %v5441_v7 = vadd.f32 1e-12, %v5439_v0  ;;  %v5440_v9 = vmul.f32 0.03125, %v5438_v5 }
0x38f2   :  { %8435 = vrsqrt.f32 %v5441_v7  ;;  %v5442_v50 = vadd.f32 1e-12, %v5440_v9 }
0x38f4   :  { %8437 = vrsqrt.f32 %v5442_v50 }
0x38fc   :  { %v8436_v10 = vpop.eup %8435 }
0x38fd   :  { %v5445_v62 = vmul.f32 %v8436_v10, %v5429_v58 }
0x38fe   :  { %v8438_v3 = vpop.eup %8437 }
0x38ff   :  { %v5451_v2 = vmul.f32 %v6899_v56, %v5445_v62  ;;  %v5446_v6 = vmul.f32 %v8438_v3, %v5430_v37 }
0x3901   :  { %v5452_v14 = vmul.f32 %v6899_v56, %v5446_v6  ;;  %v10096_v15 = vadd.f32 %v6900_v8, %v5451_v2  ;;  %v8210_v56 = vld [vmem:[%s10322_s9 + $0x2b8] sm:$0xff]  }
0x3903   :  { %v10098_v4 = vadd.f32 %v6900_v8, %v5452_v14  ;;  %v6935_v14 = vld [vmem:[%s10324_s11 + $0x53] ss:$0 sm:$0xff] }
0x3905   :  { %v5459_v27 = vpack.c.bf16 %v10098_v4, %v10096_v15 }
0x3907   :  { %7964 = vmatmul.mubr.msk.bf16.vlgmr.msra.gmra.mrb[180].mxu0 %vm236_vm1, %v5459_v27 }
0x3908   :  { %7968 = vmatpush3.bf16.msra.mxu0 %v8205_v24  ;;  %7971 = vmatprep.mubr.msk.bf16.mxu0 %vm8487_vm0, %v8486_v1 }
0x3909   :  { %7969 = vmatprep.subr.bf16.mxu0 %v8486_v1 }
0x390c   :  { %7970 = vmatpush3.bf16.msra.mxu0 %v8206_v12 }
0x390d   :  { %7975 = vmatprep.subr.bf16.mxu0 %v8486_v1 }
0x390f   :  { %7972 = vmatmul.mubr.msk.bf16.vlgmr.msra.gmra.mrb[184].mxu0 %vm236_vm1, %v5459_v27 }
0x3910   :  { %7976 = vmatpush3.bf16.msra.mxu0 %v8207_v29  ;;  %7979 = vmatprep.mubr.msk.bf16.mxu0 %vm8487_vm0, %v8486_v1 }
0x3911   :  { %7977 = vmatprep.subr.bf16.mxu0 %v8486_v1 }
0x3914   :  { %7978 = vmatpush3.bf16.msra.mxu0 %v8208_v31 }
0x3915   :  { %7983 = vmatprep.subr.bf16.mxu0 %v8486_v1 }
0x3917   :  { %7980 = vmatmul.mubr.msk.bf16.vlgmr.msra.gmra.mrb[188].mxu0 %vm236_vm1, %v5459_v27 }
0x3918   :  { %7985 = vmatprep.mubr.msk.bf16.mxu0 %vm8487_vm0, %v8486_v1 }
0x39da   :  { %v5520_v23 = vpop.f32.mrb[180].mxu0 }
0x39db   :  { %v7965_v38 = vpop.f32.mrb[181].mxu0  ;;  %v5521_v35 = vadd.f32 %v6906_v32, %v5520_v23 }
0x39dc   :  { %v5523_v16 = vpop.f32.mrb[182].mxu0 }
0x39dd   :  { %v5524_v40 = vadd.f32 %v6906_v32, %v5523_v16  ;;  %v7966_v18 = vpop.f32.mrb[183].mxu0 }
0x39df   :  { %v5651_v42 = vpack.c.bf16 %v5524_v40, %v5521_v35 }
0x39e2   :  { %v5582_v43 = vpop.f32.mrb[184].mxu0 }
0x39e3   :  { %v7973_v47 = vpop.f32.mrb[185].mxu0  ;;  %v5583_v30 = vadd.f32 %v6915_v41, %v5582_v43 }
0x39e4   :  { %v5585_v26 = vpop.f32.mrb[186].mxu0 }
0x39e5   :  { %v5586_v33 = vadd.f32 %v6915_v41, %v5585_v26  ;;  %v7974_v51 = vpop.f32.mrb[187].mxu0 }
0x39e7   :  { %v5652_v25 = vpack.c.bf16 %v5586_v33, %v5583_v30 }
0x39e9   :  { %v5657_v19 = vsel %vm236_vm1, %v5652_v25, 0 }
0x39ea   :  { %v5644_v21 = vpop.f32.mrb[188].mxu0  ;;  %7984 = vmatpush3.bf16.xpose.msra.mxu0 %v5657_v19 }
0x39eb   :  { %v7981_v17 = vpop.f32.mrb[189].mxu0  ;;  %7995 = vmatprep.subr.bf16.mxu0 %v8486_v1  ;;  %v5645_v54 = vadd.f32 %v6924_v20, %v5644_v21 }
0x39ec   :  { %v5647_v53 = vpop.f32.mrb[190].mxu0 }
0x39ed   :  { %v5648_v55 = vadd.f32 %v6924_v20, %v5647_v53  ;;  %v7982_v36 = vpop.f32.mrb[191].mxu0 }
0x39ef   :  { %v5715_v11 = vpack.c.bf16 %v5648_v55, %v5645_v54 }
0x39f1   :  { %7986 = vmatmul.mubr.msk.bf16.vlgmr.msra.gmra.mrb[192].mxu0 %vm236_vm1, %v5651_v42  ;;  %7990 = vmatpush3.bf16.msra.mxu1 %v5715_v11  ;;  %v6527_v42 = vld [vmem:[%s10319_s6 + $0x17] ss:$0 sm:$0xff] }
0x39f2   :  { %7999 = vmatprep.mubr.msk.bf16.mxu0 %vm8487_vm0, %v8486_v1  ;;  %8003 = vmatprep.subr.bf16.mxu1 %v8486_v1  ;;  %v2131_v43 = vadd.f32 %v6527_v42, %v9340_v61  ;;  %v2122_v26 = vadd.f32 %v6527_v42, %v9338_v57 }
0x39f4   :  { %v10173_v33 = vadd.f32 %v2131_v43, %v9189_v39  ;;  %v10177_v19 = vadd.f32 %v2122_v26, %v9174_v22  ;;  %v8211_v39 = vld [vmem:[%s10323_s10 + $0x50] sm:$0xff]   ;;  %v8212_v22 = vld [vmem:[%s10323_s10 + $0x58] sm:$0xff]  }
0x39f6   :  { %v2147_v61 = vsel %vm236_vm1, %v10173_v33, 0.0  ;;  %v2144_v57 = vsel %vm236_vm1, %v10177_v19, 0.0 }
0x3ac4   :  { %v5693_v13 = vpop.f32.mrb[192].mxu0 }
0x3ac5   :  { %v5694_v49 = vadd.f32 %v9823_v45, %v5693_v13  ;;  %v7987_v58 = vpop.f32.mrb[193].mxu0  ;;  %v8209_v45 = vld [vmem:[%s10322_s9 + $0x2b0] sm:$0xff]  }
0x3ac6   :  { %v5696_v34 = vpop.f32.mrb[194].mxu0  ;;  %7996 = vmatpush3.bf16.msra.mxu0 %v8209_v45  ;;  %v6941_v13 = vld [vmem:[%s10324_s11 + $0x54] ss:$0 sm:$0xff] }
0x3ac7   :  { %v5700_v37 = vmul.f32 1.442695, %v5694_v49  ;;  %v5697_v48 = vadd.f32 %v9829_v52, %v5696_v34  ;;  %v7988_v59 = vpop.f32.mrb[195].mxu0  ;;  %7997 = vmatprep.subr.bf16.mxu0 %v8486_v1  ;;  %v8215_v45 = vld [vmem:[%s10322_s9 + $0x2d0] sm:$0xff]  }
0x3ac9   :  { %8439 = vpow2.f32 %v5700_v37  ;;  %v5702_v46 = vmul.f32 1.442695, %v5697_v48  ;;  %v6942_v48 = vld [vmem:[%s10324_s11 + $0x55] ss:$0 sm:$0xff] }
0x3aca   :  { %7998 = vmatpush3.bf16.msra.mxu0 %v8210_v56 }
0x3acb   :  { %8441 = vpow2.f32 %v5702_v46  ;;  %8011 = vmatprep.subr.bf16.mxu0 %v8486_v1 }
0x3ad3   :  { %v8440_v60 = vpop.eup %8439 }
0x3ad4   :  { %v5704_v28 = vsel %vm2469_vm3, %v8440_v60, 0.0 }
0x3ad5   :  { %v8442_v63 = vpop.eup %8441  ;;  %5705 = vadd.xlane.f32.xlu0 %v5704_v28 }
0x3ad6   :  { %v5707_v44 = vsel %vm2469_vm3, %v8442_v63, 0.0 }
0x3ad7   :  { %5708 = vadd.xlane.f32.xlu1 %v5707_v44  ;;  %v8214_v44 = vld [vmem:[%s10322_s9 + $0x2c8] sm:$0xff]  }
0x3b62   :  { %v5706_v52 = vpop.xlane.xlu0 %5705 }
0x3b63   :  { %8443 = vrcp.f32 %v5706_v52  ;;  %v8216_v52 = vld [vmem:[%s10322_s9 + $0x2d8] sm:$0xff]  }
0x3b64   :  { %v5709_v0 = vpop.xlane.xlu1 %5708 }
0x3b65   :  { %8445 = vrcp.f32 %v5709_v0  ;;  %v8217_v0 = vld [vmem:[%s10322_s9 + $0x2e0] sm:$0xff]  }
0x3b6d   :  { %v8444_v5 = vpop.eup %8443 }
0x3b6e   :  { %v5712_v9 = vmul.f32 %v8444_v5, %v8440_v60  ;;  %v8218_v5 = vld [vmem:[%s10322_s9 + $0x2e8] sm:$0xff]  }
0x3b6f   :  { %v8446_v7 = vpop.eup %8445 }
0x3b70   :  { %v5713_v50 = vmul.f32 %v8446_v7, %v8442_v63  ;;  %v8213_v63 = vld [vmem:[%s10322_s9 + $0x2c0] sm:$0xff]   ;;  %v8219_v7 = vld [vmem:[%s10322_s9 + $0x2f0] sm:$0xff]  }
0x3b72   :  { %v5714_v10 = vpack.c.bf16 %v5713_v50, %v5712_v9  ;;  %v8220_v9 = vld [vmem:[%s10322_s9 + $0x2f8] sm:$0xff]   ;;  %v6948_v50 = vld [vmem:[%s10324_s11 + $0x56] ss:$0 sm:$0xff] }
0x3b74   :  { %7992 = vmatmul.mubr.msk.bf16.vlgmr.msra.gmra.mrb[184].mxu1 %vm2469_vm3, %v5714_v10 }
0x3b75   :  { %8007 = vmatprep.mubr.msk.bf16.mxu1 %vm8487_vm0, %v8486_v1  ;;  %8004 = vmatpush3.bf16.msra.mxu1 %v8211_v39 }
0x3b76   :  { %8005 = vmatprep.subr.bf16.mxu1 %v8486_v1 }
0x3b79   :  { %8006 = vmatpush3.bf16.msra.mxu1 %v8212_v22 }
0x3b7a   :  { %8031 = vmatprep.subr.bf16.mxu1 %v8486_v1 }
0x3c47   :  { %v5753_v62 = vpop.f32.mrb[184].mxu1 }
0x3c48   :  { %v7993_v3 = vpop.f32.mrb[185].mxu1 }
0x3c49   :  { %v5756_v2 = vpop.f32.mrb[186].mxu1 }
0x3c4a   :  { %v5760_v6 = vpack.c.bf16 %v5756_v2, %v5753_v62  ;;  %v7994_v8 = vpop.f32.mrb[187].mxu1 }
0x3c4c   :  { %8000 = vmatmul.mubr.msk.bf16.vlgmr.msra.gmra.mrb[196].mxu0 %vm236_vm1, %v5760_v6 }
0x3c4d   :  { %8027 = vmatprep.mubr.msk.bf16.mxu0 %vm8487_vm0, %v8486_v1  ;;  %8012 = vmatpush3.bf16.msra.mxu0 %v8213_v63 }
0x3c4e   :  { %8013 = vmatprep.subr.bf16.mxu0 %v8486_v1 }
0x3c51   :  { %8014 = vmatpush3.bf16.msra.mxu0 %v8214_v44 }
0x3c52   :  { %8015 = vmatprep.subr.bf16.mxu0 %v8486_v1 }
0x3c55   :  { %8016 = vmatpush3.bf16.msra.mxu0 %v8215_v45 }
0x3c56   :  { %8017 = vmatprep.subr.bf16.mxu0 %v8486_v1 }
0x3c59   :  { %8018 = vmatpush3.bf16.msra.mxu0 %v8216_v52 }
0x3c5a   :  { %8019 = vmatprep.subr.bf16.mxu0 %v8486_v1 }
0x3c5d   :  { %8020 = vmatpush3.bf16.msra.mxu0 %v8217_v0 }
0x3c5e   :  { %8021 = vmatprep.subr.bf16.mxu0 %v8486_v1 }
0x3c61   :  { %8022 = vmatpush3.bf16.msra.mxu0 %v8218_v5 }
0x3c62   :  { %8023 = vmatprep.subr.bf16.mxu0 %v8486_v1 }
0x3c65   :  { %8024 = vmatpush3.bf16.msra.mxu0 %v8219_v7 }
0x3c66   :  { %8025 = vmatprep.subr.bf16.mxu0 %v8486_v1 }
0x3c69   :  { %8026 = vmatpush3.bf16.msra.mxu0 %v8220_v9 }
0x3d1f   :  { %v5819_v24 = vpop.f32.mrb[196].mxu0 }
0x3d20   :  { %v5820_v27 = vadd.f32 %v6935_v14, %v5819_v24  ;;  %v8001_v12 = vpop.f32.mrb[197].mxu0 }
0x3d21   :  { %v5822_v29 = vpop.f32.mrb[198].mxu0 }
0x3d22   :  { %v5826_v31 = vadd.f32 %v5820_v27, %v10096_v15  ;;  %v5823_v32 = vadd.f32 %v6935_v14, %v5822_v29  ;;  %v8002_v23 = vpop.f32.mrb[199].mxu0 }
0x3d24   :  { %v5827_v38 = vadd.f32 %v5823_v32, %v10098_v4  ;;  %v5830_v16 = vsel %vm236_vm1, %v5826_v31, 0.0 }
0x3d25   :  { %5831 = vadd.xlane.f32.xlu0 %v5830_v16 }
0x3d26   :  { %v5833_v35 = vsel %vm236_vm1, %v5827_v38, 0.0 }
0x3d27   :  { %5834 = vadd.xlane.f32.xlu1 %v5833_v35 }
0x3db2   :  { %v5832_v40 = vpop.xlane.xlu0 %5831 }
0x3db3   :  { %v5836_v18 = vmul.f32 0.03125, %v5832_v40 }
0x3db4   :  { %v5835_v41 = vpop.xlane.xlu1 %5834 }
0x3db5   :  { %v5838_v15 = vsub.f32 %v5826_v31, %v5836_v18  ;;  %v5837_v47 = vmul.f32 0.03125, %v5835_v41 }
0x3db7   :  { %v5839_v4 = vsub.f32 %v5827_v38, %v5837_v47  ;;  %v5840_v30 = vmul.f32 %v5838_v15, %v5838_v15 }
0x3db9   :  { %v5842_v51 = vsel %vm236_vm1, %v5840_v30, 0.0  ;;  %v5841_v25 = vmul.f32 %v5839_v4, %v5839_v4 }
0x3dba   :  { %5843 = vadd.xlane.f32.xlu0 %v5842_v51  ;;  %v6969_v51 = vld [vmem:[%s10324_s11 + $0x57] ss:$0 sm:$0xff] }
0x3dbb   :  { %v5845_v20 = vsel %vm236_vm1, %v5841_v25, 0.0 }
0x3dbc   :  { %5846 = vadd.xlane.f32.xlu1 %v5845_v20 }
0x3dbe   :  { %2148 = vadd.xlane.f32.xlu0 %v2147_v61 }
0x3dc0   :  { %2145 = vadd.xlane.f32.xlu1 %v2144_v57 }
0x3e47   :  { %v5844_v21 = vpop.xlane.xlu0 %5843 }
0x3e48   :  { %v5848_v17 = vmul.f32 0.03125, %v5844_v21 }
0x3e49   :  { %v5847_v53 = vpop.xlane.xlu1 %5846 }
0x3e4a   :  { %v5850_v54 = vadd.f32 1e-12, %v5848_v17  ;;  %v5849_v55 = vmul.f32 0.03125, %v5847_v53 }
0x3e4c   :  { %8447 = vrsqrt.f32 %v5850_v54  ;;  %v5851_v36 = vadd.f32 1e-12, %v5849_v55 }
0x3e4d   :  { %v2146_v26 = vpop.xlane.xlu1 %2145 }
0x3e4e   :  { %8449 = vrsqrt.f32 %v5851_v36  ;;  %v2150_v30 = vmul.f32 0.03125, %v2146_v26  ;;  %v6980_v26 = vld [vmem:[%s10324_s11 + $0x58] ss:$0 sm:$0xff] }
0x3e50   :  { %v2152_v61 = vsub.f32 %v10177_v19, %v2150_v30 }
0x3e56   :  { %v8448_v11 = vpop.eup %8447 }
0x3e57   :  { %v5854_v49 = vmul.f32 %v8448_v11, %v5838_v15  ;;  %v2154_v11 = vmul.f32 %v2152_v61, %v2152_v61 }
0x3e58   :  { %v8450_v58 = vpop.eup %8449 }
0x3e59   :  { %v5860_v34 = vmul.f32 %v6941_v13, %v5854_v49  ;;  %v5855_v37 = vmul.f32 %v8450_v58, %v5839_v4  ;;  %v2149_v4 = vpop.xlane.xlu0 %2148  ;;  %v2156_v19 = vsel %vm236_vm1, %v2154_v11, 0.0 }
0x3e5a   :  { %v2151_v25 = vmul.f32 0.03125, %v2149_v4 }
0x3e5b   :  { %v5861_v59 = vmul.f32 %v6941_v13, %v5855_v37  ;;  %v10198_v46 = vadd.f32 %v6942_v48, %v5860_v34  ;;  %v8222_v34 = vld [vmem:[%s10325_s12 + $0x8] sm:$0xff]  }
0x3e5c   :  { %v2153_v21 = vsub.f32 %v10173_v33, %v2151_v25  ;;  %v8221_v33 = vld [vmem:[%s10325_s12] sm:$0xff]   ;;  %v6981_v25 = vld [vmem:[%s10324_s11 + $0x59] ss:$0 sm:$0xff] }
0x3e5d   :  { %v10200_v60 = vadd.f32 %v6942_v48, %v5861_v59 }
0x3e5e   :  { %v2155_v49 = vmul.f32 %v2153_v21, %v2153_v21 }
0x3e5f   :  { %v5868_v28 = vpack.c.bf16 %v10200_v60, %v10198_v46 }
0x3e60   :  { %v2159_v58 = vsel %vm236_vm1, %v2155_v49, 0.0 }
0x3e61   :  { %8008 = vmatmul.mubr.msk.bf16.vlgmr.msra.gmra.mrb[188].mxu1 %vm236_vm1, %v5868_v28 }
0x3e62   :  { %8035 = vmatprep.mubr.msk.bf16.mxu1 %vm8487_vm0, %v8486_v1  ;;  %8032 = vmatpush3.bf16.msra.mxu1 %v8221_v33 }
0x3e63   :  { %8033 = vmatprep.subr.bf16.mxu1 %v8486_v1 }
0x3e66   :  { %8034 = vmatpush3.bf16.msra.mxu1 %v8222_v34 }
0x3e67   :  { %8039 = vmatprep.subr.bf16.mxu1 %v8486_v1 }
0x3f34   :  { %v5928_v10 = vpop.f32.mrb[188].mxu1 }
0x3f35   :  { %v5929_v56 = vadd.f32 %v6948_v50, %v5928_v10  ;;  %v8009_v62 = vpop.f32.mrb[189].mxu1 }
0x3f36   :  { %v5931_v3 = vpop.f32.mrb[190].mxu1 }
0x3f37   :  { %v5935_v2 = vmul.f32 %v5929_v56, %v5929_v56  ;;  %v5932_v6 = vadd.f32 %v6948_v50, %v5931_v3  ;;  %v8010_v8 = vpop.f32.mrb[191].mxu1 }
0x3f39   :  { %v5937_v14 = vmul.f32 %v5935_v2, %v5929_v56  ;;  %v5936_v24 = vmul.f32 %v5932_v6, %v5932_v6  ;;  %v6538_v2 = vld [vmem:[%s10319_s6 + $0x18] ss:$0 sm:$0xff] }
0x3f3b   :  { %v5939_v27 = vmul.f32 0.044715, %v5937_v14  ;;  %v5938_v12 = vmul.f32 %v5936_v24, %v5932_v6  ;;  %v6539_v24 = vld [vmem:[%s10319_s6 + $0x19] ss:$0 sm:$0xff] }
0x3f3d   :  { %v5941_v29 = vadd.f32 %v5939_v27, %v5929_v56  ;;  %v5940_v31 = vmul.f32 0.044715, %v5938_v12 }
0x3f3f   :  { %v5943_v32 = vmul.f32 0.7978846, %v5941_v29  ;;  %v5942_v23 = vadd.f32 %v5940_v31, %v5932_v6 }
0x3f41   :  { %8451 = vtanh.f32 %v5943_v32  ;;  %v5944_v38 = vmul.f32 0.7978846, %v5942_v23  ;;  %v8223_v23 = vld [vmem:[%s10325_s12 + $0x10] sm:$0xff]  }
0x3f43   :  { %8453 = vtanh.f32 %v5944_v38  ;;  %v8224_v38 = vld [vmem:[%s10325_s12 + $0x18] sm:$0xff]  }
0x3f4b   :  { %v8452_v16 = vpop.eup %8451 }
0x3f4c   :  { %v5947_v35 = vadd.f32 1.0, %v8452_v16 }
0x3f4d   :  { %v8454_v40 = vpop.eup %8453 }
0x3f4e   :  { %v5949_v18 = vmul.f32 0.5, %v5947_v35  ;;  %v5948_v42 = vadd.f32 1.0, %v8454_v40 }
0x3f50   :  { %v5950_v41 = vmul.f32 0.5, %v5948_v42  ;;  %v5951_v43 = vmul.f32 %v5949_v18, %v5929_v56 }
0x3f52   :  { %v5952_v15 = vmul.f32 %v5950_v41, %v5932_v6 }
0x3f54   :  { %v5953_v47 = vpack.c.bf16 %v5952_v15, %v5951_v43 }
0x3f56   :  { %8028 = vmatmul.mubr.bf16.vlgmr.msra.gmra.mrb[200].mxu0 %v5953_v47 }
0x4029   :  { %v6057_v20 = vpop.f32.mrb[200].mxu0 }
0x402a   :  { %v6058_v57 = vadd.f32 %v6969_v51, %v6057_v20  ;;  %v8029_v39 = vpop.f32.mrb[201].mxu0 }
0x402b   :  { %v6060_v22 = vpop.f32.mrb[202].mxu0 }
0x402c   :  { %v6064_v17 = vadd.f32 %v6058_v57, %v10198_v46  ;;  %v6061_v53 = vadd.f32 %v6969_v51, %v6060_v22  ;;  %v8030_v54 = vpop.f32.mrb[203].mxu0 }
0x402e   :  { %v6065_v55 = vadd.f32 %v6061_v53, %v10200_v60  ;;  %v6068_v36 = vsel %vm236_vm1, %v6064_v17, 0.0 }
0x402f   :  { %6069 = vadd.xlane.f32.xlu1 %v6068_v36  ;;  %v8226_v36 = vld [vmem:[%s10325_s12 + $0x28] sm:$0xff]  }
0x4030   :  { %v6071_v13 = vsel %vm236_vm1, %v6065_v55, 0.0 }
0x4031   :  { %6072 = vadd.xlane.f32.xlu0 %v6071_v13  ;;  %v6988_v13 = vld [vmem:[%s10326_s13 + $0x2] ss:$0 sm:$0xff] }
0x4033   :  { %2157 = vadd.xlane.f32.xlu1 %v2156_v19 }
0x4035   :  { %2160 = vadd.xlane.f32.xlu0 %v2159_v58 }
0x40bc   :  { %v6070_v37 = vpop.xlane.xlu1 %6069 }
0x40bd   :  { %v6074_v48 = vmul.f32 0.03125, %v6070_v37 }
0x40be   :  { %v6073_v59 = vpop.xlane.xlu0 %6072 }
0x40bf   :  { %v6076_v46 = vsub.f32 %v6064_v17, %v6074_v48  ;;  %v6075_v60 = vmul.f32 0.03125, %v6073_v59 }
0x40c0   :  { %v2158_v28 = vpop.xlane.xlu1 %2157 }
0x40c1   :  { %v6077_v63 = vsub.f32 %v6065_v55, %v6075_v60  ;;  %v2162_v44 = vmul.f32 0.03125, %v2158_v28  ;;  %v6078_v45 = vmul.f32 %v6076_v46, %v6076_v46  ;;  %v8225_v55 = vld [vmem:[%s10325_s12 + $0x20] sm:$0xff]   ;;  %s6313_s12 = scalar_lea.vmem [#allocation2], %s6312_s24 }
0x40c2   :  { %v2161_v52 = vpop.xlane.xlu0 %2160 }
0x40c3   :  { %v2164_v0 = vadd.f32 1e-12, %v2162_v44  ;;  %v2163_v5 = vmul.f32 0.03125, %v2161_v52  ;;  %v6080_v7 = vsel %vm236_vm1, %v6078_v45, 0.0  ;;  %v6079_v9 = vmul.f32 %v6077_v63, %v6077_v63 }
0x40c4   :  { %6081 = vadd.xlane.f32.xlu1 %v6080_v7 }
0x40c5   :  { %8455 = vrsqrt.f32 %v2164_v0  ;;  %v2165_v50 = vadd.f32 1e-12, %v2163_v5  ;;  %v6083_v10 = vsel %vm236_vm1, %v6079_v9, 0.0  ;;  %v6989_v5 = vld [vmem:[%s10326_s13 + $0x3] ss:$0 sm:$0xff] }
0x40c6   :  { %6084 = vadd.xlane.f32.xlu0 %v6083_v10 }
0x40c7   :  { %8457 = vrsqrt.f32 %v2165_v50 }
0x40cf   :  { %v8456_v56 = vpop.eup %8455 }
0x40d0   :  { %v2168_v62 = vmul.f32 %v8456_v56, %v2152_v61 }
0x40d1   :  { %v8458_v3 = vpop.eup %8457 }
0x40d2   :  { %v2169_v6 = vmul.f32 %v8458_v3, %v2153_v21  ;;  %v2174_v8 = vmul.f32 %v6538_v2, %v2168_v62 }
0x40d4   :  { %v2175_v14 = vmul.f32 %v6538_v2, %v2169_v6  ;;  %v2180_v12 = vadd.f32 %v6539_v24, %v2174_v8 }
0x40d6   :  { %v2181_v27 = vadd.f32 %v6539_v24, %v2175_v14 }
0x40d8   :  { %v6107_v29 = vrot.slane %v2181_v27, 7 }
0x40da   :  { %v6110_v31 = vsel %vm6109_vm4, %v2180_v12, %v6107_v29 }
0x40db   :  { %v6115_v32 = vpack.c.bf16 %v6110_v31, %v6110_v31 }
0x40dd   :  { %8036 = vmatmul.mubr.msk.bf16.vlgmr.msra.gmra.mrb[192].mxu1 %vm236_vm1, %v6115_v32 }
0x40de   :  { %8043 = vmatprep.mubr.msk.bf16.mxu1 %vm8487_vm0, %v8486_v1  ;;  %8040 = vmatpush3.bf16.msra.mxu1 %v8223_v23 }
0x40df   :  { %8041 = vmatprep.subr.bf16.mxu1 %v8486_v1 }
0x40e2   :  { %8042 = vmatpush3.bf16.msra.mxu1 %v8224_v38 }
0x40e3   :  { %8047 = vmatprep.subr.bf16.mxu1 %v8486_v1 }
0x4151   :  { %v6082_v16 = vpop.xlane.xlu1 %6081 }
0x4152   :  { %v6086_v35 = vmul.f32 0.03125, %v6082_v16 }
0x4153   :  { %v6085_v40 = vpop.xlane.xlu0 %6084 }
0x4154   :  { %v6088_v18 = vadd.f32 1e-12, %v6086_v35  ;;  %v6087_v42 = vmul.f32 0.03125, %v6085_v40 }
0x4156   :  { %8459 = vrsqrt.f32 %v6088_v18  ;;  %v6089_v41 = vadd.f32 1e-12, %v6087_v42 }
0x4158   :  { %8461 = vrsqrt.f32 %v6089_v41 }
0x4160   :  { %v8460_v43 = vpop.eup %8459 }
0x4161   :  { %v6092_v15 = vmul.f32 %v8460_v43, %v6076_v46 }
0x4162   :  { %v8462_v47 = vpop.eup %8461 }
0x4163   :  { %v6093_v4 = vmul.f32 %v8462_v47, %v6077_v63  ;;  %v6098_v30 = vmul.f32 %v6980_v26, %v6092_v15 }
0x4165   :  { %v6099_v51 = vmul.f32 %v6980_v26, %v6093_v4  ;;  %v6104_v61 = vadd.f32 %v6981_v25, %v6098_v30 }
0x4167   :  { %v6105_v20 = vadd.f32 %v6981_v25, %v6099_v51 }
0x4169   :  { %v6112_v57 = vrot.slane %v6105_v20, 7 }
0x416b   :  { %v6114_v39 = vsel %vm6109_vm4, %v6104_v61, %v6112_v57 }
0x416c   :  { %v6175_v22 = vpack.c.bf16 %v6114_v39, %v6114_v39 }
0x416e   :  { %8044 = vmatmul.mubr.msk.bf16.vlgmr.msra.gmra.mrb[196].mxu1 %vm236_vm1, %v6175_v22 }
0x416f   :  { %8051 = vmatprep.mubr.msk.bf16.mxu1 %vm8487_vm0, %v8486_v1  ;;  %8048 = vmatpush3.bf16.msra.mxu1 %v8225_v55 }
0x4170   :  { %8049 = vmatprep.subr.bf16.mxu1 %v8486_v1 }
0x4173   :  { %8050 = vmatpush3.bf16.msra.mxu1 %v8226_v36 }
0x4174   :  { %8055 = vmatprep.subr.bf16.mxu1 %v8486_v1 }
0x41b0   :  { %v6169_v21 = vpop.f32.mrb[192].mxu1 }
0x41b1   :  { %v8037_v17 = vpop.f32.mrb[193].mxu1 }
0x41b2   :  { %v6172_v53 = vpop.f32.mrb[194].mxu1 }
0x41b3   :  { %v8038_v54 = vpop.f32.mrb[195].mxu1 }
0x4241   :  { %v6229_v11 = vpop.f32.mrb[196].mxu1 }
0x4242   :  { %v6241_v49 = vadd.f32 %v6229_v11, %v6169_v21  ;;  %6308 = vst.msk [vmem:[#allocation2] sm:$0x1] %vm6307_vm5, %v6229_v11  ;;  %v8045_v19 = vpop.f32.mrb[197].mxu1 }
0x4243   :  { %6311 = vst.msk [vmem:[#allocation2] sm:$0x2] %vm6310_vm6, %v6229_v11  ;;  %v6232_v58 = vpop.f32.mrb[198].mxu1 }
0x4244   :  { %v6246_v33 = vadd.f32 %v6988_v13, %v6241_v49  ;;  %v8046_v34 = vpop.f32.mrb[199].mxu1 }
0x4246   :  { %v6247_v37 = vpack.c.bf16 %v6246_v33, %v6246_v33 }
0x4248   :  { %8052 = vmatmul.mubr.msk.bf16.vlgmr.msra.gmra.mrb[200].mxu1 %vm236_vm1, %v6247_v37 }
0x4249   :  { %8056 = vmatpush3.bf16.msra.mxu1 %v8225_v55  ;;  %8059 = vmatprep.mubr.msk.bf16.mxu1 %vm8487_vm0, %v8486_v1 }
0x424a   :  { %v6314_v48 = vld [vmem:[%s6313_s12] sm:$0x1]  ;;  %8057 = vmatprep.subr.bf16.mxu1 %v8486_v1 }
0x424b   :  { %v6994_v59 = vld [vmem:[%s6316_s28] ss:$0 sm:$0xff] }
0x424c   :  { %v6324_v46 = vsel %vm6109_vm4, %v6314_v48, %v6994_v59 }
0x424d   :  { %v6325_v60 = vadd.f32 %v6324_v46, %v6169_v21  ;;  %8058 = vmatpush3.bf16.msra.mxu1 %v8226_v36 }
0x424f   :  { %v6326_v28 = vadd.f32 %v6988_v13, %v6325_v60 }
0x4251   :  { %v6327_v63 = vpack.c.bf16 %v6326_v28, %v6326_v28 }
0x4253   :  { %8060 = vmatmul.mubr.msk.bf16.vlgmr.msra.gmra.mrb[204].mxu1 %vm236_vm1, %v6327_v63 }
0x431b   :  { %v6301_v44 = vpop.f32.mrb[200].mxu1 }
0x431c   :  { %v8053_v45 = vpop.f32.mrb[201].mxu1  ;;  %v6302_v1 = vadd.f32 %v6989_v5, %v6301_v44 }
0x431d   :  { %v6304_v52 = vpop.f32.mrb[202].mxu1 }
0x431e   :  { %v8054_v0 = vpop.f32.mrb[203].mxu1 }
0x4326   :  { %v6365_v7 = vpop.f32.mrb[204].mxu1 }
0x4327   :  { %v6366_v9 = vadd.f32 %v6989_v5, %v6365_v7  ;;  %v8061_v50 = vpop.f32.mrb[205].mxu1 }
0x4328   :  { %v6368_v10 = vpop.f32.mrb[206].mxu1 }
0x4329   :  { %v6372_v56 = vrot.slane %v6366_v9, 6  ;;  %v8062_v62 = vpop.f32.mrb[207].mxu1 }
0x432b   :  { %v6375_v3 = vsel %vm6374_vm7, %v6302_v1, %v6372_v56 }
0x432c   :  { %6377 = vst.msk [vmem:[%s10327_s14] sm:$0xf] %vm6376_vm8, %v6375_v3 }
0x432d   :  { %6382 = vsyncpa [#allocation4], 1 }

</bundles_post_ra>
